<compile_context>
chip_gen: v7x
topology: tpu7x:2x2x1
jax: 0.10.0
libtpu: 0.0.40
codegen_flags: <defaults>
</compile_context>

<pallas_src>
import jax
import jax.numpy as jnp
from jax.experimental import pallas as pl
from jax.experimental.pallas import tpu as pltpu

_BN_EPS = 1e-5
_LANE = 128


# ---------------------------------------------------------------------------
# Kernel A: Conv1 (3x3, stride 1, pad 1 -- input pre-padded on host) + BN + ReLU
# ---------------------------------------------------------------------------
def _conv1_kernel(xp_ref, w1_ref, b1_ref, h1_ref):
    # xp_ref: (TB, H+2, W+2, Cin)   w1_ref: (9, Cin, 16)   b1_ref: (1, 16)
    # h1_ref: (TB, H, W, 16)
    tb = xp_ref.shape[0]
    cin = xp_ref.shape[3]
    ho, wo, cout = h1_ref.shape[1], h1_ref.shape[2], h1_ref.shape[3]

    acc = jnp.zeros((tb * ho * wo, cout), jnp.float32)
    for ky in range(3):
        for kx in range(3):
            patch = xp_ref[:, ky:ky + ho, kx:kx + wo, :]        # (TB, H, W, Cin)
            patch = patch.reshape(tb * ho * wo, cin)
            acc = acc + jnp.dot(patch, w1_ref[ky * 3 + kx],
                                preferred_element_type=jnp.float32)
    acc = jnp.maximum(acc + b1_ref[...], 0.0)
    h1_ref[...] = acc.reshape(tb, ho, wo, cout)


# ---------------------------------------------------------------------------
# Kernel B: Conv2 + Conv3 + action head + softmax (fused, one batch tile)
# ---------------------------------------------------------------------------
def _tail_kernel(x2_ref, w2_ref, b2_ref, w3_ref, b3_ref, wh_ref, bh_ref, probs_ref):
    # x2_ref: (TB, H2, W2, 16taps*16ch)  -- host-built im2col of the stride-2 conv
    # w2_ref: (256, 16)  b2_ref: (1, 16)
    # w3_ref: (9, 16, 16) b3_ref: (1, 16)
    # wh_ref: (H3*W3, 16, Apad)  bh_ref: (1, Apad)   probs_ref: (TB, Apad)
    tb, h2h, h2w = x2_ref.shape[0], x2_ref.shape[1], x2_ref.shape[2]
    c = w2_ref.shape[1]
    a_pad = probs_ref.shape[1]
    h3h, h3w = h2h - 2, h2w - 2

    # ---- Conv2 (4x4, stride 2, pad 1): a single matmul over the 16 taps ----
    x2 = x2_ref[...].reshape(tb * h2h * h2w, w2_ref.shape[0])
    h2 = jnp.dot(x2, w2_ref[...], preferred_element_type=jnp.float32) + b2_ref[...]
    h2 = jnp.maximum(h2, 0.0).reshape(tb, h2h, h2w, c)

    # ---- Conv3 (3x3, stride 1, valid): per-tap shifted matmuls ----
    acc3 = jnp.zeros((tb, h3h, h3w, c), jnp.float32)
    for ky in range(3):
        for kx in range(3):
            rows = h2[:, ky:ky + h3h, :, :].reshape(tb * h3h * h2w, c)
            prod = jnp.dot(rows, w3_ref[ky * 3 + kx],
                           preferred_element_type=jnp.float32)
            prod = prod.reshape(tb, h3h, h2w, c)
            acc3 = acc3 + prod[:, :, kx:kx + h3w, :]
    h3 = jnp.maximum(acc3 + b3_ref[...], 0.0)                   # (TB, H3, W3, 16)

    # ---- Action head (flatten + Linear); temperature is folded into wh/bh ----
    logits = jnp.zeros((tb, a_pad), jnp.float32) + bh_ref[...]
    for hy in range(h3h):
        for hx in range(h3w):
            logits = logits + jnp.dot(h3[:, hy, hx, :], wh_ref[hy * h3w + hx],
                                      preferred_element_type=jnp.float32)

    # ---- numerically-stable softmax (padded lanes carry -1e30 bias -> prob 0) ----
    m = jnp.max(logits, axis=-1, keepdims=True)
    e = jnp.exp(logits - m)
    denom = jnp.sum(e, axis=-1, keepdims=True)
    probs_ref[...] = e * pl.reciprocal(denom, approx=True)


# ---------------------------------------------------------------------------
# Host-side parameter preparation (BN folding, temperature folding, layouts)
# ---------------------------------------------------------------------------
def _fold_bn(w_oihw, b, gamma, beta, mean, var, eps=_BN_EPS):
    scale = gamma / jnp.sqrt(var + eps)                    # (Cout,)
    return w_oihw * scale[:, None, None, None], (b - mean) * scale + beta


def _tap_major(w_oihw):
    # (Cout, Cin, kh, kw) -> (kh*kw, Cin, Cout)
    cout, cin, kh, kw = w_oihw.shape
    return jnp.transpose(w_oihw, (2, 3, 1, 0)).reshape(kh * kw, cin, cout)


def prepare_params(p, temperature, feat_hw):
    """Fold eval-mode BN + temperature into kernel-layout weights."""
    h3sp, w3sp = feat_hw
    w1, b1 = _fold_bn(p["conv1_w"], p["conv1_b"],
                      p["bn1_g"], p["bn1_b"], p["bn1_m"], p["bn1_v"])
    w2, b2 = _fold_bn(p["conv2_w"], p["conv2_b"],
                      p["bn2_g"], p["bn2_b"], p["bn2_m"], p["bn2_v"])
    w3, b3 = _fold_bn(p["conv3_w"], p["conv3_b"],
                      p["bn3_g"], p["bn3_b"], p["bn3_m"], p["bn3_v"])

    num_actions, feat = p["head_w"].shape
    c3 = w3.shape[0]
    assert feat == c3 * h3sp * w3sp, "head in_features does not match feature map"
    a_pad = ((num_actions + _LANE - 1) // _LANE) * _LANE

    # PyTorch flattens NCHW: feature index = c*(H3*W3) + h*W3 + w.
    wh = p["head_w"].reshape(num_actions, c3, h3sp, w3sp)
    wh = jnp.transpose(wh, (2, 3, 1, 0)).reshape(h3sp * w3sp, c3, num_actions)
    wh = wh / temperature
    bh = p["head_b"] / temperature
    wh_p = jnp.zeros((h3sp * w3sp, c3, a_pad), jnp.float32).at[:, :, :num_actions].set(wh)
    bh_p = jnp.full((1, a_pad), -1e30, jnp.float32).at[0, :num_actions].set(bh)

    return dict(
        w1=_tap_major(w1), b1=b1.reshape(1, -1),
        w2=_tap_major(w2).reshape(-1, w2.shape[0]), b2=b2.reshape(1, -1),
        w3=_tap_major(w3), b3=b3.reshape(1, -1),
        wh=wh_p, bh=bh_p, num_actions=num_actions,
    )


# ---------------------------------------------------------------------------
# Forward wrapper
# ---------------------------------------------------------------------------
def crawler_policy_forward(x_nchw, kp, tile_b=8):
    """x_nchw: (B, Cin, H, W) float32  ->  probs: (B, num_actions) float32."""
    B, cin, H, W = x_nchw.shape
    a_pad = kp["bh"].shape[1]
    c1 = kp["w1"].shape[2]
    h2h, h2w = H // 2, W // 2            # conv2 output spatial (k4, s2, p1)

    grid_b = pl.cdiv(B, tile_b)
    Bp = grid_b * tile_b

    x = jnp.transpose(x_nchw, (0, 2, 3, 1)).astype(jnp.float32)          # NHWC
    if Bp != B:
        x = jnp.pad(x, ((0, Bp - B), (0, 0), (0, 0), (0, 0)))
    xp = jnp.pad(x, ((0, 0), (1, 1), (1, 1), (0, 0)))                    # conv1 pad=1

    cparams = pltpu.CompilerParams(dimension_semantics=("parallel",))

    # ---- Kernel A: conv1 + BN + ReLU --------------------------------------
    h1 = pl.pallas_call(
        _conv1_kernel,
        out_shape=jax.ShapeDtypeStruct((Bp, H, W, c1), jnp.float32),
        grid=(grid_b,),
        in_specs=[
            pl.BlockSpec((tile_b,) + xp.shape[1:], lambda i: (i, 0, 0, 0)),
            pl.BlockSpec(kp["w1"].shape, lambda i: (0, 0, 0)),
            pl.BlockSpec(kp["b1"].shape, lambda i: (0, 0)),
        ],
        out_specs=pl.BlockSpec((tile_b, H, W, c1), lambda i: (i, 0, 0, 0)),
        compiler_params=cparams,
    )(xp, kp["w1"], kp["b1"])

    # ---- Host: zero-pad + stride-2 space-to-depth (im2col) for conv2 ------
    # TODO(synk): this strided window gather stays in plain JAX; the equivalent
    # in-kernel strided VMEM reads are not worth the lowering risk at these sizes.
    h1p = jnp.pad(h1, ((0, 0), (1, 1), (1, 1), (0, 0)))                  # conv2 pad=1
    taps = [h1p[:, ky:ky + 2 * h2h:2, kx:kx + 2 * h2w:2, :]
            for ky in range(4) for kx in range(4)]
    x2 = jnp.concatenate(taps, axis=-1)                                  # (Bp, H2, W2, 256)

    # ---- Kernel B: conv2 + conv3 + head + softmax (fused) ------------------
    probs = pl.pallas_call(
        _tail_kernel,
        out_shape=jax.ShapeDtypeStruct((Bp, a_pad), jnp.float32),
        grid=(grid_b,),
        in_specs=[
            pl.BlockSpec((tile_b,) + x2.shape[1:], lambda i: (i, 0, 0, 0)),
            pl.BlockSpec(kp["w2"].shape, lambda i: (0, 0)),
            pl.BlockSpec(kp["b2"].shape, lambda i: (0, 0)),
            pl.BlockSpec(kp["w3"].shape, lambda i: (0, 0, 0)),
            pl.BlockSpec(kp["b3"].shape, lambda i: (0, 0)),
            pl.BlockSpec(kp["wh"].shape, lambda i: (0, 0, 0)),
            pl.BlockSpec(kp["bh"].shape, lambda i: (0, 0)),
        ],
        out_specs=pl.BlockSpec((tile_b, a_pad), lambda i: (i, 0)),
        compiler_params=cparams,
    )(x2, kp["w2"], kp["b2"], kp["w3"], kp["b3"], kp["wh"], kp["bh"])

    return probs[:B, :kp["num_actions"]]


# ---------------------------------------------------------------------------
# Pure-JAX reference (PyTorch layout / NCHW) and synthetic parameter init
# ---------------------------------------------------------------------------
def _conv_bn_relu_ref(x, w, b, gamma, beta, mean, var, stride, pad):
    y = jax.lax.conv_general_dilated(
        x, w, window_strides=(stride, stride),
        padding=((pad, pad), (pad, pad)),
        dimension_numbers=("NCHW", "OIHW", "NCHW"))
    y = y + b[None, :, None, None]
    scale = (gamma / jnp.sqrt(var + _BN_EPS))[None, :, None, None]
    y = (y - mean[None, :, None, None]) * scale + beta[None, :, None, None]
    return jnp.maximum(y, 0.0)


def reference_forward(x_nchw, p, temperature):
    x = _conv_bn_relu_ref(x_nchw, p["conv1_w"], p["conv1_b"],
                          p["bn1_g"], p["bn1_b"], p["bn1_m"], p["bn1_v"], 1, 1)
    x = _conv_bn_relu_ref(x, p["conv2_w"], p["conv2_b"],
                          p["bn2_g"], p["bn2_b"], p["bn2_m"], p["bn2_v"], 2, 1)
    x = _conv_bn_relu_ref(x, p["conv3_w"], p["conv3_b"],
                          p["bn3_g"], p["bn3_b"], p["bn3_m"], p["bn3_v"], 1, 0)
    x = x.reshape(x.shape[0], -1)
    logits = x @ p["head_w"].T + p["head_b"]
    return jax.nn.softmax(logits / temperature, axis=-1)


def init_crawler_params(key, input_channels, num_actions, head_in=384):
    def conv(k, cout, cin, kh, kw):
        kw_, kb_ = jax.random.split(k)
        bound = (cin * kh * kw) ** -0.5
        return (jax.random.uniform(kw_, (cout, cin, kh, kw), jnp.float32, -bound, bound),
                jax.random.uniform(kb_, (cout,), jnp.float32, -bound, bound))

    def bn(k, c):
        k1, k2, k3, k4 = jax.random.split(k, 4)
        return (jax.random.uniform(k1, (c,), jnp.float32, 0.8, 1.2),   # gamma
                jax.random.uniform(k2, (c,), jnp.float32, -0.1, 0.1),  # beta
                0.1 * jax.random.normal(k3, (c,), jnp.float32),        # running mean
                jax.random.uniform(k4, (c,), jnp.float32, 0.5, 1.5))   # running var

    ks = jax.random.split(key, 7)
    p = {}
    p["conv1_w"], p["conv1_b"] = conv(ks[0], 16, input_channels, 3, 3)
    p["bn1_g"], p["bn1_b"], p["bn1_m"], p["bn1_v"] = bn(ks[1], 16)
    p["conv2_w"], p["conv2_b"] = conv(ks[2], 16, 16, 4, 4)
    p["bn2_g"], p["bn2_b"], p["bn2_m"], p["bn2_v"] = bn(ks[3], 16)
    p["conv3_w"], p["conv3_b"] = conv(ks[4], 16, 16, 3, 3)
    p["bn3_g"], p["bn3_b"], p["bn3_m"], p["bn3_v"] = bn(ks[5], 16)
    kw_, kb_ = jax.random.split(ks[6])
    bound = head_in ** -0.5
    p["head_w"] = jax.random.uniform(kw_, (num_actions, head_in), jnp.float32, -bound, bound)
    p["head_b"] = jax.random.uniform(kb_, (num_actions,), jnp.float32, -bound, bound)
    return p


if __name__ == "__main__":
    key = jax.random.PRNGKey(0)
    input_channels = 4
    num_actions = 8
    H, W = 12, 16          # 16 * (H//2 - 2) * (W//2 - 2) = 384 = action-head in_features
    batch = 12
    temperature = 0.7

    k_x, k_p = jax.random.split(key)
    x = jax.random.normal(k_x, (batch, input_channels, H, W), dtype=jnp.float32)
    params = init_crawler_params(k_p, input_channels, num_actions)
    kparams = prepare_params(params, temperature, feat_hw=(H // 2 - 2, W // 2 - 2))

    probs = crawler_policy_forward(x, kparams, tile_b=8)
    probs = jax.block_until_ready(probs)

    ref = reference_forward(x, params, temperature)
    assert probs.shape == (batch, num_actions)
    # Tolerances account for pl.reciprocal(approx=True) in the softmax (~1e-4).
    assert jnp.allclose(jnp.sum(probs, axis=-1), 1.0, atol=5e-3), "row sums off"
    assert jnp.allclose(probs, ref, atol=5e-3, rtol=5e-3), (
        f"max abs err {float(jnp.max(jnp.abs(probs - ref)))}")

    print("KERNEL_OK")
</pallas_src>

<mosaic_0001>
module attributes {stable_mosaic.version = 11 : i64} {
  func.func @_conv1_kernel(%arg0: i32, %arg1: memref<8x14x18x4xf32, #tpu.memory_space<vmem>>, %arg2: memref<9x4x16xf32, #tpu.memory_space<vmem>>, %arg3: memref<1x16xf32, #tpu.memory_space<vmem>>, %arg4: memref<8x12x16x16xf32, #tpu.memory_space<vmem>>) attributes {dimension_semantics = [#tpu.dimension_semantics<parallel>], iteration_bounds = array<i64: 2>, scalar_prefetch = 0 : i64, scratch_operands = 0 : i64, tpu.core_type = #tpu.core_type<tc>, window_params = [{transform_indices = @transform_0, window_bounds = array<i64: 8, 14, 18, 4>}, {pipeline_mode = #tpu.pipeline_mode<synchronous>, transform_indices = @transform_1, window_bounds = array<i64: 9, 4, 16>}, {pipeline_mode = #tpu.pipeline_mode<synchronous>, transform_indices = @transform_2, window_bounds = array<i64: 1, 16>}, {transform_indices = @transform_3, window_bounds = array<i64: 8, 12, 16, 16>}]} {
    %cst = arith.constant 0.000000e+00 : f32
    %0 = vector.broadcast %cst : f32 to vector<1536x16xf32>
    %c0 = arith.constant 0 : index
    %c0_0 = arith.constant 0 : index
    %c0_1 = arith.constant 0 : index
    %c0_2 = arith.constant 0 : index
    %1 = vector.load %arg1[%c0, %c0_0, %c0_1, %c0_2] : memref<8x14x18x4xf32, #tpu.memory_space<vmem>>, vector<8x12x16x4xf32>
    %2 = vector.shape_cast %1 : vector<8x12x16x4xf32> to vector<1536x4xf32>
    %c0_3 = arith.constant 0 : index
    %c0_4 = arith.constant 0 : index
    %c0_5 = arith.constant 0 : index
    %3 = vector.load %arg2[%c0_3, %c0_4, %c0_5] : memref<9x4x16xf32, #tpu.memory_space<vmem>>, vector<1x4x16xf32>
    %4 = vector.shape_cast %3 : vector<1x4x16xf32> to vector<4x16xf32>
    %cst_6 = arith.constant dense<0.000000e+00> : vector<1536x16xf32>
    %5 = tpu.matmul %2, %4, %cst_6 {dimension_numbers = #tpu.dot_dimension_numbers<[1], [0], [0], [1], [0, 0, 1, 1], [], []>} : vector<1536x4xf32>, vector<4x16xf32>, vector<1536x16xf32> -> vector<1536x16xf32>
    %6 = arith.addf %0, %5 : vector<1536x16xf32>
    %c0_7 = arith.constant 0 : index
    %c0_8 = arith.constant 0 : index
    %c1 = arith.constant 1 : index
    %c0_9 = arith.constant 0 : index
    %7 = vector.load %arg1[%c0_7, %c0_8, %c1, %c0_9] : memref<8x14x18x4xf32, #tpu.memory_space<vmem>>, vector<8x12x16x4xf32>
    %8 = vector.shape_cast %7 : vector<8x12x16x4xf32> to vector<1536x4xf32>
    %c1_10 = arith.constant 1 : index
    %c0_11 = arith.constant 0 : index
    %c0_12 = arith.constant 0 : index
    %9 = vector.load %arg2[%c1_10, %c0_11, %c0_12] : memref<9x4x16xf32, #tpu.memory_space<vmem>>, vector<1x4x16xf32>
    %10 = vector.shape_cast %9 : vector<1x4x16xf32> to vector<4x16xf32>
    %cst_13 = arith.constant dense<0.000000e+00> : vector<1536x16xf32>
    %11 = tpu.matmul %8, %10, %cst_13 {dimension_numbers = #tpu.dot_dimension_numbers<[1], [0], [0], [1], [0, 0, 1, 1], [], []>} : vector<1536x4xf32>, vector<4x16xf32>, vector<1536x16xf32> -> vector<1536x16xf32>
    %12 = arith.addf %6, %11 : vector<1536x16xf32>
    %c0_14 = arith.constant 0 : index
    %c0_15 = arith.constant 0 : index
    %c2 = arith.constant 2 : index
    %c0_16 = arith.constant 0 : index
    %13 = vector.load %arg1[%c0_14, %c0_15, %c2, %c0_16] : memref<8x14x18x4xf32, #tpu.memory_space<vmem>>, vector<8x12x16x4xf32>
    %14 = vector.shape_cast %13 : vector<8x12x16x4xf32> to vector<1536x4xf32>
    %c2_17 = arith.constant 2 : index
    %c0_18 = arith.constant 0 : index
    %c0_19 = arith.constant 0 : index
    %15 = vector.load %arg2[%c2_17, %c0_18, %c0_19] : memref<9x4x16xf32, #tpu.memory_space<vmem>>, vector<1x4x16xf32>
    %16 = vector.shape_cast %15 : vector<1x4x16xf32> to vector<4x16xf32>
    %cst_20 = arith.constant dense<0.000000e+00> : vector<1536x16xf32>
    %17 = tpu.matmul %14, %16, %cst_20 {dimension_numbers = #tpu.dot_dimension_numbers<[1], [0], [0], [1], [0, 0, 1, 1], [], []>} : vector<1536x4xf32>, vector<4x16xf32>, vector<1536x16xf32> -> vector<1536x16xf32>
    %18 = arith.addf %12, %17 : vector<1536x16xf32>
    %c0_21 = arith.constant 0 : index
    %c1_22 = arith.constant 1 : index
    %c0_23 = arith.constant 0 : index
    %c0_24 = arith.constant 0 : index
    %19 = vector.load %arg1[%c0_21, %c1_22, %c0_23, %c0_24] : memref<8x14x18x4xf32, #tpu.memory_space<vmem>>, vector<8x12x16x4xf32>
    %20 = vector.shape_cast %19 : vector<8x12x16x4xf32> to vector<1536x4xf32>
    %c3 = arith.constant 3 : index
    %c0_25 = arith.constant 0 : index
    %c0_26 = arith.constant 0 : index
    %21 = vector.load %arg2[%c3, %c0_25, %c0_26] : memref<9x4x16xf32, #tpu.memory_space<vmem>>, vector<1x4x16xf32>
    %22 = vector.shape_cast %21 : vector<1x4x16xf32> to vector<4x16xf32>
    %cst_27 = arith.constant dense<0.000000e+00> : vector<1536x16xf32>
    %23 = tpu.matmul %20, %22, %cst_27 {dimension_numbers = #tpu.dot_dimension_numbers<[1], [0], [0], [1], [0, 0, 1, 1], [], []>} : vector<1536x4xf32>, vector<4x16xf32>, vector<1536x16xf32> -> vector<1536x16xf32>
    %24 = arith.addf %18, %23 : vector<1536x16xf32>
    %c0_28 = arith.constant 0 : index
    %c1_29 = arith.constant 1 : index
    %c1_30 = arith.constant 1 : index
    %c0_31 = arith.constant 0 : index
    %25 = vector.load %arg1[%c0_28, %c1_29, %c1_30, %c0_31] : memref<8x14x18x4xf32, #tpu.memory_space<vmem>>, vector<8x12x16x4xf32>
    %26 = vector.shape_cast %25 : vector<8x12x16x4xf32> to vector<1536x4xf32>
    %c4 = arith.constant 4 : index
    %c0_32 = arith.constant 0 : index
    %c0_33 = arith.constant 0 : index
    %27 = vector.load %arg2[%c4, %c0_32, %c0_33] : memref<9x4x16xf32, #tpu.memory_space<vmem>>, vector<1x4x16xf32>
    %28 = vector.shape_cast %27 : vector<1x4x16xf32> to vector<4x16xf32>
    %cst_34 = arith.constant dense<0.000000e+00> : vector<1536x16xf32>
    %29 = tpu.matmul %26, %28, %cst_34 {dimension_numbers = #tpu.dot_dimension_numbers<[1], [0], [0], [1], [0, 0, 1, 1], [], []>} : vector<1536x4xf32>, vector<4x16xf32>, vector<1536x16xf32> -> vector<1536x16xf32>
    %30 = arith.addf %24, %29 : vector<1536x16xf32>
    %c0_35 = arith.constant 0 : index
    %c1_36 = arith.constant 1 : index
    %c2_37 = arith.constant 2 : index
    %c0_38 = arith.constant 0 : index
    %31 = vector.load %arg1[%c0_35, %c1_36, %c2_37, %c0_38] : memref<8x14x18x4xf32, #tpu.memory_space<vmem>>, vector<8x12x16x4xf32>
    %32 = vector.shape_cast %31 : vector<8x12x16x4xf32> to vector<1536x4xf32>
    %c5 = arith.constant 5 : index
    %c0_39 = arith.constant 0 : index
    %c0_40 = arith.constant 0 : index
    %33 = vector.load %arg2[%c5, %c0_39, %c0_40] : memref<9x4x16xf32, #tpu.memory_space<vmem>>, vector<1x4x16xf32>
    %34 = vector.shape_cast %33 : vector<1x4x16xf32> to vector<4x16xf32>
    %cst_41 = arith.constant dense<0.000000e+00> : vector<1536x16xf32>
    %35 = tpu.matmul %32, %34, %cst_41 {dimension_numbers = #tpu.dot_dimension_numbers<[1], [0], [0], [1], [0, 0, 1, 1], [], []>} : vector<1536x4xf32>, vector<4x16xf32>, vector<1536x16xf32> -> vector<1536x16xf32>
    %36 = arith.addf %30, %35 : vector<1536x16xf32>
    %c0_42 = arith.constant 0 : index
    %c2_43 = arith.constant 2 : index
    %c0_44 = arith.constant 0 : index
    %c0_45 = arith.constant 0 : index
    %37 = vector.load %arg1[%c0_42, %c2_43, %c0_44, %c0_45] : memref<8x14x18x4xf32, #tpu.memory_space<vmem>>, vector<8x12x16x4xf32>
    %38 = vector.shape_cast %37 : vector<8x12x16x4xf32> to vector<1536x4xf32>
    %c6 = arith.constant 6 : index
    %c0_46 = arith.constant 0 : index
    %c0_47 = arith.constant 0 : index
    %39 = vector.load %arg2[%c6, %c0_46, %c0_47] : memref<9x4x16xf32, #tpu.memory_space<vmem>>, vector<1x4x16xf32>
    %40 = vector.shape_cast %39 : vector<1x4x16xf32> to vector<4x16xf32>
    %cst_48 = arith.constant dense<0.000000e+00> : vector<1536x16xf32>
    %41 = tpu.matmul %38, %40, %cst_48 {dimension_numbers = #tpu.dot_dimension_numbers<[1], [0], [0], [1], [0, 0, 1, 1], [], []>} : vector<1536x4xf32>, vector<4x16xf32>, vector<1536x16xf32> -> vector<1536x16xf32>
    %42 = arith.addf %36, %41 : vector<1536x16xf32>
    %c0_49 = arith.constant 0 : index
    %c2_50 = arith.constant 2 : index
    %c1_51 = arith.constant 1 : index
    %c0_52 = arith.constant 0 : index
    %43 = vector.load %arg1[%c0_49, %c2_50, %c1_51, %c0_52] : memref<8x14x18x4xf32, #tpu.memory_space<vmem>>, vector<8x12x16x4xf32>
    %44 = vector.shape_cast %43 : vector<8x12x16x4xf32> to vector<1536x4xf32>
    %c7 = arith.constant 7 : index
    %c0_53 = arith.constant 0 : index
    %c0_54 = arith.constant 0 : index
    %45 = vector.load %arg2[%c7, %c0_53, %c0_54] : memref<9x4x16xf32, #tpu.memory_space<vmem>>, vector<1x4x16xf32>
    %46 = vector.shape_cast %45 : vector<1x4x16xf32> to vector<4x16xf32>
    %cst_55 = arith.constant dense<0.000000e+00> : vector<1536x16xf32>
    %47 = tpu.matmul %44, %46, %cst_55 {dimension_numbers = #tpu.dot_dimension_numbers<[1], [0], [0], [1], [0, 0, 1, 1], [], []>} : vector<1536x4xf32>, vector<4x16xf32>, vector<1536x16xf32> -> vector<1536x16xf32>
    %48 = arith.addf %42, %47 : vector<1536x16xf32>
    %c0_56 = arith.constant 0 : index
    %c2_57 = arith.constant 2 : index
    %c2_58 = arith.constant 2 : index
    %c0_59 = arith.constant 0 : index
    %49 = vector.load %arg1[%c0_56, %c2_57, %c2_58, %c0_59] : memref<8x14x18x4xf32, #tpu.memory_space<vmem>>, vector<8x12x16x4xf32>
    %50 = vector.shape_cast %49 : vector<8x12x16x4xf32> to vector<1536x4xf32>
    %c8 = arith.constant 8 : index
    %c0_60 = arith.constant 0 : index
    %c0_61 = arith.constant 0 : index
    %51 = vector.load %arg2[%c8, %c0_60, %c0_61] : memref<9x4x16xf32, #tpu.memory_space<vmem>>, vector<1x4x16xf32>
    %52 = vector.shape_cast %51 : vector<1x4x16xf32> to vector<4x16xf32>
    %cst_62 = arith.constant dense<0.000000e+00> : vector<1536x16xf32>
    %53 = tpu.matmul %50, %52, %cst_62 {dimension_numbers = #tpu.dot_dimension_numbers<[1], [0], [0], [1], [0, 0, 1, 1], [], []>} : vector<1536x4xf32>, vector<4x16xf32>, vector<1536x16xf32> -> vector<1536x16xf32>
    %54 = arith.addf %48, %53 : vector<1536x16xf32>
    %c0_63 = arith.constant 0 : index
    %c0_64 = arith.constant 0 : index
    %55 = vector.load %arg3[%c0_63, %c0_64] : memref<1x16xf32, #tpu.memory_space<vmem>>, vector<1x16xf32>
    %56 = vector.broadcast %55 : vector<1x16xf32> to vector<1536x16xf32>
    %57 = arith.addf %54, %56 : vector<1536x16xf32>
    %cst_65 = arith.constant 0.000000e+00 : f32
    %58 = vector.broadcast %cst_65 : f32 to vector<1536x16xf32>
    %59 = arith.maximumf %57, %58 : vector<1536x16xf32>
    %60 = vector.shape_cast %59 : vector<1536x16xf32> to vector<8x12x16x16xf32>
    %c0_66 = arith.constant 0 : index
    %c0_67 = arith.constant 0 : index
    %c0_68 = arith.constant 0 : index
    %c0_69 = arith.constant 0 : index
    %61 = vector.load %arg4[%c0_66, %c0_67, %c0_68, %c0_69] : memref<8x12x16x16xf32, #tpu.memory_space<vmem>>, vector<8x12x16x16xf32>
    tpu.vector_store %arg4[%c0_66, %c0_67, %c0_68, %c0_69], %60 {strides = array<i32>} : memref<8x12x16x16xf32, #tpu.memory_space<vmem>>, vector<8x12x16x16xf32>,
    return
  }
  func.func @transform_0(%arg0: i32) -> (i32, i32, i32, i32) {
    %c0_i32 = arith.constant 0 : i32
    %c0_i32_0 = arith.constant 0 : i32
    %c0_i32_1 = arith.constant 0 : i32
    %c0_i32_2 = arith.constant 0 : i32
    return %arg0, %c0_i32, %c0_i32_0, %c0_i32_1 : i32, i32, i32, i32
  }
  func.func @transform_1(%arg0: i32) -> (i32, i32, i32) {
    %c0_i32 = arith.constant 0 : i32
    %c0_i32_0 = arith.constant 0 : i32
    %c0_i32_1 = arith.constant 0 : i32
    %c0_i32_2 = arith.constant 0 : i32
    return %c0_i32, %c0_i32_0, %c0_i32_1 : i32, i32, i32
  }
  func.func @transform_2(%arg0: i32) -> (i32, i32) {
    %c0_i32 = arith.constant 0 : i32
    %c0_i32_0 = arith.constant 0 : i32
    %c0_i32_1 = arith.constant 0 : i32
    return %c0_i32, %c0_i32_0 : i32, i32
  }
  func.func @transform_3(%arg0: i32) -> (i32, i32, i32, i32) {
    %c0_i32 = arith.constant 0 : i32
    %c0_i32_0 = arith.constant 0 : i32
    %c0_i32_1 = arith.constant 0 : i32
    %c0_i32_2 = arith.constant 0 : i32
    return %arg0, %c0_i32, %c0_i32_0, %c0_i32_1 : i32, i32, i32, i32
  }
}

</mosaic_0001>

<bundles_post_ra>
// kernel: tpu_custom_call.1
= control target key start
LH: loop header
LB: loop body
LE: loop exit
PB: predicated region body
PF: predicated region fallthrough
CT: control target
= control target key end

     0   :  { %8 = vsyncpa [#allocation3], 0  ;;  %s32205_s0 = inlined_call_operand.vmem [shape: f32[16,14,18,4], index: 0, kind: input, shape index: {}]   ;;  %s32206_s1 = inlined_call_operand.vmem [shape: f32[9,4,16], index: 1, kind: input, shape index: {}]   ;;  %s32207_s2 = inlined_call_operand.vmem [shape: f32[1,16], index: 2, kind: input, shape index: {}]   ;;  %s32208_s3 = inlined_call_operand.hbm [shape: f32[16,12,16,16], index: 3, kind: output, shape index: {}]  }
   0x1   :  { %10 = vsyncpa [#allocation3 + $0x1], 0  ;;  %s27294_s12 = smov 0   ;;  %s27296_s13 = smov 0  }
   0x2   :  { %s27298_s14 = smov 0   ;;  %s27300_s15 = smov 0  }
   0x3 LB: > { %s27315_s16 = sadd.s32 4294967295, %s27269_s15   ;;  %s18365_s17 = sadd.s32 4294967294, %s27269_s15   ;;  %s27269_s15 = sphi %s27300_s15, %s32438_s15   ;;  %s27265_s14 = sphi %s27298_s14, %s32437_s14   ;;  %s27261_s13 = sphi %s27296_s13, %s32436_s13   ;;  %s27257_s12 = sphi %s27294_s12, %s32435_s12  }
   0x4   : > { %s27319_s18 = sadd.s32 1, %s27269_s15   ;;  %s91_s19 = sadd.s32 1, %s27265_s14 }
   0x5   : > { %s88_s20 = ssub.s32 %s27269_s15, %s27319_s18  ;;  %p101_p0 = scmp.ne.s32.totalorder %s27265_s14, %s27261_s13 }
   0x6   : > { %p89_p1 = scmp.eq.s32.totalorder %s88_s20, 0  ;;  %p102_p2 = scmp.eq.s32.totalorder %s27315_s16, 1 }
   0x7   : > { %p107_p3 = scmp.ne.s32.totalorder %s27261_s13, %s27257_s12  ;;  %p108_p4 = scmp.eq.s32.totalorder %s18365_s17, 1 }
   0x8   : > { %s27330_s21 = scalar_select %p89_p1, %s27265_s14, %s91_s19  }
   0x9   : > { %p27332_p5 = por %p102_p2, %p101_p0  ;;  %p27336_p6 = por %p108_p4, %p107_p3 }
   0xa   : > { %p18368_p7 = scmp.ge.s32.totalorder %s27269_s15, 1  ;;  %p142_p8 = scmp.lt.s32.totalorder %s27269_s15, 3 }
   0xc   : > { %p143_p9 = pnand %p18368_p7, %p142_p8 }
   0xe   : > { %146 = sbr.rel (%p143_p9) target bundleno = 1988 (0x7c4), region = 32 }
  0x15   : > { %v18371_v0 = vld [vmem:[%s32206_s1 + $0x4] sm:$0xf]  ;;  %vm1139_vm0 = vcmask 1043456   ;;  %v19530_v1 = vld [vmem:[%s32206_s1 + $0x10] sm:$0xf]  ;;  %s18369_s28 = sshll.u32 %s27315_s16, 3 }
  0x16   : > { %23011 = vmatprep.subr.msk.mxu1 %vm1139_vm0, %v18371_v0  ;;  %24171 = vmatprep.subr.msk.mxu0 %vm1139_vm0, %v19530_v1  ;;  %p168_p10 = scmp.lt.s32.totalorder %s18369_s28, 15  ;;  %v367_v2 = vld [vmem:[%s32206_s1] sm:$0xf]  ;;  %v19916_v3 = vld [vmem:[%s32206_s1 + $0x14] sm:$0xf]  ;;  %vm562_vm1 = vcmask 31744  }
  0x17   : > { %23012 = vmatpush3.msk.msra.mxu1 %vm1139_vm0, %v18371_v0  ;;  %24172 = vmatpush3.msk.msra.mxu0 %vm1139_vm0, %v19530_v1  ;;  %v27475_v42 = vld [vmem:[%s32206_s1 + $0x18] sm:$0xf]  ;;  %vm18095_vm2 = vcmask 130048   ;;  %s27161_s24 = smul.u32 24576, %s27315_s16  ;;  %s27271_s30 = smov [#allocation2]  }
  0x18   : > { %s32440_s28 = smov (!%p168_p10, %s18369_s28), 15  ;;  %23301 = vmatprep.subr.msk.mxu1 %vm1139_vm0, %v367_v2  ;;  %24461 = vmatprep.subr.msk.mxu0 %vm1139_vm0, %v19916_v3  ;;  %s27211_s4 = sshll.u32 %s27271_s30, 4  ;;  %s27212_s4 = int_to_ptr.vmem [resolvable:$false] %s27211_s4 }
  0x19   : > { %s27160_s6 = smul.u32 336, %s32440_s28  ;;  %s32154_s28 = scalar_lea.hbm %s32208_s3, %s27161_s24 }
  0x1a   : > { %s27213_s5 = scalar_lea.vmem %s27212_s4, 49152 }
  0x1b   : > { %s27364_s9 = scalar_lea.vmem %s32205_s0, %s27160_s6  ;;  %s164_s6 = sand.u32 1, %s27261_s13  }
  0x1c   : > { %v368_v4 = vld [vmem:[%s27364_s9 + $0x1] sm:$0xff]  ;;  %v19338_v5 = vld [vmem:[%s27364_s9 + $0x19] sm:$0xff]  ;;  %v369_v6 = vld [vmem:[%s27364_s9 + $0x9] sm:$0xff]  ;;  %s27159_s7 = smul.u32 1536, %s164_s6  ;;  %s32164_s16 = scalar_lea.sflag [#allocation3], %s164_s6 }
  0x1d   : > { %23013 = vmatprep.mubr.msk.f32.mxu1 %vm562_vm1, %v368_v4  ;;  %24173 = vmatprep.mubr.msk.f32.mxu0 %vm562_vm1, %v19338_v5  ;;  %v19339_v7 = vld [vmem:[%s27364_s9 + $0x21] sm:$0xff]  ;;  %v19340_v8 = vld [vmem:[%s27364_s9 + $0x31] sm:$0xff]  ;;  %v19341_v9 = vld [vmem:[%s27364_s9 + $0x39] sm:$0xff] }
  0x1e   : > { %23014 = vmatmul.mubr.msk.f32.vlgmr.msra.gmra.mrb[0].mxu1 %vm562_vm1, %v369_v6  ;;  %24174 = vmatmul.mubr.msk.f32.vlgmr.msra.gmra.mrb[0].mxu0 %vm562_vm1, %v19339_v7  ;;  %v19342_v10 = vld [vmem:[%s27364_s9 + $0x49] sm:$0xff]  ;;  %v19343_v11 = vld [vmem:[%s27364_s9 + $0x51] sm:$0xff]  ;;  %v19344_v12 = vld [vmem:[%s27364_s9 + $0x61] sm:$0xff]  ;;  %s31153_s11 = scalar_lea.vmem [#allocation2], %s27159_s7 }
  0x1f   : > { %23302 = vmatpush3.msk.msra.mxu1 %vm1139_vm0, %v367_v2  ;;  %24462 = vmatpush3.msk.msra.mxu0 %vm1139_vm0, %v19916_v3  ;;  %v19345_v13 = vld [vmem:[%s27364_s9 + $0x69] sm:$0xff]  ;;  %v19346_v14 = vld [vmem:[%s27364_s9 + $0x79] sm:$0xff]  ;;  %v19347_v15 = vld [vmem:[%s27364_s9 + $0x81] sm:$0xff]  ;;  %s18303_s25 = sshll.u32 %s31153_s11, 4  ;;  %s32156_s25 = int_to_ptr.vmem [resolvable:$true] %s18303_s25 }
  0x20   : > { %23016 = vmatprep.mubr.msk.f32.mxu1 %vm562_vm1, %v19338_v5  ;;  %24176 = vmatprep.mubr.msk.f32.mxu0 %vm562_vm1, %v19340_v8  ;;  %v19348_v16 = vld [vmem:[%s27364_s9 + $0x91] sm:$0xff]  ;;  %v19349_v17 = vld [vmem:[%s27364_s9 + $0x99] sm:$0xff]  ;;  %v19350_v18 = vld [vmem:[%s27364_s9 + $0xa9] sm:$0xff]  ;;  %s27207_s29 = scalar_lea.vmem %s32156_s25, 24576  ;;  %p27214_p0 = scmp.lt.s32.totalorder %s32156_s25, %s27212_s4 }
  0x21   : > { %v19351_v19 = vld [vmem:[%s27364_s9 + $0xb1] sm:$0xff]  ;;  %v19352_v20 = vld [vmem:[%s27364_s9 + $0xc1] sm:$0xff]  ;;  %v19353_v21 = vld [vmem:[%s27364_s9 + $0xc9] sm:$0xff]  ;;  %24751 = vmatprep.subr.msk.mxu0 %vm1139_vm0, %v27475_v42  ;;  %p27208_p11 = scmp.ne.s32.totalorder %s32156_s25, %s27207_s29  ;;  %p27215_p1 = scmp.lt.s32.totalorder %s27213_s5, %s27207_s29 }
  0x22   : > { %23017 = vmatmul.mubr.msk.f32.gmra.mrb[2].mxu1 %vm562_vm1, %v19339_v7  ;;  %24177 = vmatmul.mubr.msk.f32.gmra.mrb[2].mxu0 %vm562_vm1, %v19341_v9  ;;  %v19354_v22 = vld [vmem:[%s27364_s9 + $0xd9] sm:$0xff]  ;;  %v19355_v23 = vld [vmem:[%s27364_s9 + $0xe1] sm:$0xff]  ;;  %v19356_v24 = vld [vmem:[%s27364_s9 + $0xf1] sm:$0xff] }
  0x23   : > { %23019 = vmatprep.mubr.msk.f32.mxu1 %vm562_vm1, %v19340_v8  ;;  %24179 = vmatprep.mubr.msk.f32.mxu0 %vm562_vm1, %v19342_v10  ;;  %v19357_v25 = vld [vmem:[%s27364_s9 + $0xf9] sm:$0xff]  ;;  %v19358_v26 = vld [vmem:[%s27364_s9 + $0x109] sm:$0xff]  ;;  %v19359_v27 = vld [vmem:[%s27364_s9 + $0x111] sm:$0xff]  ;;  %p27209_p12 = pnand %p27208_p11, %p27332_p5  ;;  %p27216_p2 = por %p27215_p1, %p27214_p0 }
  0x24   : > { %v19360_v28 = vld [vmem:[%s27364_s9 + $0x121] sm:$0xff]  ;;  %v19361_v29 = vld [vmem:[%s27364_s9 + $0x129] sm:$0xff]  ;;  %v392_v30 = vld [vmem:[%s27364_s9 + $0x151] sm:$0xff] }
  0x25   : > { %v19362_v31 = vld [vmem:[%s27364_s9 + $0x169] sm:$0xff]  ;;  %v393_v32 = vld [vmem:[%s27364_s9 + $0x159] sm:$0xff]  ;;  %v19363_v33 = vld [vmem:[%s27364_s9 + $0x171] sm:$0xff]  ;;  %p27210_p13 = pneg %p27209_p12 }
  0x26   : > { %23020 = vmatmul.mubr.msk.f32.gmra.mrb[4].mxu1 %vm562_vm1, %v19341_v9  ;;  %24180 = vmatmul.mubr.msk.f32.gmra.mrb[4].mxu0 %vm562_vm1, %v19343_v11  ;;  %v19364_v34 = vld [vmem:[%s27364_s9 + $0x181] sm:$0xff]  ;;  %v19365_v35 = vld [vmem:[%s27364_s9 + $0x189] sm:$0xff]  ;;  %v19366_v36 = vld [vmem:[%s27364_s9 + $0x199] sm:$0xff] }
  0x27   : > { %23022 = vmatprep.mubr.msk.f32.mxu1 %vm562_vm1, %v19342_v10  ;;  %24182 = vmatprep.mubr.msk.f32.mxu0 %vm562_vm1, %v19344_v12  ;;  %v19367_v37 = vld [vmem:[%s27364_s9 + $0x1a1] sm:$0xff]  ;;  %v19368_v38 = vld [vmem:[%s27364_s9 + $0x1b1] sm:$0xff]  ;;  %v19369_v39 = vld [vmem:[%s27364_s9 + $0x1b9] sm:$0xff]  ;;  %p27217_p3 = pnand %p27216_p2, %p27210_p13 }
  0x28   : > { %v19370_v40 = vld [vmem:[%s27364_s9 + $0x1c9] sm:$0xff]  ;;  %v19371_v41 = vld [vmem:[%s27364_s9 + $0x1d1] sm:$0xff]  ;;  %v19372_v43 = vld [vmem:[%s27364_s9 + $0x1e1] sm:$0xff] }
  0x29   : > { %v19373_v44 = vld [vmem:[%s27364_s9 + $0x1e9] sm:$0xff]  ;;  %v19374_v45 = vld [vmem:[%s27364_s9 + $0x1f9] sm:$0xff]  ;;  %v19375_v46 = vld [vmem:[%s27364_s9 + $0x201] sm:$0xff] }
  0x2a   : > { %23023 = vmatmul.mubr.msk.f32.gmra.mrb[6].mxu1 %vm562_vm1, %v19343_v11  ;;  %24183 = vmatmul.mubr.msk.f32.gmra.mrb[6].mxu0 %vm562_vm1, %v19345_v13  ;;  %v19376_v47 = vld [vmem:[%s27364_s9 + $0x211] sm:$0xff]  ;;  %v19377_v48 = vld [vmem:[%s27364_s9 + $0x219] sm:$0xff]  ;;  %v19378_v49 = vld [vmem:[%s27364_s9 + $0x229] sm:$0xff] }
  0x2b   : > { %23025 = vmatprep.mubr.msk.f32.mxu1 %vm562_vm1, %v19344_v12  ;;  %24185 = vmatprep.mubr.msk.f32.mxu0 %vm562_vm1, %v19346_v14  ;;  %v19379_v50 = vld [vmem:[%s27364_s9 + $0x231] sm:$0xff]  ;;  %v19380_v51 = vld [vmem:[%s27364_s9 + $0x241] sm:$0xff]  ;;  %v19381_v52 = vld [vmem:[%s27364_s9 + $0x249] sm:$0xff] }
  0x2c   : > { %v19382_v53 = vld [vmem:[%s27364_s9 + $0x259] sm:$0xff]  ;;  %v19383_v54 = vld [vmem:[%s27364_s9 + $0x261] sm:$0xff]  ;;  %v19384_v55 = vld [vmem:[%s27364_s9 + $0x271] sm:$0xff] }
  0x2d   : > { %v19385_v56 = vld [vmem:[%s27364_s9 + $0x279] sm:$0xff]  ;;  %v416_v57 = vld [vmem:[%s27364_s9 + $0x2a1] sm:$0xff]  ;;  %v417_v59 = vld [vmem:[%s27364_s9 + $0x2a9] sm:$0xff] }
  0x2e   : > { %23026 = vmatmul.mubr.msk.f32.gmra.mrb[8].mxu1 %vm562_vm1, %v19345_v13  ;;  %24186 = vmatmul.mubr.msk.f32.gmra.mrb[8].mxu0 %vm562_vm1, %v19347_v15  ;;  %v19386_v58 = vld [vmem:[%s27364_s9 + $0x2b9] sm:$0xff]  ;;  %v19387_v60 = vld [vmem:[%s27364_s9 + $0x2c1] sm:$0xff]  ;;  %v19388_v61 = vld [vmem:[%s27364_s9 + $0x2d1] sm:$0xff] }
  0x2f   : > { %23028 = vmatprep.mubr.msk.f32.mxu1 %vm562_vm1, %v19346_v14  ;;  %24188 = vmatprep.mubr.msk.f32.mxu0 %vm562_vm1, %v19348_v16  ;;  %v19389_v62 = vld [vmem:[%s27364_s9 + $0x2d9] sm:$0xff]  ;;  %v19390_v63 = vld [vmem:[%s27364_s9 + $0x2e9] sm:$0xff]  ;;  %v19391_v0 = vld [vmem:[%s27364_s9 + $0x2f1] sm:$0xff] }
  0x30   : > { %v19392_v1 = vld [vmem:[%s27364_s9 + $0x301] sm:$0xff]  ;;  %v19393_v2 = vld [vmem:[%s27364_s9 + $0x309] sm:$0xff]  ;;  %v19394_v3 = vld [vmem:[%s27364_s9 + $0x319] sm:$0xff] }
  0x31   : > { %v19395_v4 = vld [vmem:[%s27364_s9 + $0x321] sm:$0xff]  ;;  %v19396_v5 = vld [vmem:[%s27364_s9 + $0x331] sm:$0xff]  ;;  %v19397_v6 = vld [vmem:[%s27364_s9 + $0x339] sm:$0xff] }
  0x32   : > { %23029 = vmatmul.mubr.msk.f32.gmra.mrb[10].mxu1 %vm562_vm1, %v19347_v15  ;;  %24189 = vmatmul.mubr.msk.f32.gmra.mrb[10].mxu0 %vm562_vm1, %v19349_v17  ;;  %v19398_v7 = vld [vmem:[%s27364_s9 + $0x349] sm:$0xff]  ;;  %v19399_v8 = vld [vmem:[%s27364_s9 + $0x351] sm:$0xff]  ;;  %v19400_v9 = vld [vmem:[%s27364_s9 + $0x361] sm:$0xff] }
  0x33   : > { %23031 = vmatprep.mubr.msk.f32.mxu1 %vm562_vm1, %v19348_v16  ;;  %24191 = vmatprep.mubr.msk.f32.mxu0 %vm562_vm1, %v19350_v18  ;;  %v19401_v10 = vld [vmem:[%s27364_s9 + $0x369] sm:$0xff]  ;;  %v19402_v11 = vld [vmem:[%s27364_s9 + $0x379] sm:$0xff]  ;;  %v19403_v12 = vld [vmem:[%s27364_s9 + $0x381] sm:$0xff] }
  0x34   : > { %v19404_v13 = vld [vmem:[%s27364_s9 + $0x391] sm:$0xff]  ;;  %v19405_v14 = vld [vmem:[%s27364_s9 + $0x399] sm:$0xff]  ;;  %v19406_v15 = vld [vmem:[%s27364_s9 + $0x3a9] sm:$0xff] }
  0x35   : > { %v19407_v16 = vld [vmem:[%s27364_s9 + $0x3b1] sm:$0xff] }
  0x36   : > { %23032 = vmatmul.mubr.msk.f32.gmra.mrb[12].mxu1 %vm562_vm1, %v19349_v17  ;;  %24192 = vmatmul.mubr.msk.f32.gmra.mrb[12].mxu0 %vm562_vm1, %v19351_v19  ;;  %v19408_v17 = vld [vmem:[%s27364_s9 + $0x3c1] sm:$0xff] }
  0x37   : > { %23034 = vmatprep.mubr.msk.f32.mxu1 %vm562_vm1, %v19350_v18  ;;  %24194 = vmatprep.mubr.msk.f32.mxu0 %vm562_vm1, %v19352_v20  ;;  %v19409_v18 = vld [vmem:[%s27364_s9 + $0x3c9] sm:$0xff] }
  0x3a   : > { %23035 = vmatmul.mubr.msk.f32.gmra.mrb[14].mxu1 %vm562_vm1, %v19351_v19  ;;  %24195 = vmatmul.mubr.msk.f32.gmra.mrb[14].mxu0 %vm562_vm1, %v19353_v21  ;;  %v440_v19 = vld [vmem:[%s27364_s9 + $0x3f1] sm:$0xff] }
  0x3b   : > { %23037 = vmatprep.mubr.msk.f32.mxu1 %vm562_vm1, %v19352_v20  ;;  %24197 = vmatprep.mubr.msk.f32.mxu0 %vm562_vm1, %v19354_v22  ;;  %v19410_v20 = vld [vmem:[%s27364_s9 + $0x409] sm:$0xff] }
  0x3e   : > { %23038 = vmatmul.mubr.msk.f32.gmra.mrb[16].mxu1 %vm562_vm1, %v19353_v21  ;;  %24198 = vmatmul.mubr.msk.f32.gmra.mrb[16].mxu0 %vm562_vm1, %v19355_v23  ;;  %v441_v21 = vld [vmem:[%s27364_s9 + $0x3f9] sm:$0xff] }
  0x3f   : > { %23040 = vmatprep.mubr.msk.f32.mxu1 %vm562_vm1, %v19354_v22  ;;  %24200 = vmatprep.mubr.msk.f32.mxu0 %vm562_vm1, %v19356_v24  ;;  %v19411_v22 = vld [vmem:[%s27364_s9 + $0x411] sm:$0xff] }
  0x42   : > { %23041 = vmatmul.mubr.msk.f32.gmra.mrb[18].mxu1 %vm562_vm1, %v19355_v23  ;;  %24201 = vmatmul.mubr.msk.f32.gmra.mrb[18].mxu0 %vm562_vm1, %v19357_v25  ;;  %v19412_v23 = vld [vmem:[%s27364_s9 + $0x421] sm:$0xff] }
  0x43   : > { %23043 = vmatprep.mubr.msk.f32.mxu1 %vm562_vm1, %v19356_v24  ;;  %24203 = vmatprep.mubr.msk.f32.mxu0 %vm562_vm1, %v19358_v26  ;;  %v19413_v24 = vld [vmem:[%s27364_s9 + $0x429] sm:$0xff] }
  0x46   : > { %23044 = vmatmul.mubr.msk.f32.gmra.mrb[20].mxu1 %vm562_vm1, %v19357_v25  ;;  %24204 = vmatmul.mubr.msk.f32.gmra.mrb[20].mxu0 %vm562_vm1, %v19359_v27  ;;  %v19414_v25 = vld [vmem:[%s27364_s9 + $0x439] sm:$0xff] }
  0x47   : > { %23046 = vmatprep.mubr.msk.f32.mxu1 %vm562_vm1, %v19358_v26  ;;  %24206 = vmatprep.mubr.msk.f32.mxu0 %vm562_vm1, %v19360_v28  ;;  %v19415_v26 = vld [vmem:[%s27364_s9 + $0x441] sm:$0xff]  ;;  %v19417_v28 = vld [vmem:[%s27364_s9 + $0x459] sm:$0xff] }
  0x4a   : > { %23047 = vmatmul.mubr.msk.f32.gmra.mrb[22].mxu1 %vm562_vm1, %v19359_v27  ;;  %24207 = vmatmul.mubr.msk.f32.gmra.mrb[22].mxu0 %vm562_vm1, %v19361_v29  ;;  %v19416_v27 = vld [vmem:[%s27364_s9 + $0x451] sm:$0xff]  ;;  %v19418_v29 = vld [vmem:[%s27364_s9 + $0x469] sm:$0xff] }
  0x4b   : > { %23049 = vmatprep.mubr.msk.f32.mxu1 %vm562_vm1, %v392_v30  ;;  %24209 = vmatprep.mubr.msk.f32.mxu0 %vm562_vm1, %v19362_v31  ;;  %v19419_v30 = vld [vmem:[%s27364_s9 + $0x471] sm:$0xff] }
  0x4e   : > { %23050 = vmatmul.mubr.msk.f32.gmra.mrb[24].mxu1 %vm562_vm1, %v393_v32  ;;  %24210 = vmatmul.mubr.msk.f32.gmra.mrb[24].mxu0 %vm562_vm1, %v19363_v33  ;;  %v19421_v32 = vld [vmem:[%s27364_s9 + $0x489] sm:$0xff] }
  0x4f   : > { %23052 = vmatprep.mubr.msk.f32.mxu1 %vm562_vm1, %v19362_v31  ;;  %24212 = vmatprep.mubr.msk.f32.mxu0 %vm562_vm1, %v19364_v34  ;;  %v19420_v31 = vld [vmem:[%s27364_s9 + $0x481] sm:$0xff] }
  0x52   : > { %23053 = vmatmul.mubr.msk.f32.gmra.mrb[26].mxu1 %vm562_vm1, %v19363_v33  ;;  %24213 = vmatmul.mubr.msk.f32.gmra.mrb[26].mxu0 %vm562_vm1, %v19365_v35  ;;  %v19422_v33 = vld [vmem:[%s27364_s9 + $0x499] sm:$0xff] }
  0x53   : > { %23055 = vmatprep.mubr.msk.f32.mxu1 %vm562_vm1, %v19364_v34  ;;  %24215 = vmatprep.mubr.msk.f32.mxu0 %vm562_vm1, %v19366_v36  ;;  %v19423_v34 = vld [vmem:[%s27364_s9 + $0x4a1] sm:$0xff] }
  0x56   : > { %23056 = vmatmul.mubr.msk.f32.gmra.mrb[28].mxu1 %vm562_vm1, %v19365_v35  ;;  %24216 = vmatmul.mubr.msk.f32.gmra.mrb[28].mxu0 %vm562_vm1, %v19367_v37  ;;  %v19424_v35 = vld [vmem:[%s27364_s9 + $0x4b1] sm:$0xff] }
  0x57   : > { %23058 = vmatprep.mubr.msk.f32.mxu1 %vm562_vm1, %v19366_v36  ;;  %24218 = vmatprep.mubr.msk.f32.mxu0 %vm562_vm1, %v19368_v38  ;;  %v19425_v36 = vld [vmem:[%s27364_s9 + $0x4b9] sm:$0xff] }
  0x5a   : > { %23059 = vmatmul.mubr.msk.f32.gmra.mrb[30].mxu1 %vm562_vm1, %v19367_v37  ;;  %24219 = vmatmul.mubr.msk.f32.gmra.mrb[30].mxu0 %vm562_vm1, %v19369_v39  ;;  %v19426_v37 = vld [vmem:[%s27364_s9 + $0x4c9] sm:$0xff] }
  0x5b   : > { %23061 = vmatprep.mubr.msk.f32.mxu1 %vm562_vm1, %v19368_v38  ;;  %24221 = vmatprep.mubr.msk.f32.mxu0 %vm562_vm1, %v19370_v40  ;;  %v19427_v38 = vld [vmem:[%s27364_s9 + $0x4d1] sm:$0xff] }
  0x5e   : > { %23062 = vmatmul.mubr.msk.f32.gmra.mrb[32].mxu1 %vm562_vm1, %v19369_v39  ;;  %24222 = vmatmul.mubr.msk.f32.gmra.mrb[32].mxu0 %vm562_vm1, %v19371_v41  ;;  %v19428_v39 = vld [vmem:[%s27364_s9 + $0x4e1] sm:$0xff] }
  0x5f   : > { %23064 = vmatprep.mubr.msk.f32.mxu1 %vm562_vm1, %v19370_v40  ;;  %24224 = vmatprep.mubr.msk.f32.mxu0 %vm562_vm1, %v19372_v43  ;;  %v19429_v40 = vld [vmem:[%s27364_s9 + $0x4e9] sm:$0xff] }
  0x62   : > { %23065 = vmatmul.mubr.msk.f32.gmra.mrb[34].mxu1 %vm562_vm1, %v19371_v41  ;;  %24225 = vmatmul.mubr.msk.f32.gmra.mrb[34].mxu0 %vm562_vm1, %v19373_v44  ;;  %v19430_v41 = vld [vmem:[%s27364_s9 + $0x4f9] sm:$0xff] }
  0x63   : > { %23067 = vmatprep.mubr.msk.f32.mxu1 %vm562_vm1, %v19372_v43  ;;  %24227 = vmatprep.mubr.msk.f32.mxu0 %vm562_vm1, %v19374_v45  ;;  %v19431_v43 = vld [vmem:[%s27364_s9 + $0x501] sm:$0xff] }
  0x66   : > { %23068 = vmatmul.mubr.msk.f32.gmra.mrb[36].mxu1 %vm562_vm1, %v19373_v44  ;;  %24228 = vmatmul.mubr.msk.f32.gmra.mrb[36].mxu0 %vm562_vm1, %v19375_v46  ;;  %v19432_v44 = vld [vmem:[%s27364_s9 + $0x511] sm:$0xff] }
  0x67   : > { %23070 = vmatprep.mubr.msk.f32.mxu1 %vm562_vm1, %v19374_v45  ;;  %24230 = vmatprep.mubr.msk.f32.mxu0 %vm562_vm1, %v19376_v47  ;;  %v19433_v45 = vld [vmem:[%s27364_s9 + $0x519] sm:$0xff] }
  0x6a   : > { %23071 = vmatmul.mubr.msk.f32.gmra.mrb[38].mxu1 %vm562_vm1, %v19375_v46  ;;  %24231 = vmatmul.mubr.msk.f32.gmra.mrb[38].mxu0 %vm562_vm1, %v19377_v48  ;;  %v464_v46 = vld [vmem:[%s27364_s9 + $0x541] sm:$0xff] }
  0x6b   : > { %23073 = vmatprep.mubr.msk.f32.mxu1 %vm562_vm1, %v19376_v47  ;;  %24233 = vmatprep.mubr.msk.f32.mxu0 %vm562_vm1, %v19378_v49  ;;  %v19724_v47 = vld [vmem:[%s27364_s9 + $0x1a] sm:$0xff] }
  0x6e   : > { %23074 = vmatmul.mubr.msk.f32.gmra.mrb[40].mxu1 %vm562_vm1, %v19377_v48  ;;  %24234 = vmatmul.mubr.msk.f32.gmra.mrb[40].mxu0 %vm562_vm1, %v19379_v50  ;;  %v465_v48 = vld [vmem:[%s27364_s9 + $0x549] sm:$0xff] }
  0x6f   : > { %23076 = vmatprep.mubr.msk.f32.mxu1 %vm562_vm1, %v19378_v49  ;;  %24236 = vmatprep.mubr.msk.f32.mxu0 %vm562_vm1, %v19380_v51  ;;  %v19725_v49 = vld [vmem:[%s27364_s9 + $0x22] sm:$0xff] }
  0x72   : > { %23077 = vmatmul.mubr.msk.f32.gmra.mrb[42].mxu1 %vm562_vm1, %v19379_v50  ;;  %24237 = vmatmul.mubr.msk.f32.gmra.mrb[42].mxu0 %vm562_vm1, %v19381_v52  ;;  %v466_v50 = vld [vmem:[%s27364_s9 + $0x559] sm:$0xff] }
  0x73   : > { %23079 = vmatprep.mubr.msk.f32.mxu1 %vm562_vm1, %v19380_v51  ;;  %24239 = vmatprep.mubr.msk.f32.mxu0 %vm562_vm1, %v19382_v53  ;;  %v19726_v51 = vld [vmem:[%s27364_s9 + $0x32] sm:$0xff] }
  0x76   : > { %23080 = vmatmul.mubr.msk.f32.gmra.mrb[44].mxu1 %vm562_vm1, %v19381_v52  ;;  %24240 = vmatmul.mubr.msk.f32.gmra.mrb[44].mxu0 %vm562_vm1, %v19383_v54  ;;  %v467_v52 = vld [vmem:[%s27364_s9 + $0x561] sm:$0xff] }
  0x77   : > { %23082 = vmatprep.mubr.msk.f32.mxu1 %vm562_vm1, %v19382_v53  ;;  %24242 = vmatprep.mubr.msk.f32.mxu0 %vm562_vm1, %v19384_v55  ;;  %v19727_v53 = vld [vmem:[%s27364_s9 + $0x3a] sm:$0xff]  ;;  %v19728_v55 = vld [vmem:[%s27364_s9 + $0x4a] sm:$0xff] }
  0x7a   : > { %23083 = vmatmul.mubr.msk.f32.gmra.mrb[46].mxu1 %vm562_vm1, %v19383_v54  ;;  %24243 = vmatmul.mubr.msk.f32.gmra.mrb[46].mxu0 %vm562_vm1, %v19385_v56  ;;  %v468_v54 = vld [vmem:[%s27364_s9 + $0x571] sm:$0xff] }
  0x7b   : > { %23085 = vmatprep.mubr.msk.f32.mxu1 %vm562_vm1, %v416_v57  ;;  %24245 = vmatprep.mubr.msk.f32.mxu0 %vm562_vm1, %v19386_v58  ;;  %v19729_v56 = vld [vmem:[%s27364_s9 + $0x52] sm:$0xff]  ;;  %v470_v57 = vld [vmem:[%s27364_s9 + $0x589] sm:$0xff] }
  0x7e   : > { %23086 = vmatmul.mubr.msk.f32.gmra.mrb[48].mxu1 %vm562_vm1, %v417_v59  ;;  %24246 = vmatmul.mubr.msk.f32.gmra.mrb[48].mxu0 %vm562_vm1, %v19387_v60  ;;  %v471_v59 = vld [vmem:[%s27364_s9 + $0x591] sm:$0xff] }
  0x7f   : > { %23088 = vmatprep.mubr.msk.f32.mxu1 %vm562_vm1, %v19386_v58  ;;  %24248 = vmatprep.mubr.msk.f32.mxu0 %vm562_vm1, %v19388_v61  ;;  %v19730_v58 = vld [vmem:[%s27364_s9 + $0x62] sm:$0xff] }
  0x82   : > { %23089 = vmatmul.mubr.msk.f32.gmra.mrb[50].mxu1 %vm562_vm1, %v19387_v60  ;;  %24249 = vmatmul.mubr.msk.f32.gmra.mrb[50].mxu0 %vm562_vm1, %v19389_v62  ;;  %v19731_v60 = vld [vmem:[%s27364_s9 + $0x6a] sm:$0xff] }
  0x83   : > { %23091 = vmatprep.mubr.msk.f32.mxu1 %vm562_vm1, %v19388_v61  ;;  %24251 = vmatprep.mubr.msk.f32.mxu0 %vm562_vm1, %v19390_v63  ;;  %v472_v61 = vld [vmem:[%s27364_s9 + $0x5a1] sm:$0xff] }
  0x86   : > { %23092 = vmatmul.mubr.msk.f32.gmra.mrb[52].mxu1 %vm562_vm1, %v19389_v62  ;;  %24252 = vmatmul.mubr.msk.f32.gmra.mrb[52].mxu0 %vm562_vm1, %v19391_v0  ;;  %v19732_v62 = vld [vmem:[%s27364_s9 + $0x7a] sm:$0xff] }
  0x87   : > { %23094 = vmatprep.mubr.msk.f32.mxu1 %vm562_vm1, %v19390_v63  ;;  %24254 = vmatprep.mubr.msk.f32.mxu0 %vm562_vm1, %v19392_v1  ;;  %v473_v63 = vld [vmem:[%s27364_s9 + $0x5a9] sm:$0xff] }
  0x8a   : > { %23095 = vmatmul.mubr.msk.f32.gmra.mrb[54].mxu1 %vm562_vm1, %v19391_v0  ;;  %24255 = vmatmul.mubr.msk.f32.gmra.mrb[54].mxu0 %vm562_vm1, %v19393_v2  ;;  %v19733_v0 = vld [vmem:[%s27364_s9 + $0x82] sm:$0xff] }
  0x8b   : > { %23097 = vmatprep.mubr.msk.f32.mxu1 %vm562_vm1, %v19392_v1  ;;  %24257 = vmatprep.mubr.msk.f32.mxu0 %vm562_vm1, %v19394_v3  ;;  %v474_v1 = vld [vmem:[%s27364_s9 + $0x5b9] sm:$0xff] }
  0x8e   : > { %23098 = vmatmul.mubr.msk.f32.gmra.mrb[56].mxu1 %vm562_vm1, %v19393_v2  ;;  %24258 = vmatmul.mubr.msk.f32.gmra.mrb[56].mxu0 %vm562_vm1, %v19395_v4  ;;  %v19734_v2 = vld [vmem:[%s27364_s9 + $0x92] sm:$0xff] }
  0x8f   : > { %23100 = vmatprep.mubr.msk.f32.mxu1 %vm562_vm1, %v19394_v3  ;;  %24260 = vmatprep.mubr.msk.f32.mxu0 %vm562_vm1, %v19396_v5  ;;  %v475_v3 = vld [vmem:[%s27364_s9 + $0x5c1] sm:$0xff] }
  0x92   : > { %23101 = vmatmul.mubr.msk.f32.gmra.mrb[58].mxu1 %vm562_vm1, %v19395_v4  ;;  %24261 = vmatmul.mubr.msk.f32.gmra.mrb[58].mxu0 %vm562_vm1, %v19397_v6  ;;  %v19735_v4 = vld [vmem:[%s27364_s9 + $0x9a] sm:$0xff] }
  0x93   : > { %23103 = vmatprep.mubr.msk.f32.mxu1 %vm562_vm1, %v19396_v5  ;;  %24263 = vmatprep.mubr.msk.f32.mxu0 %vm562_vm1, %v19398_v7  ;;  %v476_v5 = vld [vmem:[%s27364_s9 + $0x5d1] sm:$0xff] }
  0x96   : > { %23104 = vmatmul.mubr.msk.f32.gmra.mrb[60].mxu1 %vm562_vm1, %v19397_v6  ;;  %24264 = vmatmul.mubr.msk.f32.gmra.mrb[60].mxu0 %vm562_vm1, %v19399_v8  ;;  %v19736_v6 = vld [vmem:[%s27364_s9 + $0xaa] sm:$0xff] }
  0x97   : > { %23106 = vmatprep.mubr.msk.f32.mxu1 %vm562_vm1, %v19398_v7  ;;  %24266 = vmatprep.mubr.msk.f32.mxu0 %vm562_vm1, %v19400_v9  ;;  %v477_v7 = vld [vmem:[%s27364_s9 + $0x5d9] sm:$0xff] }
  0x9a   : > { %23107 = vmatmul.mubr.msk.f32.gmra.mrb[62].mxu1 %vm562_vm1, %v19399_v8  ;;  %24267 = vmatmul.mubr.msk.f32.gmra.mrb[62].mxu0 %vm562_vm1, %v19401_v10  ;;  %v19737_v8 = vld [vmem:[%s27364_s9 + $0xb2] sm:$0xff] }
  0x9b   : > { %23109 = vmatprep.mubr.msk.f32.mxu1 %vm562_vm1, %v19400_v9  ;;  %24269 = vmatprep.mubr.msk.f32.mxu0 %vm562_vm1, %v19402_v11  ;;  %v478_v9 = vld [vmem:[%s27364_s9 + $0x5e9] sm:$0xff] }
  0x9e   : > { %23110 = vmatmul.mubr.msk.f32.gmra.mrb[64].mxu1 %vm562_vm1, %v19401_v10  ;;  %24270 = vmatmul.mubr.msk.f32.gmra.mrb[64].mxu0 %vm562_vm1, %v19403_v12  ;;  %v19738_v10 = vld [vmem:[%s27364_s9 + $0xc2] sm:$0xff] }
  0x9f   : > { %23112 = vmatprep.mubr.msk.f32.mxu1 %vm562_vm1, %v19402_v11  ;;  %24272 = vmatprep.mubr.msk.f32.mxu0 %vm562_vm1, %v19404_v13  ;;  %v479_v11 = vld [vmem:[%s27364_s9 + $0x5f1] sm:$0xff] }
  0xa2   : > { %23113 = vmatmul.mubr.msk.f32.gmra.mrb[66].mxu1 %vm562_vm1, %v19403_v12  ;;  %24273 = vmatmul.mubr.msk.f32.gmra.mrb[66].mxu0 %vm562_vm1, %v19405_v14  ;;  %v19739_v12 = vld [vmem:[%s27364_s9 + $0xca] sm:$0xff] }
  0xa3   : > { %23115 = vmatprep.mubr.msk.f32.mxu1 %vm562_vm1, %v19404_v13  ;;  %24275 = vmatprep.mubr.msk.f32.mxu0 %vm562_vm1, %v19406_v15  ;;  %v480_v13 = vld [vmem:[%s27364_s9 + $0x601] sm:$0xff] }
  0xa6   : > { %23116 = vmatmul.mubr.msk.f32.gmra.mrb[68].mxu1 %vm562_vm1, %v19405_v14  ;;  %24276 = vmatmul.mubr.msk.f32.gmra.mrb[68].mxu0 %vm562_vm1, %v19407_v16  ;;  %v19740_v14 = vld [vmem:[%s27364_s9 + $0xda] sm:$0xff] }
  0xa7   : > { %23118 = vmatprep.mubr.msk.f32.mxu1 %vm562_vm1, %v19406_v15  ;;  %24278 = vmatprep.mubr.msk.f32.mxu0 %vm562_vm1, %v19408_v17  ;;  %v481_v15 = vld [vmem:[%s27364_s9 + $0x609] sm:$0xff]  ;;  %v482_v17 = vld [vmem:[%s27364_s9 + $0x619] sm:$0xff] }
  0xaa   : > { %23119 = vmatmul.mubr.msk.f32.gmra.mrb[70].mxu1 %vm562_vm1, %v19407_v16  ;;  %24279 = vmatmul.mubr.msk.f32.gmra.mrb[70].mxu0 %vm562_vm1, %v19409_v18  ;;  %v19741_v16 = vld [vmem:[%s27364_s9 + $0xe2] sm:$0xff]  ;;  %v19742_v18 = vld [vmem:[%s27364_s9 + $0xf2] sm:$0xff] }
  0xab   : > { %23121 = vmatprep.mubr.msk.f32.mxu1 %vm562_vm1, %v440_v19  ;;  %24281 = vmatprep.mubr.msk.f32.mxu0 %vm562_vm1, %v19410_v20  ;;  %v483_v19 = vld [vmem:[%s27364_s9 + $0x621] sm:$0xff] }
  0xae   : > { %23122 = vmatmul.mubr.msk.f32.gmra.mrb[72].mxu1 %vm562_vm1, %v441_v21  ;;  %24282 = vmatmul.mubr.msk.f32.gmra.mrb[72].mxu0 %vm562_vm1, %v19411_v22  ;;  %v484_v21 = vld [vmem:[%s27364_s9 + $0x631] sm:$0xff] }
  0xaf   : > { %23124 = vmatprep.mubr.msk.f32.mxu1 %vm562_vm1, %v19410_v20  ;;  %24284 = vmatprep.mubr.msk.f32.mxu0 %vm562_vm1, %v19412_v23  ;;  %v19743_v20 = vld [vmem:[%s27364_s9 + $0xfa] sm:$0xff] }
  0xb2   : > { %23125 = vmatmul.mubr.msk.f32.gmra.mrb[74].mxu1 %vm562_vm1, %v19411_v22  ;;  %24285 = vmatmul.mubr.msk.f32.gmra.mrb[74].mxu0 %vm562_vm1, %v19413_v24  ;;  %v19744_v22 = vld [vmem:[%s27364_s9 + $0x10a] sm:$0xff] }
  0xb3   : > { %23127 = vmatprep.mubr.msk.f32.mxu1 %vm562_vm1, %v19412_v23  ;;  %24287 = vmatprep.mubr.msk.f32.mxu0 %vm562_vm1, %v19414_v25  ;;  %v485_v23 = vld [vmem:[%s27364_s9 + $0x639] sm:$0xff] }
  0xb6   : > { %23128 = vmatmul.mubr.msk.f32.gmra.mrb[76].mxu1 %vm562_vm1, %v19413_v24  ;;  %24288 = vmatmul.mubr.msk.f32.gmra.mrb[76].mxu0 %vm562_vm1, %v19415_v26  ;;  %v19745_v24 = vld [vmem:[%s27364_s9 + $0x112] sm:$0xff] }
  0xb7   : > { %23130 = vmatprep.mubr.msk.f32.mxu1 %vm562_vm1, %v19414_v25  ;;  %24290 = vmatprep.mubr.msk.f32.mxu0 %vm562_vm1, %v19416_v27  ;;  %v486_v25 = vld [vmem:[%s27364_s9 + $0x649] sm:$0xff] }
  0xba   : > { %23131 = vmatmul.mubr.msk.f32.gmra.mrb[78].mxu1 %vm562_vm1, %v19415_v26  ;;  %24291 = vmatmul.mubr.msk.f32.gmra.mrb[78].mxu0 %vm562_vm1, %v19417_v28  ;;  %v19746_v26 = vld [vmem:[%s27364_s9 + $0x122] sm:$0xff] }
  0xbb   : > { %23133 = vmatprep.mubr.msk.f32.mxu1 %vm562_vm1, %v19416_v27  ;;  %24293 = vmatprep.mubr.msk.f32.mxu0 %vm562_vm1, %v19418_v29  ;;  %v487_v27 = vld [vmem:[%s27364_s9 + $0x651] sm:$0xff] }
  0xbe   : > { %23134 = vmatmul.mubr.msk.f32.gmra.mrb[80].mxu1 %vm562_vm1, %v19417_v28  ;;  %24294 = vmatmul.mubr.msk.f32.gmra.mrb[80].mxu0 %vm562_vm1, %v19419_v30  ;;  %v19747_v28 = vld [vmem:[%s27364_s9 + $0x12a] sm:$0xff] }
  0xbf   : > { %23136 = vmatprep.mubr.msk.f32.mxu1 %vm562_vm1, %v19418_v29  ;;  %24296 = vmatprep.mubr.msk.f32.mxu0 %vm562_vm1, %v19420_v31  ;;  %v488_v29 = vld [vmem:[%s27364_s9 + $0x691] sm:$0xff] }
  0xc2   : > { %23137 = vmatmul.mubr.msk.f32.gmra.mrb[82].mxu1 %vm562_vm1, %v19419_v30  ;;  %24297 = vmatmul.mubr.msk.f32.gmra.mrb[82].mxu0 %vm562_vm1, %v19421_v32  ;;  %v19748_v30 = vld [vmem:[%s27364_s9 + $0x16a] sm:$0xff] }
  0xc3   : > { %23139 = vmatprep.mubr.msk.f32.mxu1 %vm562_vm1, %v19420_v31  ;;  %24299 = vmatprep.mubr.msk.f32.mxu0 %vm562_vm1, %v19422_v33  ;;  %v489_v31 = vld [vmem:[%s27364_s9 + $0x699] sm:$0xff] }
  0xc6   : > { %23140 = vmatmul.mubr.msk.f32.gmra.mrb[84].mxu1 %vm562_vm1, %v19421_v32  ;;  %24300 = vmatmul.mubr.msk.f32.gmra.mrb[84].mxu0 %vm562_vm1, %v19423_v34  ;;  %v19749_v32 = vld [vmem:[%s27364_s9 + $0x172] sm:$0xff] }
  0xc7   : > { %23142 = vmatprep.mubr.msk.f32.mxu1 %vm562_vm1, %v19422_v33  ;;  %24302 = vmatprep.mubr.msk.f32.mxu0 %vm562_vm1, %v19424_v35  ;;  %v490_v33 = vld [vmem:[%s27364_s9 + $0x6a9] sm:$0xff] }
  0xca   : > { %23143 = vmatmul.mubr.msk.f32.gmra.mrb[86].mxu1 %vm562_vm1, %v19423_v34  ;;  %24303 = vmatmul.mubr.msk.f32.gmra.mrb[86].mxu0 %vm562_vm1, %v19425_v36  ;;  %v19750_v34 = vld [vmem:[%s27364_s9 + $0x182] sm:$0xff] }
  0xcb   : > { %23145 = vmatprep.mubr.msk.f32.mxu1 %vm562_vm1, %v19424_v35  ;;  %24305 = vmatprep.mubr.msk.f32.mxu0 %vm562_vm1, %v19426_v37  ;;  %v491_v35 = vld [vmem:[%s27364_s9 + $0x6b1] sm:$0xff] }
  0xce   : > { %23146 = vmatmul.mubr.msk.f32.gmra.mrb[88].mxu1 %vm562_vm1, %v19425_v36  ;;  %24306 = vmatmul.mubr.msk.f32.gmra.mrb[88].mxu0 %vm562_vm1, %v19427_v38  ;;  %v19751_v36 = vld [vmem:[%s27364_s9 + $0x18a] sm:$0xff] }
  0xcf   : > { %23148 = vmatprep.mubr.msk.f32.mxu1 %vm562_vm1, %v19426_v37  ;;  %24308 = vmatprep.mubr.msk.f32.mxu0 %vm562_vm1, %v19428_v39  ;;  %v492_v37 = vld [vmem:[%s27364_s9 + $0x6c1] sm:$0xff] }
  0xd2   : > { %23149 = vmatmul.mubr.msk.f32.gmra.mrb[90].mxu1 %vm562_vm1, %v19427_v38  ;;  %24309 = vmatmul.mubr.msk.f32.gmra.mrb[90].mxu0 %vm562_vm1, %v19429_v40  ;;  %v19752_v38 = vld [vmem:[%s27364_s9 + $0x19a] sm:$0xff] }
  0xd3   : > { %23151 = vmatprep.mubr.msk.f32.mxu1 %vm562_vm1, %v19428_v39  ;;  %24311 = vmatprep.mubr.msk.f32.mxu0 %vm562_vm1, %v19430_v41  ;;  %v493_v39 = vld [vmem:[%s27364_s9 + $0x6c9] sm:$0xff] }
  0xd6   : > { %23152 = vmatmul.mubr.msk.f32.gmra.mrb[92].mxu1 %vm562_vm1, %v19429_v40  ;;  %24312 = vmatmul.mubr.msk.f32.gmra.mrb[92].mxu0 %vm562_vm1, %v19431_v43  ;;  %v19753_v40 = vld [vmem:[%s27364_s9 + $0x1a2] sm:$0xff] }
  0xd7   : > { %23154 = vmatprep.mubr.msk.f32.mxu1 %vm562_vm1, %v19430_v41  ;;  %24314 = vmatprep.mubr.msk.f32.mxu0 %vm562_vm1, %v19432_v44  ;;  %v494_v41 = vld [vmem:[%s27364_s9 + $0x6d9] sm:$0xff]  ;;  %v495_v44 = vld [vmem:[%s27364_s9 + $0x6e1] sm:$0xff] }
  0xda   : > { %23155 = vmatmul.mubr.msk.f32.gmra.mrb[94].mxu1 %vm562_vm1, %v19431_v43  ;;  %24315 = vmatmul.mubr.msk.f32.gmra.mrb[94].mxu0 %vm562_vm1, %v19433_v45  ;;  %v19754_v43 = vld [vmem:[%s27364_s9 + $0x1b2] sm:$0xff]  ;;  %v19755_v45 = vld [vmem:[%s27364_s9 + $0x1ba] sm:$0xff] }
  0xdb   : > { %23157 = vmatprep.mubr.msk.f32.mxu1 %vm562_vm1, %v464_v46  ;;  %24463 = vmatprep.mubr.msk.f32.mxu0 %vm562_vm1, %v19724_v47  ;;  %v496_v46 = vld [vmem:[%s27364_s9 + $0x6f1] sm:$0xff] }
  0xdc   : > { %v19756_v47 = vld [vmem:[%s27364_s9 + $0x1ca] sm:$0xff] }
  0xde   : > { %23158 = vmatmul.mubr.msk.f32.gmra.mrb[96].mxu1 %vm562_vm1, %v465_v48  ;;  %24464 = vmatmul.mubr.msk.f32.vlgmr.msra.gmra.mrb[0].mxu0 %vm562_vm1, %v19725_v49  ;;  %v497_v48 = vld [vmem:[%s27364_s9 + $0x6f9] sm:$0xff] }
  0xdf   : > { %24752 = vmatpush3.msk.msra.mxu0 %vm1139_vm0, %v27475_v42  ;;  %23160 = vmatprep.mubr.msk.f32.mxu1 %vm562_vm1, %v466_v50  ;;  %v469_v42 = vld [vmem:[%s27364_s9 + $0x579] sm:$0xff]  ;;  %v27810_v50 = vld [vmem:[%s32206_s1 + $0x8] sm:$0xf] }
  0xe0   : > { %24466 = vmatprep.mubr.msk.f32.mxu0 %vm562_vm1, %v19726_v51  ;;  %v19757_v49 = vld [vmem:[%s27364_s9 + $0x1d2] sm:$0xff]  ;;  %v498_v51 = vld [vmem:[%s27364_s9 + $0x709] sm:$0xff]  ;;  %23591 = vmatprep.subr.msk.mxu1 %vm1139_vm0, %v27810_v50 }
  0xe2   : > { %23161 = vmatmul.mubr.msk.f32.gmra.mrb[98].mxu1 %vm562_vm1, %v467_v52  ;;  %24467 = vmatmul.mubr.msk.f32.gmra.mrb[2].mxu0 %vm562_vm1, %v19727_v53  ;;  %v19758_v52 = vld [vmem:[%s27364_s9 + $0x1e2] sm:$0xff]  ;;  %v499_v53 = vld [vmem:[%s27364_s9 + $0x711] sm:$0xff] }
  0xe3   : > { %23163 = vmatprep.mubr.msk.f32.mxu1 %vm562_vm1, %v468_v54  ;;  %24469 = vmatprep.mubr.msk.f32.mxu0 %vm562_vm1, %v19728_v55  ;;  %v19759_v54 = vld [vmem:[%s27364_s9 + $0x1ea] sm:$0xff]  ;;  %v500_v55 = vld [vmem:[%s27364_s9 + $0x721] sm:$0xff] }
  0xe6   : > { %23164 = vmatmul.mubr.msk.f32.gmra.mrb[100].mxu1 %vm562_vm1, %v469_v42  ;;  %24470 = vmatmul.mubr.msk.f32.gmra.mrb[4].mxu0 %vm562_vm1, %v19729_v56  ;;  %v19760_v42 = vld [vmem:[%s27364_s9 + $0x1fa] sm:$0xff]  ;;  %v501_v56 = vld [vmem:[%s27364_s9 + $0x729] sm:$0xff] }
  0xe7   : > { %23166 = vmatprep.mubr.msk.f32.mxu1 %vm562_vm1, %v470_v57  ;;  %24472 = vmatprep.mubr.msk.f32.mxu0 %vm562_vm1, %v19730_v58  ;;  %v19761_v57 = vld [vmem:[%s27364_s9 + $0x202] sm:$0xff]  ;;  %v502_v58 = vld [vmem:[%s27364_s9 + $0x739] sm:$0xff] }
  0xea   : > { %23167 = vmatmul.mubr.msk.f32.gmra.mrb[102].mxu1 %vm562_vm1, %v471_v59  ;;  %24473 = vmatmul.mubr.msk.f32.gmra.mrb[6].mxu0 %vm562_vm1, %v19731_v60  ;;  %v19762_v59 = vld [vmem:[%s27364_s9 + $0x212] sm:$0xff]  ;;  %v503_v60 = vld [vmem:[%s27364_s9 + $0x741] sm:$0xff] }
  0xeb   : > { %23169 = vmatprep.mubr.msk.f32.mxu1 %vm562_vm1, %v472_v61  ;;  %24475 = vmatprep.mubr.msk.f32.mxu0 %vm562_vm1, %v19732_v62  ;;  %v19763_v61 = vld [vmem:[%s27364_s9 + $0x21a] sm:$0xff]  ;;  %v504_v62 = vld [vmem:[%s27364_s9 + $0x751] sm:$0xff] }
  0xee   : > { %23170 = vmatmul.mubr.msk.f32.gmra.mrb[104].mxu1 %vm562_vm1, %v473_v63  ;;  %24476 = vmatmul.mubr.msk.f32.gmra.mrb[8].mxu0 %vm562_vm1, %v19733_v0  ;;  %v19764_v63 = vld [vmem:[%s27364_s9 + $0x22a] sm:$0xff]  ;;  %v505_v0 = vld [vmem:[%s27364_s9 + $0x759] sm:$0xff] }
  0xef   : > { %23172 = vmatprep.mubr.msk.f32.mxu1 %vm562_vm1, %v474_v1  ;;  %24478 = vmatprep.mubr.msk.f32.mxu0 %vm562_vm1, %v19734_v2  ;;  %v19765_v1 = vld [vmem:[%s27364_s9 + $0x232] sm:$0xff]  ;;  %v506_v2 = vld [vmem:[%s27364_s9 + $0x769] sm:$0xff] }
  0xf2   : > { %23173 = vmatmul.mubr.msk.f32.gmra.mrb[106].mxu1 %vm562_vm1, %v475_v3  ;;  %24479 = vmatmul.mubr.msk.f32.gmra.mrb[10].mxu0 %vm562_vm1, %v19735_v4  ;;  %v19766_v3 = vld [vmem:[%s27364_s9 + $0x242] sm:$0xff]  ;;  %v507_v4 = vld [vmem:[%s27364_s9 + $0x771] sm:$0xff] }
  0xf3   : > { %23175 = vmatprep.mubr.msk.f32.mxu1 %vm562_vm1, %v476_v5  ;;  %24481 = vmatprep.mubr.msk.f32.mxu0 %vm562_vm1, %v19736_v6  ;;  %v19767_v5 = vld [vmem:[%s27364_s9 + $0x24a] sm:$0xff]  ;;  %v508_v6 = vld [vmem:[%s27364_s9 + $0x781] sm:$0xff] }
  0xf6   : > { %23176 = vmatmul.mubr.msk.f32.gmra.mrb[108].mxu1 %vm562_vm1, %v477_v7  ;;  %24482 = vmatmul.mubr.msk.f32.gmra.mrb[12].mxu0 %vm562_vm1, %v19737_v8  ;;  %v19768_v7 = vld [vmem:[%s27364_s9 + $0x25a] sm:$0xff]  ;;  %v509_v8 = vld [vmem:[%s27364_s9 + $0x789] sm:$0xff] }
  0xf7   : > { %23178 = vmatprep.mubr.msk.f32.mxu1 %vm562_vm1, %v478_v9  ;;  %24484 = vmatprep.mubr.msk.f32.mxu0 %vm562_vm1, %v19738_v10  ;;  %v19769_v9 = vld [vmem:[%s27364_s9 + $0x262] sm:$0xff]  ;;  %v510_v10 = vld [vmem:[%s27364_s9 + $0x799] sm:$0xff] }
  0xfa   : > { %23179 = vmatmul.mubr.msk.f32.gmra.mrb[110].mxu1 %vm562_vm1, %v479_v11  ;;  %24485 = vmatmul.mubr.msk.f32.gmra.mrb[14].mxu0 %vm562_vm1, %v19739_v12  ;;  %v19770_v11 = vld [vmem:[%s27364_s9 + $0x272] sm:$0xff]  ;;  %v511_v12 = vld [vmem:[%s27364_s9 + $0x7a1] sm:$0xff] }
  0xfb   : > { %23181 = vmatprep.mubr.msk.f32.mxu1 %vm562_vm1, %v480_v13  ;;  %24487 = vmatprep.mubr.msk.f32.mxu0 %vm562_vm1, %v19740_v14  ;;  %v19771_v13 = vld [vmem:[%s27364_s9 + $0x27a] sm:$0xff] }
  0xfc   : > { %v512_v14 = vld [vmem:[%s27364_s9 + $0x7e1] sm:$0xff] }
  0xfe   : > { %23182 = vmatmul.mubr.msk.f32.gmra.mrb[112].mxu1 %vm562_vm1, %v481_v15  ;;  %24488 = vmatmul.mubr.msk.f32.gmra.mrb[16].mxu0 %vm562_vm1, %v19741_v16  ;;  %v19772_v15 = vld [vmem:[%s27364_s9 + $0x2ba] sm:$0xff]  ;;  %v513_v16 = vld [vmem:[%s27364_s9 + $0x7e9] sm:$0xff] }
  0xff   : > { %23184 = vmatprep.mubr.msk.f32.mxu1 %vm562_vm1, %v482_v17  ;;  %24490 = vmatprep.mubr.msk.f32.mxu0 %vm562_vm1, %v19742_v18  ;;  %v19773_v17 = vld [vmem:[%s27364_s9 + $0x2c2] sm:$0xff]  ;;  %v514_v18 = vld [vmem:[%s27364_s9 + $0x7f9] sm:$0xff] }
 0x102   : > { %23185 = vmatmul.mubr.msk.f32.gmra.mrb[114].mxu1 %vm562_vm1, %v483_v19  ;;  %24491 = vmatmul.mubr.msk.f32.gmra.mrb[18].mxu0 %vm562_vm1, %v19743_v20  ;;  %v19774_v19 = vld [vmem:[%s27364_s9 + $0x2d2] sm:$0xff]  ;;  %v515_v20 = vld [vmem:[%s27364_s9 + $0x801] sm:$0xff] }
 0x103   : > { %23187 = vmatprep.mubr.msk.f32.mxu1 %vm562_vm1, %v484_v21  ;;  %24493 = vmatprep.mubr.msk.f32.mxu0 %vm562_vm1, %v19744_v22  ;;  %v19775_v21 = vld [vmem:[%s27364_s9 + $0x2da] sm:$0xff]  ;;  %v516_v22 = vld [vmem:[%s27364_s9 + $0x811] sm:$0xff] }
 0x106   : > { %23188 = vmatmul.mubr.msk.f32.gmra.mrb[116].mxu1 %vm562_vm1, %v485_v23  ;;  %24494 = vmatmul.mubr.msk.f32.gmra.mrb[20].mxu0 %vm562_vm1, %v19745_v24  ;;  %v19776_v23 = vld [vmem:[%s27364_s9 + $0x2ea] sm:$0xff]  ;;  %v517_v24 = vld [vmem:[%s27364_s9 + $0x819] sm:$0xff] }
 0x107   : > { %23190 = vmatprep.mubr.msk.f32.mxu1 %vm562_vm1, %v486_v25  ;;  %24496 = vmatprep.mubr.msk.f32.mxu0 %vm562_vm1, %v19746_v26  ;;  %v19777_v25 = vld [vmem:[%s27364_s9 + $0x2f2] sm:$0xff]  ;;  %v518_v26 = vld [vmem:[%s27364_s9 + $0x829] sm:$0xff] }
 0x10a   : > { %23191 = vmatmul.mubr.msk.f32.gmra.mrb[118].mxu1 %vm562_vm1, %v487_v27  ;;  %24497 = vmatmul.mubr.msk.f32.gmra.mrb[22].mxu0 %vm562_vm1, %v19747_v28  ;;  %v19778_v27 = vld [vmem:[%s27364_s9 + $0x302] sm:$0xff]  ;;  %v519_v28 = vld [vmem:[%s27364_s9 + $0x831] sm:$0xff] }
 0x10b   : > { %23193 = vmatprep.mubr.msk.f32.mxu1 %vm562_vm1, %v488_v29  ;;  %24499 = vmatprep.mubr.msk.f32.mxu0 %vm562_vm1, %v19748_v30  ;;  %v19779_v29 = vld [vmem:[%s27364_s9 + $0x30a] sm:$0xff]  ;;  %v520_v30 = vld [vmem:[%s27364_s9 + $0x841] sm:$0xff] }
 0x10e   : > { %23194 = vmatmul.mubr.msk.f32.gmra.mrb[120].mxu1 %vm562_vm1, %v489_v31  ;;  %24500 = vmatmul.mubr.msk.f32.gmra.mrb[24].mxu0 %vm562_vm1, %v19749_v32  ;;  %v19780_v31 = vld [vmem:[%s27364_s9 + $0x31a] sm:$0xff]  ;;  %v521_v32 = vld [vmem:[%s27364_s9 + $0x849] sm:$0xff] }
 0x10f   : > { %23196 = vmatprep.mubr.msk.f32.mxu1 %vm562_vm1, %v490_v33  ;;  %24502 = vmatprep.mubr.msk.f32.mxu0 %vm562_vm1, %v19750_v34  ;;  %v19781_v33 = vld [vmem:[%s27364_s9 + $0x322] sm:$0xff]  ;;  %v522_v34 = vld [vmem:[%s27364_s9 + $0x859] sm:$0xff] }
 0x112   : > { %23197 = vmatmul.mubr.msk.f32.gmra.mrb[122].mxu1 %vm562_vm1, %v491_v35  ;;  %24503 = vmatmul.mubr.msk.f32.gmra.mrb[26].mxu0 %vm562_vm1, %v19751_v36  ;;  %v19782_v35 = vld [vmem:[%s27364_s9 + $0x332] sm:$0xff]  ;;  %v523_v36 = vld [vmem:[%s27364_s9 + $0x861] sm:$0xff] }
 0x113   : > { %23199 = vmatprep.mubr.msk.f32.mxu1 %vm562_vm1, %v492_v37  ;;  %24505 = vmatprep.mubr.msk.f32.mxu0 %vm562_vm1, %v19752_v38  ;;  %v19783_v37 = vld [vmem:[%s27364_s9 + $0x33a] sm:$0xff]  ;;  %v524_v38 = vld [vmem:[%s27364_s9 + $0x871] sm:$0xff] }
 0x116   : > { %23200 = vmatmul.mubr.msk.f32.gmra.mrb[124].mxu1 %vm562_vm1, %v493_v39  ;;  %24506 = vmatmul.mubr.msk.f32.gmra.mrb[28].mxu0 %vm562_vm1, %v19753_v40  ;;  %v19784_v39 = vld [vmem:[%s27364_s9 + $0x34a] sm:$0xff]  ;;  %v525_v40 = vld [vmem:[%s27364_s9 + $0x879] sm:$0xff] }
 0x117   : > { %23202 = vmatprep.mubr.msk.f32.mxu1 %vm562_vm1, %v494_v41  ;;  %24508 = vmatprep.mubr.msk.f32.mxu0 %vm562_vm1, %v19754_v43  ;;  %v19785_v41 = vld [vmem:[%s27364_s9 + $0x352] sm:$0xff]  ;;  %v526_v43 = vld [vmem:[%s27364_s9 + $0x889] sm:$0xff] }
 0x11a   : > { %23203 = vmatmul.mubr.msk.f32.gmra.mrb[126].mxu1 %vm562_vm1, %v495_v44  ;;  %24509 = vmatmul.mubr.msk.f32.gmra.mrb[30].mxu0 %vm562_vm1, %v19755_v45  ;;  %v19786_v44 = vld [vmem:[%s27364_s9 + $0x362] sm:$0xff]  ;;  %v527_v45 = vld [vmem:[%s27364_s9 + $0x891] sm:$0xff] }
 0x11b   : > { %23205 = vmatprep.mubr.msk.f32.mxu1 %vm562_vm1, %v496_v46  ;;  %24511 = vmatprep.mubr.msk.f32.mxu0 %vm562_vm1, %v19756_v47  ;;  %v19787_v46 = vld [vmem:[%s27364_s9 + $0x36a] sm:$0xff]  ;;  %v528_v47 = vld [vmem:[%s27364_s9 + $0x8a1] sm:$0xff] }
 0x11e   : > { %23206 = vmatmul.mubr.msk.f32.gmra.mrb[128].mxu1 %vm562_vm1, %v497_v48  ;;  %24512 = vmatmul.mubr.msk.f32.gmra.mrb[32].mxu0 %vm562_vm1, %v19757_v49  ;;  %v19788_v48 = vld [vmem:[%s27364_s9 + $0x37a] sm:$0xff]  ;;  %v529_v49 = vld [vmem:[%s27364_s9 + $0x8a9] sm:$0xff] }
 0x11f   : > { %23208 = vmatprep.mubr.msk.f32.mxu1 %vm562_vm1, %v498_v51  ;;  %24514 = vmatprep.mubr.msk.f32.mxu0 %vm562_vm1, %v19758_v52  ;;  %v19789_v51 = vld [vmem:[%s27364_s9 + $0x382] sm:$0xff]  ;;  %v530_v52 = vld [vmem:[%s27364_s9 + $0x8b9] sm:$0xff] }
 0x122   : > { %23209 = vmatmul.mubr.msk.f32.gmra.mrb[130].mxu1 %vm562_vm1, %v499_v53  ;;  %24515 = vmatmul.mubr.msk.f32.gmra.mrb[34].mxu0 %vm562_vm1, %v19759_v54  ;;  %v19790_v53 = vld [vmem:[%s27364_s9 + $0x392] sm:$0xff]  ;;  %v531_v54 = vld [vmem:[%s27364_s9 + $0x8c1] sm:$0xff] }
 0x123   : > { %23211 = vmatprep.mubr.msk.f32.mxu1 %vm562_vm1, %v500_v55  ;;  %24517 = vmatprep.mubr.msk.f32.mxu0 %vm562_vm1, %v19760_v42  ;;  %v19791_v55 = vld [vmem:[%s27364_s9 + $0x39a] sm:$0xff]  ;;  %v532_v42 = vld [vmem:[%s27364_s9 + $0x8d1] sm:$0xff] }
 0x126   : > { %23212 = vmatmul.mubr.msk.f32.gmra.mrb[132].mxu1 %vm562_vm1, %v501_v56  ;;  %24518 = vmatmul.mubr.msk.f32.gmra.mrb[36].mxu0 %vm562_vm1, %v19761_v57  ;;  %v19792_v56 = vld [vmem:[%s27364_s9 + $0x3aa] sm:$0xff]  ;;  %v533_v57 = vld [vmem:[%s27364_s9 + $0x8d9] sm:$0xff] }
 0x127   : > { %23214 = vmatprep.mubr.msk.f32.mxu1 %vm562_vm1, %v502_v58  ;;  %24520 = vmatprep.mubr.msk.f32.mxu0 %vm562_vm1, %v19762_v59  ;;  %v19793_v58 = vld [vmem:[%s27364_s9 + $0x3b2] sm:$0xff]  ;;  %v534_v59 = vld [vmem:[%s27364_s9 + $0x8e9] sm:$0xff] }
 0x12a   : > { %23215 = vmatmul.mubr.msk.f32.gmra.mrb[134].mxu1 %vm562_vm1, %v503_v60  ;;  %24521 = vmatmul.mubr.msk.f32.gmra.mrb[38].mxu0 %vm562_vm1, %v19763_v61  ;;  %v19794_v60 = vld [vmem:[%s27364_s9 + $0x3c2] sm:$0xff]  ;;  %v535_v61 = vld [vmem:[%s27364_s9 + $0x8f1] sm:$0xff] }
 0x12b   : > { %23217 = vmatprep.mubr.msk.f32.mxu1 %vm562_vm1, %v504_v62  ;;  %24523 = vmatprep.mubr.msk.f32.mxu0 %vm562_vm1, %v19764_v63  ;;  %v19795_v62 = vld [vmem:[%s27364_s9 + $0x3ca] sm:$0xff] }
 0x12c   : > { %v536_v63 = vld [vmem:[%s27364_s9 + $0x931] sm:$0xff] }
 0x12e   : > { %23218 = vmatmul.mubr.msk.f32.gmra.mrb[136].mxu1 %vm562_vm1, %v505_v0  ;;  %24524 = vmatmul.mubr.msk.f32.gmra.mrb[40].mxu0 %vm562_vm1, %v19765_v1  ;;  %v19796_v0 = vld [vmem:[%s27364_s9 + $0x40a] sm:$0xff]  ;;  %v537_v1 = vld [vmem:[%s27364_s9 + $0x939] sm:$0xff] }
 0x12f   : > { %23220 = vmatprep.mubr.msk.f32.mxu1 %vm562_vm1, %v506_v2  ;;  %24526 = vmatprep.mubr.msk.f32.mxu0 %vm562_vm1, %v19766_v3  ;;  %v19797_v2 = vld [vmem:[%s27364_s9 + $0x412] sm:$0xff]  ;;  %v538_v3 = vld [vmem:[%s27364_s9 + $0x949] sm:$0xff] }
 0x132   : > { %23221 = vmatmul.mubr.msk.f32.gmra.mrb[138].mxu1 %vm562_vm1, %v507_v4  ;;  %24527 = vmatmul.mubr.msk.f32.gmra.mrb[42].mxu0 %vm562_vm1, %v19767_v5  ;;  %v19798_v4 = vld [vmem:[%s27364_s9 + $0x422] sm:$0xff]  ;;  %v539_v5 = vld [vmem:[%s27364_s9 + $0x951] sm:$0xff] }
 0x133   : > { %23223 = vmatprep.mubr.msk.f32.mxu1 %vm562_vm1, %v508_v6  ;;  %24529 = vmatprep.mubr.msk.f32.mxu0 %vm562_vm1, %v19768_v7  ;;  %v19799_v6 = vld [vmem:[%s27364_s9 + $0x42a] sm:$0xff]  ;;  %v540_v7 = vld [vmem:[%s27364_s9 + $0x961] sm:$0xff] }
 0x136   : > { %23224 = vmatmul.mubr.msk.f32.gmra.mrb[140].mxu1 %vm562_vm1, %v509_v8  ;;  %24530 = vmatmul.mubr.msk.f32.gmra.mrb[44].mxu0 %vm562_vm1, %v19769_v9  ;;  %v19800_v8 = vld [vmem:[%s27364_s9 + $0x43a] sm:$0xff]  ;;  %v541_v9 = vld [vmem:[%s27364_s9 + $0x969] sm:$0xff] }
 0x137   : > { %23226 = vmatprep.mubr.msk.f32.mxu1 %vm562_vm1, %v510_v10  ;;  %24532 = vmatprep.mubr.msk.f32.mxu0 %vm562_vm1, %v19770_v11  ;;  %v19801_v10 = vld [vmem:[%s27364_s9 + $0x442] sm:$0xff]  ;;  %v542_v11 = vld [vmem:[%s27364_s9 + $0x979] sm:$0xff] }
 0x13a   : > { %23227 = vmatmul.mubr.msk.f32.gmra.mrb[142].mxu1 %vm562_vm1, %v511_v12  ;;  %24533 = vmatmul.mubr.msk.f32.gmra.mrb[46].mxu0 %vm562_vm1, %v19771_v13  ;;  %v19802_v12 = vld [vmem:[%s27364_s9 + $0x452] sm:$0xff]  ;;  %v543_v13 = vld [vmem:[%s27364_s9 + $0x981] sm:$0xff] }
 0x13b   : > { %23229 = vmatprep.mubr.msk.f32.mxu1 %vm562_vm1, %v512_v14  ;;  %24535 = vmatprep.mubr.msk.f32.mxu0 %vm562_vm1, %v19772_v15  ;;  %v19803_v14 = vld [vmem:[%s27364_s9 + $0x45a] sm:$0xff]  ;;  %v544_v15 = vld [vmem:[%s27364_s9 + $0x991] sm:$0xff] }
 0x13e   : > { %23230 = vmatmul.mubr.msk.f32.gmra.mrb[144].mxu1 %vm562_vm1, %v513_v16  ;;  %24536 = vmatmul.mubr.msk.f32.gmra.mrb[48].mxu0 %vm562_vm1, %v19773_v17  ;;  %v19804_v16 = vld [vmem:[%s27364_s9 + $0x46a] sm:$0xff]  ;;  %v545_v17 = vld [vmem:[%s27364_s9 + $0x999] sm:$0xff] }
 0x13f   : > { %23232 = vmatprep.mubr.msk.f32.mxu1 %vm562_vm1, %v514_v18  ;;  %24538 = vmatprep.mubr.msk.f32.mxu0 %vm562_vm1, %v19774_v19  ;;  %v19805_v18 = vld [vmem:[%s27364_s9 + $0x472] sm:$0xff]  ;;  %v546_v19 = vld [vmem:[%s27364_s9 + $0x9a9] sm:$0xff] }
 0x142   : > { %23233 = vmatmul.mubr.msk.f32.gmra.mrb[146].mxu1 %vm562_vm1, %v515_v20  ;;  %24539 = vmatmul.mubr.msk.f32.gmra.mrb[50].mxu0 %vm562_vm1, %v19775_v21  ;;  %v19806_v20 = vld [vmem:[%s27364_s9 + $0x482] sm:$0xff]  ;;  %v547_v21 = vld [vmem:[%s27364_s9 + $0x9b1] sm:$0xff] }
 0x143   : > { %23235 = vmatprep.mubr.msk.f32.mxu1 %vm562_vm1, %v516_v22  ;;  %24541 = vmatprep.mubr.msk.f32.mxu0 %vm562_vm1, %v19776_v23  ;;  %v19807_v22 = vld [vmem:[%s27364_s9 + $0x48a] sm:$0xff]  ;;  %v548_v23 = vld [vmem:[%s27364_s9 + $0x9c1] sm:$0xff] }
 0x146   : > { %23236 = vmatmul.mubr.msk.f32.gmra.mrb[148].mxu1 %vm562_vm1, %v517_v24  ;;  %24542 = vmatmul.mubr.msk.f32.gmra.mrb[52].mxu0 %vm562_vm1, %v19777_v25  ;;  %v19808_v24 = vld [vmem:[%s27364_s9 + $0x49a] sm:$0xff]  ;;  %v549_v25 = vld [vmem:[%s27364_s9 + $0x9c9] sm:$0xff] }
 0x147   : > { %23238 = vmatprep.mubr.msk.f32.mxu1 %vm562_vm1, %v518_v26  ;;  %24544 = vmatprep.mubr.msk.f32.mxu0 %vm562_vm1, %v19778_v27  ;;  %v19809_v26 = vld [vmem:[%s27364_s9 + $0x4a2] sm:$0xff]  ;;  %v550_v27 = vld [vmem:[%s27364_s9 + $0x9d9] sm:$0xff] }
 0x14a   : > { %23239 = vmatmul.mubr.msk.f32.gmra.mrb[150].mxu1 %vm562_vm1, %v519_v28  ;;  %24545 = vmatmul.mubr.msk.f32.gmra.mrb[54].mxu0 %vm562_vm1, %v19779_v29  ;;  %v19810_v28 = vld [vmem:[%s27364_s9 + $0x4b2] sm:$0xff]  ;;  %v551_v29 = vld [vmem:[%s27364_s9 + $0x9e1] sm:$0xff] }
 0x14b   : > { %23241 = vmatprep.mubr.msk.f32.mxu1 %vm562_vm1, %v520_v30  ;;  %24547 = vmatprep.mubr.msk.f32.mxu0 %vm562_vm1, %v19780_v31  ;;  %v19811_v30 = vld [vmem:[%s27364_s9 + $0x4ba] sm:$0xff]  ;;  %v552_v31 = vld [vmem:[%s27364_s9 + $0x9f1] sm:$0xff] }
 0x14e   : > { %23242 = vmatmul.mubr.msk.f32.gmra.mrb[152].mxu1 %vm562_vm1, %v521_v32  ;;  %24548 = vmatmul.mubr.msk.f32.gmra.mrb[56].mxu0 %vm562_vm1, %v19781_v33  ;;  %v19812_v32 = vld [vmem:[%s27364_s9 + $0x4ca] sm:$0xff]  ;;  %v553_v33 = vld [vmem:[%s27364_s9 + $0x9f9] sm:$0xff] }
 0x14f   : > { %23244 = vmatprep.mubr.msk.f32.mxu1 %vm562_vm1, %v522_v34  ;;  %24550 = vmatprep.mubr.msk.f32.mxu0 %vm562_vm1, %v19782_v35  ;;  %v19813_v34 = vld [vmem:[%s27364_s9 + $0x4d2] sm:$0xff]  ;;  %v554_v35 = vld [vmem:[%s27364_s9 + $0xa09] sm:$0xff] }
 0x152   : > { %23245 = vmatmul.mubr.msk.f32.gmra.mrb[154].mxu1 %vm562_vm1, %v523_v36  ;;  %24551 = vmatmul.mubr.msk.f32.gmra.mrb[58].mxu0 %vm562_vm1, %v19783_v37  ;;  %v19814_v36 = vld [vmem:[%s27364_s9 + $0x4e2] sm:$0xff]  ;;  %v555_v37 = vld [vmem:[%s27364_s9 + $0xa11] sm:$0xff] }
 0x153   : > { %23247 = vmatprep.mubr.msk.f32.mxu1 %vm562_vm1, %v524_v38  ;;  %24553 = vmatprep.mubr.msk.f32.mxu0 %vm562_vm1, %v19784_v39  ;;  %v19815_v38 = vld [vmem:[%s27364_s9 + $0x4ea] sm:$0xff]  ;;  %v556_v39 = vld [vmem:[%s27364_s9 + $0xa21] sm:$0xff] }
 0x156   : > { %23248 = vmatmul.mubr.msk.f32.gmra.mrb[156].mxu1 %vm562_vm1, %v525_v40  ;;  %24554 = vmatmul.mubr.msk.f32.gmra.mrb[60].mxu0 %vm562_vm1, %v19785_v41  ;;  %v19816_v40 = vld [vmem:[%s27364_s9 + $0x4fa] sm:$0xff]  ;;  %v557_v41 = vld [vmem:[%s27364_s9 + $0xa29] sm:$0xff] }
 0x157   : > { %23250 = vmatprep.mubr.msk.f32.mxu1 %vm562_vm1, %v526_v43  ;;  %24556 = vmatprep.mubr.msk.f32.mxu0 %vm562_vm1, %v19786_v44  ;;  %v19817_v43 = vld [vmem:[%s27364_s9 + $0x502] sm:$0xff]  ;;  %v558_v44 = vld [vmem:[%s27364_s9 + $0xa39] sm:$0xff] }
 0x15a   : > { %23251 = vmatmul.mubr.msk.f32.gmra.mrb[158].mxu1 %vm562_vm1, %v527_v45  ;;  %24557 = vmatmul.mubr.msk.f32.gmra.mrb[62].mxu0 %vm562_vm1, %v19787_v46  ;;  %v19818_v45 = vld [vmem:[%s27364_s9 + $0x512] sm:$0xff]  ;;  %v559_v46 = vld [vmem:[%s27364_s9 + $0xa41] sm:$0xff] }
 0x15b   : > { %23253 = vmatprep.mubr.msk.f32.mxu1 %vm562_vm1, %v528_v47  ;;  %24559 = vmatprep.mubr.msk.f32.mxu0 %vm562_vm1, %v19788_v48  ;;  %v19819_v47 = vld [vmem:[%s27364_s9 + $0x51a] sm:$0xff] }
 0x15c   : > { %v175_v48 = vld [vmem:[%s27364_s9] sm:$0xff] }
 0x15e   : > { %23254 = vmatmul.mubr.msk.f32.gmra.mrb[160].mxu1 %vm562_vm1, %v529_v49  ;;  %24560 = vmatmul.mubr.msk.f32.gmra.mrb[64].mxu0 %vm562_vm1, %v19789_v51  ;;  %v19820_v49 = vld [vmem:[%s27364_s9 + $0x55a] sm:$0xff]  ;;  %v176_v51 = vld [vmem:[%s27364_s9 + $0x8] sm:$0xff] }
 0x15f   : > { %23256 = vmatprep.mubr.msk.f32.mxu1 %vm562_vm1, %v530_v52  ;;  %24562 = vmatprep.mubr.msk.f32.mxu0 %vm562_vm1, %v19790_v53  ;;  %v19821_v52 = vld [vmem:[%s27364_s9 + $0x562] sm:$0xff]  ;;  %v177_v53 = vld [vmem:[%s27364_s9 + $0x18] sm:$0xff] }
 0x162   : > { %23257 = vmatmul.mubr.msk.f32.gmra.mrb[162].mxu1 %vm562_vm1, %v531_v54  ;;  %24563 = vmatmul.mubr.msk.f32.gmra.mrb[66].mxu0 %vm562_vm1, %v19791_v55  ;;  %v19822_v54 = vld [vmem:[%s27364_s9 + $0x572] sm:$0xff]  ;;  %v178_v55 = vld [vmem:[%s27364_s9 + $0x20] sm:$0xff] }
 0x163   : > { %23259 = vmatprep.mubr.msk.f32.mxu1 %vm562_vm1, %v532_v42  ;;  %24565 = vmatprep.mubr.msk.f32.mxu0 %vm562_vm1, %v19792_v56  ;;  %v19823_v42 = vld [vmem:[%s27364_s9 + $0x57a] sm:$0xff]  ;;  %v28081_v56 = vld [vmem:[%s27364_s9 + $0x30] sm:$0xff] }
 0x166   : > { %23260 = vmatmul.mubr.msk.f32.gmra.mrb[164].mxu1 %vm562_vm1, %v533_v57  ;;  %24566 = vmatmul.mubr.msk.f32.gmra.mrb[68].mxu0 %vm562_vm1, %v19793_v58  ;;  %v19824_v57 = vld [vmem:[%s27364_s9 + $0x58a] sm:$0xff]  ;;  %v19825_v58 = vld [vmem:[%s27364_s9 + $0x592] sm:$0xff] }
 0x167   : > { %23262 = vmatprep.mubr.msk.f32.mxu1 %vm562_vm1, %v534_v59  ;;  %24568 = vmatprep.mubr.msk.f32.mxu0 %vm562_vm1, %v19794_v60  ;;  %v28094_v59 = vld [vmem:[%s27364_s9 + $0x48] sm:$0xff] }
 0x168   : > { %v19826_v60 = vld [vmem:[%s27364_s9 + $0x5a2] sm:$0xff] }
 0x16a   : > { %23263 = vmatmul.mubr.msk.f32.gmra.mrb[166].mxu1 %vm562_vm1, %v535_v61  ;;  %24569 = vmatmul.mubr.msk.f32.gmra.mrb[70].mxu0 %vm562_vm1, %v19795_v62  ;;  %v28104_v61 = vld [vmem:[%s27364_s9 + $0x50] sm:$0xff] }
 0x16b   : > { %23265 = vmatprep.mubr.msk.f32.mxu1 %vm562_vm1, %v536_v63  ;;  %24571 = vmatprep.mubr.msk.f32.mxu0 %vm562_vm1, %v19796_v0  ;;  %v19827_v62 = vld [vmem:[%s27364_s9 + $0x5aa] sm:$0xff]  ;;  %v28108_v63 = vld [vmem:[%s27364_s9 + $0x60] sm:$0xff] }
 0x16c   : > { %v19828_v0 = vld [vmem:[%s27364_s9 + $0x5ba] sm:$0xff] }
 0x16e   : > { %23266 = vmatmul.mubr.msk.f32.gmra.mrb[168].mxu1 %vm562_vm1, %v537_v1  ;;  %24572 = vmatmul.mubr.msk.f32.gmra.mrb[72].mxu0 %vm562_vm1, %v19797_v2  ;;  %v28118_v1 = vld [vmem:[%s27364_s9 + $0x68] sm:$0xff] }
 0x16f   : > { %23268 = vmatprep.mubr.msk.f32.mxu1 %vm562_vm1, %v538_v3  ;;  %24574 = vmatprep.mubr.msk.f32.mxu0 %vm562_vm1, %v19798_v4  ;;  %v19829_v2 = vld [vmem:[%s27364_s9 + $0x5c2] sm:$0xff]  ;;  %v28122_v3 = vld [vmem:[%s27364_s9 + $0x78] sm:$0xff] }
 0x170   : > { %v19830_v4 = vld [vmem:[%s27364_s9 + $0x5d2] sm:$0xff] }
 0x172   : > { %23269 = vmatmul.mubr.msk.f32.gmra.mrb[170].mxu1 %vm562_vm1, %v539_v5  ;;  %24575 = vmatmul.mubr.msk.f32.gmra.mrb[74].mxu0 %vm562_vm1, %v19799_v6  ;;  %v28132_v5 = vld [vmem:[%s27364_s9 + $0x80] sm:$0xff] }
 0x173   : > { %23271 = vmatprep.mubr.msk.f32.mxu1 %vm562_vm1, %v540_v7  ;;  %24577 = vmatprep.mubr.msk.f32.mxu0 %vm562_vm1, %v19800_v8  ;;  %v19831_v6 = vld [vmem:[%s27364_s9 + $0x5da] sm:$0xff]  ;;  %v28136_v7 = vld [vmem:[%s27364_s9 + $0x90] sm:$0xff] }
 0x174   : > { %v19832_v8 = vld [vmem:[%s27364_s9 + $0x5ea] sm:$0xff] }
 0x176   : > { %23272 = vmatmul.mubr.msk.f32.gmra.mrb[172].mxu1 %vm562_vm1, %v541_v9  ;;  %24578 = vmatmul.mubr.msk.f32.gmra.mrb[76].mxu0 %vm562_vm1, %v19801_v10  ;;  %v28146_v9 = vld [vmem:[%s27364_s9 + $0x98] sm:$0xff] }
 0x177   : > { %23274 = vmatprep.mubr.msk.f32.mxu1 %vm562_vm1, %v542_v11  ;;  %24580 = vmatprep.mubr.msk.f32.mxu0 %vm562_vm1, %v19802_v12  ;;  %v19833_v10 = vld [vmem:[%s27364_s9 + $0x5f2] sm:$0xff]  ;;  %v28150_v11 = vld [vmem:[%s27364_s9 + $0xa8] sm:$0xff] }
 0x178   : > { %v19834_v12 = vld [vmem:[%s27364_s9 + $0x602] sm:$0xff] }
 0x17a   : > { %23275 = vmatmul.mubr.msk.f32.gmra.mrb[174].mxu1 %vm562_vm1, %v543_v13  ;;  %24581 = vmatmul.mubr.msk.f32.gmra.mrb[78].mxu0 %vm562_vm1, %v19803_v14  ;;  %v28160_v13 = vld [vmem:[%s27364_s9 + $0xb0] sm:$0xff] }
 0x17b   : > { %23277 = vmatprep.mubr.msk.f32.mxu1 %vm562_vm1, %v544_v15  ;;  %24583 = vmatprep.mubr.msk.f32.mxu0 %vm562_vm1, %v19804_v16  ;;  %v19835_v14 = vld [vmem:[%s27364_s9 + $0x60a] sm:$0xff]  ;;  %v28164_v15 = vld [vmem:[%s27364_s9 + $0xc0] sm:$0xff] }
 0x17c   : > { %v19836_v16 = vld [vmem:[%s27364_s9 + $0x61a] sm:$0xff] }
 0x17e   : > { %23278 = vmatmul.mubr.msk.f32.gmra.mrb[176].mxu1 %vm562_vm1, %v545_v17  ;;  %24584 = vmatmul.mubr.msk.f32.gmra.mrb[80].mxu0 %vm562_vm1, %v19805_v18  ;;  %v28174_v17 = vld [vmem:[%s27364_s9 + $0xc8] sm:$0xff] }
 0x17f   : > { %23280 = vmatprep.mubr.msk.f32.mxu1 %vm562_vm1, %v546_v19  ;;  %24586 = vmatprep.mubr.msk.f32.mxu0 %vm562_vm1, %v19806_v20  ;;  %v19837_v18 = vld [vmem:[%s27364_s9 + $0x622] sm:$0xff]  ;;  %v28178_v19 = vld [vmem:[%s27364_s9 + $0xd8] sm:$0xff] }
 0x180   : > { %v19838_v20 = vld [vmem:[%s27364_s9 + $0x632] sm:$0xff] }
 0x182   : > { %23281 = vmatmul.mubr.msk.f32.gmra.mrb[178].mxu1 %vm562_vm1, %v547_v21  ;;  %24587 = vmatmul.mubr.msk.f32.gmra.mrb[82].mxu0 %vm562_vm1, %v19807_v22  ;;  %v28188_v21 = vld [vmem:[%s27364_s9 + $0xe0] sm:$0xff] }
 0x183   : > { %23283 = vmatprep.mubr.msk.f32.mxu1 %vm562_vm1, %v548_v23  ;;  %24589 = vmatprep.mubr.msk.f32.mxu0 %vm562_vm1, %v19808_v24  ;;  %v19839_v22 = vld [vmem:[%s27364_s9 + $0x63a] sm:$0xff]  ;;  %v28192_v23 = vld [vmem:[%s27364_s9 + $0xf0] sm:$0xff] }
 0x184   : > { %v19840_v24 = vld [vmem:[%s27364_s9 + $0x64a] sm:$0xff] }
 0x186   : > { %23284 = vmatmul.mubr.msk.f32.gmra.mrb[180].mxu1 %vm562_vm1, %v549_v25  ;;  %24590 = vmatmul.mubr.msk.f32.gmra.mrb[84].mxu0 %vm562_vm1, %v19809_v26  ;;  %v28202_v25 = vld [vmem:[%s27364_s9 + $0xf8] sm:$0xff] }
 0x187   : > { %23286 = vmatprep.mubr.msk.f32.mxu1 %vm562_vm1, %v550_v27  ;;  %24592 = vmatprep.mubr.msk.f32.mxu0 %vm562_vm1, %v19810_v28  ;;  %v19841_v26 = vld [vmem:[%s27364_s9 + $0x652] sm:$0xff]  ;;  %v28206_v27 = vld [vmem:[%s27364_s9 + $0x108] sm:$0xff] }
 0x188   : > { %v19842_v28 = vld [vmem:[%s27364_s9 + $0x662] sm:$0xff] }
 0x18a   : > { %23287 = vmatmul.mubr.msk.f32.gmra.mrb[182].mxu1 %vm562_vm1, %v551_v29  ;;  %24593 = vmatmul.mubr.msk.f32.gmra.mrb[86].mxu0 %vm562_vm1, %v19811_v30  ;;  %v28216_v29 = vld [vmem:[%s27364_s9 + $0x110] sm:$0xff] }
 0x18b   : > { %23289 = vmatprep.mubr.msk.f32.mxu1 %vm562_vm1, %v552_v31  ;;  %24595 = vmatprep.mubr.msk.f32.mxu0 %vm562_vm1, %v19812_v32  ;;  %v19843_v30 = vld [vmem:[%s27364_s9 + $0x66a] sm:$0xff] }
 0x18c   : > { %v199_v31 = vld [vmem:[%s27364_s9 + $0x150] sm:$0xff] }
 0x18d   : > { %v19844_v32 = vld [vmem:[%s27364_s9 + $0x6aa] sm:$0xff] }
 0x18e   : > { %23290 = vmatmul.mubr.msk.f32.gmra.mrb[184].mxu1 %vm562_vm1, %v553_v33  ;;  %24596 = vmatmul.mubr.msk.f32.gmra.mrb[88].mxu0 %vm562_vm1, %v19813_v34  ;;  %v200_v33 = vld [vmem:[%s27364_s9 + $0x158] sm:$0xff] }
 0x18f   : > { %23292 = vmatprep.mubr.msk.f32.mxu1 %vm562_vm1, %v554_v35  ;;  %24598 = vmatprep.mubr.msk.f32.mxu0 %vm562_vm1, %v19814_v36  ;;  %v19845_v34 = vld [vmem:[%s27364_s9 + $0x6b2] sm:$0xff]  ;;  %v201_v35 = vld [vmem:[%s27364_s9 + $0x168] sm:$0xff] }
 0x190   : > { %v19846_v36 = vld [vmem:[%s27364_s9 + $0x6c2] sm:$0xff] }
 0x192   : > { %23293 = vmatmul.mubr.msk.f32.gmra.mrb[186].mxu1 %vm562_vm1, %v555_v37  ;;  %24599 = vmatmul.mubr.msk.f32.gmra.mrb[90].mxu0 %vm562_vm1, %v19815_v38  ;;  %v202_v37 = vld [vmem:[%s27364_s9 + $0x170] sm:$0xff] }
 0x193   : > { %23295 = vmatprep.mubr.msk.f32.mxu1 %vm562_vm1, %v556_v39  ;;  %24601 = vmatprep.mubr.msk.f32.mxu0 %vm562_vm1, %v19816_v40  ;;  %v19847_v38 = vld [vmem:[%s27364_s9 + $0x6ca] sm:$0xff]  ;;  %v28237_v39 = vld [vmem:[%s27364_s9 + $0x180] sm:$0xff] }
 0x194   : > { %v19848_v40 = vld [vmem:[%s27364_s9 + $0x6da] sm:$0xff] }
 0x196   : > { %23296 = vmatmul.mubr.msk.f32.gmra.mrb[188].mxu1 %vm562_vm1, %v557_v41  ;;  %24602 = vmatmul.mubr.msk.f32.gmra.mrb[92].mxu0 %vm562_vm1, %v19817_v43  ;;  %v28246_v41 = vld [vmem:[%s27364_s9 + $0x188] sm:$0xff] }
 0x197   : > { %23298 = vmatprep.mubr.msk.f32.mxu1 %vm562_vm1, %v558_v44  ;;  %24604 = vmatprep.mubr.msk.f32.mxu0 %vm562_vm1, %v19818_v45  ;;  %v19849_v43 = vld [vmem:[%s27364_s9 + $0x6e2] sm:$0xff]  ;;  %v28250_v44 = vld [vmem:[%s27364_s9 + $0x198] sm:$0xff] }
 0x198   : > { %v19850_v45 = vld [vmem:[%s27364_s9 + $0x6f2] sm:$0xff] }
 0x19a   : > { %23299 = vmatmul.mubr.msk.f32.gmra.mrb[190].mxu1 %vm562_vm1, %v559_v46  ;;  %24605 = vmatmul.mubr.msk.f32.gmra.mrb[94].mxu0 %vm562_vm1, %v19819_v47  ;;  %v28260_v46 = vld [vmem:[%s27364_s9 + $0x1a0] sm:$0xff] }
 0x19b   : > { %23303 = vmatprep.mubr.msk.f32.mxu1 %vm562_vm1, %v175_v48  ;;  %24607 = vmatprep.mubr.msk.f32.mxu0 %vm562_vm1, %v19820_v49  ;;  %v19851_v47 = vld [vmem:[%s27364_s9 + $0x6fa] sm:$0xff]  ;;  %v28264_v48 = vld [vmem:[%s27364_s9 + $0x1b0] sm:$0xff] }
 0x19c   : > { %v19852_v49 = vld [vmem:[%s27364_s9 + $0x70a] sm:$0xff] }
 0x19e   : > { %23304 = vmatmul.mubr.msk.f32.vlgmr.msra.gmra.mrb[0].mxu1 %vm562_vm1, %v176_v51  ;;  %24608 = vmatmul.mubr.msk.f32.gmra.mrb[96].mxu0 %vm562_vm1, %v19821_v52  ;;  %v28274_v51 = vld [vmem:[%s27364_s9 + $0x1b8] sm:$0xff] }
 0x19f   : > { %23592 = vmatpush3.msk.msra.mxu1 %vm1139_vm0, %v27810_v50  ;;  %23306 = vmatprep.mubr.msk.f32.mxu1 %vm562_vm1, %v177_v53  ;;  %v28090_v50 = vld [vmem:[%s27364_s9 + $0x38] sm:$0xff] }
 0x1a0   : > { %24610 = vmatprep.mubr.msk.f32.mxu0 %vm562_vm1, %v19822_v54  ;;  %v19853_v52 = vld [vmem:[%s27364_s9 + $0x712] sm:$0xff]  ;;  %v28280_v53 = vld [vmem:[%s32206_s1 + $0x1c] sm:$0xf]  ;;  %v28283_v54 = vld [vmem:[%s27364_s9 + $0x1c8] sm:$0xff] }
 0x1a1   : > { %25041 = vmatprep.subr.msk.mxu0 %vm1139_vm0, %v28280_v53 }
 0x1a2   : > { %23307 = vmatmul.mubr.msk.f32.gmra.mrb[2].mxu1 %vm562_vm1, %v178_v55  ;;  %24611 = vmatmul.mubr.msk.f32.gmra.mrb[98].mxu0 %vm562_vm1, %v19823_v42  ;;  %v19854_v55 = vld [vmem:[%s27364_s9 + $0x722] sm:$0xff]  ;;  %v28295_v42 = vld [vmem:[%s27364_s9 + $0x1d0] sm:$0xff] }
 0x1a3   : > { %23309 = vmatprep.mubr.msk.f32.mxu1 %vm562_vm1, %v28081_v56  ;;  %24613 = vmatprep.mubr.msk.f32.mxu0 %vm562_vm1, %v19824_v57  ;;  %v19855_v57 = vld [vmem:[%s27364_s9 + $0x72a] sm:$0xff] }
 0x1a6   : > { %23310 = vmatmul.mubr.msk.f32.gmra.mrb[4].mxu1 %vm562_vm1, %v28090_v50  ;;  %24614 = vmatmul.mubr.msk.f32.gmra.mrb[100].mxu0 %vm562_vm1, %v19825_v58  ;;  %v28299_v58 = vld [vmem:[%s27364_s9 + $0x1e0] sm:$0xff] }
 0x1a7   : > { %23312 = vmatprep.mubr.msk.f32.mxu1 %vm562_vm1, %v28094_v59  ;;  %24616 = vmatprep.mubr.msk.f32.mxu0 %vm562_vm1, %v19826_v60  ;;  %v19856_v60 = vld [vmem:[%s27364_s9 + $0x73a] sm:$0xff] }
 0x1aa   : > { %23313 = vmatmul.mubr.msk.f32.gmra.mrb[6].mxu1 %vm562_vm1, %v28104_v61  ;;  %24617 = vmatmul.mubr.msk.f32.gmra.mrb[102].mxu0 %vm562_vm1, %v19827_v62  ;;  %v28309_v62 = vld [vmem:[%s27364_s9 + $0x1e8] sm:$0xff] }
 0x1ab   : > { %23315 = vmatprep.mubr.msk.f32.mxu1 %vm562_vm1, %v28108_v63  ;;  %24619 = vmatprep.mubr.msk.f32.mxu0 %vm562_vm1, %v19828_v0  ;;  %v19857_v0 = vld [vmem:[%s27364_s9 + $0x742] sm:$0xff] }
 0x1ae   : > { %23316 = vmatmul.mubr.msk.f32.gmra.mrb[8].mxu1 %vm562_vm1, %v28118_v1  ;;  %24620 = vmatmul.mubr.msk.f32.gmra.mrb[104].mxu0 %vm562_vm1, %v19829_v2  ;;  %v28313_v2 = vld [vmem:[%s27364_s9 + $0x1f8] sm:$0xff] }
 0x1af   : > { %23318 = vmatprep.mubr.msk.f32.mxu1 %vm562_vm1, %v28122_v3  ;;  %24622 = vmatprep.mubr.msk.f32.mxu0 %vm562_vm1, %v19830_v4  ;;  %v19858_v4 = vld [vmem:[%s27364_s9 + $0x752] sm:$0xff] }
 0x1b2   : > { %23319 = vmatmul.mubr.msk.f32.gmra.mrb[10].mxu1 %vm562_vm1, %v28132_v5  ;;  %24623 = vmatmul.mubr.msk.f32.gmra.mrb[106].mxu0 %vm562_vm1, %v19831_v6  ;;  %v28323_v6 = vld [vmem:[%s27364_s9 + $0x200] sm:$0xff] }
 0x1b3   : > { %23321 = vmatprep.mubr.msk.f32.mxu1 %vm562_vm1, %v28136_v7  ;;  %24625 = vmatprep.mubr.msk.f32.mxu0 %vm562_vm1, %v19832_v8  ;;  %v19859_v8 = vld [vmem:[%s27364_s9 + $0x75a] sm:$0xff] }
 0x1b6   : > { %23322 = vmatmul.mubr.msk.f32.gmra.mrb[12].mxu1 %vm562_vm1, %v28146_v9  ;;  %24626 = vmatmul.mubr.msk.f32.gmra.mrb[108].mxu0 %vm562_vm1, %v19833_v10  ;;  %v28327_v10 = vld [vmem:[%s27364_s9 + $0x210] sm:$0xff] }
 0x1b7   : > { %23324 = vmatprep.mubr.msk.f32.mxu1 %vm562_vm1, %v28150_v11  ;;  %24628 = vmatprep.mubr.msk.f32.mxu0 %vm562_vm1, %v19834_v12  ;;  %v19860_v12 = vld [vmem:[%s27364_s9 + $0x76a] sm:$0xff] }
 0x1ba   : > { %23325 = vmatmul.mubr.msk.f32.gmra.mrb[14].mxu1 %vm562_vm1, %v28160_v13  ;;  %24629 = vmatmul.mubr.msk.f32.gmra.mrb[110].mxu0 %vm562_vm1, %v19835_v14  ;;  %v28337_v14 = vld [vmem:[%s27364_s9 + $0x218] sm:$0xff] }
 0x1bb   : > { %23327 = vmatprep.mubr.msk.f32.mxu1 %vm562_vm1, %v28164_v15  ;;  %24631 = vmatprep.mubr.msk.f32.mxu0 %vm562_vm1, %v19836_v16  ;;  %v19861_v16 = vld [vmem:[%s27364_s9 + $0x772] sm:$0xff] }
 0x1be   : > { %23328 = vmatmul.mubr.msk.f32.gmra.mrb[16].mxu1 %vm562_vm1, %v28174_v17  ;;  %24632 = vmatmul.mubr.msk.f32.gmra.mrb[112].mxu0 %vm562_vm1, %v19837_v18  ;;  %v28341_v18 = vld [vmem:[%s27364_s9 + $0x228] sm:$0xff] }
 0x1bf   : > { %23330 = vmatprep.mubr.msk.f32.mxu1 %vm562_vm1, %v28178_v19  ;;  %24634 = vmatprep.mubr.msk.f32.mxu0 %vm562_vm1, %v19838_v20  ;;  %v19862_v20 = vld [vmem:[%s27364_s9 + $0x782] sm:$0xff] }
 0x1c2   : > { %23331 = vmatmul.mubr.msk.f32.gmra.mrb[18].mxu1 %vm562_vm1, %v28188_v21  ;;  %24635 = vmatmul.mubr.msk.f32.gmra.mrb[114].mxu0 %vm562_vm1, %v19839_v22  ;;  %v28351_v22 = vld [vmem:[%s27364_s9 + $0x230] sm:$0xff] }
 0x1c3   : > { %23333 = vmatprep.mubr.msk.f32.mxu1 %vm562_vm1, %v28192_v23  ;;  %24637 = vmatprep.mubr.msk.f32.mxu0 %vm562_vm1, %v19840_v24  ;;  %v19863_v24 = vld [vmem:[%s27364_s9 + $0x78a] sm:$0xff] }
 0x1c6   : > { %23334 = vmatmul.mubr.msk.f32.gmra.mrb[20].mxu1 %vm562_vm1, %v28202_v25  ;;  %24638 = vmatmul.mubr.msk.f32.gmra.mrb[116].mxu0 %vm562_vm1, %v19841_v26  ;;  %v28355_v26 = vld [vmem:[%s27364_s9 + $0x240] sm:$0xff] }
 0x1c7   : > { %23336 = vmatprep.mubr.msk.f32.mxu1 %vm562_vm1, %v28206_v27  ;;  %24640 = vmatprep.mubr.msk.f32.mxu0 %vm562_vm1, %v19842_v28  ;;  %v19864_v28 = vld [vmem:[%s27364_s9 + $0x79a] sm:$0xff] }
 0x1ca   : > { %23337 = vmatmul.mubr.msk.f32.gmra.mrb[22].mxu1 %vm562_vm1, %v28216_v29  ;;  %24641 = vmatmul.mubr.msk.f32.gmra.mrb[118].mxu0 %vm562_vm1, %v19843_v30  ;;  %v28365_v30 = vld [vmem:[%s27364_s9 + $0x248] sm:$0xff] }
 0x1cb   : > { %23339 = vmatprep.mubr.msk.f32.mxu1 %vm562_vm1, %v199_v31  ;;  %24643 = vmatprep.mubr.msk.f32.mxu0 %vm562_vm1, %v19844_v32  ;;  %v19865_v31 = vld [vmem:[%s27364_s9 + $0x7a2] sm:$0xff]  ;;  %v28369_v32 = vld [vmem:[%s27364_s9 + $0x258] sm:$0xff] }
 0x1ce   : > { %23340 = vmatmul.mubr.msk.f32.gmra.mrb[24].mxu1 %vm562_vm1, %v200_v33  ;;  %24644 = vmatmul.mubr.msk.f32.gmra.mrb[120].mxu0 %vm562_vm1, %v19845_v34  ;;  %v19866_v33 = vld [vmem:[%s27364_s9 + $0x7b2] sm:$0xff]  ;;  %v28379_v34 = vld [vmem:[%s27364_s9 + $0x260] sm:$0xff] }
 0x1cf   : > { %23342 = vmatprep.mubr.msk.f32.mxu1 %vm562_vm1, %v201_v35  ;;  %24646 = vmatprep.mubr.msk.f32.mxu0 %vm562_vm1, %v19846_v36  ;;  %v19867_v35 = vld [vmem:[%s27364_s9 + $0x7ba] sm:$0xff] }
 0x1d0   : > { %v223_v36 = vld [vmem:[%s27364_s9 + $0x2a0] sm:$0xff] }
 0x1d2   : > { %23343 = vmatmul.mubr.msk.f32.gmra.mrb[26].mxu1 %vm562_vm1, %v202_v37  ;;  %24647 = vmatmul.mubr.msk.f32.gmra.mrb[122].mxu0 %vm562_vm1, %v19847_v38  ;;  %v19868_v37 = vld [vmem:[%s27364_s9 + $0x7fa] sm:$0xff]  ;;  %v224_v38 = vld [vmem:[%s27364_s9 + $0x2a8] sm:$0xff] }
 0x1d3   : > { %23345 = vmatprep.mubr.msk.f32.mxu1 %vm562_vm1, %v28237_v39  ;;  %24649 = vmatprep.mubr.msk.f32.mxu0 %vm562_vm1, %v19848_v40  ;;  %v19869_v40 = vld [vmem:[%s27364_s9 + $0x802] sm:$0xff] }
 0x1d6   : > { %23346 = vmatmul.mubr.msk.f32.gmra.mrb[28].mxu1 %vm562_vm1, %v28246_v41  ;;  %24650 = vmatmul.mubr.msk.f32.gmra.mrb[124].mxu0 %vm562_vm1, %v19849_v43  ;;  %v225_v43 = vld [vmem:[%s27364_s9 + $0x2b8] sm:$0xff] }
 0x1d7   : > { %23348 = vmatprep.mubr.msk.f32.mxu1 %vm562_vm1, %v28250_v44  ;;  %24652 = vmatprep.mubr.msk.f32.mxu0 %vm562_vm1, %v19850_v45  ;;  %v19870_v45 = vld [vmem:[%s27364_s9 + $0x812] sm:$0xff] }
 0x1da   : > { %23349 = vmatmul.mubr.msk.f32.gmra.mrb[30].mxu1 %vm562_vm1, %v28260_v46  ;;  %24653 = vmatmul.mubr.msk.f32.gmra.mrb[126].mxu0 %vm562_vm1, %v19851_v47  ;;  %v226_v47 = vld [vmem:[%s27364_s9 + $0x2c0] sm:$0xff] }
 0x1db   : > { %23351 = vmatprep.mubr.msk.f32.mxu1 %vm562_vm1, %v28264_v48  ;;  %24655 = vmatprep.mubr.msk.f32.mxu0 %vm562_vm1, %v19852_v49  ;;  %v19871_v49 = vld [vmem:[%s27364_s9 + $0x81a] sm:$0xff] }
 0x1de   : > { %23352 = vmatmul.mubr.msk.f32.gmra.mrb[32].mxu1 %vm562_vm1, %v28274_v51  ;;  %24656 = vmatmul.mubr.msk.f32.gmra.mrb[128].mxu0 %vm562_vm1, %v19853_v52  ;;  %v28400_v52 = vld [vmem:[%s27364_s9 + $0x2d0] sm:$0xff] }
 0x1df   : > { %23354 = vmatprep.mubr.msk.f32.mxu1 %vm562_vm1, %v28283_v54  ;;  %24658 = vmatprep.mubr.msk.f32.mxu0 %vm562_vm1, %v19854_v55  ;;  %v19872_v55 = vld [vmem:[%s27364_s9 + $0x82a] sm:$0xff] }
 0x1e2   : > { %23355 = vmatmul.mubr.msk.f32.gmra.mrb[34].mxu1 %vm562_vm1, %v28295_v42  ;;  %24659 = vmatmul.mubr.msk.f32.gmra.mrb[130].mxu0 %vm562_vm1, %v19855_v57  ;;  %v28409_v57 = vld [vmem:[%s27364_s9 + $0x2d8] sm:$0xff] }
 0x1e3   : > { %23357 = vmatprep.mubr.msk.f32.mxu1 %vm562_vm1, %v28299_v58  ;;  %24661 = vmatprep.mubr.msk.f32.mxu0 %vm562_vm1, %v19856_v60  ;;  %v19873_v60 = vld [vmem:[%s27364_s9 + $0x832] sm:$0xff] }
 0x1e6   : > { %23358 = vmatmul.mubr.msk.f32.gmra.mrb[36].mxu1 %vm562_vm1, %v28309_v62  ;;  %24662 = vmatmul.mubr.msk.f32.gmra.mrb[132].mxu0 %vm562_vm1, %v19857_v0  ;;  %v28413_v0 = vld [vmem:[%s27364_s9 + $0x2e8] sm:$0xff] }
 0x1e7   : > { %23360 = vmatprep.mubr.msk.f32.mxu1 %vm562_vm1, %v28313_v2  ;;  %24664 = vmatprep.mubr.msk.f32.mxu0 %vm562_vm1, %v19858_v4  ;;  %v19874_v4 = vld [vmem:[%s27364_s9 + $0x842] sm:$0xff] }
 0x1ea   : > { %23361 = vmatmul.mubr.msk.f32.gmra.mrb[38].mxu1 %vm562_vm1, %v28323_v6  ;;  %24665 = vmatmul.mubr.msk.f32.gmra.mrb[134].mxu0 %vm562_vm1, %v19859_v8  ;;  %v28423_v8 = vld [vmem:[%s27364_s9 + $0x2f0] sm:$0xff] }
 0x1eb   : > { %23363 = vmatprep.mubr.msk.f32.mxu1 %vm562_vm1, %v28327_v10  ;;  %24667 = vmatprep.mubr.msk.f32.mxu0 %vm562_vm1, %v19860_v12  ;;  %v19875_v12 = vld [vmem:[%s27364_s9 + $0x84a] sm:$0xff] }
 0x1ee   : > { %23364 = vmatmul.mubr.msk.f32.gmra.mrb[40].mxu1 %vm562_vm1, %v28337_v14  ;;  %24668 = vmatmul.mubr.msk.f32.gmra.mrb[136].mxu0 %vm562_vm1, %v19861_v16  ;;  %v28427_v16 = vld [vmem:[%s27364_s9 + $0x300] sm:$0xff] }
 0x1ef   : > { %23366 = vmatprep.mubr.msk.f32.mxu1 %vm562_vm1, %v28341_v18  ;;  %24670 = vmatprep.mubr.msk.f32.mxu0 %vm562_vm1, %v19862_v20  ;;  %v19876_v20 = vld [vmem:[%s27364_s9 + $0x85a] sm:$0xff] }
 0x1f2   : > { %23367 = vmatmul.mubr.msk.f32.gmra.mrb[42].mxu1 %vm562_vm1, %v28351_v22  ;;  %24671 = vmatmul.mubr.msk.f32.gmra.mrb[138].mxu0 %vm562_vm1, %v19863_v24  ;;  %v28437_v24 = vld [vmem:[%s27364_s9 + $0x308] sm:$0xff] }
 0x1f3   : > { %23369 = vmatprep.mubr.msk.f32.mxu1 %vm562_vm1, %v28355_v26  ;;  %24673 = vmatprep.mubr.msk.f32.mxu0 %vm562_vm1, %v19864_v28  ;;  %v19877_v28 = vld [vmem:[%s27364_s9 + $0x862] sm:$0xff] }
 0x1f6   : > { %23370 = vmatmul.mubr.msk.f32.gmra.mrb[44].mxu1 %vm562_vm1, %v28365_v30  ;;  %24674 = vmatmul.mubr.msk.f32.gmra.mrb[140].mxu0 %vm562_vm1, %v19865_v31  ;;  %v28441_v31 = vld [vmem:[%s27364_s9 + $0x318] sm:$0xff] }
 0x1f7   : > { %23372 = vmatprep.mubr.msk.f32.mxu1 %vm562_vm1, %v28369_v32  ;;  %24676 = vmatprep.mubr.msk.f32.mxu0 %vm562_vm1, %v19866_v33  ;;  %v19878_v33 = vld [vmem:[%s27364_s9 + $0x872] sm:$0xff] }
 0x1fa   : > { %23373 = vmatmul.mubr.msk.f32.gmra.mrb[46].mxu1 %vm562_vm1, %v28379_v34  ;;  %24677 = vmatmul.mubr.msk.f32.gmra.mrb[142].mxu0 %vm562_vm1, %v19867_v35  ;;  %v28451_v35 = vld [vmem:[%s27364_s9 + $0x320] sm:$0xff] }
 0x1fb   : > { %23375 = vmatprep.mubr.msk.f32.mxu1 %vm562_vm1, %v223_v36  ;;  %24679 = vmatprep.mubr.msk.f32.mxu0 %vm562_vm1, %v19868_v37  ;;  %v19879_v36 = vld [vmem:[%s27364_s9 + $0x87a] sm:$0xff]  ;;  %v28455_v37 = vld [vmem:[%s27364_s9 + $0x330] sm:$0xff] }
 0x1fe   : > { %23376 = vmatmul.mubr.msk.f32.gmra.mrb[48].mxu1 %vm562_vm1, %v224_v38  ;;  %24680 = vmatmul.mubr.msk.f32.gmra.mrb[144].mxu0 %vm562_vm1, %v19869_v40  ;;  %v19880_v38 = vld [vmem:[%s27364_s9 + $0x88a] sm:$0xff]  ;;  %v28465_v40 = vld [vmem:[%s27364_s9 + $0x338] sm:$0xff] }
 0x1ff   : > { %23378 = vmatprep.mubr.msk.f32.mxu1 %vm562_vm1, %v225_v43  ;;  %24682 = vmatprep.mubr.msk.f32.mxu0 %vm562_vm1, %v19870_v45  ;;  %v19881_v43 = vld [vmem:[%s27364_s9 + $0x892] sm:$0xff]  ;;  %v28469_v45 = vld [vmem:[%s27364_s9 + $0x348] sm:$0xff] }
 0x202   : > { %23379 = vmatmul.mubr.msk.f32.gmra.mrb[50].mxu1 %vm562_vm1, %v226_v47  ;;  %24683 = vmatmul.mubr.msk.f32.gmra.mrb[146].mxu0 %vm562_vm1, %v19871_v49  ;;  %v19882_v47 = vld [vmem:[%s27364_s9 + $0x8a2] sm:$0xff]  ;;  %v28479_v49 = vld [vmem:[%s27364_s9 + $0x350] sm:$0xff] }
 0x203   : > { %23381 = vmatprep.mubr.msk.f32.mxu1 %vm562_vm1, %v28400_v52  ;;  %24685 = vmatprep.mubr.msk.f32.mxu0 %vm562_vm1, %v19872_v55  ;;  %v19883_v55 = vld [vmem:[%s27364_s9 + $0x8aa] sm:$0xff] }
 0x206   : > { %23382 = vmatmul.mubr.msk.f32.gmra.mrb[52].mxu1 %vm562_vm1, %v28409_v57  ;;  %24686 = vmatmul.mubr.msk.f32.gmra.mrb[148].mxu0 %vm562_vm1, %v19873_v60  ;;  %v28483_v60 = vld [vmem:[%s27364_s9 + $0x360] sm:$0xff] }
 0x207   : > { %23384 = vmatprep.mubr.msk.f32.mxu1 %vm562_vm1, %v28413_v0  ;;  %24688 = vmatprep.mubr.msk.f32.mxu0 %vm562_vm1, %v19874_v4  ;;  %v19884_v4 = vld [vmem:[%s27364_s9 + $0x8ba] sm:$0xff] }
 0x20a   : > { %23385 = vmatmul.mubr.msk.f32.gmra.mrb[54].mxu1 %vm562_vm1, %v28423_v8  ;;  %24689 = vmatmul.mubr.msk.f32.gmra.mrb[150].mxu0 %vm562_vm1, %v19875_v12  ;;  %v28493_v12 = vld [vmem:[%s27364_s9 + $0x368] sm:$0xff] }
 0x20b   : > { %23387 = vmatprep.mubr.msk.f32.mxu1 %vm562_vm1, %v28427_v16  ;;  %24691 = vmatprep.mubr.msk.f32.mxu0 %vm562_vm1, %v19876_v20  ;;  %v19885_v20 = vld [vmem:[%s27364_s9 + $0x8c2] sm:$0xff] }
 0x20e   : > { %23388 = vmatmul.mubr.msk.f32.gmra.mrb[56].mxu1 %vm562_vm1, %v28437_v24  ;;  %24692 = vmatmul.mubr.msk.f32.gmra.mrb[152].mxu0 %vm562_vm1, %v19877_v28  ;;  %v28497_v28 = vld [vmem:[%s27364_s9 + $0x378] sm:$0xff] }
 0x20f   : > { %23390 = vmatprep.mubr.msk.f32.mxu1 %vm562_vm1, %v28441_v31  ;;  %24694 = vmatprep.mubr.msk.f32.mxu0 %vm562_vm1, %v19878_v33  ;;  %v19886_v33 = vld [vmem:[%s27364_s9 + $0x8d2] sm:$0xff] }
 0x212   : > { %23391 = vmatmul.mubr.msk.f32.gmra.mrb[58].mxu1 %vm562_vm1, %v28451_v35  ;;  %24695 = vmatmul.mubr.msk.f32.gmra.mrb[154].mxu0 %vm562_vm1, %v19879_v36  ;;  %v28507_v36 = vld [vmem:[%s27364_s9 + $0x380] sm:$0xff] }
 0x213   : > { %23393 = vmatprep.mubr.msk.f32.mxu1 %vm562_vm1, %v28455_v37  ;;  %24697 = vmatprep.mubr.msk.f32.mxu0 %vm562_vm1, %v19880_v38  ;;  %32255 = vst [vmem:[#allocation5_spill] sm:$0xff] %v28507_v36  ;;  %v19887_v38 = vld [vmem:[%s27364_s9 + $0x8da] sm:$0xff] }
 0x216   : > { %23394 = vmatmul.mubr.msk.f32.gmra.mrb[60].mxu1 %vm562_vm1, %v28465_v40  ;;  %24698 = vmatmul.mubr.msk.f32.gmra.mrb[156].mxu0 %vm562_vm1, %v19881_v43  ;;  %v28511_v43 = vld [vmem:[%s27364_s9 + $0x390] sm:$0xff] }
 0x217   : > { %23396 = vmatprep.mubr.msk.f32.mxu1 %vm562_vm1, %v28469_v45  ;;  %24700 = vmatprep.mubr.msk.f32.mxu0 %vm562_vm1, %v19882_v47  ;;  %32256 = vst [vmem:[#allocation6_spill] sm:$0xff] %v28511_v43  ;;  %v19888_v47 = vld [vmem:[%s27364_s9 + $0x8ea] sm:$0xff] }
 0x21a   : > { %23397 = vmatmul.mubr.msk.f32.gmra.mrb[62].mxu1 %vm562_vm1, %v28479_v49  ;;  %24701 = vmatmul.mubr.msk.f32.gmra.mrb[158].mxu0 %vm562_vm1, %v19883_v55  ;;  %v28521_v55 = vld [vmem:[%s27364_s9 + $0x398] sm:$0xff] }
 0x21b   : > { %23399 = vmatprep.mubr.msk.f32.mxu1 %vm562_vm1, %v28483_v60  ;;  %24703 = vmatprep.mubr.msk.f32.mxu0 %vm562_vm1, %v19884_v4  ;;  %32257 = vst [vmem:[#allocation7_spill] sm:$0xff] %v28521_v55  ;;  %v19889_v4 = vld [vmem:[%s27364_s9 + $0x8f2] sm:$0xff] }
 0x21e   : > { %23400 = vmatmul.mubr.msk.f32.gmra.mrb[64].mxu1 %vm562_vm1, %v28493_v12  ;;  %24704 = vmatmul.mubr.msk.f32.gmra.mrb[160].mxu0 %vm562_vm1, %v19885_v20  ;;  %v28525_v20 = vld [vmem:[%s27364_s9 + $0x3a8] sm:$0xff] }
 0x21f   : > { %23402 = vmatprep.mubr.msk.f32.mxu1 %vm562_vm1, %v28497_v28  ;;  %24706 = vmatprep.mubr.msk.f32.mxu0 %vm562_vm1, %v19886_v33  ;;  %32258 = vst [vmem:[#allocation8_spill] sm:$0xff] %v28525_v20  ;;  %v19890_v33 = vld [vmem:[%s27364_s9 + $0x902] sm:$0xff] }
 0x222   : > { %23403 = vmatmul.mubr.msk.f32.gmra.mrb[66].mxu1 %vm562_vm1, %v28507_v36  ;;  %24707 = vmatmul.mubr.msk.f32.gmra.mrb[162].mxu0 %vm562_vm1, %v19887_v38  ;;  %v28535_v38 = vld [vmem:[%s27364_s9 + $0x3b0] sm:$0xff] }
 0x223   : > { %23405 = vmatprep.mubr.msk.f32.mxu1 %vm562_vm1, %v28511_v43  ;;  %24709 = vmatprep.mubr.msk.f32.mxu0 %vm562_vm1, %v19888_v47  ;;  %32259 = vst [vmem:[#allocation9_spill] sm:$0xff] %v28535_v38  ;;  %v19891_v47 = vld [vmem:[%s27364_s9 + $0x90a] sm:$0xff] }
 0x224   : > { %v247_v43 = vld [vmem:[%s27364_s9 + $0x3f0] sm:$0xff] }
 0x225   : > { %v19892_v36 = vld [vmem:[%s27364_s9 + $0x94a] sm:$0xff] }
 0x226   : > { %23406 = vmatmul.mubr.msk.f32.gmra.mrb[68].mxu1 %vm562_vm1, %v28521_v55  ;;  %24710 = vmatmul.mubr.msk.f32.gmra.mrb[164].mxu0 %vm562_vm1, %v19889_v4  ;;  %v248_v4 = vld [vmem:[%s27364_s9 + $0x3f8] sm:$0xff]  ;;  %v19894_v55 = vld [vmem:[%s27364_s9 + $0x962] sm:$0xff] }
 0x227   : > { %23408 = vmatprep.mubr.msk.f32.mxu1 %vm562_vm1, %v28525_v20  ;;  %24712 = vmatprep.mubr.msk.f32.mxu0 %vm562_vm1, %v19890_v33  ;;  %v19893_v33 = vld [vmem:[%s27364_s9 + $0x952] sm:$0xff]  ;;  %v249_v20 = vld [vmem:[%s27364_s9 + $0x408] sm:$0xff] }
 0x22a   : > { %23409 = vmatmul.mubr.msk.f32.gmra.mrb[70].mxu1 %vm562_vm1, %v28535_v38  ;;  %24713 = vmatmul.mubr.msk.f32.gmra.mrb[166].mxu0 %vm562_vm1, %v19891_v47  ;;  %v250_v47 = vld [vmem:[%s27364_s9 + $0x410] sm:$0xff]  ;;  %v19896_v38 = vld [vmem:[%s27364_s9 + $0x97a] sm:$0xff] }
 0x22b   : > { %23411 = vmatprep.mubr.msk.f32.mxu1 %vm562_vm1, %v247_v43  ;;  %24715 = vmatprep.mubr.msk.f32.mxu0 %vm562_vm1, %v19892_v36  ;;  %v19895_v43 = vld [vmem:[%s27364_s9 + $0x96a] sm:$0xff]  ;;  %v28556_v36 = vld [vmem:[%s27364_s9 + $0x420] sm:$0xff] }
 0x22c   : > { %32260 = vst [vmem:[#allocation10_spill] sm:$0xff] %v28556_v36 }
 0x22e   : > { %23412 = vmatmul.mubr.msk.f32.gmra.mrb[72].mxu1 %vm562_vm1, %v248_v4  ;;  %24716 = vmatmul.mubr.msk.f32.gmra.mrb[168].mxu0 %vm562_vm1, %v19893_v33  ;;  %v28569_v4 = vld [vmem:[%s27364_s9 + $0x438] sm:$0xff] }
 0x22f   : > { %23414 = vmatprep.mubr.msk.f32.mxu1 %vm562_vm1, %v249_v20  ;;  %24718 = vmatprep.mubr.msk.f32.mxu0 %vm562_vm1, %v19894_v55  ;;  %v28565_v20 = vld [vmem:[%s27364_s9 + $0x428] sm:$0xff]  ;;  %32262 = vst [vmem:[#allocation12_spill] sm:$0xff] %v28569_v4  ;;  %v19898_v33 = vld [vmem:[%s27364_s9 + $0x992] sm:$0xff] }
 0x230   : > { %32261 = vst [vmem:[#allocation11_spill] sm:$0xff] %v28565_v20  ;;  %v19897_v55 = vld [vmem:[%s27364_s9 + $0x982] sm:$0xff] }
 0x232   : > { %23415 = vmatmul.mubr.msk.f32.gmra.mrb[74].mxu1 %vm562_vm1, %v250_v47  ;;  %24719 = vmatmul.mubr.msk.f32.gmra.mrb[170].mxu0 %vm562_vm1, %v19895_v43  ;;  %v19899_v47 = vld [vmem:[%s27364_s9 + $0x99a] sm:$0xff]  ;;  %v28583_v43 = vld [vmem:[%s27364_s9 + $0x450] sm:$0xff] }
 0x233   : > { %23417 = vmatprep.mubr.msk.f32.mxu1 %vm562_vm1, %v28556_v36  ;;  %24721 = vmatprep.mubr.msk.f32.mxu0 %vm562_vm1, %v19896_v38  ;;  %v28579_v38 = vld [vmem:[%s27364_s9 + $0x440] sm:$0xff]  ;;  %32264 = vst [vmem:[#allocation14_spill] sm:$0xff] %v28583_v43  ;;  %v19900_v36 = vld [vmem:[%s27364_s9 + $0x9aa] sm:$0xff] }
 0x234   : > { %32263 = vst [vmem:[#allocation13_spill] sm:$0xff] %v28579_v38 }
 0x236   : > { %23418 = vmatmul.mubr.msk.f32.gmra.mrb[76].mxu1 %vm562_vm1, %v28565_v20  ;;  %24722 = vmatmul.mubr.msk.f32.gmra.mrb[172].mxu0 %vm562_vm1, %v19897_v55  ;;  %v28593_v55 = vld [vmem:[%s27364_s9 + $0x458] sm:$0xff]  ;;  %v19902_v20 = vld [vmem:[%s27364_s9 + $0x9c2] sm:$0xff] }
 0x237   : > { %23420 = vmatprep.mubr.msk.f32.mxu1 %vm562_vm1, %v28569_v4  ;;  %24724 = vmatprep.mubr.msk.f32.mxu0 %vm562_vm1, %v19898_v33  ;;  %32265 = vst [vmem:[#allocation15_spill] sm:$0xff] %v28593_v55  ;;  %v19901_v33 = vld [vmem:[%s27364_s9 + $0x9b2] sm:$0xff]  ;;  %v28597_v4 = vld [vmem:[%s27364_s9 + $0x468] sm:$0xff] }
 0x238   : > { %32266 = vst [vmem:[#allocation16_spill] sm:$0xff] %v28597_v4 }
 0x23a   : > { %23421 = vmatmul.mubr.msk.f32.gmra.mrb[78].mxu1 %vm562_vm1, %v28579_v38  ;;  %24725 = vmatmul.mubr.msk.f32.gmra.mrb[174].mxu0 %vm562_vm1, %v19899_v47  ;;  %v19903_v47 = vld [vmem:[%s27364_s9 + $0x9ca] sm:$0xff]  ;;  %v19904_v38 = vld [vmem:[%s27364_s9 + $0x9da] sm:$0xff] }
 0x23b   : > { %23423 = vmatprep.mubr.msk.f32.mxu1 %vm562_vm1, %v28583_v43  ;;  %24727 = vmatprep.mubr.msk.f32.mxu0 %vm562_vm1, %v19900_v36  ;;  %v28607_v36 = vld [vmem:[%s27364_s9 + $0x470] sm:$0xff]  ;;  %v28611_v43 = vld [vmem:[%s27364_s9 + $0x480] sm:$0xff] }
 0x23c   : > { %32267 = vst [vmem:[#allocation17_spill] sm:$0xff] %v28607_v36  ;;  %32268 = vst [vmem:[#allocation18_spill] sm:$0xff] %v28611_v43 }
 0x23e   : > { %23424 = vmatmul.mubr.msk.f32.gmra.mrb[80].mxu1 %vm562_vm1, %v28593_v55  ;;  %24728 = vmatmul.mubr.msk.f32.gmra.mrb[176].mxu0 %vm562_vm1, %v19901_v33  ;;  %v19905_v33 = vld [vmem:[%s27364_s9 + $0x9e2] sm:$0xff]  ;;  %v19906_v55 = vld [vmem:[%s27364_s9 + $0x9f2] sm:$0xff] }
 0x23f   : > { %23426 = vmatprep.mubr.msk.f32.mxu1 %vm562_vm1, %v28597_v4  ;;  %24730 = vmatprep.mubr.msk.f32.mxu0 %vm562_vm1, %v19902_v20  ;;  %v28621_v20 = vld [vmem:[%s27364_s9 + $0x488] sm:$0xff]  ;;  %v28625_v4 = vld [vmem:[%s27364_s9 + $0x498] sm:$0xff] }
 0x240   : > { %32269 = vst [vmem:[#allocation19_spill] sm:$0xff] %v28621_v20  ;;  %32270 = vst [vmem:[#allocation20_spill] sm:$0xff] %v28625_v4 }
 0x242   : > { %23427 = vmatmul.mubr.msk.f32.gmra.mrb[82].mxu1 %vm562_vm1, %v28607_v36  ;;  %24731 = vmatmul.mubr.msk.f32.gmra.mrb[178].mxu0 %vm562_vm1, %v19903_v47  ;;  %v19907_v47 = vld [vmem:[%s27364_s9 + $0x9fa] sm:$0xff]  ;;  %v19908_v36 = vld [vmem:[%s27364_s9 + $0xa0a] sm:$0xff] }
 0x243   : > { %23429 = vmatprep.mubr.msk.f32.mxu1 %vm562_vm1, %v28611_v43  ;;  %24733 = vmatprep.mubr.msk.f32.mxu0 %vm562_vm1, %v19904_v38  ;;  %v28635_v38 = vld [vmem:[%s27364_s9 + $0x4a0] sm:$0xff]  ;;  %v28639_v43 = vld [vmem:[%s27364_s9 + $0x4b0] sm:$0xff] }
 0x244   : > { %32271 = vst [vmem:[#allocation21_spill] sm:$0xff] %v28635_v38  ;;  %32272 = vst [vmem:[#allocation22_spill] sm:$0xff] %v28639_v43 }
 0x246   : > { %23430 = vmatmul.mubr.msk.f32.gmra.mrb[84].mxu1 %vm562_vm1, %v28621_v20  ;;  %24734 = vmatmul.mubr.msk.f32.gmra.mrb[180].mxu0 %vm562_vm1, %v19905_v33  ;;  %v19909_v33 = vld [vmem:[%s27364_s9 + $0xa12] sm:$0xff]  ;;  %v19910_v20 = vld [vmem:[%s27364_s9 + $0xa22] sm:$0xff] }
 0x247   : > { %23432 = vmatprep.mubr.msk.f32.mxu1 %vm562_vm1, %v28625_v4  ;;  %24736 = vmatprep.mubr.msk.f32.mxu0 %vm562_vm1, %v19906_v55  ;;  %v28649_v55 = vld [vmem:[%s27364_s9 + $0x4b8] sm:$0xff]  ;;  %v28653_v4 = vld [vmem:[%s27364_s9 + $0x4c8] sm:$0xff] }
 0x248   : > { %32273 = vst [vmem:[#allocation23_spill] sm:$0xff] %v28649_v55  ;;  %32274 = vst [vmem:[#allocation24_spill] sm:$0xff] %v28653_v4 }
 0x24a   : > { %23433 = vmatmul.mubr.msk.f32.gmra.mrb[86].mxu1 %vm562_vm1, %v28635_v38  ;;  %24737 = vmatmul.mubr.msk.f32.gmra.mrb[182].mxu0 %vm562_vm1, %v19907_v47  ;;  %v19911_v47 = vld [vmem:[%s27364_s9 + $0xa2a] sm:$0xff]  ;;  %v19912_v38 = vld [vmem:[%s27364_s9 + $0xa3a] sm:$0xff] }
 0x24b   : > { %23435 = vmatprep.mubr.msk.f32.mxu1 %vm562_vm1, %v28639_v43  ;;  %24739 = vmatprep.mubr.msk.f32.mxu0 %vm562_vm1, %v19908_v36  ;;  %v28663_v36 = vld [vmem:[%s27364_s9 + $0x4d0] sm:$0xff]  ;;  %v28667_v43 = vld [vmem:[%s27364_s9 + $0x4e0] sm:$0xff] }
 0x24c   : > { %32275 = vst [vmem:[#allocation25_spill] sm:$0xff] %v28667_v43 }
 0x24e   : > { %23436 = vmatmul.mubr.msk.f32.gmra.mrb[88].mxu1 %vm562_vm1, %v28649_v55  ;;  %24740 = vmatmul.mubr.msk.f32.gmra.mrb[184].mxu0 %vm562_vm1, %v19909_v33  ;;  %v19913_v33 = vld [vmem:[%s27364_s9 + $0xa42] sm:$0xff]  ;;  %v19914_v55 = vld [vmem:[%s27364_s9 + $0xa52] sm:$0xff] }
 0x24f   : > { %23438 = vmatprep.mubr.msk.f32.mxu1 %vm562_vm1, %v28653_v4  ;;  %24742 = vmatprep.mubr.msk.f32.mxu0 %vm562_vm1, %v19910_v20  ;;  %v28677_v20 = vld [vmem:[%s27364_s9 + $0x4e8] sm:$0xff]  ;;  %v28681_v4 = vld [vmem:[%s27364_s9 + $0x4f8] sm:$0xff] }
 0x250   : > { %32276 = vst [vmem:[#allocation26_spill] sm:$0xff] %v28681_v4 }
 0x252   : > { %23439 = vmatmul.mubr.msk.f32.gmra.mrb[90].mxu1 %vm562_vm1, %v28663_v36  ;;  %24743 = vmatmul.mubr.msk.f32.gmra.mrb[186].mxu0 %vm562_vm1, %v19911_v47  ;;  %v19915_v47 = vld [vmem:[%s27364_s9 + $0xa5a] sm:$0xff] }
 0x253   : > { %23441 = vmatprep.mubr.msk.f32.mxu1 %vm562_vm1, %v28667_v43  ;;  %24745 = vmatprep.mubr.msk.f32.mxu0 %vm562_vm1, %v19912_v38  ;;  %v28691_v38 = vld [vmem:[%s27364_s9 + $0x500] sm:$0xff] }
 0x254   : > { %v271_v43 = vld [vmem:[%s27364_s9 + $0x540] sm:$0xff] }
 0x256   : > { %23442 = vmatmul.mubr.msk.f32.gmra.mrb[92].mxu1 %vm562_vm1, %v28677_v20  ;;  %24746 = vmatmul.mubr.msk.f32.gmra.mrb[188].mxu0 %vm562_vm1, %v19913_v33  ;;  %v272_v33 = vld [vmem:[%s27364_s9 + $0x548] sm:$0xff] }
 0x257   : > { %23444 = vmatprep.mubr.msk.f32.mxu1 %vm562_vm1, %v28681_v4  ;;  %24748 = vmatprep.mubr.msk.f32.mxu0 %vm562_vm1, %v19914_v55  ;;  %v273_v4 = vld [vmem:[%s27364_s9 + $0x558] sm:$0xff]  ;;  %v274_v55 = vld [vmem:[%s27364_s9 + $0x560] sm:$0xff] }
 0x25a   : > { %23445 = vmatmul.mubr.msk.f32.gmra.mrb[94].mxu1 %vm562_vm1, %v28691_v38  ;;  %24749 = vmatmul.mubr.msk.f32.gmra.mrb[190].mxu0 %vm562_vm1, %v19915_v47  ;;  %v20133_v47 = vld [vmem:[%s27364_s9 + $0x140] sm:$0xff] }
 0x25b   : > { %23447 = vmatprep.mubr.msk.f32.mxu1 %vm562_vm1, %v271_v43  ;;  %24753 = vmatprep.mubr.msk.f32.mxu0 %vm562_vm1, %v28081_v56  ;;  %v28713_v43 = vld [vmem:[%s27364_s9 + $0x570] sm:$0xff]  ;;  %v28723_v56 = vld [vmem:[%s27364_s9 + $0x578] sm:$0xff] }
 0x25e   : > { %23448 = vmatmul.mubr.msk.f32.gmra.mrb[96].mxu1 %vm562_vm1, %v272_v33  ;;  %24754 = vmatmul.mubr.msk.f32.vlgmr.msra.gmra.mrb[0].mxu0 %vm562_vm1, %v28090_v50  ;;  %v28726_v50 = vld [vmem:[%s27364_s9 + $0x588] sm:$0xff]  ;;  %v295_v33 = vld [vmem:[%s27364_s9 + $0x690] sm:$0xff] }
 0x25f   : > { %25042 = vmatpush3.msk.msra.mxu0 %vm1139_vm0, %v28280_v53  ;;  %23450 = vmatprep.mubr.msk.f32.mxu1 %vm562_vm1, %v273_v4  ;;  %v28839_v53 = vld [vmem:[%s27364_s9 + $0x648] sm:$0xff]  ;;  %v20132_v4 = vld [vmem:[%s27364_s9 + $0x138] sm:$0xff] }
 0x260   : > { %24756 = vmatprep.mubr.msk.f32.mxu0 %vm562_vm1, %v28094_v59  ;;  %v28737_v59 = vld [vmem:[%s27364_s9 + $0x590] sm:$0xff] }
 0x262   : > { %23451 = vmatmul.mubr.msk.f32.gmra.mrb[98].mxu1 %vm562_vm1, %v274_v55  ;;  %24757 = vmatmul.mubr.msk.f32.gmra.mrb[2].mxu0 %vm562_vm1, %v28104_v61  ;;  %v28740_v61 = vld [vmem:[%s27364_s9 + $0x5a0] sm:$0xff]  ;;  %v296_v55 = vld [vmem:[%s27364_s9 + $0x698] sm:$0xff] }
 0x263   : > { %23453 = vmatprep.mubr.msk.f32.mxu1 %vm562_vm1, %v28713_v43  ;;  %24759 = vmatprep.mubr.msk.f32.mxu0 %vm562_vm1, %v28108_v63  ;;  %v28751_v63 = vld [vmem:[%s27364_s9 + $0x5a8] sm:$0xff] }
 0x266   : > { %23454 = vmatmul.mubr.msk.f32.gmra.mrb[100].mxu1 %vm562_vm1, %v28723_v56  ;;  %24760 = vmatmul.mubr.msk.f32.gmra.mrb[4].mxu0 %vm562_vm1, %v28118_v1  ;;  %v28754_v1 = vld [vmem:[%s27364_s9 + $0x5b8] sm:$0xff] }
 0x267   : > { %23456 = vmatprep.mubr.msk.f32.mxu1 %vm562_vm1, %v28726_v50  ;;  %24762 = vmatprep.mubr.msk.f32.mxu0 %vm562_vm1, %v28122_v3  ;;  %v28765_v3 = vld [vmem:[%s27364_s9 + $0x5c0] sm:$0xff] }
 0x26a   : > { %23457 = vmatmul.mubr.msk.f32.gmra.mrb[102].mxu1 %vm562_vm1, %v28737_v59  ;;  %24763 = vmatmul.mubr.msk.f32.gmra.mrb[6].mxu0 %vm562_vm1, %v28132_v5  ;;  %v28768_v5 = vld [vmem:[%s27364_s9 + $0x5d0] sm:$0xff] }
 0x26b   : > { %23459 = vmatprep.mubr.msk.f32.mxu1 %vm562_vm1, %v28740_v61  ;;  %24765 = vmatprep.mubr.msk.f32.mxu0 %vm562_vm1, %v28136_v7  ;;  %v28779_v7 = vld [vmem:[%s27364_s9 + $0x5d8] sm:$0xff] }
 0x26e   : > { %23460 = vmatmul.mubr.msk.f32.gmra.mrb[104].mxu1 %vm562_vm1, %v28751_v63  ;;  %24766 = vmatmul.mubr.msk.f32.gmra.mrb[8].mxu0 %vm562_vm1, %v28146_v9  ;;  %v28782_v9 = vld [vmem:[%s27364_s9 + $0x5e8] sm:$0xff] }
 0x26f   : > { %23462 = vmatprep.mubr.msk.f32.mxu1 %vm562_vm1, %v28754_v1  ;;  %24768 = vmatprep.mubr.msk.f32.mxu0 %vm562_vm1, %v28150_v11  ;;  %v28793_v11 = vld [vmem:[%s27364_s9 + $0x5f0] sm:$0xff] }
 0x272   : > { %23463 = vmatmul.mubr.msk.f32.gmra.mrb[106].mxu1 %vm562_vm1, %v28765_v3  ;;  %24769 = vmatmul.mubr.msk.f32.gmra.mrb[10].mxu0 %vm562_vm1, %v28160_v13  ;;  %v28796_v13 = vld [vmem:[%s27364_s9 + $0x600] sm:$0xff] }
 0x273   : > { %23465 = vmatprep.mubr.msk.f32.mxu1 %vm562_vm1, %v28768_v5  ;;  %24771 = vmatprep.mubr.msk.f32.mxu0 %vm562_vm1, %v28164_v15  ;;  %v28807_v15 = vld [vmem:[%s27364_s9 + $0x608] sm:$0xff] }
 0x276   : > { %23466 = vmatmul.mubr.msk.f32.gmra.mrb[108].mxu1 %vm562_vm1, %v28779_v7  ;;  %24772 = vmatmul.mubr.msk.f32.gmra.mrb[12].mxu0 %vm562_vm1, %v28174_v17  ;;  %v28810_v17 = vld [vmem:[%s27364_s9 + $0x618] sm:$0xff] }
 0x277   : > { %23468 = vmatprep.mubr.msk.f32.mxu1 %vm562_vm1, %v28782_v9  ;;  %24774 = vmatprep.mubr.msk.f32.mxu0 %vm562_vm1, %v28178_v19  ;;  %v28821_v19 = vld [vmem:[%s27364_s9 + $0x620] sm:$0xff] }
 0x27a   : > { %23469 = vmatmul.mubr.msk.f32.gmra.mrb[110].mxu1 %vm562_vm1, %v28793_v11  ;;  %24775 = vmatmul.mubr.msk.f32.gmra.mrb[14].mxu0 %vm562_vm1, %v28188_v21  ;;  %v28824_v21 = vld [vmem:[%s27364_s9 + $0x630] sm:$0xff] }
 0x27b   : > { %23471 = vmatprep.mubr.msk.f32.mxu1 %vm562_vm1, %v28796_v13  ;;  %24777 = vmatprep.mubr.msk.f32.mxu0 %vm562_vm1, %v28192_v23  ;;  %v20130_v23 = vld [vmem:[%s27364_s9 + $0x120] sm:$0xff] }
 0x27e   : > { %23472 = vmatmul.mubr.msk.f32.gmra.mrb[112].mxu1 %vm562_vm1, %v28807_v15  ;;  %24778 = vmatmul.mubr.msk.f32.gmra.mrb[16].mxu0 %vm562_vm1, %v28202_v25  ;;  %v28835_v25 = vld [vmem:[%s27364_s9 + $0x638] sm:$0xff] }
 0x27f   : > { %23474 = vmatprep.mubr.msk.f32.mxu1 %vm562_vm1, %v28810_v17  ;;  %24780 = vmatprep.mubr.msk.f32.mxu0 %vm562_vm1, %v28206_v27  ;;  %v20131_v27 = vld [vmem:[%s27364_s9 + $0x128] sm:$0xff] }
 0x282   : > { %23475 = vmatmul.mubr.msk.f32.gmra.mrb[114].mxu1 %vm562_vm1, %v28821_v19  ;;  %24781 = vmatmul.mubr.msk.f32.gmra.mrb[18].mxu0 %vm562_vm1, %v28216_v29  ;;  %v28849_v29 = vld [vmem:[%s27364_s9 + $0x650] sm:$0xff] }
 0x283   : > { %23477 = vmatprep.mubr.msk.f32.mxu1 %vm562_vm1, %v28824_v21  ;;  %24783 = vmatprep.mubr.msk.f32.mxu0 %vm562_vm1, %v20130_v23  ;;  %v297_v23 = vld [vmem:[%s27364_s9 + $0x6a8] sm:$0xff] }
 0x286   : > { %23478 = vmatmul.mubr.msk.f32.gmra.mrb[116].mxu1 %vm562_vm1, %v28835_v25  ;;  %24784 = vmatmul.mubr.msk.f32.gmra.mrb[20].mxu0 %vm562_vm1, %v20131_v27  ;;  %v298_v27 = vld [vmem:[%s27364_s9 + $0x6b0] sm:$0xff] }
 0x287   : > { %23480 = vmatprep.mubr.msk.f32.mxu1 %vm562_vm1, %v28839_v53  ;;  %24786 = vmatprep.mubr.msk.f32.mxu0 %vm562_vm1, %v20132_v4  ;;  %v28869_v4 = vld [vmem:[%s27364_s9 + $0x6c0] sm:$0xff] }
 0x28a   : > { %23481 = vmatmul.mubr.msk.f32.gmra.mrb[118].mxu1 %vm562_vm1, %v28849_v29  ;;  %24787 = vmatmul.mubr.msk.f32.gmra.mrb[22].mxu0 %vm562_vm1, %v20133_v47  ;;  %v20154_v47 = vld [vmem:[%s27364_s9 + $0x270] sm:$0xff] }
 0x28b   : > { %23483 = vmatprep.mubr.msk.f32.mxu1 %vm562_vm1, %v295_v33  ;;  %24789 = vmatprep.mubr.msk.f32.mxu0 %vm562_vm1, %v28237_v39  ;;  %v28879_v39 = vld [vmem:[%s27364_s9 + $0x6c8] sm:$0xff]  ;;  %v29002_v33 = vld [vmem:[%s27364_s9 + $0x798] sm:$0xff] }
 0x28e   : > { %23484 = vmatmul.mubr.msk.f32.gmra.mrb[120].mxu1 %vm562_vm1, %v296_v55  ;;  %24790 = vmatmul.mubr.msk.f32.gmra.mrb[24].mxu0 %vm562_vm1, %v28246_v41  ;;  %v28882_v41 = vld [vmem:[%s27364_s9 + $0x6d8] sm:$0xff]  ;;  %v20156_v55 = vld [vmem:[%s27364_s9 + $0x288] sm:$0xff] }
 0x28f   : > { %23486 = vmatprep.mubr.msk.f32.mxu1 %vm562_vm1, %v297_v23  ;;  %24792 = vmatprep.mubr.msk.f32.mxu0 %vm562_vm1, %v28250_v44  ;;  %v28893_v44 = vld [vmem:[%s27364_s9 + $0x6e0] sm:$0xff]  ;;  %v20157_v23 = vld [vmem:[%s27364_s9 + $0x290] sm:$0xff] }
 0x292   : > { %23487 = vmatmul.mubr.msk.f32.gmra.mrb[122].mxu1 %vm562_vm1, %v298_v27  ;;  %24793 = vmatmul.mubr.msk.f32.gmra.mrb[26].mxu0 %vm562_vm1, %v28260_v46  ;;  %v28896_v46 = vld [vmem:[%s27364_s9 + $0x6f0] sm:$0xff]  ;;  %v319_v27 = vld [vmem:[%s27364_s9 + $0x7e0] sm:$0xff] }
 0x293   : > { %23489 = vmatprep.mubr.msk.f32.mxu1 %vm562_vm1, %v28869_v4  ;;  %24795 = vmatprep.mubr.msk.f32.mxu0 %vm562_vm1, %v28264_v48  ;;  %v28907_v48 = vld [vmem:[%s27364_s9 + $0x6f8] sm:$0xff] }
 0x296   : > { %23490 = vmatmul.mubr.msk.f32.gmra.mrb[124].mxu1 %vm562_vm1, %v28879_v39  ;;  %24796 = vmatmul.mubr.msk.f32.gmra.mrb[28].mxu0 %vm562_vm1, %v28274_v51  ;;  %v28912_v51 = vld [vmem:[%s32206_s1 + $0xc] sm:$0xf] }
 0x297   : > { %23492 = vmatprep.mubr.msk.f32.mxu1 %vm562_vm1, %v28882_v41  ;;  %24798 = vmatprep.mubr.msk.f32.mxu0 %vm562_vm1, %v28283_v54  ;;  %v28915_v54 = vld [vmem:[%s27364_s9 + $0x708] sm:$0xff] }
 0x298   : > { %23881 = vmatprep.subr.msk.mxu1 %vm1139_vm0, %v28912_v51 }
 0x29a   : > { %23493 = vmatmul.mubr.msk.f32.gmra.mrb[126].mxu1 %vm562_vm1, %v28893_v44  ;;  %24799 = vmatmul.mubr.msk.f32.gmra.mrb[30].mxu0 %vm562_vm1, %v28295_v42  ;;  %v28928_v42 = vld [vmem:[%s27364_s9 + $0x710] sm:$0xff] }
 0x29b   : > { %23495 = vmatprep.mubr.msk.f32.mxu1 %vm562_vm1, %v28896_v46  ;;  %24801 = vmatprep.mubr.msk.f32.mxu0 %vm562_vm1, %v28299_v58  ;;  %v28931_v58 = vld [vmem:[%s27364_s9 + $0x720] sm:$0xff] }
 0x29e   : > { %23496 = vmatmul.mubr.msk.f32.gmra.mrb[128].mxu1 %vm562_vm1, %v28907_v48  ;;  %24802 = vmatmul.mubr.msk.f32.gmra.mrb[32].mxu0 %vm562_vm1, %v28309_v62  ;;  %v28942_v62 = vld [vmem:[%s27364_s9 + $0x728] sm:$0xff] }
 0x29f   : > { %23498 = vmatprep.mubr.msk.f32.mxu1 %vm562_vm1, %v28915_v54  ;;  %24804 = vmatprep.mubr.msk.f32.mxu0 %vm562_vm1, %v28313_v2  ;;  %v28945_v2 = vld [vmem:[%s27364_s9 + $0x738] sm:$0xff] }
 0x2a2   : > { %23499 = vmatmul.mubr.msk.f32.gmra.mrb[130].mxu1 %vm562_vm1, %v28928_v42  ;;  %24805 = vmatmul.mubr.msk.f32.gmra.mrb[34].mxu0 %vm562_vm1, %v28323_v6  ;;  %v28956_v6 = vld [vmem:[%s27364_s9 + $0x740] sm:$0xff] }
 0x2a3   : > { %23501 = vmatprep.mubr.msk.f32.mxu1 %vm562_vm1, %v28931_v58  ;;  %24807 = vmatprep.mubr.msk.f32.mxu0 %vm562_vm1, %v28327_v10  ;;  %v28959_v10 = vld [vmem:[%s27364_s9 + $0x750] sm:$0xff] }
 0x2a6   : > { %23502 = vmatmul.mubr.msk.f32.gmra.mrb[132].mxu1 %vm562_vm1, %v28942_v62  ;;  %24808 = vmatmul.mubr.msk.f32.gmra.mrb[36].mxu0 %vm562_vm1, %v28337_v14  ;;  %v28970_v14 = vld [vmem:[%s27364_s9 + $0x758] sm:$0xff] }
 0x2a7   : > { %23504 = vmatprep.mubr.msk.f32.mxu1 %vm562_vm1, %v28945_v2  ;;  %24810 = vmatprep.mubr.msk.f32.mxu0 %vm562_vm1, %v28341_v18  ;;  %v28973_v18 = vld [vmem:[%s27364_s9 + $0x768] sm:$0xff] }
 0x2aa   : > { %23505 = vmatmul.mubr.msk.f32.gmra.mrb[134].mxu1 %vm562_vm1, %v28956_v6  ;;  %24811 = vmatmul.mubr.msk.f32.gmra.mrb[38].mxu0 %vm562_vm1, %v28351_v22  ;;  %v28984_v22 = vld [vmem:[%s27364_s9 + $0x770] sm:$0xff] }
 0x2ab   : > { %23507 = vmatprep.mubr.msk.f32.mxu1 %vm562_vm1, %v28959_v10  ;;  %24813 = vmatprep.mubr.msk.f32.mxu0 %vm562_vm1, %v28355_v26  ;;  %v28987_v26 = vld [vmem:[%s27364_s9 + $0x780] sm:$0xff] }
 0x2ae   : > { %23508 = vmatmul.mubr.msk.f32.gmra.mrb[136].mxu1 %vm562_vm1, %v28970_v14  ;;  %24814 = vmatmul.mubr.msk.f32.gmra.mrb[40].mxu0 %vm562_vm1, %v28365_v30  ;;  %v28998_v30 = vld [vmem:[%s27364_s9 + $0x788] sm:$0xff] }
 0x2af   : > { %23510 = vmatprep.mubr.msk.f32.mxu1 %vm562_vm1, %v28973_v18  ;;  %24816 = vmatprep.mubr.msk.f32.mxu0 %vm562_vm1, %v28369_v32  ;;  %v20155_v32 = vld [vmem:[%s27364_s9 + $0x278] sm:$0xff] }
 0x2b2   : > { %23511 = vmatmul.mubr.msk.f32.gmra.mrb[138].mxu1 %vm562_vm1, %v28984_v22  ;;  %24817 = vmatmul.mubr.msk.f32.gmra.mrb[42].mxu0 %vm562_vm1, %v28379_v34  ;;  %v29012_v34 = vld [vmem:[%s27364_s9 + $0x7a0] sm:$0xff] }
 0x2b3   : > { %23513 = vmatprep.mubr.msk.f32.mxu1 %vm562_vm1, %v28987_v26  ;;  %24819 = vmatprep.mubr.msk.f32.mxu0 %vm562_vm1, %v20154_v47  ;;  %v320_v47 = vld [vmem:[%s27364_s9 + $0x7e8] sm:$0xff] }
 0x2b6   : > { %23514 = vmatmul.mubr.msk.f32.gmra.mrb[140].mxu1 %vm562_vm1, %v28998_v30  ;;  %24820 = vmatmul.mubr.msk.f32.gmra.mrb[44].mxu0 %vm562_vm1, %v20155_v32  ;;  %v321_v32 = vld [vmem:[%s27364_s9 + $0x7f8] sm:$0xff] }
 0x2b7   : > { %23516 = vmatprep.mubr.msk.f32.mxu1 %vm562_vm1, %v29002_v33  ;;  %24822 = vmatprep.mubr.msk.f32.mxu0 %vm562_vm1, %v20156_v55  ;;  %v322_v55 = vld [vmem:[%s27364_s9 + $0x800] sm:$0xff] }
 0x2ba   : > { %23517 = vmatmul.mubr.msk.f32.gmra.mrb[142].mxu1 %vm562_vm1, %v29012_v34  ;;  %24823 = vmatmul.mubr.msk.f32.gmra.mrb[46].mxu0 %vm562_vm1, %v20157_v23  ;;  %v29032_v23 = vld [vmem:[%s27364_s9 + $0x810] sm:$0xff] }
 0x2bb   : > { %23519 = vmatprep.mubr.msk.f32.mxu1 %vm562_vm1, %v319_v27  ;;  %24825 = vmatprep.mubr.msk.f32.mxu0 %vm562_vm1, %v28400_v52  ;;  %v29042_v52 = vld [vmem:[%s27364_s9 + $0x818] sm:$0xff] }
 0x2bc   : > { %v29129_v27 = vld [vmem:[%s27364_s9 + $0x8b8] sm:$0xff] }
 0x2be   : > { %23520 = vmatmul.mubr.msk.f32.gmra.mrb[144].mxu1 %vm562_vm1, %v320_v47  ;;  %24826 = vmatmul.mubr.msk.f32.gmra.mrb[48].mxu0 %vm562_vm1, %v28409_v57  ;;  %v29045_v57 = vld [vmem:[%s27364_s9 + $0x828] sm:$0xff]  ;;  %v32282_v47 = vld [vmem:[#allocation7_spill] sm:$0xff] }
 0x2bf   : > { %23522 = vmatprep.mubr.msk.f32.mxu1 %vm562_vm1, %v321_v32  ;;  %24828 = vmatprep.mubr.msk.f32.mxu0 %vm562_vm1, %v28413_v0  ;;  %v29056_v0 = vld [vmem:[%s27364_s9 + $0x830] sm:$0xff]  ;;  %v32283_v32 = vld [vmem:[#allocation8_spill] sm:$0xff] }
 0x2c2   : > { %23523 = vmatmul.mubr.msk.f32.gmra.mrb[146].mxu1 %vm562_vm1, %v322_v55  ;;  %24829 = vmatmul.mubr.msk.f32.gmra.mrb[50].mxu0 %vm562_vm1, %v28423_v8  ;;  %v29059_v8 = vld [vmem:[%s27364_s9 + $0x840] sm:$0xff] }
 0x2c3   : > { %23525 = vmatprep.mubr.msk.f32.mxu1 %vm562_vm1, %v29032_v23  ;;  %24831 = vmatprep.mubr.msk.f32.mxu0 %vm562_vm1, %v28427_v16  ;;  %v29070_v16 = vld [vmem:[%s27364_s9 + $0x848] sm:$0xff]  ;;  %v29140_v55 = vld [vmem:[%s27364_s9 + $0x8c0] sm:$0xff] }
 0x2c4   : > { %32284 = vst [vmem:[#allocation7_spill] sm:$0xff] %v29140_v55 }
 0x2c6   : > { %23526 = vmatmul.mubr.msk.f32.gmra.mrb[148].mxu1 %vm562_vm1, %v29042_v52  ;;  %24832 = vmatmul.mubr.msk.f32.gmra.mrb[52].mxu0 %vm562_vm1, %v28437_v24  ;;  %v29073_v24 = vld [vmem:[%s27364_s9 + $0x858] sm:$0xff] }
 0x2c7   : > { %23528 = vmatprep.mubr.msk.f32.mxu1 %vm562_vm1, %v29045_v57  ;;  %24834 = vmatprep.mubr.msk.f32.mxu0 %vm562_vm1, %v28441_v31  ;;  %v29084_v31 = vld [vmem:[%s27364_s9 + $0x860] sm:$0xff] }
 0x2ca   : > { %23529 = vmatmul.mubr.msk.f32.gmra.mrb[150].mxu1 %vm562_vm1, %v29056_v0  ;;  %24835 = vmatmul.mubr.msk.f32.gmra.mrb[54].mxu0 %vm562_vm1, %v28451_v35  ;;  %v29087_v35 = vld [vmem:[%s27364_s9 + $0x870] sm:$0xff] }
 0x2cb   : > { %23531 = vmatprep.mubr.msk.f32.mxu1 %vm562_vm1, %v29059_v8  ;;  %24837 = vmatprep.mubr.msk.f32.mxu0 %vm562_vm1, %v28455_v37  ;;  %v29098_v37 = vld [vmem:[%s27364_s9 + $0x878] sm:$0xff] }
 0x2ce   : > { %23532 = vmatmul.mubr.msk.f32.gmra.mrb[152].mxu1 %vm562_vm1, %v29070_v16  ;;  %24838 = vmatmul.mubr.msk.f32.gmra.mrb[56].mxu0 %vm562_vm1, %v28465_v40  ;;  %v29101_v40 = vld [vmem:[%s27364_s9 + $0x888] sm:$0xff] }
 0x2cf   : > { %23534 = vmatprep.mubr.msk.f32.mxu1 %vm562_vm1, %v29073_v24  ;;  %24840 = vmatprep.mubr.msk.f32.mxu0 %vm562_vm1, %v28469_v45  ;;  %v29112_v45 = vld [vmem:[%s27364_s9 + $0x890] sm:$0xff] }
 0x2d2   : > { %23535 = vmatmul.mubr.msk.f32.gmra.mrb[154].mxu1 %vm562_vm1, %v29084_v31  ;;  %24841 = vmatmul.mubr.msk.f32.gmra.mrb[58].mxu0 %vm562_vm1, %v28479_v49  ;;  %v29115_v49 = vld [vmem:[%s27364_s9 + $0x8a0] sm:$0xff] }
 0x2d3   : > { %23537 = vmatprep.mubr.msk.f32.mxu1 %vm562_vm1, %v29087_v35  ;;  %24843 = vmatprep.mubr.msk.f32.mxu0 %vm562_vm1, %v28483_v60  ;;  %32277 = vst [vmem:[#allocation27_spill] sm:$0xff] %v29115_v49  ;;  %v32278_v60 = vld [vmem:[#allocation5_spill] sm:$0xff] }
 0x2d6   : > { %23538 = vmatmul.mubr.msk.f32.gmra.mrb[156].mxu1 %vm562_vm1, %v29098_v37  ;;  %24844 = vmatmul.mubr.msk.f32.gmra.mrb[60].mxu0 %vm562_vm1, %v28493_v12  ;;  %v32279_v12 = vld [vmem:[#allocation6_spill] sm:$0xff] }
 0x2d7   : > { %23540 = vmatprep.mubr.msk.f32.mxu1 %vm562_vm1, %v29101_v40  ;;  %24846 = vmatprep.mubr.msk.f32.mxu0 %vm562_vm1, %v28497_v28  ;;  %v29126_v28 = vld [vmem:[%s27364_s9 + $0x8a8] sm:$0xff]  ;;  %32281 = vst [vmem:[#allocation6_spill] sm:$0xff] %v29129_v27 }
 0x2d8   : > { %32280 = vst [vmem:[#allocation5_spill] sm:$0xff] %v29126_v28 }
 0x2da   : > { %23541 = vmatmul.mubr.msk.f32.gmra.mrb[158].mxu1 %vm562_vm1, %v29112_v45  ;;  %24847 = vmatmul.mubr.msk.f32.gmra.mrb[62].mxu0 %vm562_vm1, %v32278_v60  ;;  %v29143_v60 = vld [vmem:[%s27364_s9 + $0x8d0] sm:$0xff] }
 0x2db   : > { %23543 = vmatprep.mubr.msk.f32.mxu1 %vm562_vm1, %v29115_v49  ;;  %24849 = vmatprep.mubr.msk.f32.mxu0 %vm562_vm1, %v32279_v12  ;;  %32285 = vst [vmem:[#allocation8_spill] sm:$0xff] %v29143_v60  ;;  %v20178_v12 = vld [vmem:[%s27364_s9 + $0x3c0] sm:$0xff]  ;;  %v20180_v49 = vld [vmem:[%s27364_s9 + $0x3d8] sm:$0xff] }
 0x2de   : > { %23544 = vmatmul.mubr.msk.f32.gmra.mrb[160].mxu1 %vm562_vm1, %v29126_v28  ;;  %24850 = vmatmul.mubr.msk.f32.gmra.mrb[64].mxu0 %vm562_vm1, %v32282_v47  ;;  %v32286_v28 = vld [vmem:[#allocation9_spill] sm:$0xff]  ;;  %v29154_v47 = vld [vmem:[%s27364_s9 + $0x8d8] sm:$0xff] }
 0x2df   : > { %23546 = vmatprep.mubr.msk.f32.mxu1 %vm562_vm1, %v29129_v27  ;;  %24852 = vmatprep.mubr.msk.f32.mxu0 %vm562_vm1, %v32283_v32  ;;  %32287 = vst [vmem:[#allocation9_spill] sm:$0xff] %v29154_v47  ;;  %v20179_v32 = vld [vmem:[%s27364_s9 + $0x3c8] sm:$0xff] }
 0x2e0   : > { %v29158_v27 = vld [vmem:[%s27364_s9 + $0x8e8] sm:$0xff] }
 0x2e1   : > { %32288 = vst [vmem:[#allocation28_spill] sm:$0xff] %v29158_v27 }
 0x2e2   : > { %23547 = vmatmul.mubr.msk.f32.gmra.mrb[162].mxu1 %vm562_vm1, %v29140_v55  ;;  %24853 = vmatmul.mubr.msk.f32.gmra.mrb[66].mxu0 %vm562_vm1, %v32286_v28  ;;  %v29168_v28 = vld [vmem:[%s27364_s9 + $0x8f0] sm:$0xff]  ;;  %v29188_v55 = vld [vmem:[%s27364_s9 + $0x960] sm:$0xff] }
 0x2e3   : > { %23549 = vmatprep.mubr.msk.f32.mxu1 %vm562_vm1, %v29143_v60  ;;  %24855 = vmatprep.mubr.msk.f32.mxu0 %vm562_vm1, %v20178_v12  ;;  %32289 = vst [vmem:[#allocation29_spill] sm:$0xff] %v29168_v28  ;;  %v20181_v12 = vld [vmem:[%s27364_s9 + $0x3e0] sm:$0xff]  ;;  %v343_v60 = vld [vmem:[%s27364_s9 + $0x930] sm:$0xff] }
 0x2e6   : > { %23550 = vmatmul.mubr.msk.f32.gmra.mrb[164].mxu1 %vm562_vm1, %v29154_v47  ;;  %24856 = vmatmul.mubr.msk.f32.gmra.mrb[68].mxu0 %vm562_vm1, %v20179_v32  ;;  %v32290_v32 = vld [vmem:[#allocation10_spill] sm:$0xff] }
 0x2e7   : > { %23552 = vmatprep.mubr.msk.f32.mxu1 %vm562_vm1, %v29158_v27  ;;  %24858 = vmatprep.mubr.msk.f32.mxu0 %vm562_vm1, %v20180_v49  ;;  %v344_v27 = vld [vmem:[%s27364_s9 + $0x938] sm:$0xff]  ;;  %v345_v47 = vld [vmem:[%s27364_s9 + $0x948] sm:$0xff]  ;;  %v32291_v49 = vld [vmem:[#allocation11_spill] sm:$0xff] }
 0x2ea   : > { %23553 = vmatmul.mubr.msk.f32.gmra.mrb[166].mxu1 %vm562_vm1, %v29168_v28  ;;  %24859 = vmatmul.mubr.msk.f32.gmra.mrb[70].mxu0 %vm562_vm1, %v20181_v12  ;;  %v32292_v28 = vld [vmem:[#allocation12_spill] sm:$0xff]  ;;  %v346_v12 = vld [vmem:[%s27364_s9 + $0x950] sm:$0xff] }
 0x2eb   : > { %23555 = vmatprep.mubr.msk.f32.mxu1 %vm562_vm1, %v343_v60  ;;  %24861 = vmatprep.mubr.msk.f32.mxu0 %vm562_vm1, %v32290_v32  ;;  %v32293_v60 = vld [vmem:[#allocation13_spill] sm:$0xff]  ;;  %v29201_v32 = vld [vmem:[%s27364_s9 + $0x978] sm:$0xff] }
 0x2ec   : > { %32296 = vst [vmem:[#allocation11_spill] sm:$0xff] %v29201_v32 }
 0x2ee   : > { %23556 = vmatmul.mubr.msk.f32.gmra.mrb[168].mxu1 %vm562_vm1, %v344_v27  ;;  %24862 = vmatmul.mubr.msk.f32.gmra.mrb[72].mxu0 %vm562_vm1, %v32291_v49  ;;  %v32294_v27 = vld [vmem:[#allocation14_spill] sm:$0xff]  ;;  %v32298_v49 = vld [vmem:[#allocation16_spill] sm:$0xff] }
 0x2ef   : > { %23558 = vmatprep.mubr.msk.f32.mxu1 %vm562_vm1, %v345_v47  ;;  %24864 = vmatprep.mubr.msk.f32.mxu0 %vm562_vm1, %v32292_v28  ;;  %v29198_v47 = vld [vmem:[%s27364_s9 + $0x968] sm:$0xff]  ;;  %v32297_v28 = vld [vmem:[#allocation15_spill] sm:$0xff] }
 0x2f0   : > { %32295 = vst [vmem:[#allocation10_spill] sm:$0xff] %v29198_v47 }
 0x2f2   : > { %23559 = vmatmul.mubr.msk.f32.gmra.mrb[170].mxu1 %vm562_vm1, %v346_v12  ;;  %24865 = vmatmul.mubr.msk.f32.gmra.mrb[74].mxu0 %vm562_vm1, %v32293_v60  ;;  %v29212_v12 = vld [vmem:[%s27364_s9 + $0x980] sm:$0xff]  ;;  %v29215_v60 = vld [vmem:[%s27364_s9 + $0x990] sm:$0xff] }
 0x2f3   : > { %23561 = vmatprep.mubr.msk.f32.mxu1 %vm562_vm1, %v29188_v55  ;;  %24867 = vmatprep.mubr.msk.f32.mxu0 %vm562_vm1, %v32294_v27  ;;  %32299 = vst [vmem:[#allocation12_spill] sm:$0xff] %v29212_v12  ;;  %32300 = vst [vmem:[#allocation13_spill] sm:$0xff] %v29215_v60  ;;  %v32301_v27 = vld [vmem:[#allocation17_spill] sm:$0xff] }
 0x2f6   : > { %23562 = vmatmul.mubr.msk.f32.gmra.mrb[172].mxu1 %vm562_vm1, %v29198_v47  ;;  %24868 = vmatmul.mubr.msk.f32.gmra.mrb[76].mxu0 %vm562_vm1, %v32297_v28  ;;  %v32302_v28 = vld [vmem:[#allocation18_spill] sm:$0xff]  ;;  %v32305_v47 = vld [vmem:[#allocation19_spill] sm:$0xff] }
 0x2f7   : > { %23564 = vmatprep.mubr.msk.f32.mxu1 %vm562_vm1, %v29201_v32  ;;  %24870 = vmatprep.mubr.msk.f32.mxu0 %vm562_vm1, %v32298_v49  ;;  %v29226_v32 = vld [vmem:[%s27364_s9 + $0x998] sm:$0xff]  ;;  %v29229_v49 = vld [vmem:[%s27364_s9 + $0x9a8] sm:$0xff] }
 0x2f8   : > { %32303 = vst [vmem:[#allocation14_spill] sm:$0xff] %v29226_v32  ;;  %32304 = vst [vmem:[#allocation15_spill] sm:$0xff] %v29229_v49 }
 0x2fa   : > { %23565 = vmatmul.mubr.msk.f32.gmra.mrb[174].mxu1 %vm562_vm1, %v29212_v12  ;;  %24871 = vmatmul.mubr.msk.f32.gmra.mrb[78].mxu0 %vm562_vm1, %v32301_v27  ;;  %v32306_v27 = vld [vmem:[#allocation20_spill] sm:$0xff]  ;;  %v32308_v12 = vld [vmem:[#allocation21_spill] sm:$0xff] }
 0x2fb   : > { %23567 = vmatprep.mubr.msk.f32.mxu1 %vm562_vm1, %v29215_v60  ;;  %24873 = vmatprep.mubr.msk.f32.mxu0 %vm562_vm1, %v32302_v28  ;;  %v29240_v60 = vld [vmem:[%s27364_s9 + $0x9b0] sm:$0xff]  ;;  %v29243_v28 = vld [vmem:[%s27364_s9 + $0x9c0] sm:$0xff] }
 0x2fc   : > { %32307 = vst [vmem:[#allocation16_spill] sm:$0xff] %v29243_v28 }
 0x2fe   : > { %23568 = vmatmul.mubr.msk.f32.gmra.mrb[176].mxu1 %vm562_vm1, %v29226_v32  ;;  %24874 = vmatmul.mubr.msk.f32.gmra.mrb[80].mxu0 %vm562_vm1, %v32305_v47  ;;  %v32309_v47 = vld [vmem:[#allocation22_spill] sm:$0xff]  ;;  %v32311_v32 = vld [vmem:[#allocation23_spill] sm:$0xff] }
 0x2ff   : > { %23570 = vmatprep.mubr.msk.f32.mxu1 %vm562_vm1, %v29229_v49  ;;  %24876 = vmatprep.mubr.msk.f32.mxu0 %vm562_vm1, %v32306_v27  ;;  %v29254_v49 = vld [vmem:[%s27364_s9 + $0x9c8] sm:$0xff]  ;;  %v29257_v27 = vld [vmem:[%s27364_s9 + $0x9d8] sm:$0xff] }
 0x300   : > { %32310 = vst [vmem:[#allocation17_spill] sm:$0xff] %v29257_v27 }
 0x302   : > { %23571 = vmatmul.mubr.msk.f32.gmra.mrb[178].mxu1 %vm562_vm1, %v29240_v60  ;;  %24877 = vmatmul.mubr.msk.f32.gmra.mrb[82].mxu0 %vm562_vm1, %v32308_v12  ;;  %v32312_v12 = vld [vmem:[#allocation24_spill] sm:$0xff] }
 0x303   : > { %23573 = vmatprep.mubr.msk.f32.mxu1 %vm562_vm1, %v29243_v28  ;;  %24879 = vmatprep.mubr.msk.f32.mxu0 %vm562_vm1, %v32309_v47  ;;  %v29268_v47 = vld [vmem:[%s27364_s9 + $0x9e0] sm:$0xff]  ;;  %v29271_v28 = vld [vmem:[%s27364_s9 + $0x9f0] sm:$0xff] }
 0x304   : > { %32313 = vst [vmem:[#allocation18_spill] sm:$0xff] %v29268_v47  ;;  %32314 = vst [vmem:[#allocation19_spill] sm:$0xff] %v29271_v28 }
 0x306   : > { %23574 = vmatmul.mubr.msk.f32.gmra.mrb[180].mxu1 %vm562_vm1, %v29254_v49  ;;  %24880 = vmatmul.mubr.msk.f32.gmra.mrb[84].mxu0 %vm562_vm1, %v32311_v32  ;;  %v32315_v32 = vld [vmem:[#allocation25_spill] sm:$0xff] }
 0x307   : > { %23576 = vmatprep.mubr.msk.f32.mxu1 %vm562_vm1, %v29257_v27  ;;  %24882 = vmatprep.mubr.msk.f32.mxu0 %vm562_vm1, %v32312_v12  ;;  %v29282_v12 = vld [vmem:[%s27364_s9 + $0x9f8] sm:$0xff]  ;;  %v29285_v27 = vld [vmem:[%s27364_s9 + $0xa08] sm:$0xff] }
 0x308   : > { %32316 = vst [vmem:[#allocation20_spill] sm:$0xff] %v29282_v12  ;;  %32317 = vst [vmem:[#allocation21_spill] sm:$0xff] %v29285_v27 }
 0x30a   : > { %23577 = vmatmul.mubr.msk.f32.gmra.mrb[182].mxu1 %vm562_vm1, %v29268_v47  ;;  %24883 = vmatmul.mubr.msk.f32.gmra.mrb[86].mxu0 %vm562_vm1, %v28663_v36  ;;  %v32318_v36 = vld [vmem:[#allocation26_spill] sm:$0xff]  ;;  %v20202_v47 = vld [vmem:[%s27364_s9 + $0x510] sm:$0xff] }
 0x30b   : > { %23579 = vmatprep.mubr.msk.f32.mxu1 %vm562_vm1, %v29271_v28  ;;  %24885 = vmatprep.mubr.msk.f32.mxu0 %vm562_vm1, %v32315_v32  ;;  %v29296_v32 = vld [vmem:[%s27364_s9 + $0xa10] sm:$0xff]  ;;  %v29299_v28 = vld [vmem:[%s27364_s9 + $0xa20] sm:$0xff] }
 0x30c   : > { %32319 = vst [vmem:[#allocation22_spill] sm:$0xff] %v29299_v28 }
 0x30e   : > { %23580 = vmatmul.mubr.msk.f32.gmra.mrb[184].mxu1 %vm562_vm1, %v29282_v12  ;;  %24886 = vmatmul.mubr.msk.f32.gmra.mrb[88].mxu0 %vm562_vm1, %v28677_v20  ;;  %v29310_v20 = vld [vmem:[%s27364_s9 + $0xa28] sm:$0xff] }
 0x30f   : > { %23582 = vmatprep.mubr.msk.f32.mxu1 %vm562_vm1, %v29285_v27  ;;  %24888 = vmatprep.mubr.msk.f32.mxu0 %vm562_vm1, %v32318_v36  ;;  %v20203_v36 = vld [vmem:[%s27364_s9 + $0x518] sm:$0xff]  ;;  %v20204_v12 = vld [vmem:[%s27364_s9 + $0x528] sm:$0xff] }
 0x310   : > { %v29314_v27 = vld [vmem:[%s27364_s9 + $0xa38] sm:$0xff] }
 0x311   : > { %32320 = vst [vmem:[#allocation23_spill] sm:$0xff] %v29314_v27 }
 0x312   : > { %23583 = vmatmul.mubr.msk.f32.gmra.mrb[186].mxu1 %vm562_vm1, %v29296_v32  ;;  %24889 = vmatmul.mubr.msk.f32.gmra.mrb[90].mxu0 %vm562_vm1, %v28691_v38  ;;  %v29324_v38 = vld [vmem:[%s27364_s9 + $0xa40] sm:$0xff] }
 0x313   : > { %23585 = vmatprep.mubr.msk.f32.mxu1 %vm562_vm1, %v29299_v28  ;;  %24891 = vmatprep.mubr.msk.f32.mxu0 %vm562_vm1, %v20202_v47  ;;  %v20205_v47 = vld [vmem:[%s27364_s9 + $0x530] sm:$0xff]  ;;  %v3772_v28 = vld [vmem:[%s27364_s9 + $0x2] sm:$0xff] }
 0x316   : > { %23586 = vmatmul.mubr.msk.f32.gmra.mrb[188].mxu1 %vm562_vm1, %v29310_v20  ;;  %24892 = vmatmul.mubr.msk.f32.gmra.mrb[92].mxu0 %vm562_vm1, %v20203_v36  ;;  %v3773_v36 = vld [vmem:[%s27364_s9 + $0xa] sm:$0xff] }
 0x317   : > { %23588 = vmatprep.mubr.msk.f32.mxu1 %vm562_vm1, %v29314_v27  ;;  %24894 = vmatprep.mubr.msk.f32.mxu0 %vm562_vm1, %v20204_v12  ;;  %v3774_v27 = vld [vmem:[%s27364_s9 + $0x1a] sm:$0xff]  ;;  %v3775_v12 = vld [vmem:[%s27364_s9 + $0x22] sm:$0xff] }
 0x31a   : > { %23589 = vmatmul.mubr.msk.f32.gmra.mrb[190].mxu1 %vm562_vm1, %v29324_v38  ;;  %24895 = vmatmul.mubr.msk.f32.gmra.mrb[94].mxu0 %vm562_vm1, %v20205_v47  ;;  %v20228_v47 = vld [vmem:[%s27364_s9 + $0x678] sm:$0xff] }
 0x31b   : > { %23593 = vmatprep.mubr.msk.f32.mxu1 %vm562_vm1, %v3772_v28  ;;  %24897 = vmatprep.mubr.msk.f32.mxu0 %vm562_vm1, %v28713_v43  ;;  %v3776_v43 = vld [vmem:[%s27364_s9 + $0x32] sm:$0xff] }
 0x31c   : > { %v27203_v28 = vld [vmem:[%s32206_s1 + $0x10] sm:$0xf] }
 0x31e   : > { %23594 = vmatmul.mubr.msk.f32.vlgmr.msra.gmra.mrb[0].mxu1 %vm562_vm1, %v3773_v36  ;;  %24898 = vmatmul.mubr.msk.f32.gmra.mrb[96].mxu0 %vm562_vm1, %v28723_v56  ;;  %v3777_v56 = vld [vmem:[%s27364_s9 + $0x3a] sm:$0xff] }
 0x31f   : > { %23882 = vmatpush3.msk.msra.mxu1 %vm1139_vm0, %v28912_v51  ;;  %23596 = vmatprep.mubr.msk.f32.mxu1 %vm562_vm1, %v3774_v27  ;;  %v3780_v51 = vld [vmem:[%s27364_s9 + $0x62] sm:$0xff] }
 0x320   : > { %24900 = vmatprep.mubr.msk.f32.mxu0 %vm562_vm1, %v28726_v50  ;;  %25621 = vmatprep.subr.msk.mxu1 %vm1139_vm0, %v27203_v28  ;;  %v3778_v50 = vld [vmem:[%s27364_s9 + $0x4a] sm:$0xff]  ;;  %v20229_v36 = vld [vmem:[%s27364_s9 + $0x680] sm:$0xff] }
 0x321   : > { %v20227_v27 = vld [vmem:[%s27364_s9 + $0x668] sm:$0xff] }
 0x322   : > { %23597 = vmatmul.mubr.msk.f32.gmra.mrb[2].mxu1 %vm562_vm1, %v3775_v12  ;;  %24901 = vmatmul.mubr.msk.f32.gmra.mrb[98].mxu0 %vm562_vm1, %v28737_v59  ;;  %v3779_v59 = vld [vmem:[%s27364_s9 + $0x52] sm:$0xff]  ;;  %v3798_v28 = vld [vmem:[%s27364_s9 + $0x16a] sm:$0xff] }
 0x323   : > { %23599 = vmatprep.mubr.msk.f32.mxu1 %vm562_vm1, %v3776_v43  ;;  %24903 = vmatprep.mubr.msk.f32.mxu0 %vm562_vm1, %v28740_v61  ;;  %v3781_v61 = vld [vmem:[%s27364_s9 + $0x6a] sm:$0xff]  ;;  %v3796_v12 = vld [vmem:[%s27364_s9 + $0x152] sm:$0xff]  ;;  %v3797_v43 = vld [vmem:[%s27364_s9 + $0x15a] sm:$0xff] }
 0x326   : > { %23600 = vmatmul.mubr.msk.f32.gmra.mrb[4].mxu1 %vm562_vm1, %v3777_v56  ;;  %24904 = vmatmul.mubr.msk.f32.gmra.mrb[100].mxu0 %vm562_vm1, %v28751_v63  ;;  %v3782_v63 = vld [vmem:[%s27364_s9 + $0x7a] sm:$0xff]  ;;  %v3799_v56 = vld [vmem:[%s27364_s9 + $0x172] sm:$0xff] }
 0x327   : > { %23602 = vmatprep.mubr.msk.f32.mxu1 %vm562_vm1, %v3778_v50  ;;  %24906 = vmatprep.mubr.msk.f32.mxu0 %vm562_vm1, %v28754_v1  ;;  %v3783_v1 = vld [vmem:[%s27364_s9 + $0x82] sm:$0xff] }
 0x328   : > { %v3800_v50 = vld [vmem:[%s27364_s9 + $0x182] sm:$0xff] }
 0x32a   : > { %23603 = vmatmul.mubr.msk.f32.gmra.mrb[6].mxu1 %vm562_vm1, %v3779_v59  ;;  %24907 = vmatmul.mubr.msk.f32.gmra.mrb[102].mxu0 %vm562_vm1, %v28765_v3  ;;  %v3784_v3 = vld [vmem:[%s27364_s9 + $0x92] sm:$0xff]  ;;  %v3810_v59 = vld [vmem:[%s27364_s9 + $0x1fa] sm:$0xff] }
 0x32b   : > { %23605 = vmatprep.mubr.msk.f32.mxu1 %vm562_vm1, %v3780_v51  ;;  %24909 = vmatprep.mubr.msk.f32.mxu0 %vm562_vm1, %v28768_v5  ;;  %v3785_v5 = vld [vmem:[%s27364_s9 + $0x9a] sm:$0xff] }
 0x32c   : > { %v20251_v51 = vld [vmem:[%s27364_s9 + $0x7b8] sm:$0xff] }
 0x32e   : > { %23606 = vmatmul.mubr.msk.f32.gmra.mrb[8].mxu1 %vm562_vm1, %v3781_v61  ;;  %24910 = vmatmul.mubr.msk.f32.gmra.mrb[104].mxu0 %vm562_vm1, %v28779_v7  ;;  %v3786_v7 = vld [vmem:[%s27364_s9 + $0xaa] sm:$0xff] }
 0x32f   : > { %23608 = vmatprep.mubr.msk.f32.mxu1 %vm562_vm1, %v3782_v63  ;;  %24912 = vmatprep.mubr.msk.f32.mxu0 %vm562_vm1, %v28782_v9  ;;  %v3787_v9 = vld [vmem:[%s27364_s9 + $0xb2] sm:$0xff]  ;;  %v20252_v61 = vld [vmem:[%s27364_s9 + $0x7c8] sm:$0xff] }
 0x330   : > { %v20253_v63 = vld [vmem:[%s27364_s9 + $0x7d0] sm:$0xff] }
 0x332   : > { %23609 = vmatmul.mubr.msk.f32.gmra.mrb[10].mxu1 %vm562_vm1, %v3783_v1  ;;  %24913 = vmatmul.mubr.msk.f32.gmra.mrb[106].mxu0 %vm562_vm1, %v28793_v11  ;;  %v3788_v11 = vld [vmem:[%s27364_s9 + $0xc2] sm:$0xff] }
 0x333   : > { %23611 = vmatprep.mubr.msk.f32.mxu1 %vm562_vm1, %v3784_v3  ;;  %24915 = vmatprep.mubr.msk.f32.mxu0 %vm562_vm1, %v28796_v13  ;;  %v3789_v13 = vld [vmem:[%s27364_s9 + $0xca] sm:$0xff]  ;;  %v3820_v1 = vld [vmem:[%s27364_s9 + $0x2a2] sm:$0xff] }
 0x334   : > { %v3821_v3 = vld [vmem:[%s27364_s9 + $0x2aa] sm:$0xff] }
 0x336   : > { %23612 = vmatmul.mubr.msk.f32.gmra.mrb[12].mxu1 %vm562_vm1, %v3785_v5  ;;  %24916 = vmatmul.mubr.msk.f32.gmra.mrb[108].mxu0 %vm562_vm1, %v28807_v15  ;;  %v3790_v15 = vld [vmem:[%s27364_s9 + $0xda] sm:$0xff] }
 0x337   : > { %23614 = vmatprep.mubr.msk.f32.mxu1 %vm562_vm1, %v3786_v7  ;;  %24918 = vmatprep.mubr.msk.f32.mxu0 %vm562_vm1, %v28810_v17  ;;  %v3791_v17 = vld [vmem:[%s27364_s9 + $0xe2] sm:$0xff]  ;;  %v3822_v5 = vld [vmem:[%s27364_s9 + $0x2ba] sm:$0xff] }
 0x338   : > { %v3823_v7 = vld [vmem:[%s27364_s9 + $0x2c2] sm:$0xff] }
 0x33a   : > { %23615 = vmatmul.mubr.msk.f32.gmra.mrb[14].mxu1 %vm562_vm1, %v3787_v9  ;;  %24919 = vmatmul.mubr.msk.f32.gmra.mrb[110].mxu0 %vm562_vm1, %v28821_v19  ;;  %v3792_v19 = vld [vmem:[%s27364_s9 + $0xf2] sm:$0xff] }
 0x33b   : > { %23617 = vmatprep.mubr.msk.f32.mxu1 %vm562_vm1, %v3788_v11  ;;  %24921 = vmatprep.mubr.msk.f32.mxu0 %vm562_vm1, %v28824_v21  ;;  %v20226_v21 = vld [vmem:[%s27364_s9 + $0x660] sm:$0xff]  ;;  %v3824_v9 = vld [vmem:[%s27364_s9 + $0x2d2] sm:$0xff]  ;;  %v3834_v11 = vld [vmem:[%s27364_s9 + $0x34a] sm:$0xff] }
 0x33e   : > { %23618 = vmatmul.mubr.msk.f32.gmra.mrb[16].mxu1 %vm562_vm1, %v3789_v13  ;;  %24922 = vmatmul.mubr.msk.f32.gmra.mrb[112].mxu0 %vm562_vm1, %v28835_v25  ;;  %v3793_v25 = vld [vmem:[%s27364_s9 + $0xfa] sm:$0xff] }
 0x33f   : > { %23620 = vmatprep.mubr.msk.f32.mxu1 %vm562_vm1, %v3790_v15  ;;  %24924 = vmatprep.mubr.msk.f32.mxu0 %vm562_vm1, %v28839_v53  ;;  %v3794_v53 = vld [vmem:[%s27364_s9 + $0x10a] sm:$0xff]  ;;  %v32322_v13 = vld [vmem:[#allocation5_spill] sm:$0xff] }
 0x340   : > { %v3836_v15 = vld [vmem:[%s27364_s9 + $0x362] sm:$0xff] }
 0x342   : > { %23621 = vmatmul.mubr.msk.f32.gmra.mrb[18].mxu1 %vm562_vm1, %v3791_v17  ;;  %24925 = vmatmul.mubr.msk.f32.gmra.mrb[114].mxu0 %vm562_vm1, %v28849_v29  ;;  %v3795_v29 = vld [vmem:[%s27364_s9 + $0x112] sm:$0xff] }
 0x343   : > { %23623 = vmatprep.mubr.msk.f32.mxu1 %vm562_vm1, %v3792_v19  ;;  %24927 = vmatprep.mubr.msk.f32.mxu0 %vm562_vm1, %v20226_v21  ;;  %v32324_v17 = vld [vmem:[#allocation7_spill] sm:$0xff]  ;;  %v32325_v19 = vld [vmem:[#allocation8_spill] sm:$0xff] }
 0x344   : > { %v3837_v21 = vld [vmem:[%s27364_s9 + $0x36a] sm:$0xff] }
 0x346   : > { %23624 = vmatmul.mubr.msk.f32.gmra.mrb[20].mxu1 %vm562_vm1, %v3793_v25  ;;  %24928 = vmatmul.mubr.msk.f32.gmra.mrb[116].mxu0 %vm562_vm1, %v20227_v27  ;;  %v3838_v25 = vld [vmem:[%s27364_s9 + $0x37a] sm:$0xff] }
 0x347   : > { %23626 = vmatprep.mubr.msk.f32.mxu1 %vm562_vm1, %v3794_v53  ;;  %24930 = vmatprep.mubr.msk.f32.mxu0 %vm562_vm1, %v20228_v47  ;;  %v32326_v27 = vld [vmem:[#allocation9_spill] sm:$0xff]  ;;  %v32327_v53 = vld [vmem:[#allocation28_spill] sm:$0xff] }
 0x348   : > { %v3839_v47 = vld [vmem:[%s27364_s9 + $0x382] sm:$0xff] }
 0x34a   : > { %23627 = vmatmul.mubr.msk.f32.gmra.mrb[22].mxu1 %vm562_vm1, %v3795_v29  ;;  %24931 = vmatmul.mubr.msk.f32.gmra.mrb[118].mxu0 %vm562_vm1, %v20229_v36  ;;  %v3840_v29 = vld [vmem:[%s27364_s9 + $0x392] sm:$0xff]  ;;  %v20274_v36 = vld [vmem:[%s27364_s9 + $0x900] sm:$0xff] }
 0x34b   : > { %23629 = vmatprep.mubr.msk.f32.mxu1 %vm562_vm1, %v3796_v12  ;;  %24933 = vmatprep.mubr.msk.f32.mxu0 %vm562_vm1, %v28869_v4  ;;  %v3801_v4 = vld [vmem:[%s27364_s9 + $0x18a] sm:$0xff]  ;;  %v32328_v12 = vld [vmem:[#allocation29_spill] sm:$0xff] }
 0x34e   : > { %23630 = vmatmul.mubr.msk.f32.gmra.mrb[24].mxu1 %vm562_vm1, %v3797_v43  ;;  %24934 = vmatmul.mubr.msk.f32.gmra.mrb[120].mxu0 %vm562_vm1, %v28879_v39  ;;  %v3802_v39 = vld [vmem:[%s27364_s9 + $0x19a] sm:$0xff] }
 0x34f   : > { %23632 = vmatprep.mubr.msk.f32.mxu1 %vm562_vm1, %v3798_v28  ;;  %24936 = vmatprep.mubr.msk.f32.mxu0 %vm562_vm1, %v28882_v41  ;;  %v3803_v41 = vld [vmem:[%s27364_s9 + $0x1a2] sm:$0xff]  ;;  %v3841_v43 = vld [vmem:[%s27364_s9 + $0x39a] sm:$0xff] }
 0x350   : > { %v20275_v28 = vld [vmem:[%s27364_s9 + $0x908] sm:$0xff] }
 0x352   : > { %23633 = vmatmul.mubr.msk.f32.gmra.mrb[26].mxu1 %vm562_vm1, %v3799_v56  ;;  %24937 = vmatmul.mubr.msk.f32.gmra.mrb[122].mxu0 %vm562_vm1, %v28893_v44  ;;  %v3804_v44 = vld [vmem:[%s27364_s9 + $0x1b2] sm:$0xff]  ;;  %v3842_v56 = vld [vmem:[%s27364_s9 + $0x3aa] sm:$0xff] }
 0x353   : > { %23635 = vmatprep.mubr.msk.f32.mxu1 %vm562_vm1, %v3800_v50  ;;  %24939 = vmatprep.mubr.msk.f32.mxu0 %vm562_vm1, %v28896_v46  ;;  %v3805_v46 = vld [vmem:[%s27364_s9 + $0x1ba] sm:$0xff] }
 0x354   : > { %v20276_v50 = vld [vmem:[%s27364_s9 + $0x918] sm:$0xff] }
 0x356   : > { %23636 = vmatmul.mubr.msk.f32.gmra.mrb[28].mxu1 %vm562_vm1, %v3801_v4  ;;  %24940 = vmatmul.mubr.msk.f32.gmra.mrb[124].mxu0 %vm562_vm1, %v28907_v48  ;;  %v29472_v48 = vld [vmem:[%s32206_s1 + $0x20] sm:$0xf]  ;;  %v3843_v4 = vld [vmem:[%s27364_s9 + $0x3b2] sm:$0xff] }
 0x357   : > { %23638 = vmatprep.mubr.msk.f32.mxu1 %vm562_vm1, %v3802_v39  ;;  %24942 = vmatprep.mubr.msk.f32.mxu0 %vm562_vm1, %v28915_v54  ;;  %v3806_v54 = vld [vmem:[%s27364_s9 + $0x1ca] sm:$0xff]  ;;  %v20277_v39 = vld [vmem:[%s27364_s9 + $0x920] sm:$0xff] }
 0x358   : > { %25331 = vmatprep.subr.msk.mxu0 %vm1139_vm0, %v29472_v48 }
 0x35a   : > { %23639 = vmatmul.mubr.msk.f32.gmra.mrb[30].mxu1 %vm562_vm1, %v3803_v41  ;;  %24943 = vmatmul.mubr.msk.f32.gmra.mrb[126].mxu0 %vm562_vm1, %v28928_v42  ;;  %v3807_v42 = vld [vmem:[%s27364_s9 + $0x1d2] sm:$0xff] }
 0x35b   : > { %23641 = vmatprep.mubr.msk.f32.mxu1 %vm562_vm1, %v3804_v44  ;;  %24945 = vmatprep.mubr.msk.f32.mxu0 %vm562_vm1, %v28931_v58  ;;  %v3808_v58 = vld [vmem:[%s27364_s9 + $0x1e2] sm:$0xff]  ;;  %v3844_v41 = vld [vmem:[%s27364_s9 + $0x3f2] sm:$0xff]  ;;  %v3845_v44 = vld [vmem:[%s27364_s9 + $0x3fa] sm:$0xff] }
 0x35e   : > { %23642 = vmatmul.mubr.msk.f32.gmra.mrb[32].mxu1 %vm562_vm1, %v3805_v46  ;;  %24946 = vmatmul.mubr.msk.f32.gmra.mrb[128].mxu0 %vm562_vm1, %v28942_v62  ;;  %v3809_v62 = vld [vmem:[%s27364_s9 + $0x1ea] sm:$0xff] }
 0x35f   : > { %23644 = vmatprep.mubr.msk.f32.mxu1 %vm562_vm1, %v3806_v54  ;;  %24948 = vmatprep.mubr.msk.f32.mxu0 %vm562_vm1, %v28945_v2  ;;  %v3811_v2 = vld [vmem:[%s27364_s9 + $0x202] sm:$0xff]  ;;  %v3846_v46 = vld [vmem:[%s27364_s9 + $0x40a] sm:$0xff] }
 0x360   : > { %v32329_v54 = vld [vmem:[#allocation10_spill] sm:$0xff] }
 0x362   : > { %23645 = vmatmul.mubr.msk.f32.gmra.mrb[34].mxu1 %vm562_vm1, %v3807_v42  ;;  %24949 = vmatmul.mubr.msk.f32.gmra.mrb[130].mxu0 %vm562_vm1, %v28956_v6  ;;  %v3812_v6 = vld [vmem:[%s27364_s9 + $0x212] sm:$0xff] }
 0x363   : > { %23647 = vmatprep.mubr.msk.f32.mxu1 %vm562_vm1, %v3808_v58  ;;  %24951 = vmatprep.mubr.msk.f32.mxu0 %vm562_vm1, %v28959_v10  ;;  %v3813_v10 = vld [vmem:[%s27364_s9 + $0x21a] sm:$0xff]  ;;  %v32330_v42 = vld [vmem:[#allocation11_spill] sm:$0xff] }
 0x364   : > { %v3847_v58 = vld [vmem:[%s27364_s9 + $0x412] sm:$0xff] }
 0x366   : > { %23648 = vmatmul.mubr.msk.f32.gmra.mrb[36].mxu1 %vm562_vm1, %v3809_v62  ;;  %24952 = vmatmul.mubr.msk.f32.gmra.mrb[132].mxu0 %vm562_vm1, %v28970_v14  ;;  %v3814_v14 = vld [vmem:[%s27364_s9 + $0x22a] sm:$0xff]  ;;  %v3848_v62 = vld [vmem:[%s27364_s9 + $0x422] sm:$0xff] }
 0x367   : > { %23650 = vmatprep.mubr.msk.f32.mxu1 %vm562_vm1, %v3810_v59  ;;  %24954 = vmatprep.mubr.msk.f32.mxu0 %vm562_vm1, %v28973_v18  ;;  %v3815_v18 = vld [vmem:[%s27364_s9 + $0x232] sm:$0xff] }
 0x368   : > { %v32331_v59 = vld [vmem:[#allocation12_spill] sm:$0xff] }
 0x36a   : > { %23651 = vmatmul.mubr.msk.f32.gmra.mrb[38].mxu1 %vm562_vm1, %v3811_v2  ;;  %24955 = vmatmul.mubr.msk.f32.gmra.mrb[134].mxu0 %vm562_vm1, %v28984_v22  ;;  %v3816_v22 = vld [vmem:[%s27364_s9 + $0x242] sm:$0xff]  ;;  %v3849_v2 = vld [vmem:[%s27364_s9 + $0x42a] sm:$0xff] }
 0x36b   : > { %23653 = vmatprep.mubr.msk.f32.mxu1 %vm562_vm1, %v3812_v6  ;;  %24957 = vmatprep.mubr.msk.f32.mxu0 %vm562_vm1, %v28987_v26  ;;  %v20250_v26 = vld [vmem:[%s27364_s9 + $0x7b0] sm:$0xff]  ;;  %v3850_v6 = vld [vmem:[%s27364_s9 + $0x43a] sm:$0xff] }
 0x36e   : > { %23654 = vmatmul.mubr.msk.f32.gmra.mrb[40].mxu1 %vm562_vm1, %v3813_v10  ;;  %24958 = vmatmul.mubr.msk.f32.gmra.mrb[136].mxu0 %vm562_vm1, %v28998_v30  ;;  %v3817_v30 = vld [vmem:[%s27364_s9 + $0x24a] sm:$0xff] }
 0x36f   : > { %23656 = vmatprep.mubr.msk.f32.mxu1 %vm562_vm1, %v3814_v14  ;;  %24960 = vmatprep.mubr.msk.f32.mxu0 %vm562_vm1, %v29002_v33  ;;  %v3818_v33 = vld [vmem:[%s27364_s9 + $0x25a] sm:$0xff]  ;;  %v32333_v10 = vld [vmem:[#allocation14_spill] sm:$0xff]  ;;  %v32334_v14 = vld [vmem:[#allocation15_spill] sm:$0xff] }
 0x372   : > { %23657 = vmatmul.mubr.msk.f32.gmra.mrb[42].mxu1 %vm562_vm1, %v3815_v18  ;;  %24961 = vmatmul.mubr.msk.f32.gmra.mrb[138].mxu0 %vm562_vm1, %v29012_v34  ;;  %v3819_v34 = vld [vmem:[%s27364_s9 + $0x262] sm:$0xff] }
 0x373   : > { %23659 = vmatprep.mubr.msk.f32.mxu1 %vm562_vm1, %v3816_v22  ;;  %24963 = vmatprep.mubr.msk.f32.mxu0 %vm562_vm1, %v20250_v26  ;;  %v3851_v18 = vld [vmem:[%s27364_s9 + $0x442] sm:$0xff]  ;;  %v3852_v22 = vld [vmem:[%s27364_s9 + $0x452] sm:$0xff] }
 0x374   : > { %v32335_v26 = vld [vmem:[#allocation16_spill] sm:$0xff] }
 0x376   : > { %23660 = vmatmul.mubr.msk.f32.gmra.mrb[44].mxu1 %vm562_vm1, %v3817_v30  ;;  %24964 = vmatmul.mubr.msk.f32.gmra.mrb[140].mxu0 %vm562_vm1, %v20251_v51  ;;  %v3853_v30 = vld [vmem:[%s27364_s9 + $0x45a] sm:$0xff]  ;;  %v3854_v51 = vld [vmem:[%s27364_s9 + $0x46a] sm:$0xff] }
 0x377   : > { %23662 = vmatprep.mubr.msk.f32.mxu1 %vm562_vm1, %v3818_v33  ;;  %24966 = vmatprep.mubr.msk.f32.mxu0 %vm562_vm1, %v20252_v61  ;;  %v32336_v33 = vld [vmem:[#allocation17_spill] sm:$0xff] }
 0x378   : > { %v3856_v61 = vld [vmem:[%s27364_s9 + $0x482] sm:$0xff] }
 0x37a   : > { %23663 = vmatmul.mubr.msk.f32.gmra.mrb[46].mxu1 %vm562_vm1, %v3819_v34  ;;  %24967 = vmatmul.mubr.msk.f32.gmra.mrb[142].mxu0 %vm562_vm1, %v20253_v63  ;;  %v32337_v34 = vld [vmem:[#allocation18_spill] sm:$0xff]  ;;  %v32338_v63 = vld [vmem:[#allocation19_spill] sm:$0xff] }
 0x37b   : > { %23665 = vmatprep.mubr.msk.f32.mxu1 %vm562_vm1, %v3820_v1  ;;  %24969 = vmatprep.mubr.msk.f32.mxu0 %vm562_vm1, %v29032_v23  ;;  %v3825_v23 = vld [vmem:[%s27364_s9 + $0x2da] sm:$0xff] }
 0x37c   : > { %v3858_v1 = vld [vmem:[%s27364_s9 + $0x49a] sm:$0xff] }
 0x37e   : > { %23666 = vmatmul.mubr.msk.f32.gmra.mrb[48].mxu1 %vm562_vm1, %v3821_v3  ;;  %24970 = vmatmul.mubr.msk.f32.gmra.mrb[144].mxu0 %vm562_vm1, %v29042_v52  ;;  %v3826_v52 = vld [vmem:[%s27364_s9 + $0x2ea] sm:$0xff]  ;;  %v32339_v3 = vld [vmem:[#allocation20_spill] sm:$0xff] }
 0x37f   : > { %23668 = vmatprep.mubr.msk.f32.mxu1 %vm562_vm1, %v3822_v5  ;;  %24972 = vmatprep.mubr.msk.f32.mxu0 %vm562_vm1, %v29045_v57  ;;  %v3827_v57 = vld [vmem:[%s27364_s9 + $0x2f2] sm:$0xff]  ;;  %v32340_v5 = vld [vmem:[#allocation21_spill] sm:$0xff] }
 0x382   : > { %23669 = vmatmul.mubr.msk.f32.gmra.mrb[50].mxu1 %vm562_vm1, %v3823_v7  ;;  %24973 = vmatmul.mubr.msk.f32.gmra.mrb[146].mxu0 %vm562_vm1, %v29056_v0  ;;  %v3828_v0 = vld [vmem:[%s27364_s9 + $0x302] sm:$0xff] }
 0x383   : > { %23671 = vmatprep.mubr.msk.f32.mxu1 %vm562_vm1, %v3824_v9  ;;  %24975 = vmatprep.mubr.msk.f32.mxu0 %vm562_vm1, %v29059_v8  ;;  %v3829_v8 = vld [vmem:[%s27364_s9 + $0x30a] sm:$0xff]  ;;  %v3859_v7 = vld [vmem:[%s27364_s9 + $0x4a2] sm:$0xff]  ;;  %v3860_v9 = vld [vmem:[%s27364_s9 + $0x4b2] sm:$0xff] }
 0x386   : > { %23672 = vmatmul.mubr.msk.f32.gmra.mrb[52].mxu1 %vm562_vm1, %v3825_v23  ;;  %24976 = vmatmul.mubr.msk.f32.gmra.mrb[148].mxu0 %vm562_vm1, %v29070_v16  ;;  %v3830_v16 = vld [vmem:[%s27364_s9 + $0x31a] sm:$0xff]  ;;  %v32341_v23 = vld [vmem:[#allocation22_spill] sm:$0xff] }
 0x387   : > { %23674 = vmatprep.mubr.msk.f32.mxu1 %vm562_vm1, %v3826_v52  ;;  %24978 = vmatprep.mubr.msk.f32.mxu0 %vm562_vm1, %v29073_v24  ;;  %v3831_v24 = vld [vmem:[%s27364_s9 + $0x322] sm:$0xff]  ;;  %v3861_v52 = vld [vmem:[%s27364_s9 + $0x4ba] sm:$0xff] }
 0x38a   : > { %23675 = vmatmul.mubr.msk.f32.gmra.mrb[54].mxu1 %vm562_vm1, %v3827_v57  ;;  %24979 = vmatmul.mubr.msk.f32.gmra.mrb[150].mxu0 %vm562_vm1, %v29084_v31  ;;  %v3832_v31 = vld [vmem:[%s27364_s9 + $0x332] sm:$0xff]  ;;  %v3862_v57 = vld [vmem:[%s27364_s9 + $0x4ca] sm:$0xff] }
 0x38b   : > { %23677 = vmatprep.mubr.msk.f32.mxu1 %vm562_vm1, %v3828_v0  ;;  %24981 = vmatprep.mubr.msk.f32.mxu0 %vm562_vm1, %v29087_v35  ;;  %v32321_v35 = vld [vmem:[#allocation27_spill] sm:$0xff] }
 0x38c   : > { %v32342_v0 = vld [vmem:[#allocation23_spill] sm:$0xff] }
 0x38e   : > { %23678 = vmatmul.mubr.msk.f32.gmra.mrb[56].mxu1 %vm562_vm1, %v3829_v8  ;;  %24982 = vmatmul.mubr.msk.f32.gmra.mrb[152].mxu0 %vm562_vm1, %v29098_v37  ;;  %v3833_v37 = vld [vmem:[%s27364_s9 + $0x33a] sm:$0xff]  ;;  %v3864_v8 = vld [vmem:[%s27364_s9 + $0x4e2] sm:$0xff] }
 0x38f   : > { %23680 = vmatprep.mubr.msk.f32.mxu1 %vm562_vm1, %v3830_v16  ;;  %24984 = vmatprep.mubr.msk.f32.mxu0 %vm562_vm1, %v29101_v40  ;;  %v32323_v40 = vld [vmem:[#allocation6_spill] sm:$0xff]  ;;  %v20298_v16 = vld [vmem:[%s27364_s9 + $0xa50] sm:$0xff] }
 0x392   : > { %23681 = vmatmul.mubr.msk.f32.gmra.mrb[58].mxu1 %vm562_vm1, %v3831_v24  ;;  %24985 = vmatmul.mubr.msk.f32.gmra.mrb[154].mxu0 %vm562_vm1, %v29112_v45  ;;  %v3835_v45 = vld [vmem:[%s27364_s9 + $0x352] sm:$0xff] }
 0x393   : > { %23683 = vmatprep.mubr.msk.f32.mxu1 %vm562_vm1, %v3832_v31  ;;  %24987 = vmatprep.mubr.msk.f32.mxu0 %vm562_vm1, %v32321_v35  ;;  %v20299_v24 = vld [vmem:[%s27364_s9 + $0xa58] sm:$0xff]  ;;  %v20300_v35 = vld [vmem:[%s27364_s9 + $0xa68] sm:$0xff] }
 0x394   : > { %v3866_v31 = vld [vmem:[%s27364_s9 + $0x4fa] sm:$0xff] }
 0x396   : > { %23684 = vmatmul.mubr.msk.f32.gmra.mrb[60].mxu1 %vm562_vm1, %v3833_v37  ;;  %24988 = vmatmul.mubr.msk.f32.gmra.mrb[156].mxu0 %vm562_vm1, %v32322_v13  ;;  %v20301_v37 = vld [vmem:[%s27364_s9 + $0xa70] sm:$0xff] }
 0x397   : > { %23686 = vmatprep.mubr.msk.f32.mxu1 %vm562_vm1, %v3834_v11  ;;  %24990 = vmatprep.mubr.msk.f32.mxu0 %vm562_vm1, %v32323_v40  ;;  %v3868_v11 = vld [vmem:[%s27364_s9 + $0x542] sm:$0xff]  ;;  %v20496_v13 = vld [vmem:[%s27364_s9 + $0x31] sm:$0xff] }
 0x398   : > { %v3869_v40 = vld [vmem:[%s27364_s9 + $0x54a] sm:$0xff] }
 0x39a   : > { %23687 = vmatmul.mubr.msk.f32.gmra.mrb[62].mxu1 %vm562_vm1, %v3835_v45  ;;  %24991 = vmatmul.mubr.msk.f32.gmra.mrb[158].mxu0 %vm562_vm1, %v32324_v17  ;;  %v20497_v45 = vld [vmem:[%s27364_s9 + $0x39] sm:$0xff]  ;;  %v20498_v17 = vld [vmem:[%s27364_s9 + $0x49] sm:$0xff] }
 0x39b   : > { %23689 = vmatprep.mubr.msk.f32.mxu1 %vm562_vm1, %v3836_v15  ;;  %24993 = vmatprep.mubr.msk.f32.mxu0 %vm562_vm1, %v32325_v19  ;;  %v3870_v15 = vld [vmem:[%s27364_s9 + $0x55a] sm:$0xff]  ;;  %v3871_v19 = vld [vmem:[%s27364_s9 + $0x562] sm:$0xff] }
 0x39e   : > { %23690 = vmatmul.mubr.msk.f32.gmra.mrb[64].mxu1 %vm562_vm1, %v3837_v21  ;;  %24994 = vmatmul.mubr.msk.f32.gmra.mrb[160].mxu0 %vm562_vm1, %v32326_v27  ;;  %v20499_v21 = vld [vmem:[%s27364_s9 + $0x51] sm:$0xff]  ;;  %v20500_v27 = vld [vmem:[%s27364_s9 + $0x61] sm:$0xff] }
 0x39f   : > { %23692 = vmatprep.mubr.msk.f32.mxu1 %vm562_vm1, %v3838_v25  ;;  %24996 = vmatprep.mubr.msk.f32.mxu0 %vm562_vm1, %v32327_v53  ;;  %v3872_v25 = vld [vmem:[%s27364_s9 + $0x572] sm:$0xff]  ;;  %v20501_v53 = vld [vmem:[%s27364_s9 + $0x69] sm:$0xff] }
 0x3a2   : > { %23693 = vmatmul.mubr.msk.f32.gmra.mrb[66].mxu1 %vm562_vm1, %v3839_v47  ;;  %24997 = vmatmul.mubr.msk.f32.gmra.mrb[162].mxu0 %vm562_vm1, %v32328_v12  ;;  %v3874_v47 = vld [vmem:[%s27364_s9 + $0x58a] sm:$0xff]  ;;  %v20503_v12 = vld [vmem:[%s27364_s9 + $0x81] sm:$0xff] }
 0x3a3   : > { %23695 = vmatprep.mubr.msk.f32.mxu1 %vm562_vm1, %v3840_v29  ;;  %24999 = vmatprep.mubr.msk.f32.mxu0 %vm562_vm1, %v20274_v36  ;;  %v20502_v29 = vld [vmem:[%s27364_s9 + $0x79] sm:$0xff] }
 0x3a4   : > { %v3875_v36 = vld [vmem:[%s27364_s9 + $0x592] sm:$0xff] }
 0x3a6   : > { %23696 = vmatmul.mubr.msk.f32.gmra.mrb[68].mxu1 %vm562_vm1, %v3841_v43  ;;  %25000 = vmatmul.mubr.msk.f32.gmra.mrb[164].mxu0 %vm562_vm1, %v20275_v28  ;;  %v3876_v43 = vld [vmem:[%s27364_s9 + $0x5a2] sm:$0xff]  ;;  %v20504_v28 = vld [vmem:[%s27364_s9 + $0x91] sm:$0xff] }
 0x3a7   : > { %23698 = vmatprep.mubr.msk.f32.mxu1 %vm562_vm1, %v3842_v56  ;;  %25002 = vmatprep.mubr.msk.f32.mxu0 %vm562_vm1, %v20276_v50  ;;  %v3877_v56 = vld [vmem:[%s27364_s9 + $0x5aa] sm:$0xff]  ;;  %v20505_v50 = vld [vmem:[%s27364_s9 + $0x99] sm:$0xff] }
 0x3aa   : > { %23699 = vmatmul.mubr.msk.f32.gmra.mrb[70].mxu1 %vm562_vm1, %v3843_v4  ;;  %25003 = vmatmul.mubr.msk.f32.gmra.mrb[166].mxu0 %vm562_vm1, %v20277_v39  ;;  %v3878_v4 = vld [vmem:[%s27364_s9 + $0x5ba] sm:$0xff]  ;;  %v20506_v39 = vld [vmem:[%s27364_s9 + $0xa9] sm:$0xff] }
 0x3ab   : > { %23701 = vmatprep.mubr.msk.f32.mxu1 %vm562_vm1, %v3844_v41  ;;  %25005 = vmatprep.mubr.msk.f32.mxu0 %vm562_vm1, %v29188_v55  ;;  %v32332_v55 = vld [vmem:[#allocation13_spill] sm:$0xff] }
 0x3ac   : > { %v3879_v41 = vld [vmem:[%s27364_s9 + $0x5c2] sm:$0xff] }
 0x3ae   : > { %23702 = vmatmul.mubr.msk.f32.gmra.mrb[72].mxu1 %vm562_vm1, %v3845_v44  ;;  %25006 = vmatmul.mubr.msk.f32.gmra.mrb[168].mxu0 %vm562_vm1, %v32329_v54  ;;  %v20507_v44 = vld [vmem:[%s27364_s9 + $0xb1] sm:$0xff]  ;;  %v20508_v54 = vld [vmem:[%s27364_s9 + $0xc1] sm:$0xff] }
 0x3af   : > { %23704 = vmatprep.mubr.msk.f32.mxu1 %vm562_vm1, %v3846_v46  ;;  %25008 = vmatprep.mubr.msk.f32.mxu0 %vm562_vm1, %v32330_v42  ;;  %v3880_v46 = vld [vmem:[%s27364_s9 + $0x5d2] sm:$0xff]  ;;  %v3881_v42 = vld [vmem:[%s27364_s9 + $0x5da] sm:$0xff] }
 0x3b2   : > { %23705 = vmatmul.mubr.msk.f32.gmra.mrb[74].mxu1 %vm562_vm1, %v3847_v58  ;;  %25009 = vmatmul.mubr.msk.f32.gmra.mrb[170].mxu0 %vm562_vm1, %v32331_v59  ;;  %v20509_v58 = vld [vmem:[%s27364_s9 + $0xc9] sm:$0xff]  ;;  %v20510_v59 = vld [vmem:[%s27364_s9 + $0xd9] sm:$0xff] }
 0x3b3   : > { %23707 = vmatprep.mubr.msk.f32.mxu1 %vm562_vm1, %v3848_v62  ;;  %25011 = vmatprep.mubr.msk.f32.mxu0 %vm562_vm1, %v32332_v55  ;;  %v3882_v62 = vld [vmem:[%s27364_s9 + $0x5ea] sm:$0xff]  ;;  %v3883_v55 = vld [vmem:[%s27364_s9 + $0x5f2] sm:$0xff] }
 0x3b6   : > { %23708 = vmatmul.mubr.msk.f32.gmra.mrb[76].mxu1 %vm562_vm1, %v3849_v2  ;;  %25012 = vmatmul.mubr.msk.f32.gmra.mrb[172].mxu0 %vm562_vm1, %v32333_v10  ;;  %v20511_v2 = vld [vmem:[%s27364_s9 + $0xe1] sm:$0xff]  ;;  %v20512_v10 = vld [vmem:[%s27364_s9 + $0xf1] sm:$0xff] }
 0x3b7   : > { %23710 = vmatprep.mubr.msk.f32.mxu1 %vm562_vm1, %v3850_v6  ;;  %25014 = vmatprep.mubr.msk.f32.mxu0 %vm562_vm1, %v32334_v14  ;;  %v3884_v6 = vld [vmem:[%s27364_s9 + $0x602] sm:$0xff]  ;;  %v3885_v14 = vld [vmem:[%s27364_s9 + $0x60a] sm:$0xff] }
 0x3ba   : > { %23711 = vmatmul.mubr.msk.f32.gmra.mrb[78].mxu1 %vm562_vm1, %v3851_v18  ;;  %25015 = vmatmul.mubr.msk.f32.gmra.mrb[174].mxu0 %vm562_vm1, %v29240_v60  ;;  %v3855_v60 = vld [vmem:[%s27364_s9 + $0x472] sm:$0xff] }
 0x3bb   : > { %23713 = vmatprep.mubr.msk.f32.mxu1 %vm562_vm1, %v3852_v22  ;;  %25017 = vmatprep.mubr.msk.f32.mxu0 %vm562_vm1, %v32335_v26  ;;  %v20513_v18 = vld [vmem:[%s27364_s9 + $0xf9] sm:$0xff]  ;;  %v20514_v26 = vld [vmem:[%s27364_s9 + $0x109] sm:$0xff] }
 0x3bc   : > { %v3886_v22 = vld [vmem:[%s27364_s9 + $0x61a] sm:$0xff] }
 0x3be   : > { %23714 = vmatmul.mubr.msk.f32.gmra.mrb[80].mxu1 %vm562_vm1, %v3853_v30  ;;  %25018 = vmatmul.mubr.msk.f32.gmra.mrb[176].mxu0 %vm562_vm1, %v29254_v49  ;;  %v3857_v49 = vld [vmem:[%s27364_s9 + $0x48a] sm:$0xff]  ;;  %v3887_v30 = vld [vmem:[%s27364_s9 + $0x622] sm:$0xff] }
 0x3bf   : > { %23716 = vmatprep.mubr.msk.f32.mxu1 %vm562_vm1, %v3854_v51  ;;  %25020 = vmatprep.mubr.msk.f32.mxu0 %vm562_vm1, %v32336_v33  ;;  %v20515_v51 = vld [vmem:[%s27364_s9 + $0x111] sm:$0xff] }
 0x3c0   : > { %v3888_v33 = vld [vmem:[%s27364_s9 + $0x632] sm:$0xff] }
 0x3c2   : > { %23717 = vmatmul.mubr.msk.f32.gmra.mrb[82].mxu1 %vm562_vm1, %v3855_v60  ;;  %25021 = vmatmul.mubr.msk.f32.gmra.mrb[178].mxu0 %vm562_vm1, %v32337_v34  ;;  %v20516_v60 = vld [vmem:[%s27364_s9 + $0x121] sm:$0xff]  ;;  %v20517_v34 = vld [vmem:[%s27364_s9 + $0x129] sm:$0xff] }
 0x3c3   : > { %23719 = vmatprep.mubr.msk.f32.mxu1 %vm562_vm1, %v3856_v61  ;;  %25023 = vmatprep.mubr.msk.f32.mxu0 %vm562_vm1, %v32338_v63  ;;  %v3889_v61 = vld [vmem:[%s27364_s9 + $0x63a] sm:$0xff]  ;;  %v3890_v63 = vld [vmem:[%s27364_s9 + $0x64a] sm:$0xff] }
 0x3c6   : > { %23720 = vmatmul.mubr.msk.f32.gmra.mrb[84].mxu1 %vm562_vm1, %v3857_v49  ;;  %25024 = vmatmul.mubr.msk.f32.gmra.mrb[180].mxu0 %vm562_vm1, %v32339_v3  ;;  %v20518_v49 = vld [vmem:[%s27364_s9 + $0x139] sm:$0xff]  ;;  %v20519_v3 = vld [vmem:[%s27364_s9 + $0x141] sm:$0xff] }
 0x3c7   : > { %23722 = vmatprep.mubr.msk.f32.mxu1 %vm562_vm1, %v3858_v1  ;;  %25026 = vmatprep.mubr.msk.f32.mxu0 %vm562_vm1, %v32340_v5  ;;  %v3891_v1 = vld [vmem:[%s27364_s9 + $0x652] sm:$0xff] }
 0x3c8   : > { %v3892_v5 = vld [vmem:[%s27364_s9 + $0x692] sm:$0xff] }
 0x3ca   : > { %23723 = vmatmul.mubr.msk.f32.gmra.mrb[86].mxu1 %vm562_vm1, %v3859_v7  ;;  %25027 = vmatmul.mubr.msk.f32.gmra.mrb[182].mxu0 %vm562_vm1, %v29296_v32  ;;  %v3863_v32 = vld [vmem:[%s27364_s9 + $0x4d2] sm:$0xff]  ;;  %v20520_v7 = vld [vmem:[%s27364_s9 + $0x181] sm:$0xff] }
 0x3cb   : > { %23725 = vmatprep.mubr.msk.f32.mxu1 %vm562_vm1, %v3860_v9  ;;  %25029 = vmatprep.mubr.msk.f32.mxu0 %vm562_vm1, %v32341_v23  ;;  %v3893_v9 = vld [vmem:[%s27364_s9 + $0x69a] sm:$0xff]  ;;  %v20521_v23 = vld [vmem:[%s27364_s9 + $0x189] sm:$0xff] }
 0x3ce   : > { %23726 = vmatmul.mubr.msk.f32.gmra.mrb[88].mxu1 %vm562_vm1, %v3861_v52  ;;  %25030 = vmatmul.mubr.msk.f32.gmra.mrb[184].mxu0 %vm562_vm1, %v29310_v20  ;;  %v3865_v20 = vld [vmem:[%s27364_s9 + $0x4ea] sm:$0xff] }
 0x3cf   : > { %23728 = vmatprep.mubr.msk.f32.mxu1 %vm562_vm1, %v3862_v57  ;;  %25032 = vmatprep.mubr.msk.f32.mxu0 %vm562_vm1, %v32342_v0  ;;  %v3894_v52 = vld [vmem:[%s27364_s9 + $0x6aa] sm:$0xff]  ;;  %v20522_v57 = vld [vmem:[%s27364_s9 + $0x199] sm:$0xff] }
 0x3d0   : > { %v3895_v0 = vld [vmem:[%s27364_s9 + $0x6b2] sm:$0xff] }
 0x3d2   : > { %23729 = vmatmul.mubr.msk.f32.gmra.mrb[90].mxu1 %vm562_vm1, %v3863_v32  ;;  %25033 = vmatmul.mubr.msk.f32.gmra.mrb[186].mxu0 %vm562_vm1, %v29324_v38  ;;  %v3867_v38 = vld [vmem:[%s27364_s9 + $0x502] sm:$0xff] }
 0x3d3   : > { %23731 = vmatprep.mubr.msk.f32.mxu1 %vm562_vm1, %v3864_v8  ;;  %25035 = vmatprep.mubr.msk.f32.mxu0 %vm562_vm1, %v20298_v16  ;;  %v20523_v32 = vld [vmem:[%s27364_s9 + $0x1a1] sm:$0xff]  ;;  %v20524_v16 = vld [vmem:[%s27364_s9 + $0x1b1] sm:$0xff] }
 0x3d4   : > { %v3896_v8 = vld [vmem:[%s27364_s9 + $0x6c2] sm:$0xff] }
 0x3d6   : > { %23732 = vmatmul.mubr.msk.f32.gmra.mrb[92].mxu1 %vm562_vm1, %v3865_v20  ;;  %25036 = vmatmul.mubr.msk.f32.gmra.mrb[188].mxu0 %vm562_vm1, %v20299_v24  ;;  %v3897_v20 = vld [vmem:[%s27364_s9 + $0x6ca] sm:$0xff]  ;;  %v20525_v24 = vld [vmem:[%s27364_s9 + $0x1b9] sm:$0xff] }
 0x3d7   : > { %23734 = vmatprep.mubr.msk.f32.mxu1 %vm562_vm1, %v3866_v31  ;;  %25038 = vmatprep.mubr.msk.f32.mxu0 %vm562_vm1, %v20300_v35  ;;  %v3898_v31 = vld [vmem:[%s27364_s9 + $0x6da] sm:$0xff]  ;;  %v20526_v35 = vld [vmem:[%s27364_s9 + $0x1c9] sm:$0xff] }
 0x3da   : > { %23735 = vmatmul.mubr.msk.f32.gmra.mrb[94].mxu1 %vm562_vm1, %v3867_v38  ;;  %25039 = vmatmul.mubr.msk.f32.gmra.mrb[190].mxu0 %vm562_vm1, %v20301_v37  ;;  %v3899_v38 = vld [vmem:[%s27364_s9 + $0x6e2] sm:$0xff]  ;;  %v20527_v37 = vld [vmem:[%s27364_s9 + $0x1d1] sm:$0xff] }
 0x3db   : > { %23737 = vmatprep.mubr.msk.f32.mxu1 %vm562_vm1, %v3868_v11  ;;  %25043 = vmatprep.mubr.msk.f32.mxu0 %vm562_vm1, %v20496_v13  ;;  %v3900_v11 = vld [vmem:[%s27364_s9 + $0x6f2] sm:$0xff]  ;;  %v20528_v13 = vld [vmem:[%s27364_s9 + $0x1e1] sm:$0xff] }
 0x3de   : > { %23738 = vmatmul.mubr.msk.f32.gmra.mrb[96].mxu1 %vm562_vm1, %v3869_v40  ;;  %25044 = vmatmul.mubr.msk.f32.vlgmr.msra.gmra.mrb[0].mxu0 %vm562_vm1, %v20497_v45  ;;  %v3901_v40 = vld [vmem:[%s27364_s9 + $0x6fa] sm:$0xff]  ;;  %v20529_v45 = vld [vmem:[%s27364_s9 + $0x1e9] sm:$0xff] }
 0x3df   : > { %25332 = vmatpush3.msk.msra.mxu0 %vm1139_vm0, %v29472_v48  ;;  %23740 = vmatprep.mubr.msk.f32.mxu1 %vm562_vm1, %v3870_v15  ;;  %v3873_v48 = vld [vmem:[%s27364_s9 + $0x57a] sm:$0xff]  ;;  %v3902_v15 = vld [vmem:[%s27364_s9 + $0x70a] sm:$0xff] }
 0x3e0   : > { %25046 = vmatprep.mubr.msk.f32.mxu0 %vm562_vm1, %v20498_v17  ;;  %v20530_v17 = vld [vmem:[%s27364_s9 + $0x1f9] sm:$0xff] }
 0x3e2   : > { %23741 = vmatmul.mubr.msk.f32.gmra.mrb[98].mxu1 %vm562_vm1, %v3871_v19  ;;  %25047 = vmatmul.mubr.msk.f32.gmra.mrb[2].mxu0 %vm562_vm1, %v20499_v21  ;;  %v3903_v19 = vld [vmem:[%s27364_s9 + $0x712] sm:$0xff]  ;;  %v20531_v21 = vld [vmem:[%s27364_s9 + $0x201] sm:$0xff] }
 0x3e3   : > { %23743 = vmatprep.mubr.msk.f32.mxu1 %vm562_vm1, %v3872_v25  ;;  %25049 = vmatprep.mubr.msk.f32.mxu0 %vm562_vm1, %v20500_v27  ;;  %v3904_v25 = vld [vmem:[%s27364_s9 + $0x722] sm:$0xff]  ;;  %v20532_v27 = vld [vmem:[%s27364_s9 + $0x211] sm:$0xff] }
 0x3e6   : > { %23744 = vmatmul.mubr.msk.f32.gmra.mrb[100].mxu1 %vm562_vm1, %v3873_v48  ;;  %25050 = vmatmul.mubr.msk.f32.gmra.mrb[4].mxu0 %vm562_vm1, %v20501_v53  ;;  %v3905_v48 = vld [vmem:[%s27364_s9 + $0x72a] sm:$0xff]  ;;  %v20533_v53 = vld [vmem:[%s27364_s9 + $0x219] sm:$0xff] }
 0x3e7   : > { %23746 = vmatprep.mubr.msk.f32.mxu1 %vm562_vm1, %v3874_v47  ;;  %25052 = vmatprep.mubr.msk.f32.mxu0 %vm562_vm1, %v20502_v29  ;;  %v3906_v47 = vld [vmem:[%s27364_s9 + $0x73a] sm:$0xff]  ;;  %v20534_v29 = vld [vmem:[%s27364_s9 + $0x229] sm:$0xff] }
 0x3ea   : > { %23747 = vmatmul.mubr.msk.f32.gmra.mrb[102].mxu1 %vm562_vm1, %v3875_v36  ;;  %25053 = vmatmul.mubr.msk.f32.gmra.mrb[6].mxu0 %vm562_vm1, %v20503_v12  ;;  %v3907_v36 = vld [vmem:[%s27364_s9 + $0x742] sm:$0xff]  ;;  %v20535_v12 = vld [vmem:[%s27364_s9 + $0x231] sm:$0xff] }
 0x3eb   : > { %23749 = vmatprep.mubr.msk.f32.mxu1 %vm562_vm1, %v3876_v43  ;;  %25055 = vmatprep.mubr.msk.f32.mxu0 %vm562_vm1, %v20504_v28  ;;  %v3908_v43 = vld [vmem:[%s27364_s9 + $0x752] sm:$0xff]  ;;  %v20536_v28 = vld [vmem:[%s27364_s9 + $0x241] sm:$0xff] }
 0x3ee   : > { %23750 = vmatmul.mubr.msk.f32.gmra.mrb[104].mxu1 %vm562_vm1, %v3877_v56  ;;  %25056 = vmatmul.mubr.msk.f32.gmra.mrb[8].mxu0 %vm562_vm1, %v20505_v50  ;;  %v3909_v56 = vld [vmem:[%s27364_s9 + $0x75a] sm:$0xff]  ;;  %v20537_v50 = vld [vmem:[%s27364_s9 + $0x249] sm:$0xff] }
 0x3ef   : > { %23752 = vmatprep.mubr.msk.f32.mxu1 %vm562_vm1, %v3878_v4  ;;  %25058 = vmatprep.mubr.msk.f32.mxu0 %vm562_vm1, %v20506_v39  ;;  %v3910_v4 = vld [vmem:[%s27364_s9 + $0x76a] sm:$0xff]  ;;  %v20538_v39 = vld [vmem:[%s27364_s9 + $0x259] sm:$0xff] }
 0x3f2   : > { %23753 = vmatmul.mubr.msk.f32.gmra.mrb[106].mxu1 %vm562_vm1, %v3879_v41  ;;  %25059 = vmatmul.mubr.msk.f32.gmra.mrb[10].mxu0 %vm562_vm1, %v20507_v44  ;;  %v3911_v41 = vld [vmem:[%s27364_s9 + $0x772] sm:$0xff]  ;;  %v20539_v44 = vld [vmem:[%s27364_s9 + $0x261] sm:$0xff] }
 0x3f3   : > { %23755 = vmatprep.mubr.msk.f32.mxu1 %vm562_vm1, %v3880_v46  ;;  %25061 = vmatprep.mubr.msk.f32.mxu0 %vm562_vm1, %v20508_v54  ;;  %v3912_v46 = vld [vmem:[%s27364_s9 + $0x782] sm:$0xff]  ;;  %v20540_v54 = vld [vmem:[%s27364_s9 + $0x271] sm:$0xff] }
 0x3f6   : > { %23756 = vmatmul.mubr.msk.f32.gmra.mrb[108].mxu1 %vm562_vm1, %v3881_v42  ;;  %25062 = vmatmul.mubr.msk.f32.gmra.mrb[12].mxu0 %vm562_vm1, %v20509_v58  ;;  %v3913_v42 = vld [vmem:[%s27364_s9 + $0x78a] sm:$0xff]  ;;  %v20541_v58 = vld [vmem:[%s27364_s9 + $0x279] sm:$0xff] }
 0x3f7   : > { %23758 = vmatprep.mubr.msk.f32.mxu1 %vm562_vm1, %v3882_v62  ;;  %25064 = vmatprep.mubr.msk.f32.mxu0 %vm562_vm1, %v20510_v59  ;;  %v3914_v62 = vld [vmem:[%s27364_s9 + $0x79a] sm:$0xff]  ;;  %v20542_v59 = vld [vmem:[%s27364_s9 + $0x289] sm:$0xff] }
 0x3fa   : > { %23759 = vmatmul.mubr.msk.f32.gmra.mrb[110].mxu1 %vm562_vm1, %v3883_v55  ;;  %25065 = vmatmul.mubr.msk.f32.gmra.mrb[14].mxu0 %vm562_vm1, %v20511_v2  ;;  %v3915_v55 = vld [vmem:[%s27364_s9 + $0x7a2] sm:$0xff]  ;;  %v20543_v2 = vld [vmem:[%s27364_s9 + $0x291] sm:$0xff] }
 0x3fb   : > { %23761 = vmatprep.mubr.msk.f32.mxu1 %vm562_vm1, %v3884_v6  ;;  %25067 = vmatprep.mubr.msk.f32.mxu0 %vm562_vm1, %v20512_v10  ;;  %v3916_v6 = vld [vmem:[%s27364_s9 + $0x7e2] sm:$0xff]  ;;  %v20544_v10 = vld [vmem:[%s27364_s9 + $0x2d1] sm:$0xff] }
 0x3fe   : > { %23762 = vmatmul.mubr.msk.f32.gmra.mrb[112].mxu1 %vm562_vm1, %v3885_v14  ;;  %25068 = vmatmul.mubr.msk.f32.gmra.mrb[16].mxu0 %vm562_vm1, %v20513_v18  ;;  %v3917_v14 = vld [vmem:[%s27364_s9 + $0x7ea] sm:$0xff]  ;;  %v20545_v18 = vld [vmem:[%s27364_s9 + $0x2d9] sm:$0xff] }
 0x3ff   : > { %23764 = vmatprep.mubr.msk.f32.mxu1 %vm562_vm1, %v3886_v22  ;;  %25070 = vmatprep.mubr.msk.f32.mxu0 %vm562_vm1, %v20514_v26  ;;  %v3918_v22 = vld [vmem:[%s27364_s9 + $0x7fa] sm:$0xff]  ;;  %v20546_v26 = vld [vmem:[%s27364_s9 + $0x2e9] sm:$0xff] }
 0x402   : > { %23765 = vmatmul.mubr.msk.f32.gmra.mrb[114].mxu1 %vm562_vm1, %v3887_v30  ;;  %25071 = vmatmul.mubr.msk.f32.gmra.mrb[18].mxu0 %vm562_vm1, %v20515_v51  ;;  %v3919_v30 = vld [vmem:[%s27364_s9 + $0x802] sm:$0xff]  ;;  %v20547_v51 = vld [vmem:[%s27364_s9 + $0x2f1] sm:$0xff] }
 0x403   : > { %23767 = vmatprep.mubr.msk.f32.mxu1 %vm562_vm1, %v3888_v33  ;;  %25073 = vmatprep.mubr.msk.f32.mxu0 %vm562_vm1, %v20516_v60  ;;  %v3920_v33 = vld [vmem:[%s27364_s9 + $0x812] sm:$0xff]  ;;  %v20548_v60 = vld [vmem:[%s27364_s9 + $0x301] sm:$0xff] }
 0x406   : > { %23768 = vmatmul.mubr.msk.f32.gmra.mrb[116].mxu1 %vm562_vm1, %v3889_v61  ;;  %25074 = vmatmul.mubr.msk.f32.gmra.mrb[20].mxu0 %vm562_vm1, %v20517_v34  ;;  %v3921_v61 = vld [vmem:[%s27364_s9 + $0x81a] sm:$0xff]  ;;  %v20549_v34 = vld [vmem:[%s27364_s9 + $0x309] sm:$0xff] }
 0x407   : > { %23770 = vmatprep.mubr.msk.f32.mxu1 %vm562_vm1, %v3890_v63  ;;  %25076 = vmatprep.mubr.msk.f32.mxu0 %vm562_vm1, %v20518_v49  ;;  %v3922_v63 = vld [vmem:[%s27364_s9 + $0x82a] sm:$0xff]  ;;  %v20550_v49 = vld [vmem:[%s27364_s9 + $0x319] sm:$0xff] }
 0x40a   : > { %23771 = vmatmul.mubr.msk.f32.gmra.mrb[118].mxu1 %vm562_vm1, %v3891_v1  ;;  %25077 = vmatmul.mubr.msk.f32.gmra.mrb[22].mxu0 %vm562_vm1, %v20519_v3  ;;  %v3923_v1 = vld [vmem:[%s27364_s9 + $0x832] sm:$0xff]  ;;  %v20551_v3 = vld [vmem:[%s27364_s9 + $0x321] sm:$0xff] }
 0x40b   : > { %23773 = vmatprep.mubr.msk.f32.mxu1 %vm562_vm1, %v3892_v5  ;;  %25079 = vmatprep.mubr.msk.f32.mxu0 %vm562_vm1, %v20520_v7  ;;  %v3924_v5 = vld [vmem:[%s27364_s9 + $0x842] sm:$0xff]  ;;  %v20552_v7 = vld [vmem:[%s27364_s9 + $0x331] sm:$0xff] }
 0x40e   : > { %23774 = vmatmul.mubr.msk.f32.gmra.mrb[120].mxu1 %vm562_vm1, %v3893_v9  ;;  %25080 = vmatmul.mubr.msk.f32.gmra.mrb[24].mxu0 %vm562_vm1, %v20521_v23  ;;  %v3925_v9 = vld [vmem:[%s27364_s9 + $0x84a] sm:$0xff]  ;;  %v20553_v23 = vld [vmem:[%s27364_s9 + $0x339] sm:$0xff] }
 0x40f   : > { %23776 = vmatprep.mubr.msk.f32.mxu1 %vm562_vm1, %v3894_v52  ;;  %25082 = vmatprep.mubr.msk.f32.mxu0 %vm562_vm1, %v20522_v57  ;;  %v3926_v52 = vld [vmem:[%s27364_s9 + $0x85a] sm:$0xff]  ;;  %v20554_v57 = vld [vmem:[%s27364_s9 + $0x349] sm:$0xff] }
 0x412   : > { %23777 = vmatmul.mubr.msk.f32.gmra.mrb[122].mxu1 %vm562_vm1, %v3895_v0  ;;  %25083 = vmatmul.mubr.msk.f32.gmra.mrb[26].mxu0 %vm562_vm1, %v20523_v32  ;;  %v3927_v0 = vld [vmem:[%s27364_s9 + $0x862] sm:$0xff]  ;;  %v20555_v32 = vld [vmem:[%s27364_s9 + $0x351] sm:$0xff] }
 0x413   : > { %23779 = vmatprep.mubr.msk.f32.mxu1 %vm562_vm1, %v3896_v8  ;;  %25085 = vmatprep.mubr.msk.f32.mxu0 %vm562_vm1, %v20524_v16  ;;  %v3928_v8 = vld [vmem:[%s27364_s9 + $0x872] sm:$0xff]  ;;  %v20556_v16 = vld [vmem:[%s27364_s9 + $0x361] sm:$0xff] }
 0x416   : > { %23780 = vmatmul.mubr.msk.f32.gmra.mrb[124].mxu1 %vm562_vm1, %v3897_v20  ;;  %25086 = vmatmul.mubr.msk.f32.gmra.mrb[28].mxu0 %vm562_vm1, %v20525_v24  ;;  %v3929_v20 = vld [vmem:[%s27364_s9 + $0x87a] sm:$0xff]  ;;  %v20557_v24 = vld [vmem:[%s27364_s9 + $0x369] sm:$0xff] }
 0x417   : > { %23782 = vmatprep.mubr.msk.f32.mxu1 %vm562_vm1, %v3898_v31  ;;  %25088 = vmatprep.mubr.msk.f32.mxu0 %vm562_vm1, %v20526_v35  ;;  %v3930_v31 = vld [vmem:[%s27364_s9 + $0x88a] sm:$0xff]  ;;  %v20558_v35 = vld [vmem:[%s27364_s9 + $0x379] sm:$0xff] }
 0x41a   : > { %23783 = vmatmul.mubr.msk.f32.gmra.mrb[126].mxu1 %vm562_vm1, %v3899_v38  ;;  %25089 = vmatmul.mubr.msk.f32.gmra.mrb[30].mxu0 %vm562_vm1, %v20527_v37  ;;  %v3931_v38 = vld [vmem:[%s27364_s9 + $0x892] sm:$0xff]  ;;  %v20559_v37 = vld [vmem:[%s27364_s9 + $0x381] sm:$0xff] }
 0x41b   : > { %23785 = vmatprep.mubr.msk.f32.mxu1 %vm562_vm1, %v3900_v11  ;;  %25091 = vmatprep.mubr.msk.f32.mxu0 %vm562_vm1, %v20528_v13  ;;  %v3932_v11 = vld [vmem:[%s27364_s9 + $0x8a2] sm:$0xff]  ;;  %v20560_v13 = vld [vmem:[%s27364_s9 + $0x391] sm:$0xff] }
 0x41e   : > { %23786 = vmatmul.mubr.msk.f32.gmra.mrb[128].mxu1 %vm562_vm1, %v3901_v40  ;;  %25092 = vmatmul.mubr.msk.f32.gmra.mrb[32].mxu0 %vm562_vm1, %v20529_v45  ;;  %v3933_v40 = vld [vmem:[%s27364_s9 + $0x8aa] sm:$0xff]  ;;  %v20561_v45 = vld [vmem:[%s27364_s9 + $0x399] sm:$0xff] }
 0x41f   : > { %23788 = vmatprep.mubr.msk.f32.mxu1 %vm562_vm1, %v3902_v15  ;;  %25094 = vmatprep.mubr.msk.f32.mxu0 %vm562_vm1, %v20530_v17  ;;  %v3934_v15 = vld [vmem:[%s27364_s9 + $0x8ba] sm:$0xff]  ;;  %v20562_v17 = vld [vmem:[%s27364_s9 + $0x3a9] sm:$0xff] }
 0x422   : > { %23789 = vmatmul.mubr.msk.f32.gmra.mrb[130].mxu1 %vm562_vm1, %v3903_v19  ;;  %25095 = vmatmul.mubr.msk.f32.gmra.mrb[34].mxu0 %vm562_vm1, %v20531_v21  ;;  %v3935_v19 = vld [vmem:[%s27364_s9 + $0x8c2] sm:$0xff]  ;;  %v20563_v21 = vld [vmem:[%s27364_s9 + $0x3b1] sm:$0xff] }
 0x423   : > { %23791 = vmatprep.mubr.msk.f32.mxu1 %vm562_vm1, %v3904_v25  ;;  %25097 = vmatprep.mubr.msk.f32.mxu0 %vm562_vm1, %v20532_v27  ;;  %v3936_v25 = vld [vmem:[%s27364_s9 + $0x8d2] sm:$0xff]  ;;  %v20564_v27 = vld [vmem:[%s27364_s9 + $0x3c1] sm:$0xff] }
 0x426   : > { %23792 = vmatmul.mubr.msk.f32.gmra.mrb[132].mxu1 %vm562_vm1, %v3905_v48  ;;  %25098 = vmatmul.mubr.msk.f32.gmra.mrb[36].mxu0 %vm562_vm1, %v20533_v53  ;;  %v3937_v48 = vld [vmem:[%s27364_s9 + $0x8da] sm:$0xff]  ;;  %v20565_v53 = vld [vmem:[%s27364_s9 + $0x3c9] sm:$0xff] }
 0x427   : > { %23794 = vmatprep.mubr.msk.f32.mxu1 %vm562_vm1, %v3906_v47  ;;  %25100 = vmatprep.mubr.msk.f32.mxu0 %vm562_vm1, %v20534_v29  ;;  %v3938_v47 = vld [vmem:[%s27364_s9 + $0x8ea] sm:$0xff]  ;;  %v20566_v29 = vld [vmem:[%s27364_s9 + $0x3d9] sm:$0xff] }
 0x42a   : > { %23795 = vmatmul.mubr.msk.f32.gmra.mrb[134].mxu1 %vm562_vm1, %v3907_v36  ;;  %25101 = vmatmul.mubr.msk.f32.gmra.mrb[38].mxu0 %vm562_vm1, %v20535_v12  ;;  %v3939_v36 = vld [vmem:[%s27364_s9 + $0x8f2] sm:$0xff]  ;;  %v20567_v12 = vld [vmem:[%s27364_s9 + $0x3e1] sm:$0xff] }
 0x42b   : > { %23797 = vmatprep.mubr.msk.f32.mxu1 %vm562_vm1, %v3908_v43  ;;  %25103 = vmatprep.mubr.msk.f32.mxu0 %vm562_vm1, %v20536_v28  ;;  %v3940_v43 = vld [vmem:[%s27364_s9 + $0x932] sm:$0xff]  ;;  %v20568_v28 = vld [vmem:[%s27364_s9 + $0x421] sm:$0xff] }
 0x42e   : > { %23798 = vmatmul.mubr.msk.f32.gmra.mrb[136].mxu1 %vm562_vm1, %v3909_v56  ;;  %25104 = vmatmul.mubr.msk.f32.gmra.mrb[40].mxu0 %vm562_vm1, %v20537_v50  ;;  %v3941_v56 = vld [vmem:[%s27364_s9 + $0x93a] sm:$0xff]  ;;  %v20569_v50 = vld [vmem:[%s27364_s9 + $0x429] sm:$0xff] }
 0x42f   : > { %23800 = vmatprep.mubr.msk.f32.mxu1 %vm562_vm1, %v3910_v4  ;;  %25106 = vmatprep.mubr.msk.f32.mxu0 %vm562_vm1, %v20538_v39  ;;  %v3942_v4 = vld [vmem:[%s27364_s9 + $0x94a] sm:$0xff]  ;;  %v20570_v39 = vld [vmem:[%s27364_s9 + $0x439] sm:$0xff] }
 0x432   : > { %23801 = vmatmul.mubr.msk.f32.gmra.mrb[138].mxu1 %vm562_vm1, %v3911_v41  ;;  %25107 = vmatmul.mubr.msk.f32.gmra.mrb[42].mxu0 %vm562_vm1, %v20539_v44  ;;  %v3943_v41 = vld [vmem:[%s27364_s9 + $0x952] sm:$0xff]  ;;  %v20571_v44 = vld [vmem:[%s27364_s9 + $0x441] sm:$0xff] }
 0x433   : > { %23803 = vmatprep.mubr.msk.f32.mxu1 %vm562_vm1, %v3912_v46  ;;  %25109 = vmatprep.mubr.msk.f32.mxu0 %vm562_vm1, %v20540_v54  ;;  %v3944_v46 = vld [vmem:[%s27364_s9 + $0x962] sm:$0xff]  ;;  %v20572_v54 = vld [vmem:[%s27364_s9 + $0x451] sm:$0xff] }
 0x436   : > { %23804 = vmatmul.mubr.msk.f32.gmra.mrb[140].mxu1 %vm562_vm1, %v3913_v42  ;;  %25110 = vmatmul.mubr.msk.f32.gmra.mrb[44].mxu0 %vm562_vm1, %v20541_v58  ;;  %v3945_v42 = vld [vmem:[%s27364_s9 + $0x96a] sm:$0xff]  ;;  %v20573_v58 = vld [vmem:[%s27364_s9 + $0x459] sm:$0xff] }
 0x437   : > { %23806 = vmatprep.mubr.msk.f32.mxu1 %vm562_vm1, %v3914_v62  ;;  %25112 = vmatprep.mubr.msk.f32.mxu0 %vm562_vm1, %v20542_v59  ;;  %v3946_v62 = vld [vmem:[%s27364_s9 + $0x97a] sm:$0xff]  ;;  %v20574_v59 = vld [vmem:[%s27364_s9 + $0x469] sm:$0xff] }
 0x43a   : > { %23807 = vmatmul.mubr.msk.f32.gmra.mrb[142].mxu1 %vm562_vm1, %v3915_v55  ;;  %25113 = vmatmul.mubr.msk.f32.gmra.mrb[46].mxu0 %vm562_vm1, %v20543_v2  ;;  %v3947_v55 = vld [vmem:[%s27364_s9 + $0x982] sm:$0xff]  ;;  %v20575_v2 = vld [vmem:[%s27364_s9 + $0x471] sm:$0xff] }
 0x43b   : > { %23809 = vmatprep.mubr.msk.f32.mxu1 %vm562_vm1, %v3916_v6  ;;  %25115 = vmatprep.mubr.msk.f32.mxu0 %vm562_vm1, %v20544_v10  ;;  %v3948_v6 = vld [vmem:[%s27364_s9 + $0x992] sm:$0xff]  ;;  %v20576_v10 = vld [vmem:[%s27364_s9 + $0x481] sm:$0xff] }
 0x43e   : > { %23810 = vmatmul.mubr.msk.f32.gmra.mrb[144].mxu1 %vm562_vm1, %v3917_v14  ;;  %25116 = vmatmul.mubr.msk.f32.gmra.mrb[48].mxu0 %vm562_vm1, %v20545_v18  ;;  %v3949_v14 = vld [vmem:[%s27364_s9 + $0x99a] sm:$0xff]  ;;  %v20577_v18 = vld [vmem:[%s27364_s9 + $0x489] sm:$0xff] }
 0x43f   : > { %23812 = vmatprep.mubr.msk.f32.mxu1 %vm562_vm1, %v3918_v22  ;;  %25118 = vmatprep.mubr.msk.f32.mxu0 %vm562_vm1, %v20546_v26  ;;  %v3950_v22 = vld [vmem:[%s27364_s9 + $0x9aa] sm:$0xff]  ;;  %v20578_v26 = vld [vmem:[%s27364_s9 + $0x499] sm:$0xff] }
 0x442   : > { %23813 = vmatmul.mubr.msk.f32.gmra.mrb[146].mxu1 %vm562_vm1, %v3919_v30  ;;  %25119 = vmatmul.mubr.msk.f32.gmra.mrb[50].mxu0 %vm562_vm1, %v20547_v51  ;;  %v3951_v30 = vld [vmem:[%s27364_s9 + $0x9b2] sm:$0xff]  ;;  %v20579_v51 = vld [vmem:[%s27364_s9 + $0x4a1] sm:$0xff] }
 0x443   : > { %23815 = vmatprep.mubr.msk.f32.mxu1 %vm562_vm1, %v3920_v33  ;;  %25121 = vmatprep.mubr.msk.f32.mxu0 %vm562_vm1, %v20548_v60  ;;  %v3952_v33 = vld [vmem:[%s27364_s9 + $0x9c2] sm:$0xff]  ;;  %v20580_v60 = vld [vmem:[%s27364_s9 + $0x4b1] sm:$0xff] }
 0x446   : > { %23816 = vmatmul.mubr.msk.f32.gmra.mrb[148].mxu1 %vm562_vm1, %v3921_v61  ;;  %25122 = vmatmul.mubr.msk.f32.gmra.mrb[52].mxu0 %vm562_vm1, %v20549_v34  ;;  %v3953_v61 = vld [vmem:[%s27364_s9 + $0x9ca] sm:$0xff]  ;;  %v20581_v34 = vld [vmem:[%s27364_s9 + $0x4b9] sm:$0xff] }
 0x447   : > { %23818 = vmatprep.mubr.msk.f32.mxu1 %vm562_vm1, %v3922_v63  ;;  %25124 = vmatprep.mubr.msk.f32.mxu0 %vm562_vm1, %v20550_v49  ;;  %v3954_v63 = vld [vmem:[%s27364_s9 + $0x9da] sm:$0xff]  ;;  %v20582_v49 = vld [vmem:[%s27364_s9 + $0x4c9] sm:$0xff] }
 0x44a   : > { %23819 = vmatmul.mubr.msk.f32.gmra.mrb[150].mxu1 %vm562_vm1, %v3923_v1  ;;  %25125 = vmatmul.mubr.msk.f32.gmra.mrb[54].mxu0 %vm562_vm1, %v20551_v3  ;;  %v3955_v1 = vld [vmem:[%s27364_s9 + $0x9e2] sm:$0xff]  ;;  %v20583_v3 = vld [vmem:[%s27364_s9 + $0x4d1] sm:$0xff] }
 0x44b   : > { %23821 = vmatprep.mubr.msk.f32.mxu1 %vm562_vm1, %v3924_v5  ;;  %25127 = vmatprep.mubr.msk.f32.mxu0 %vm562_vm1, %v20552_v7  ;;  %v3956_v5 = vld [vmem:[%s27364_s9 + $0x9f2] sm:$0xff]  ;;  %v20584_v7 = vld [vmem:[%s27364_s9 + $0x4e1] sm:$0xff] }
 0x44e   : > { %23822 = vmatmul.mubr.msk.f32.gmra.mrb[152].mxu1 %vm562_vm1, %v3925_v9  ;;  %25128 = vmatmul.mubr.msk.f32.gmra.mrb[56].mxu0 %vm562_vm1, %v20553_v23  ;;  %v3957_v9 = vld [vmem:[%s27364_s9 + $0x9fa] sm:$0xff]  ;;  %v20585_v23 = vld [vmem:[%s27364_s9 + $0x4e9] sm:$0xff] }
 0x44f   : > { %23824 = vmatprep.mubr.msk.f32.mxu1 %vm562_vm1, %v3926_v52  ;;  %25130 = vmatprep.mubr.msk.f32.mxu0 %vm562_vm1, %v20554_v57  ;;  %v3958_v52 = vld [vmem:[%s27364_s9 + $0xa0a] sm:$0xff]  ;;  %v20586_v57 = vld [vmem:[%s27364_s9 + $0x4f9] sm:$0xff] }
 0x452   : > { %23825 = vmatmul.mubr.msk.f32.gmra.mrb[154].mxu1 %vm562_vm1, %v3927_v0  ;;  %25131 = vmatmul.mubr.msk.f32.gmra.mrb[58].mxu0 %vm562_vm1, %v20555_v32  ;;  %v3959_v0 = vld [vmem:[%s27364_s9 + $0xa12] sm:$0xff]  ;;  %v20587_v32 = vld [vmem:[%s27364_s9 + $0x501] sm:$0xff] }
 0x453   : > { %23827 = vmatprep.mubr.msk.f32.mxu1 %vm562_vm1, %v3928_v8  ;;  %25133 = vmatprep.mubr.msk.f32.mxu0 %vm562_vm1, %v20556_v16  ;;  %v3960_v8 = vld [vmem:[%s27364_s9 + $0xa22] sm:$0xff]  ;;  %v20588_v16 = vld [vmem:[%s27364_s9 + $0x511] sm:$0xff] }
 0x456   : > { %23828 = vmatmul.mubr.msk.f32.gmra.mrb[156].mxu1 %vm562_vm1, %v3929_v20  ;;  %25134 = vmatmul.mubr.msk.f32.gmra.mrb[60].mxu0 %vm562_vm1, %v20557_v24  ;;  %v3961_v20 = vld [vmem:[%s27364_s9 + $0xa2a] sm:$0xff]  ;;  %v20589_v24 = vld [vmem:[%s27364_s9 + $0x519] sm:$0xff] }
 0x457   : > { %23830 = vmatprep.mubr.msk.f32.mxu1 %vm562_vm1, %v3930_v31  ;;  %25136 = vmatprep.mubr.msk.f32.mxu0 %vm562_vm1, %v20558_v35  ;;  %v3962_v31 = vld [vmem:[%s27364_s9 + $0xa3a] sm:$0xff]  ;;  %v20590_v35 = vld [vmem:[%s27364_s9 + $0x529] sm:$0xff] }
 0x45a   : > { %23831 = vmatmul.mubr.msk.f32.gmra.mrb[158].mxu1 %vm562_vm1, %v3931_v38  ;;  %25137 = vmatmul.mubr.msk.f32.gmra.mrb[62].mxu0 %vm562_vm1, %v20559_v37  ;;  %v3963_v38 = vld [vmem:[%s27364_s9 + $0xa42] sm:$0xff]  ;;  %v20591_v37 = vld [vmem:[%s27364_s9 + $0x531] sm:$0xff] }
 0x45b   : > { %23833 = vmatprep.mubr.msk.f32.mxu1 %vm562_vm1, %v3932_v11  ;;  %25139 = vmatprep.mubr.msk.f32.mxu0 %vm562_vm1, %v20560_v13  ;;  %v18952_v11 = vld [vmem:[%s27364_s9 + $0x18] sm:$0xff] }
 0x45c   : > { %v20592_v13 = vld [vmem:[%s27364_s9 + $0x571] sm:$0xff] }
 0x45e   : > { %23834 = vmatmul.mubr.msk.f32.gmra.mrb[160].mxu1 %vm562_vm1, %v3933_v40  ;;  %25140 = vmatmul.mubr.msk.f32.gmra.mrb[64].mxu0 %vm562_vm1, %v20561_v45  ;;  %v18953_v40 = vld [vmem:[%s27364_s9 + $0x20] sm:$0xff] }
 0x45f   : > { %23836 = vmatprep.mubr.msk.f32.mxu1 %vm562_vm1, %v3934_v15  ;;  %25142 = vmatprep.mubr.msk.f32.mxu0 %vm562_vm1, %v20562_v17  ;;  %v20593_v45 = vld [vmem:[%s27364_s9 + $0x579] sm:$0xff]  ;;  %v18954_v15 = vld [vmem:[%s27364_s9 + $0x30] sm:$0xff] }
 0x460   : > { %v20594_v17 = vld [vmem:[%s27364_s9 + $0x589] sm:$0xff] }
 0x462   : > { %23837 = vmatmul.mubr.msk.f32.gmra.mrb[162].mxu1 %vm562_vm1, %v3935_v19  ;;  %25143 = vmatmul.mubr.msk.f32.gmra.mrb[66].mxu0 %vm562_vm1, %v20563_v21  ;;  %v27204_v19 = vld [vmem:[%s32206_s1 + $0x10] sm:$0xf]  ;;  %v18955_v21 = vld [vmem:[%s27364_s9 + $0x38] sm:$0xff] }
 0x463   : > { %23839 = vmatprep.mubr.msk.f32.mxu1 %vm562_vm1, %v3936_v25  ;;  %25145 = vmatprep.mubr.msk.f32.mxu0 %vm562_vm1, %v20564_v27  ;;  %v20595_v25 = vld [vmem:[%s27364_s9 + $0x591] sm:$0xff]  ;;  %v18956_v27 = vld [vmem:[%s27364_s9 + $0x48] sm:$0xff] }
 0x466   : > { %23840 = vmatmul.mubr.msk.f32.gmra.mrb[164].mxu1 %vm562_vm1, %v3937_v48  ;;  %25146 = vmatmul.mubr.msk.f32.gmra.mrb[68].mxu0 %vm562_vm1, %v20565_v53  ;;  %v20596_v48 = vld [vmem:[%s27364_s9 + $0x5a1] sm:$0xff]  ;;  %v18957_v53 = vld [vmem:[%s27364_s9 + $0x50] sm:$0xff] }
 0x467   : > { %23842 = vmatprep.mubr.msk.f32.mxu1 %vm562_vm1, %v3938_v47  ;;  %25148 = vmatprep.mubr.msk.f32.mxu0 %vm562_vm1, %v20566_v29  ;;  %v20597_v47 = vld [vmem:[%s27364_s9 + $0x5a9] sm:$0xff]  ;;  %v18958_v29 = vld [vmem:[%s27364_s9 + $0x60] sm:$0xff] }
 0x46a   : > { %23843 = vmatmul.mubr.msk.f32.gmra.mrb[166].mxu1 %vm562_vm1, %v3939_v36  ;;  %25149 = vmatmul.mubr.msk.f32.gmra.mrb[70].mxu0 %vm562_vm1, %v20567_v12  ;;  %v20598_v36 = vld [vmem:[%s27364_s9 + $0x5b9] sm:$0xff]  ;;  %v18959_v12 = vld [vmem:[%s27364_s9 + $0x68] sm:$0xff] }
 0x46b   : > { %23845 = vmatprep.mubr.msk.f32.mxu1 %vm562_vm1, %v3940_v43  ;;  %25151 = vmatprep.mubr.msk.f32.mxu0 %vm562_vm1, %v20568_v28  ;;  %v20599_v43 = vld [vmem:[%s27364_s9 + $0x5c1] sm:$0xff]  ;;  %v18960_v28 = vld [vmem:[%s27364_s9 + $0x78] sm:$0xff] }
 0x46e   : > { %23846 = vmatmul.mubr.msk.f32.gmra.mrb[168].mxu1 %vm562_vm1, %v3941_v56  ;;  %25152 = vmatmul.mubr.msk.f32.gmra.mrb[72].mxu0 %vm562_vm1, %v20569_v50  ;;  %v20600_v56 = vld [vmem:[%s27364_s9 + $0x5d1] sm:$0xff]  ;;  %v18961_v50 = vld [vmem:[%s27364_s9 + $0x80] sm:$0xff] }
 0x46f   : > { %23848 = vmatprep.mubr.msk.f32.mxu1 %vm562_vm1, %v3942_v4  ;;  %25154 = vmatprep.mubr.msk.f32.mxu0 %vm562_vm1, %v20570_v39  ;;  %v20601_v4 = vld [vmem:[%s27364_s9 + $0x5d9] sm:$0xff]  ;;  %v18962_v39 = vld [vmem:[%s27364_s9 + $0x90] sm:$0xff] }
 0x472   : > { %23849 = vmatmul.mubr.msk.f32.gmra.mrb[170].mxu1 %vm562_vm1, %v3943_v41  ;;  %25155 = vmatmul.mubr.msk.f32.gmra.mrb[74].mxu0 %vm562_vm1, %v20571_v44  ;;  %v20602_v41 = vld [vmem:[%s27364_s9 + $0x5e9] sm:$0xff]  ;;  %v18963_v44 = vld [vmem:[%s27364_s9 + $0x98] sm:$0xff] }
 0x473   : > { %23851 = vmatprep.mubr.msk.f32.mxu1 %vm562_vm1, %v3944_v46  ;;  %25157 = vmatprep.mubr.msk.f32.mxu0 %vm562_vm1, %v20572_v54  ;;  %v20603_v46 = vld [vmem:[%s27364_s9 + $0x5f1] sm:$0xff]  ;;  %v18964_v54 = vld [vmem:[%s27364_s9 + $0xa8] sm:$0xff] }
 0x476   : > { %23852 = vmatmul.mubr.msk.f32.gmra.mrb[172].mxu1 %vm562_vm1, %v3945_v42  ;;  %25158 = vmatmul.mubr.msk.f32.gmra.mrb[76].mxu0 %vm562_vm1, %v20573_v58  ;;  %v20604_v42 = vld [vmem:[%s27364_s9 + $0x601] sm:$0xff]  ;;  %v18965_v58 = vld [vmem:[%s27364_s9 + $0xb0] sm:$0xff] }
 0x477   : > { %23854 = vmatprep.mubr.msk.f32.mxu1 %vm562_vm1, %v3946_v62  ;;  %25160 = vmatprep.mubr.msk.f32.mxu0 %vm562_vm1, %v20574_v59  ;;  %v20605_v62 = vld [vmem:[%s27364_s9 + $0x609] sm:$0xff]  ;;  %v18966_v59 = vld [vmem:[%s27364_s9 + $0xc0] sm:$0xff] }
 0x47a   : > { %23855 = vmatmul.mubr.msk.f32.gmra.mrb[174].mxu1 %vm562_vm1, %v3947_v55  ;;  %25161 = vmatmul.mubr.msk.f32.gmra.mrb[78].mxu0 %vm562_vm1, %v20575_v2  ;;  %v20606_v55 = vld [vmem:[%s27364_s9 + $0x619] sm:$0xff]  ;;  %v18967_v2 = vld [vmem:[%s27364_s9 + $0xc8] sm:$0xff] }
 0x47b   : > { %23857 = vmatprep.mubr.msk.f32.mxu1 %vm562_vm1, %v3948_v6  ;;  %25163 = vmatprep.mubr.msk.f32.mxu0 %vm562_vm1, %v20576_v10  ;;  %v20607_v6 = vld [vmem:[%s27364_s9 + $0x621] sm:$0xff]  ;;  %v18968_v10 = vld [vmem:[%s27364_s9 + $0xd8] sm:$0xff] }
 0x47e   : > { %23858 = vmatmul.mubr.msk.f32.gmra.mrb[176].mxu1 %vm562_vm1, %v3949_v14  ;;  %25164 = vmatmul.mubr.msk.f32.gmra.mrb[80].mxu0 %vm562_vm1, %v20577_v18  ;;  %v20608_v14 = vld [vmem:[%s27364_s9 + $0x631] sm:$0xff]  ;;  %v18969_v18 = vld [vmem:[%s27364_s9 + $0xe0] sm:$0xff] }
 0x47f   : > { %23860 = vmatprep.mubr.msk.f32.mxu1 %vm562_vm1, %v3950_v22  ;;  %25166 = vmatprep.mubr.msk.f32.mxu0 %vm562_vm1, %v20578_v26  ;;  %v20609_v22 = vld [vmem:[%s27364_s9 + $0x639] sm:$0xff]  ;;  %v18970_v26 = vld [vmem:[%s27364_s9 + $0xf0] sm:$0xff] }
 0x482   : > { %23861 = vmatmul.mubr.msk.f32.gmra.mrb[178].mxu1 %vm562_vm1, %v3951_v30  ;;  %25167 = vmatmul.mubr.msk.f32.gmra.mrb[82].mxu0 %vm562_vm1, %v20579_v51  ;;  %v20610_v30 = vld [vmem:[%s27364_s9 + $0x649] sm:$0xff]  ;;  %v18971_v51 = vld [vmem:[%s27364_s9 + $0xf8] sm:$0xff] }
 0x483   : > { %23863 = vmatprep.mubr.msk.f32.mxu1 %vm562_vm1, %v3952_v33  ;;  %25169 = vmatprep.mubr.msk.f32.mxu0 %vm562_vm1, %v20580_v60  ;;  %v20611_v33 = vld [vmem:[%s27364_s9 + $0x651] sm:$0xff]  ;;  %v18972_v60 = vld [vmem:[%s27364_s9 + $0x108] sm:$0xff] }
 0x486   : > { %23864 = vmatmul.mubr.msk.f32.gmra.mrb[180].mxu1 %vm562_vm1, %v3953_v61  ;;  %25170 = vmatmul.mubr.msk.f32.gmra.mrb[84].mxu0 %vm562_vm1, %v20581_v34  ;;  %v20612_v61 = vld [vmem:[%s27364_s9 + $0x661] sm:$0xff]  ;;  %v18973_v34 = vld [vmem:[%s27364_s9 + $0x110] sm:$0xff] }
 0x487   : > { %23866 = vmatprep.mubr.msk.f32.mxu1 %vm562_vm1, %v3954_v63  ;;  %25172 = vmatprep.mubr.msk.f32.mxu0 %vm562_vm1, %v20582_v49  ;;  %v20613_v63 = vld [vmem:[%s27364_s9 + $0x669] sm:$0xff]  ;;  %v18974_v49 = vld [vmem:[%s27364_s9 + $0x120] sm:$0xff] }
 0x48a   : > { %23867 = vmatmul.mubr.msk.f32.gmra.mrb[182].mxu1 %vm562_vm1, %v3955_v1  ;;  %25173 = vmatmul.mubr.msk.f32.gmra.mrb[86].mxu0 %vm562_vm1, %v20583_v3  ;;  %v20614_v1 = vld [vmem:[%s27364_s9 + $0x679] sm:$0xff]  ;;  %v18975_v3 = vld [vmem:[%s27364_s9 + $0x128] sm:$0xff] }
 0x48b   : > { %23869 = vmatprep.mubr.msk.f32.mxu1 %vm562_vm1, %v3956_v5  ;;  %25175 = vmatprep.mubr.msk.f32.mxu0 %vm562_vm1, %v20584_v7  ;;  %v20615_v5 = vld [vmem:[%s27364_s9 + $0x681] sm:$0xff] }
 0x48c   : > { %v18976_v7 = vld [vmem:[%s27364_s9 + $0x168] sm:$0xff] }
 0x48e   : > { %23870 = vmatmul.mubr.msk.f32.gmra.mrb[184].mxu1 %vm562_vm1, %v3957_v9  ;;  %25176 = vmatmul.mubr.msk.f32.gmra.mrb[88].mxu0 %vm562_vm1, %v20585_v23  ;;  %v20616_v9 = vld [vmem:[%s27364_s9 + $0x6c1] sm:$0xff]  ;;  %v18977_v23 = vld [vmem:[%s27364_s9 + $0x170] sm:$0xff] }
 0x48f   : > { %23872 = vmatprep.mubr.msk.f32.mxu1 %vm562_vm1, %v3958_v52  ;;  %25178 = vmatprep.mubr.msk.f32.mxu0 %vm562_vm1, %v20586_v57  ;;  %v20617_v52 = vld [vmem:[%s27364_s9 + $0x6c9] sm:$0xff]  ;;  %v18978_v57 = vld [vmem:[%s27364_s9 + $0x180] sm:$0xff] }
 0x492   : > { %23873 = vmatmul.mubr.msk.f32.gmra.mrb[186].mxu1 %vm562_vm1, %v3959_v0  ;;  %25179 = vmatmul.mubr.msk.f32.gmra.mrb[90].mxu0 %vm562_vm1, %v20587_v32  ;;  %v20618_v0 = vld [vmem:[%s27364_s9 + $0x6d9] sm:$0xff]  ;;  %v18979_v32 = vld [vmem:[%s27364_s9 + $0x188] sm:$0xff] }
 0x493   : > { %23875 = vmatprep.mubr.msk.f32.mxu1 %vm562_vm1, %v3960_v8  ;;  %25181 = vmatprep.mubr.msk.f32.mxu0 %vm562_vm1, %v20588_v16  ;;  %v20619_v8 = vld [vmem:[%s27364_s9 + $0x6e1] sm:$0xff]  ;;  %v18980_v16 = vld [vmem:[%s27364_s9 + $0x198] sm:$0xff] }
 0x496   : > { %23876 = vmatmul.mubr.msk.f32.gmra.mrb[188].mxu1 %vm562_vm1, %v3961_v20  ;;  %25182 = vmatmul.mubr.msk.f32.gmra.mrb[92].mxu0 %vm562_vm1, %v20589_v24  ;;  %v20620_v20 = vld [vmem:[%s27364_s9 + $0x6f1] sm:$0xff]  ;;  %v18981_v24 = vld [vmem:[%s27364_s9 + $0x1a0] sm:$0xff] }
 0x497   : > { %23878 = vmatprep.mubr.msk.f32.mxu1 %vm562_vm1, %v3962_v31  ;;  %25184 = vmatprep.mubr.msk.f32.mxu0 %vm562_vm1, %v20590_v35  ;;  %v20621_v31 = vld [vmem:[%s27364_s9 + $0x6f9] sm:$0xff]  ;;  %v18982_v35 = vld [vmem:[%s27364_s9 + $0x1b0] sm:$0xff] }
 0x49a   : > { %23879 = vmatmul.mubr.msk.f32.gmra.mrb[190].mxu1 %vm562_vm1, %v3963_v38  ;;  %25185 = vmatmul.mubr.msk.f32.gmra.mrb[94].mxu0 %vm562_vm1, %v20591_v37  ;;  %v20622_v38 = vld [vmem:[%s27364_s9 + $0x709] sm:$0xff]  ;;  %v18983_v37 = vld [vmem:[%s27364_s9 + $0x1b8] sm:$0xff] }
 0x49b   : > { %23883 = vmatprep.mubr.msk.f32.mxu1 %vm562_vm1, %v18952_v11  ;;  %25187 = vmatprep.mubr.msk.f32.mxu0 %vm562_vm1, %v20592_v13  ;;  %v20623_v11 = vld [vmem:[%s27364_s9 + $0x711] sm:$0xff]  ;;  %v18984_v13 = vld [vmem:[%s27364_s9 + $0x1c8] sm:$0xff] }
 0x49e   : > { %23884 = vmatmul.mubr.msk.f32.vlgmr.msra.gmra.mrb[0].mxu1 %vm562_vm1, %v18953_v40  ;;  %25188 = vmatmul.mubr.msk.f32.gmra.mrb[96].mxu0 %vm562_vm1, %v20593_v45  ;;  %v20624_v40 = vld [vmem:[%s27364_s9 + $0x721] sm:$0xff]  ;;  %v18985_v45 = vld [vmem:[%s27364_s9 + $0x1d0] sm:$0xff] }
 0x49f   : > { %25622 = vmatpush3.msk.msra.mxu1 %vm1139_vm0, %v27204_v19  ;;  %23886 = vmatprep.mubr.msk.f32.mxu1 %vm562_vm1, %v18954_v15  ;;  %v20625_v15 = vld [vmem:[%s27364_s9 + $0x729] sm:$0xff]  ;;  %v20626_v19 = vld [vmem:[%s27364_s9 + $0x739] sm:$0xff] }
 0x4a0   : > { %25190 = vmatprep.mubr.msk.f32.mxu0 %vm562_vm1, %v20594_v17  ;;  %v18986_v17 = vld [vmem:[%s27364_s9 + $0x1e0] sm:$0xff] }
 0x4a2   : > { %23887 = vmatmul.mubr.msk.f32.gmra.mrb[2].mxu1 %vm562_vm1, %v18955_v21  ;;  %25191 = vmatmul.mubr.msk.f32.gmra.mrb[98].mxu0 %vm562_vm1, %v20595_v25  ;;  %v18987_v21 = vld [vmem:[%s27364_s9 + $0x1e8] sm:$0xff] }
 0x4a3   : > { %23889 = vmatprep.mubr.msk.f32.mxu1 %vm562_vm1, %v18956_v27  ;;  %25193 = vmatprep.mubr.msk.f32.mxu0 %vm562_vm1, %v20596_v48  ;;  %v20627_v25 = vld [vmem:[%s27364_s9 + $0x741] sm:$0xff]  ;;  %v18988_v27 = vld [vmem:[%s27364_s9 + $0x1f8] sm:$0xff] }
 0x4a4   : > { %v20628_v48 = vld [vmem:[%s27364_s9 + $0x751] sm:$0xff] }
 0x4a6   : > { %23890 = vmatmul.mubr.msk.f32.gmra.mrb[4].mxu1 %vm562_vm1, %v18957_v53  ;;  %25194 = vmatmul.mubr.msk.f32.gmra.mrb[100].mxu0 %vm562_vm1, %v20597_v47  ;;  %v18989_v53 = vld [vmem:[%s27364_s9 + $0x200] sm:$0xff] }
 0x4a7   : > { %23892 = vmatprep.mubr.msk.f32.mxu1 %vm562_vm1, %v18958_v29  ;;  %25196 = vmatprep.mubr.msk.f32.mxu0 %vm562_vm1, %v20598_v36  ;;  %v20629_v47 = vld [vmem:[%s27364_s9 + $0x759] sm:$0xff]  ;;  %v18990_v29 = vld [vmem:[%s27364_s9 + $0x210] sm:$0xff] }
 0x4a8   : > { %v20630_v36 = vld [vmem:[%s27364_s9 + $0x769] sm:$0xff] }
 0x4aa   : > { %23893 = vmatmul.mubr.msk.f32.gmra.mrb[6].mxu1 %vm562_vm1, %v18959_v12  ;;  %25197 = vmatmul.mubr.msk.f32.gmra.mrb[102].mxu0 %vm562_vm1, %v20599_v43  ;;  %v18991_v12 = vld [vmem:[%s27364_s9 + $0x218] sm:$0xff] }
 0x4ab   : > { %23895 = vmatprep.mubr.msk.f32.mxu1 %vm562_vm1, %v18960_v28  ;;  %25199 = vmatprep.mubr.msk.f32.mxu0 %vm562_vm1, %v20600_v56  ;;  %v20631_v43 = vld [vmem:[%s27364_s9 + $0x771] sm:$0xff]  ;;  %v18992_v28 = vld [vmem:[%s27364_s9 + $0x228] sm:$0xff] }
 0x4ac   : > { %v20632_v56 = vld [vmem:[%s27364_s9 + $0x781] sm:$0xff] }
 0x4ae   : > { %23896 = vmatmul.mubr.msk.f32.gmra.mrb[8].mxu1 %vm562_vm1, %v18961_v50  ;;  %25200 = vmatmul.mubr.msk.f32.gmra.mrb[104].mxu0 %vm562_vm1, %v20601_v4  ;;  %v18993_v50 = vld [vmem:[%s27364_s9 + $0x230] sm:$0xff] }
 0x4af   : > { %23898 = vmatprep.mubr.msk.f32.mxu1 %vm562_vm1, %v18962_v39  ;;  %25202 = vmatprep.mubr.msk.f32.mxu0 %vm562_vm1, %v20602_v41  ;;  %v20633_v4 = vld [vmem:[%s27364_s9 + $0x789] sm:$0xff]  ;;  %v18994_v39 = vld [vmem:[%s27364_s9 + $0x240] sm:$0xff] }
 0x4b0   : > { %v20634_v41 = vld [vmem:[%s27364_s9 + $0x799] sm:$0xff] }
 0x4b2   : > { %23899 = vmatmul.mubr.msk.f32.gmra.mrb[10].mxu1 %vm562_vm1, %v18963_v44  ;;  %25203 = vmatmul.mubr.msk.f32.gmra.mrb[106].mxu0 %vm562_vm1, %v20603_v46  ;;  %v18995_v44 = vld [vmem:[%s27364_s9 + $0x248] sm:$0xff] }
 0x4b3   : > { %23901 = vmatprep.mubr.msk.f32.mxu1 %vm562_vm1, %v18964_v54  ;;  %25205 = vmatprep.mubr.msk.f32.mxu0 %vm562_vm1, %v20604_v42  ;;  %v20635_v46 = vld [vmem:[%s27364_s9 + $0x7a1] sm:$0xff]  ;;  %v18996_v54 = vld [vmem:[%s27364_s9 + $0x258] sm:$0xff] }
 0x4b4   : > { %v20636_v42 = vld [vmem:[%s27364_s9 + $0x7b1] sm:$0xff] }
 0x4b6   : > { %23902 = vmatmul.mubr.msk.f32.gmra.mrb[12].mxu1 %vm562_vm1, %v18965_v58  ;;  %25206 = vmatmul.mubr.msk.f32.gmra.mrb[108].mxu0 %vm562_vm1, %v20605_v62  ;;  %v18997_v58 = vld [vmem:[%s27364_s9 + $0x260] sm:$0xff] }
 0x4b7   : > { %23904 = vmatprep.mubr.msk.f32.mxu1 %vm562_vm1, %v18966_v59  ;;  %25208 = vmatprep.mubr.msk.f32.mxu0 %vm562_vm1, %v20606_v55  ;;  %v20637_v62 = vld [vmem:[%s27364_s9 + $0x7b9] sm:$0xff]  ;;  %v18998_v59 = vld [vmem:[%s27364_s9 + $0x270] sm:$0xff] }
 0x4b8   : > { %v20638_v55 = vld [vmem:[%s27364_s9 + $0x7c9] sm:$0xff] }
 0x4ba   : > { %23905 = vmatmul.mubr.msk.f32.gmra.mrb[14].mxu1 %vm562_vm1, %v18967_v2  ;;  %25209 = vmatmul.mubr.msk.f32.gmra.mrb[110].mxu0 %vm562_vm1, %v20607_v6  ;;  %v18999_v2 = vld [vmem:[%s27364_s9 + $0x278] sm:$0xff] }
 0x4bb   : > { %23907 = vmatprep.mubr.msk.f32.mxu1 %vm562_vm1, %v18968_v10  ;;  %25211 = vmatprep.mubr.msk.f32.mxu0 %vm562_vm1, %v20608_v14  ;;  %v20639_v6 = vld [vmem:[%s27364_s9 + $0x7d1] sm:$0xff] }
 0x4bc   : > { %v19000_v10 = vld [vmem:[%s27364_s9 + $0x2b8] sm:$0xff] }
 0x4bd   : > { %v20640_v14 = vld [vmem:[%s27364_s9 + $0x811] sm:$0xff] }
 0x4be   : > { %23908 = vmatmul.mubr.msk.f32.gmra.mrb[16].mxu1 %vm562_vm1, %v18969_v18  ;;  %25212 = vmatmul.mubr.msk.f32.gmra.mrb[112].mxu0 %vm562_vm1, %v20609_v22  ;;  %v19001_v18 = vld [vmem:[%s27364_s9 + $0x2c0] sm:$0xff] }
 0x4bf   : > { %23910 = vmatprep.mubr.msk.f32.mxu1 %vm562_vm1, %v18970_v26  ;;  %25214 = vmatprep.mubr.msk.f32.mxu0 %vm562_vm1, %v20610_v30  ;;  %v20641_v22 = vld [vmem:[%s27364_s9 + $0x819] sm:$0xff]  ;;  %v19002_v26 = vld [vmem:[%s27364_s9 + $0x2d0] sm:$0xff] }
 0x4c0   : > { %v20642_v30 = vld [vmem:[%s27364_s9 + $0x829] sm:$0xff] }
 0x4c2   : > { %23911 = vmatmul.mubr.msk.f32.gmra.mrb[18].mxu1 %vm562_vm1, %v18971_v51  ;;  %25215 = vmatmul.mubr.msk.f32.gmra.mrb[114].mxu0 %vm562_vm1, %v20611_v33  ;;  %v19003_v51 = vld [vmem:[%s27364_s9 + $0x2d8] sm:$0xff] }
 0x4c3   : > { %23913 = vmatprep.mubr.msk.f32.mxu1 %vm562_vm1, %v18972_v60  ;;  %25217 = vmatprep.mubr.msk.f32.mxu0 %vm562_vm1, %v20612_v61  ;;  %v20643_v33 = vld [vmem:[%s27364_s9 + $0x831] sm:$0xff]  ;;  %v19004_v60 = vld [vmem:[%s27364_s9 + $0x2e8] sm:$0xff] }
 0x4c4   : > { %v20644_v61 = vld [vmem:[%s27364_s9 + $0x841] sm:$0xff] }
 0x4c6   : > { %23914 = vmatmul.mubr.msk.f32.gmra.mrb[20].mxu1 %vm562_vm1, %v18973_v34  ;;  %25218 = vmatmul.mubr.msk.f32.gmra.mrb[116].mxu0 %vm562_vm1, %v20613_v63  ;;  %v19005_v34 = vld [vmem:[%s27364_s9 + $0x2f0] sm:$0xff] }
 0x4c7   : > { %23916 = vmatprep.mubr.msk.f32.mxu1 %vm562_vm1, %v18974_v49  ;;  %25220 = vmatprep.mubr.msk.f32.mxu0 %vm562_vm1, %v20614_v1  ;;  %v20645_v63 = vld [vmem:[%s27364_s9 + $0x849] sm:$0xff]  ;;  %v19006_v49 = vld [vmem:[%s27364_s9 + $0x300] sm:$0xff] }
 0x4c8   : > { %v20646_v1 = vld [vmem:[%s27364_s9 + $0x859] sm:$0xff] }
 0x4ca   : > { %23917 = vmatmul.mubr.msk.f32.gmra.mrb[22].mxu1 %vm562_vm1, %v18975_v3  ;;  %25221 = vmatmul.mubr.msk.f32.gmra.mrb[118].mxu0 %vm562_vm1, %v20615_v5  ;;  %v19007_v3 = vld [vmem:[%s27364_s9 + $0x308] sm:$0xff] }
 0x4cb   : > { %23919 = vmatprep.mubr.msk.f32.mxu1 %vm562_vm1, %v18976_v7  ;;  %25223 = vmatprep.mubr.msk.f32.mxu0 %vm562_vm1, %v20616_v9  ;;  %v20647_v5 = vld [vmem:[%s27364_s9 + $0x861] sm:$0xff]  ;;  %v19008_v7 = vld [vmem:[%s27364_s9 + $0x318] sm:$0xff] }
 0x4cc   : > { %v20648_v9 = vld [vmem:[%s27364_s9 + $0x871] sm:$0xff] }
 0x4ce   : > { %23920 = vmatmul.mubr.msk.f32.gmra.mrb[24].mxu1 %vm562_vm1, %v18977_v23  ;;  %25224 = vmatmul.mubr.msk.f32.gmra.mrb[120].mxu0 %vm562_vm1, %v20617_v52  ;;  %v19009_v23 = vld [vmem:[%s27364_s9 + $0x320] sm:$0xff] }
 0x4cf   : > { %23922 = vmatprep.mubr.msk.f32.mxu1 %vm562_vm1, %v18978_v57  ;;  %25226 = vmatprep.mubr.msk.f32.mxu0 %vm562_vm1, %v20618_v0  ;;  %v20649_v52 = vld [vmem:[%s27364_s9 + $0x879] sm:$0xff]  ;;  %v19010_v57 = vld [vmem:[%s27364_s9 + $0x330] sm:$0xff] }
 0x4d0   : > { %v20650_v0 = vld [vmem:[%s27364_s9 + $0x889] sm:$0xff] }
 0x4d2   : > { %23923 = vmatmul.mubr.msk.f32.gmra.mrb[26].mxu1 %vm562_vm1, %v18979_v32  ;;  %25227 = vmatmul.mubr.msk.f32.gmra.mrb[122].mxu0 %vm562_vm1, %v20619_v8  ;;  %v19011_v32 = vld [vmem:[%s27364_s9 + $0x338] sm:$0xff] }
 0x4d3   : > { %23925 = vmatprep.mubr.msk.f32.mxu1 %vm562_vm1, %v18980_v16  ;;  %25229 = vmatprep.mubr.msk.f32.mxu0 %vm562_vm1, %v20620_v20  ;;  %v20651_v8 = vld [vmem:[%s27364_s9 + $0x891] sm:$0xff]  ;;  %v19012_v16 = vld [vmem:[%s27364_s9 + $0x348] sm:$0xff] }
 0x4d4   : > { %v20652_v20 = vld [vmem:[%s27364_s9 + $0x8a1] sm:$0xff] }
 0x4d6   : > { %23926 = vmatmul.mubr.msk.f32.gmra.mrb[28].mxu1 %vm562_vm1, %v18981_v24  ;;  %25230 = vmatmul.mubr.msk.f32.gmra.mrb[124].mxu0 %vm562_vm1, %v20621_v31  ;;  %v19013_v24 = vld [vmem:[%s27364_s9 + $0x350] sm:$0xff] }
 0x4d7   : > { %23928 = vmatprep.mubr.msk.f32.mxu1 %vm562_vm1, %v18982_v35  ;;  %25232 = vmatprep.mubr.msk.f32.mxu0 %vm562_vm1, %v20622_v38  ;;  %v20653_v31 = vld [vmem:[%s27364_s9 + $0x8a9] sm:$0xff]  ;;  %v19014_v35 = vld [vmem:[%s27364_s9 + $0x360] sm:$0xff] }
 0x4d8   : > { %v20654_v38 = vld [vmem:[%s27364_s9 + $0x8b9] sm:$0xff] }
 0x4da   : > { %23929 = vmatmul.mubr.msk.f32.gmra.mrb[30].mxu1 %vm562_vm1, %v18983_v37  ;;  %25233 = vmatmul.mubr.msk.f32.gmra.mrb[126].mxu0 %vm562_vm1, %v20623_v11  ;;  %v19015_v37 = vld [vmem:[%s27364_s9 + $0x368] sm:$0xff] }
 0x4db   : > { %23931 = vmatprep.mubr.msk.f32.mxu1 %vm562_vm1, %v18984_v13  ;;  %25235 = vmatprep.mubr.msk.f32.mxu0 %vm562_vm1, %v20624_v40  ;;  %v20655_v11 = vld [vmem:[%s27364_s9 + $0x8c1] sm:$0xff]  ;;  %v19016_v13 = vld [vmem:[%s27364_s9 + $0x378] sm:$0xff] }
 0x4dc   : > { %v20656_v40 = vld [vmem:[%s27364_s9 + $0x8d1] sm:$0xff] }
 0x4de   : > { %23932 = vmatmul.mubr.msk.f32.gmra.mrb[32].mxu1 %vm562_vm1, %v18985_v45  ;;  %25236 = vmatmul.mubr.msk.f32.gmra.mrb[128].mxu0 %vm562_vm1, %v20625_v15  ;;  %v19017_v45 = vld [vmem:[%s27364_s9 + $0x380] sm:$0xff] }
 0x4df   : > { %23934 = vmatprep.mubr.msk.f32.mxu1 %vm562_vm1, %v18986_v17  ;;  %25238 = vmatprep.mubr.msk.f32.mxu0 %vm562_vm1, %v20626_v19  ;;  %v20657_v15 = vld [vmem:[%s27364_s9 + $0x8d9] sm:$0xff]  ;;  %v19018_v17 = vld [vmem:[%s27364_s9 + $0x390] sm:$0xff] }
 0x4e0   : > { %v20658_v19 = vld [vmem:[%s27364_s9 + $0x8e9] sm:$0xff] }
 0x4e2   : > { %23935 = vmatmul.mubr.msk.f32.gmra.mrb[34].mxu1 %vm562_vm1, %v18987_v21  ;;  %25239 = vmatmul.mubr.msk.f32.gmra.mrb[130].mxu0 %vm562_vm1, %v20627_v25  ;;  %v19019_v21 = vld [vmem:[%s27364_s9 + $0x398] sm:$0xff] }
 0x4e3   : > { %23937 = vmatprep.mubr.msk.f32.mxu1 %vm562_vm1, %v18988_v27  ;;  %25241 = vmatprep.mubr.msk.f32.mxu0 %vm562_vm1, %v20628_v48  ;;  %v20659_v25 = vld [vmem:[%s27364_s9 + $0x8f1] sm:$0xff]  ;;  %v19020_v27 = vld [vmem:[%s27364_s9 + $0x3a8] sm:$0xff] }
 0x4e4   : > { %v20660_v48 = vld [vmem:[%s27364_s9 + $0x901] sm:$0xff] }
 0x4e6   : > { %23938 = vmatmul.mubr.msk.f32.gmra.mrb[36].mxu1 %vm562_vm1, %v18989_v53  ;;  %25242 = vmatmul.mubr.msk.f32.gmra.mrb[132].mxu0 %vm562_vm1, %v20629_v47  ;;  %v19021_v53 = vld [vmem:[%s27364_s9 + $0x3b0] sm:$0xff] }
 0x4e7   : > { %23940 = vmatprep.mubr.msk.f32.mxu1 %vm562_vm1, %v18990_v29  ;;  %25244 = vmatprep.mubr.msk.f32.mxu0 %vm562_vm1, %v20630_v36  ;;  %v20661_v47 = vld [vmem:[%s27364_s9 + $0x909] sm:$0xff]  ;;  %v19022_v29 = vld [vmem:[%s27364_s9 + $0x3c0] sm:$0xff] }
 0x4e8   : > { %v20662_v36 = vld [vmem:[%s27364_s9 + $0x919] sm:$0xff] }
 0x4ea   : > { %23941 = vmatmul.mubr.msk.f32.gmra.mrb[38].mxu1 %vm562_vm1, %v18991_v12  ;;  %25245 = vmatmul.mubr.msk.f32.gmra.mrb[134].mxu0 %vm562_vm1, %v20631_v43  ;;  %v19023_v12 = vld [vmem:[%s27364_s9 + $0x3c8] sm:$0xff] }
 0x4eb   : > { %23943 = vmatprep.mubr.msk.f32.mxu1 %vm562_vm1, %v18992_v28  ;;  %25247 = vmatprep.mubr.msk.f32.mxu0 %vm562_vm1, %v20632_v56  ;;  %v20663_v43 = vld [vmem:[%s27364_s9 + $0x921] sm:$0xff] }
 0x4ec   : > { %v19024_v28 = vld [vmem:[%s27364_s9 + $0x408] sm:$0xff] }
 0x4ed   : > { %v20664_v56 = vld [vmem:[%s27364_s9 + $0x961] sm:$0xff] }
 0x4ee   : > { %23944 = vmatmul.mubr.msk.f32.gmra.mrb[40].mxu1 %vm562_vm1, %v18993_v50  ;;  %25248 = vmatmul.mubr.msk.f32.gmra.mrb[136].mxu0 %vm562_vm1, %v20633_v4  ;;  %v19025_v50 = vld [vmem:[%s27364_s9 + $0x410] sm:$0xff] }
 0x4ef   : > { %23946 = vmatprep.mubr.msk.f32.mxu1 %vm562_vm1, %v18994_v39  ;;  %25250 = vmatprep.mubr.msk.f32.mxu0 %vm562_vm1, %v20634_v41  ;;  %v20665_v4 = vld [vmem:[%s27364_s9 + $0x969] sm:$0xff]  ;;  %v19026_v39 = vld [vmem:[%s27364_s9 + $0x420] sm:$0xff] }
 0x4f0   : > { %v20666_v41 = vld [vmem:[%s27364_s9 + $0x979] sm:$0xff] }
 0x4f2   : > { %23947 = vmatmul.mubr.msk.f32.gmra.mrb[42].mxu1 %vm562_vm1, %v18995_v44  ;;  %25251 = vmatmul.mubr.msk.f32.gmra.mrb[138].mxu0 %vm562_vm1, %v20635_v46  ;;  %v19027_v44 = vld [vmem:[%s27364_s9 + $0x428] sm:$0xff] }
 0x4f3   : > { %23949 = vmatprep.mubr.msk.f32.mxu1 %vm562_vm1, %v18996_v54  ;;  %25253 = vmatprep.mubr.msk.f32.mxu0 %vm562_vm1, %v20636_v42  ;;  %v20667_v46 = vld [vmem:[%s27364_s9 + $0x981] sm:$0xff]  ;;  %v19028_v54 = vld [vmem:[%s27364_s9 + $0x438] sm:$0xff] }
 0x4f4   : > { %v20668_v42 = vld [vmem:[%s27364_s9 + $0x991] sm:$0xff] }
 0x4f6   : > { %23950 = vmatmul.mubr.msk.f32.gmra.mrb[44].mxu1 %vm562_vm1, %v18997_v58  ;;  %25254 = vmatmul.mubr.msk.f32.gmra.mrb[140].mxu0 %vm562_vm1, %v20637_v62  ;;  %v19029_v58 = vld [vmem:[%s27364_s9 + $0x440] sm:$0xff] }
 0x4f7   : > { %23952 = vmatprep.mubr.msk.f32.mxu1 %vm562_vm1, %v18998_v59  ;;  %25256 = vmatprep.mubr.msk.f32.mxu0 %vm562_vm1, %v20638_v55  ;;  %v20669_v62 = vld [vmem:[%s27364_s9 + $0x999] sm:$0xff]  ;;  %v19030_v59 = vld [vmem:[%s27364_s9 + $0x450] sm:$0xff] }
 0x4f8   : > { %v20670_v55 = vld [vmem:[%s27364_s9 + $0x9a9] sm:$0xff] }
 0x4fa   : > { %23953 = vmatmul.mubr.msk.f32.gmra.mrb[46].mxu1 %vm562_vm1, %v18999_v2  ;;  %25257 = vmatmul.mubr.msk.f32.gmra.mrb[142].mxu0 %vm562_vm1, %v20639_v6  ;;  %v19031_v2 = vld [vmem:[%s27364_s9 + $0x458] sm:$0xff] }
 0x4fb   : > { %23955 = vmatprep.mubr.msk.f32.mxu1 %vm562_vm1, %v19000_v10  ;;  %25259 = vmatprep.mubr.msk.f32.mxu0 %vm562_vm1, %v20640_v14  ;;  %v20671_v6 = vld [vmem:[%s27364_s9 + $0x9b1] sm:$0xff]  ;;  %v19032_v10 = vld [vmem:[%s27364_s9 + $0x468] sm:$0xff] }
 0x4fc   : > { %v20672_v14 = vld [vmem:[%s27364_s9 + $0x9c1] sm:$0xff] }
 0x4fe   : > { %23956 = vmatmul.mubr.msk.f32.gmra.mrb[48].mxu1 %vm562_vm1, %v19001_v18  ;;  %25260 = vmatmul.mubr.msk.f32.gmra.mrb[144].mxu0 %vm562_vm1, %v20641_v22  ;;  %v19033_v18 = vld [vmem:[%s27364_s9 + $0x470] sm:$0xff] }
 0x4ff   : > { %23958 = vmatprep.mubr.msk.f32.mxu1 %vm562_vm1, %v19002_v26  ;;  %25262 = vmatprep.mubr.msk.f32.mxu0 %vm562_vm1, %v20642_v30  ;;  %v20673_v22 = vld [vmem:[%s27364_s9 + $0x9c9] sm:$0xff]  ;;  %v19034_v26 = vld [vmem:[%s27364_s9 + $0x480] sm:$0xff] }
 0x500   : > { %v20674_v30 = vld [vmem:[%s27364_s9 + $0x9d9] sm:$0xff] }
 0x502   : > { %23959 = vmatmul.mubr.msk.f32.gmra.mrb[50].mxu1 %vm562_vm1, %v19003_v51  ;;  %25263 = vmatmul.mubr.msk.f32.gmra.mrb[146].mxu0 %vm562_vm1, %v20643_v33  ;;  %v19035_v51 = vld [vmem:[%s27364_s9 + $0x488] sm:$0xff] }
 0x503   : > { %23961 = vmatprep.mubr.msk.f32.mxu1 %vm562_vm1, %v19004_v60  ;;  %25265 = vmatprep.mubr.msk.f32.mxu0 %vm562_vm1, %v20644_v61  ;;  %v20675_v33 = vld [vmem:[%s27364_s9 + $0x9e1] sm:$0xff]  ;;  %v19036_v60 = vld [vmem:[%s27364_s9 + $0x498] sm:$0xff] }
 0x504   : > { %v20676_v61 = vld [vmem:[%s27364_s9 + $0x9f1] sm:$0xff] }
 0x506   : > { %23962 = vmatmul.mubr.msk.f32.gmra.mrb[52].mxu1 %vm562_vm1, %v19005_v34  ;;  %25266 = vmatmul.mubr.msk.f32.gmra.mrb[148].mxu0 %vm562_vm1, %v20645_v63  ;;  %v19037_v34 = vld [vmem:[%s27364_s9 + $0x4a0] sm:$0xff] }
 0x507   : > { %23964 = vmatprep.mubr.msk.f32.mxu1 %vm562_vm1, %v19006_v49  ;;  %25268 = vmatprep.mubr.msk.f32.mxu0 %vm562_vm1, %v20646_v1  ;;  %v20677_v63 = vld [vmem:[%s27364_s9 + $0x9f9] sm:$0xff]  ;;  %v19038_v49 = vld [vmem:[%s27364_s9 + $0x4b0] sm:$0xff] }
 0x508   : > { %v20678_v1 = vld [vmem:[%s27364_s9 + $0xa09] sm:$0xff] }
 0x50a   : > { %23965 = vmatmul.mubr.msk.f32.gmra.mrb[54].mxu1 %vm562_vm1, %v19007_v3  ;;  %25269 = vmatmul.mubr.msk.f32.gmra.mrb[150].mxu0 %vm562_vm1, %v20647_v5  ;;  %v19039_v3 = vld [vmem:[%s27364_s9 + $0x4b8] sm:$0xff] }
 0x50b   : > { %23967 = vmatprep.mubr.msk.f32.mxu1 %vm562_vm1, %v19008_v7  ;;  %25271 = vmatprep.mubr.msk.f32.mxu0 %vm562_vm1, %v20648_v9  ;;  %v20679_v5 = vld [vmem:[%s27364_s9 + $0xa11] sm:$0xff]  ;;  %v19040_v7 = vld [vmem:[%s27364_s9 + $0x4c8] sm:$0xff] }
 0x50c   : > { %v20680_v9 = vld [vmem:[%s27364_s9 + $0xa21] sm:$0xff] }
 0x50e   : > { %23968 = vmatmul.mubr.msk.f32.gmra.mrb[56].mxu1 %vm562_vm1, %v19009_v23  ;;  %25272 = vmatmul.mubr.msk.f32.gmra.mrb[152].mxu0 %vm562_vm1, %v20649_v52  ;;  %v19041_v23 = vld [vmem:[%s27364_s9 + $0x4d0] sm:$0xff] }
 0x50f   : > { %23970 = vmatprep.mubr.msk.f32.mxu1 %vm562_vm1, %v19010_v57  ;;  %25274 = vmatprep.mubr.msk.f32.mxu0 %vm562_vm1, %v20650_v0  ;;  %v20681_v52 = vld [vmem:[%s27364_s9 + $0xa29] sm:$0xff]  ;;  %v19042_v57 = vld [vmem:[%s27364_s9 + $0x4e0] sm:$0xff] }
 0x510   : > { %v20682_v0 = vld [vmem:[%s27364_s9 + $0xa39] sm:$0xff] }
 0x512   : > { %23971 = vmatmul.mubr.msk.f32.gmra.mrb[58].mxu1 %vm562_vm1, %v19011_v32  ;;  %25275 = vmatmul.mubr.msk.f32.gmra.mrb[154].mxu0 %vm562_vm1, %v20651_v8  ;;  %v19043_v32 = vld [vmem:[%s27364_s9 + $0x4e8] sm:$0xff] }
 0x513   : > { %23973 = vmatprep.mubr.msk.f32.mxu1 %vm562_vm1, %v19012_v16  ;;  %25277 = vmatprep.mubr.msk.f32.mxu0 %vm562_vm1, %v20652_v20  ;;  %v20683_v8 = vld [vmem:[%s27364_s9 + $0xa41] sm:$0xff]  ;;  %v19044_v16 = vld [vmem:[%s27364_s9 + $0x4f8] sm:$0xff] }
 0x514   : > { %v20684_v20 = vld [vmem:[%s27364_s9 + $0xa51] sm:$0xff] }
 0x516   : > { %23974 = vmatmul.mubr.msk.f32.gmra.mrb[60].mxu1 %vm562_vm1, %v19013_v24  ;;  %25278 = vmatmul.mubr.msk.f32.gmra.mrb[156].mxu0 %vm562_vm1, %v20653_v31  ;;  %v19045_v24 = vld [vmem:[%s27364_s9 + $0x500] sm:$0xff] }
 0x517   : > { %23976 = vmatprep.mubr.msk.f32.mxu1 %vm562_vm1, %v19014_v35  ;;  %25280 = vmatprep.mubr.msk.f32.mxu0 %vm562_vm1, %v20654_v38  ;;  %v20685_v31 = vld [vmem:[%s27364_s9 + $0xa59] sm:$0xff]  ;;  %v19046_v35 = vld [vmem:[%s27364_s9 + $0x510] sm:$0xff] }
 0x518   : > { %v20686_v38 = vld [vmem:[%s27364_s9 + $0xa69] sm:$0xff] }
 0x51a   : > { %23977 = vmatmul.mubr.msk.f32.gmra.mrb[62].mxu1 %vm562_vm1, %v19015_v37  ;;  %25281 = vmatmul.mubr.msk.f32.gmra.mrb[158].mxu0 %vm562_vm1, %v20655_v11  ;;  %v19047_v37 = vld [vmem:[%s27364_s9 + $0x518] sm:$0xff] }
 0x51b   : > { %23979 = vmatprep.mubr.msk.f32.mxu1 %vm562_vm1, %v19016_v13  ;;  %25283 = vmatprep.mubr.msk.f32.mxu0 %vm562_vm1, %v20656_v40  ;;  %v20687_v11 = vld [vmem:[%s27364_s9 + $0xa71] sm:$0xff] }
 0x51c   : > { %v19048_v13 = vld [vmem:[%s27364_s9 + $0x558] sm:$0xff] }
 0x51d   : > { %v20882_v40 = vld [vmem:[%s27364_s9 + $0x32] sm:$0xff] }
 0x51e   : > { %23980 = vmatmul.mubr.msk.f32.gmra.mrb[64].mxu1 %vm562_vm1, %v19017_v45  ;;  %25284 = vmatmul.mubr.msk.f32.gmra.mrb[160].mxu0 %vm562_vm1, %v20657_v15  ;;  %v19049_v45 = vld [vmem:[%s27364_s9 + $0x560] sm:$0xff] }
 0x51f   : > { %23982 = vmatprep.mubr.msk.f32.mxu1 %vm562_vm1, %v19018_v17  ;;  %25286 = vmatprep.mubr.msk.f32.mxu0 %vm562_vm1, %v20658_v19  ;;  %v20883_v15 = vld [vmem:[%s27364_s9 + $0x3a] sm:$0xff]  ;;  %v19050_v17 = vld [vmem:[%s27364_s9 + $0x570] sm:$0xff] }
 0x520   : > { %v20884_v19 = vld [vmem:[%s27364_s9 + $0x4a] sm:$0xff] }
 0x522   : > { %23983 = vmatmul.mubr.msk.f32.gmra.mrb[66].mxu1 %vm562_vm1, %v19019_v21  ;;  %25287 = vmatmul.mubr.msk.f32.gmra.mrb[162].mxu0 %vm562_vm1, %v20659_v25  ;;  %v19051_v21 = vld [vmem:[%s27364_s9 + $0x578] sm:$0xff] }
 0x523   : > { %23985 = vmatprep.mubr.msk.f32.mxu1 %vm562_vm1, %v19020_v27  ;;  %25289 = vmatprep.mubr.msk.f32.mxu0 %vm562_vm1, %v20660_v48  ;;  %v20885_v25 = vld [vmem:[%s27364_s9 + $0x52] sm:$0xff]  ;;  %v19052_v27 = vld [vmem:[%s27364_s9 + $0x588] sm:$0xff] }
 0x524   : > { %v20886_v48 = vld [vmem:[%s27364_s9 + $0x62] sm:$0xff] }
 0x526   : > { %23986 = vmatmul.mubr.msk.f32.gmra.mrb[68].mxu1 %vm562_vm1, %v19021_v53  ;;  %25290 = vmatmul.mubr.msk.f32.gmra.mrb[164].mxu0 %vm562_vm1, %v20661_v47  ;;  %v19053_v53 = vld [vmem:[%s27364_s9 + $0x590] sm:$0xff] }
 0x527   : > { %23988 = vmatprep.mubr.msk.f32.mxu1 %vm562_vm1, %v19022_v29  ;;  %25292 = vmatprep.mubr.msk.f32.mxu0 %vm562_vm1, %v20662_v36  ;;  %v20887_v47 = vld [vmem:[%s27364_s9 + $0x6a] sm:$0xff]  ;;  %v19054_v29 = vld [vmem:[%s27364_s9 + $0x5a0] sm:$0xff] }
 0x528   : > { %v20888_v36 = vld [vmem:[%s27364_s9 + $0x7a] sm:$0xff] }
 0x52a   : > { %23989 = vmatmul.mubr.msk.f32.gmra.mrb[70].mxu1 %vm562_vm1, %v19023_v12  ;;  %25293 = vmatmul.mubr.msk.f32.gmra.mrb[166].mxu0 %vm562_vm1, %v20663_v43  ;;  %v19055_v12 = vld [vmem:[%s27364_s9 + $0x5a8] sm:$0xff] }
 0x52b   : > { %23991 = vmatprep.mubr.msk.f32.mxu1 %vm562_vm1, %v19024_v28  ;;  %25295 = vmatprep.mubr.msk.f32.mxu0 %vm562_vm1, %v20664_v56  ;;  %v20889_v43 = vld [vmem:[%s27364_s9 + $0x82] sm:$0xff]  ;;  %v19056_v28 = vld [vmem:[%s27364_s9 + $0x5b8] sm:$0xff] }
 0x52c   : > { %v20890_v56 = vld [vmem:[%s27364_s9 + $0x92] sm:$0xff] }
 0x52e   : > { %23992 = vmatmul.mubr.msk.f32.gmra.mrb[72].mxu1 %vm562_vm1, %v19025_v50  ;;  %25296 = vmatmul.mubr.msk.f32.gmra.mrb[168].mxu0 %vm562_vm1, %v20665_v4  ;;  %v19057_v50 = vld [vmem:[%s27364_s9 + $0x5c0] sm:$0xff] }
 0x52f   : > { %23994 = vmatprep.mubr.msk.f32.mxu1 %vm562_vm1, %v19026_v39  ;;  %25298 = vmatprep.mubr.msk.f32.mxu0 %vm562_vm1, %v20666_v41  ;;  %v20891_v4 = vld [vmem:[%s27364_s9 + $0x9a] sm:$0xff]  ;;  %v19058_v39 = vld [vmem:[%s27364_s9 + $0x5d0] sm:$0xff] }
 0x530   : > { %v20892_v41 = vld [vmem:[%s27364_s9 + $0xaa] sm:$0xff] }
 0x532   : > { %23995 = vmatmul.mubr.msk.f32.gmra.mrb[74].mxu1 %vm562_vm1, %v19027_v44  ;;  %25299 = vmatmul.mubr.msk.f32.gmra.mrb[170].mxu0 %vm562_vm1, %v20667_v46  ;;  %v19059_v44 = vld [vmem:[%s27364_s9 + $0x5d8] sm:$0xff] }
 0x533   : > { %23997 = vmatprep.mubr.msk.f32.mxu1 %vm562_vm1, %v19028_v54  ;;  %25301 = vmatprep.mubr.msk.f32.mxu0 %vm562_vm1, %v20668_v42  ;;  %v20893_v46 = vld [vmem:[%s27364_s9 + $0xb2] sm:$0xff]  ;;  %v19060_v54 = vld [vmem:[%s27364_s9 + $0x5e8] sm:$0xff] }
 0x534   : > { %v20894_v42 = vld [vmem:[%s27364_s9 + $0xc2] sm:$0xff] }
 0x536   : > { %23998 = vmatmul.mubr.msk.f32.gmra.mrb[76].mxu1 %vm562_vm1, %v19029_v58  ;;  %25302 = vmatmul.mubr.msk.f32.gmra.mrb[172].mxu0 %vm562_vm1, %v20669_v62 }
 0x537   : > { %24000 = vmatprep.mubr.msk.f32.mxu1 %vm562_vm1, %v19030_v59  ;;  %25304 = vmatprep.mubr.msk.f32.mxu0 %vm562_vm1, %v20670_v55  ;;  %v19061_v59 = vld [vmem:[%s27364_s9 + $0x5f0] sm:$0xff] }
 0x538   : > { %v20895_v55 = vld [vmem:[%s27364_s9 + $0xca] sm:$0xff] }
 0x53a   : > { %24001 = vmatmul.mubr.msk.f32.gmra.mrb[78].mxu1 %vm562_vm1, %v19031_v2  ;;  %25305 = vmatmul.mubr.msk.f32.gmra.mrb[174].mxu0 %vm562_vm1, %v20671_v6  ;;  %v19062_v2 = vld [vmem:[%s27364_s9 + $0x600] sm:$0xff] }
 0x53b   : > { %24003 = vmatprep.mubr.msk.f32.mxu1 %vm562_vm1, %v19032_v10  ;;  %25307 = vmatprep.mubr.msk.f32.mxu0 %vm562_vm1, %v20672_v14  ;;  %v20896_v6 = vld [vmem:[%s27364_s9 + $0xda] sm:$0xff] }
 0x53e   : > { %24004 = vmatmul.mubr.msk.f32.gmra.mrb[80].mxu1 %vm562_vm1, %v19033_v18  ;;  %25308 = vmatmul.mubr.msk.f32.gmra.mrb[176].mxu0 %vm562_vm1, %v20673_v22  ;;  %v19063_v18 = vld [vmem:[%s27364_s9 + $0x608] sm:$0xff] }
 0x53f   : > { %24006 = vmatprep.mubr.msk.f32.mxu1 %vm562_vm1, %v19034_v26  ;;  %25310 = vmatprep.mubr.msk.f32.mxu0 %vm562_vm1, %v20674_v30  ;;  %v20897_v22 = vld [vmem:[%s27364_s9 + $0xe2] sm:$0xff]  ;;  %v19064_v26 = vld [vmem:[%s27364_s9 + $0x618] sm:$0xff] }
 0x540   : > { %v20898_v30 = vld [vmem:[%s27364_s9 + $0xf2] sm:$0xff] }
 0x542   : > { %24007 = vmatmul.mubr.msk.f32.gmra.mrb[82].mxu1 %vm562_vm1, %v19035_v51  ;;  %25311 = vmatmul.mubr.msk.f32.gmra.mrb[178].mxu0 %vm562_vm1, %v20675_v33 }
 0x543   : > { %24009 = vmatprep.mubr.msk.f32.mxu1 %vm562_vm1, %v19036_v60  ;;  %25313 = vmatprep.mubr.msk.f32.mxu0 %vm562_vm1, %v20676_v61  ;;  %v19065_v60 = vld [vmem:[%s27364_s9 + $0x620] sm:$0xff] }
 0x544   : > { %v20899_v61 = vld [vmem:[%s27364_s9 + $0xfa] sm:$0xff] }
 0x546   : > { %24010 = vmatmul.mubr.msk.f32.gmra.mrb[84].mxu1 %vm562_vm1, %v19037_v34  ;;  %25314 = vmatmul.mubr.msk.f32.gmra.mrb[180].mxu0 %vm562_vm1, %v20677_v63  ;;  %v19066_v34 = vld [vmem:[%s27364_s9 + $0x630] sm:$0xff] }
 0x547   : > { %24012 = vmatprep.mubr.msk.f32.mxu1 %vm562_vm1, %v19038_v49  ;;  %25316 = vmatprep.mubr.msk.f32.mxu0 %vm562_vm1, %v20678_v1  ;;  %v20900_v63 = vld [vmem:[%s27364_s9 + $0x10a] sm:$0xff] }
 0x54a   : > { %24013 = vmatmul.mubr.msk.f32.gmra.mrb[86].mxu1 %vm562_vm1, %v19039_v3  ;;  %25317 = vmatmul.mubr.msk.f32.gmra.mrb[182].mxu0 %vm562_vm1, %v20679_v5  ;;  %v19067_v3 = vld [vmem:[%s27364_s9 + $0x638] sm:$0xff] }
 0x54b   : > { %24015 = vmatprep.mubr.msk.f32.mxu1 %vm562_vm1, %v19040_v7  ;;  %25319 = vmatprep.mubr.msk.f32.mxu0 %vm562_vm1, %v20680_v9  ;;  %v20901_v5 = vld [vmem:[%s27364_s9 + $0x112] sm:$0xff]  ;;  %v19068_v7 = vld [vmem:[%s27364_s9 + $0x648] sm:$0xff] }
 0x54c   : > { %v20902_v9 = vld [vmem:[%s27364_s9 + $0x122] sm:$0xff] }
 0x54e   : > { %24016 = vmatmul.mubr.msk.f32.gmra.mrb[88].mxu1 %vm562_vm1, %v19041_v23  ;;  %25320 = vmatmul.mubr.msk.f32.gmra.mrb[184].mxu0 %vm562_vm1, %v20681_v52 }
 0x54f   : > { %24018 = vmatprep.mubr.msk.f32.mxu1 %vm562_vm1, %v19042_v57  ;;  %25322 = vmatprep.mubr.msk.f32.mxu0 %vm562_vm1, %v20682_v0  ;;  %v19069_v57 = vld [vmem:[%s27364_s9 + $0x650] sm:$0xff] }
 0x550   : > { %v20903_v0 = vld [vmem:[%s27364_s9 + $0x12a] sm:$0xff] }
 0x552   : > { %24019 = vmatmul.mubr.msk.f32.gmra.mrb[90].mxu1 %vm562_vm1, %v19043_v32  ;;  %25323 = vmatmul.mubr.msk.f32.gmra.mrb[186].mxu0 %vm562_vm1, %v20683_v8  ;;  %v19070_v32 = vld [vmem:[%s27364_s9 + $0x660] sm:$0xff] }
 0x553   : > { %24021 = vmatprep.mubr.msk.f32.mxu1 %vm562_vm1, %v19044_v16  ;;  %25325 = vmatprep.mubr.msk.f32.mxu0 %vm562_vm1, %v20684_v20  ;;  %v20904_v8 = vld [vmem:[%s27364_s9 + $0x13a] sm:$0xff] }
 0x556   : > { %24022 = vmatmul.mubr.msk.f32.gmra.mrb[92].mxu1 %vm562_vm1, %v19045_v24  ;;  %25326 = vmatmul.mubr.msk.f32.gmra.mrb[188].mxu0 %vm562_vm1, %v20685_v31  ;;  %v19071_v24 = vld [vmem:[%s27364_s9 + $0x668] sm:$0xff] }
 0x557   : > { %24024 = vmatprep.mubr.msk.f32.mxu1 %vm562_vm1, %v19046_v35  ;;  %25328 = vmatprep.mubr.msk.f32.mxu0 %vm562_vm1, %v20686_v38  ;;  %v20905_v31 = vld [vmem:[%s27364_s9 + $0x142] sm:$0xff] }
 0x558   : > { %v19072_v35 = vld [vmem:[%s27364_s9 + $0x6a8] sm:$0xff] }
 0x559   : > { %v20906_v38 = vld [vmem:[%s27364_s9 + $0x182] sm:$0xff] }
 0x55a   : > { %24025 = vmatmul.mubr.msk.f32.gmra.mrb[94].mxu1 %vm562_vm1, %v19047_v37  ;;  %25329 = vmatmul.mubr.msk.f32.gmra.mrb[190].mxu0 %vm562_vm1, %v20687_v11 }
 0x55b   : > { %24027 = vmatprep.mubr.msk.f32.mxu1 %vm562_vm1, %v19048_v13  ;;  %25333 = vmatprep.mubr.msk.f32.mxu0 %vm562_vm1, %v20882_v40  ;;  %v19073_v13 = vld [vmem:[%s27364_s9 + $0x6b0] sm:$0xff] }
 0x55c   : > { %v20907_v40 = vld [vmem:[%s27364_s9 + $0x18a] sm:$0xff] }
 0x55e   : > { %24028 = vmatmul.mubr.msk.f32.gmra.mrb[96].mxu1 %vm562_vm1, %v19049_v45  ;;  %25334 = vmatmul.mubr.msk.f32.vlgmr.msra.gmra.mrb[0].mxu0 %vm562_vm1, %v20883_v15  ;;  %v19074_v45 = vld [vmem:[%s27364_s9 + $0x6c0] sm:$0xff] }
 0x55f   : > { %24030 = vmatprep.mubr.msk.f32.mxu1 %vm562_vm1, %v19050_v17  ;;  %25336 = vmatprep.mubr.msk.f32.mxu0 %vm562_vm1, %v20884_v19  ;;  %v20908_v15 = vld [vmem:[%s27364_s9 + $0x19a] sm:$0xff] }
 0x562   : > { %24031 = vmatmul.mubr.msk.f32.gmra.mrb[98].mxu1 %vm562_vm1, %v19051_v21  ;;  %25337 = vmatmul.mubr.msk.f32.gmra.mrb[2].mxu0 %vm562_vm1, %v20885_v25  ;;  %v19075_v21 = vld [vmem:[%s27364_s9 + $0x6c8] sm:$0xff] }
 0x563   : > { %24033 = vmatprep.mubr.msk.f32.mxu1 %vm562_vm1, %v19052_v27  ;;  %25339 = vmatprep.mubr.msk.f32.mxu0 %vm562_vm1, %v20886_v48  ;;  %v20909_v25 = vld [vmem:[%s27364_s9 + $0x1a2] sm:$0xff]  ;;  %v19076_v27 = vld [vmem:[%s27364_s9 + $0x6d8] sm:$0xff] }
 0x564   : > { %v20910_v48 = vld [vmem:[%s27364_s9 + $0x1b2] sm:$0xff] }
 0x566   : > { %24034 = vmatmul.mubr.msk.f32.gmra.mrb[100].mxu1 %vm562_vm1, %v19053_v53  ;;  %25340 = vmatmul.mubr.msk.f32.gmra.mrb[4].mxu0 %vm562_vm1, %v20887_v47 }
 0x567   : > { %24036 = vmatprep.mubr.msk.f32.mxu1 %vm562_vm1, %v19054_v29  ;;  %25342 = vmatprep.mubr.msk.f32.mxu0 %vm562_vm1, %v20888_v36  ;;  %v19077_v29 = vld [vmem:[%s27364_s9 + $0x6e0] sm:$0xff] }
 0x568   : > { %v20911_v36 = vld [vmem:[%s27364_s9 + $0x1ba] sm:$0xff] }
 0x56a   : > { %24037 = vmatmul.mubr.msk.f32.gmra.mrb[102].mxu1 %vm562_vm1, %v19055_v12  ;;  %25343 = vmatmul.mubr.msk.f32.gmra.mrb[6].mxu0 %vm562_vm1, %v20889_v43  ;;  %v19078_v12 = vld [vmem:[%s27364_s9 + $0x6f0] sm:$0xff] }
 0x56b   : > { %24039 = vmatprep.mubr.msk.f32.mxu1 %vm562_vm1, %v19056_v28  ;;  %25345 = vmatprep.mubr.msk.f32.mxu0 %vm562_vm1, %v20890_v56  ;;  %v20912_v43 = vld [vmem:[%s27364_s9 + $0x1ca] sm:$0xff] }
 0x56e   : > { %24040 = vmatmul.mubr.msk.f32.gmra.mrb[104].mxu1 %vm562_vm1, %v19057_v50  ;;  %25346 = vmatmul.mubr.msk.f32.gmra.mrb[8].mxu0 %vm562_vm1, %v20891_v4  ;;  %v19079_v50 = vld [vmem:[%s27364_s9 + $0x6f8] sm:$0xff] }
 0x56f   : > { %24042 = vmatprep.mubr.msk.f32.mxu1 %vm562_vm1, %v19058_v39  ;;  %25348 = vmatprep.mubr.msk.f32.mxu0 %vm562_vm1, %v20892_v41  ;;  %v20913_v4 = vld [vmem:[%s27364_s9 + $0x1d2] sm:$0xff]  ;;  %v19080_v39 = vld [vmem:[%s27364_s9 + $0x708] sm:$0xff] }
 0x570   : > { %v20914_v41 = vld [vmem:[%s27364_s9 + $0x1e2] sm:$0xff] }
 0x571   : > { %v30549_v58 = vpop.f32.mrb[0].mxu1 }
 0x572   : > { %v30551_v62 = vpop.f32.mrb[1].mxu1  ;;  %24043 = vmatmul.mubr.msk.f32.gmra.mrb[106].mxu1 %vm562_vm1, %v19059_v44  ;;  %25349 = vmatmul.mubr.msk.f32.gmra.mrb[10].mxu0 %vm562_vm1, %v20893_v46 }
 0x573   : > { %24045 = vmatprep.mubr.msk.f32.mxu1 %vm562_vm1, %v19060_v54  ;;  %25351 = vmatprep.mubr.msk.f32.mxu0 %vm562_vm1, %v20894_v42  ;;  %v19081_v54 = vld [vmem:[%s27364_s9 + $0x710] sm:$0xff] }
 0x574   : > { %v20915_v42 = vld [vmem:[%s27364_s9 + $0x1ea] sm:$0xff] }
 0x575   : > { %v30561_v10 = vpop.f32.mrb[2].mxu1 }
 0x576   : > { %v30563_v14 = vpop.f32.mrb[3].mxu1  ;;  %24046 = vmatmul.mubr.msk.f32.gmra.mrb[108].mxu1 %vm562_vm1, %v19061_v59  ;;  %25352 = vmatmul.mubr.msk.f32.gmra.mrb[12].mxu0 %vm562_vm1, %v20895_v55  ;;  %v19082_v59 = vld [vmem:[%s27364_s9 + $0x720] sm:$0xff] }
 0x577   : > { %24048 = vmatprep.mubr.msk.f32.mxu1 %vm562_vm1, %v19062_v2  ;;  %25354 = vmatprep.mubr.msk.f32.mxu0 %vm562_vm1, %v20896_v6  ;;  %v20916_v55 = vld [vmem:[%s27364_s9 + $0x1fa] sm:$0xff] }
 0x579   : > { %v30573_v51 = vpop.f32.mrb[4].mxu1 }
 0x57a   : > { %v30575_v33 = vpop.f32.mrb[5].mxu1  ;;  %24049 = vmatmul.mubr.msk.f32.gmra.mrb[110].mxu1 %vm562_vm1, %v19063_v18  ;;  %25355 = vmatmul.mubr.msk.f32.gmra.mrb[14].mxu0 %vm562_vm1, %v20897_v22  ;;  %v19083_v18 = vld [vmem:[%s27364_s9 + $0x728] sm:$0xff] }
 0x57b   : > { %24051 = vmatprep.mubr.msk.f32.mxu1 %vm562_vm1, %v19064_v26  ;;  %25357 = vmatprep.mubr.msk.f32.mxu0 %vm562_vm1, %v20898_v30  ;;  %v20917_v22 = vld [vmem:[%s27364_s9 + $0x202] sm:$0xff]  ;;  %v19084_v26 = vld [vmem:[%s27364_s9 + $0x738] sm:$0xff] }
 0x57c   : > { %v20918_v30 = vld [vmem:[%s27364_s9 + $0x212] sm:$0xff] }
 0x57d   : > { %v30585_v49 = vpop.f32.mrb[6].mxu1 }
 0x57e   : > { %v30587_v1 = vpop.f32.mrb[7].mxu1  ;;  %24052 = vmatmul.mubr.msk.f32.gmra.mrb[112].mxu1 %vm562_vm1, %v19065_v60  ;;  %25358 = vmatmul.mubr.msk.f32.gmra.mrb[16].mxu0 %vm562_vm1, %v20899_v61 }
 0x57f   : > { %24054 = vmatprep.mubr.msk.f32.mxu1 %vm562_vm1, %v19066_v34  ;;  %25360 = vmatprep.mubr.msk.f32.mxu0 %vm562_vm1, %v20900_v63  ;;  %v19085_v34 = vld [vmem:[%s27364_s9 + $0x740] sm:$0xff] }
 0x580   : > { %v20919_v63 = vld [vmem:[%s27364_s9 + $0x21a] sm:$0xff] }
 0x581   : > { %v30597_v23 = vpop.f32.mrb[8].mxu1 }
 0x582   : > { %v30599_v52 = vpop.f32.mrb[9].mxu1  ;;  %24055 = vmatmul.mubr.msk.f32.gmra.mrb[114].mxu1 %vm562_vm1, %v19067_v3  ;;  %25361 = vmatmul.mubr.msk.f32.gmra.mrb[18].mxu0 %vm562_vm1, %v20901_v5  ;;  %v19086_v3 = vld [vmem:[%s27364_s9 + $0x750] sm:$0xff] }
 0x583   : > { %24057 = vmatprep.mubr.msk.f32.mxu1 %vm562_vm1, %v19068_v7  ;;  %25363 = vmatprep.mubr.msk.f32.mxu0 %vm562_vm1, %v20902_v9  ;;  %v20920_v5 = vld [vmem:[%s27364_s9 + $0x22a] sm:$0xff] }
 0x585   : > { %v30609_v16 = vpop.f32.mrb[10].mxu1 }
 0x586   : > { %v30611_v20 = vpop.f32.mrb[11].mxu1  ;;  %24058 = vmatmul.mubr.msk.f32.gmra.mrb[116].mxu1 %vm562_vm1, %v19069_v57  ;;  %25364 = vmatmul.mubr.msk.f32.gmra.mrb[20].mxu0 %vm562_vm1, %v20903_v0  ;;  %v19087_v57 = vld [vmem:[%s27364_s9 + $0x758] sm:$0xff] }
 0x587   : > { %24060 = vmatprep.mubr.msk.f32.mxu1 %vm562_vm1, %v19070_v32  ;;  %25366 = vmatprep.mubr.msk.f32.mxu0 %vm562_vm1, %v20904_v8  ;;  %v20921_v0 = vld [vmem:[%s27364_s9 + $0x232] sm:$0xff]  ;;  %v19088_v32 = vld [vmem:[%s27364_s9 + $0x768] sm:$0xff] }
 0x588   : > { %v20922_v8 = vld [vmem:[%s27364_s9 + $0x242] sm:$0xff] }
 0x589   : > { %v30621_v37 = vpop.f32.mrb[12].mxu1 }
 0x58a   : > { %v30623_v11 = vpop.f32.mrb[13].mxu1  ;;  %24061 = vmatmul.mubr.msk.f32.gmra.mrb[118].mxu1 %vm562_vm1, %v19071_v24  ;;  %25367 = vmatmul.mubr.msk.f32.gmra.mrb[22].mxu0 %vm562_vm1, %v20905_v31 }
 0x58b   : > { %24063 = vmatprep.mubr.msk.f32.mxu1 %vm562_vm1, %v19072_v35  ;;  %25369 = vmatprep.mubr.msk.f32.mxu0 %vm562_vm1, %v20906_v38  ;;  %v19089_v35 = vld [vmem:[%s27364_s9 + $0x770] sm:$0xff] }
 0x58c   : > { %v20923_v38 = vld [vmem:[%s27364_s9 + $0x24a] sm:$0xff] }
 0x58d   : > { %v30633_v17 = vpop.f32.mrb[14].mxu1 }
 0x58e   : > { %v30635_v19 = vpop.f32.mrb[15].mxu1  ;;  %24064 = vmatmul.mubr.msk.f32.gmra.mrb[120].mxu1 %vm562_vm1, %v19073_v13  ;;  %25370 = vmatmul.mubr.msk.f32.gmra.mrb[24].mxu0 %vm562_vm1, %v20907_v40  ;;  %v19090_v13 = vld [vmem:[%s27364_s9 + $0x780] sm:$0xff] }
 0x58f   : > { %24066 = vmatprep.mubr.msk.f32.mxu1 %vm562_vm1, %v19074_v45  ;;  %25372 = vmatprep.mubr.msk.f32.mxu0 %vm562_vm1, %v20908_v15  ;;  %v20924_v40 = vld [vmem:[%s27364_s9 + $0x25a] sm:$0xff] }
 0x591   : > { %v30645_v53 = vpop.f32.mrb[16].mxu1 }
 0x592   : > { %v30647_v47 = vpop.f32.mrb[17].mxu1  ;;  %24067 = vmatmul.mubr.msk.f32.gmra.mrb[122].mxu1 %vm562_vm1, %v19075_v21  ;;  %25373 = vmatmul.mubr.msk.f32.gmra.mrb[26].mxu0 %vm562_vm1, %v20909_v25  ;;  %v19091_v21 = vld [vmem:[%s27364_s9 + $0x788] sm:$0xff] }
 0x593   : > { %24069 = vmatprep.mubr.msk.f32.mxu1 %vm562_vm1, %v19076_v27  ;;  %25375 = vmatprep.mubr.msk.f32.mxu0 %vm562_vm1, %v20910_v48  ;;  %v20925_v25 = vld [vmem:[%s27364_s9 + $0x262] sm:$0xff]  ;;  %v19092_v27 = vld [vmem:[%s27364_s9 + $0x798] sm:$0xff] }
 0x594   : > { %v20926_v48 = vld [vmem:[%s27364_s9 + $0x272] sm:$0xff] }
 0x595   : > { %v30657_v28 = vpop.f32.mrb[18].mxu1 }
 0x596   : > { %v30659_v56 = vpop.f32.mrb[19].mxu1  ;;  %24070 = vmatmul.mubr.msk.f32.gmra.mrb[124].mxu1 %vm562_vm1, %v19077_v29  ;;  %25376 = vmatmul.mubr.msk.f32.gmra.mrb[28].mxu0 %vm562_vm1, %v20911_v36 }
 0x597   : > { %24072 = vmatprep.mubr.msk.f32.mxu1 %vm562_vm1, %v19078_v12  ;;  %25378 = vmatprep.mubr.msk.f32.mxu0 %vm562_vm1, %v20912_v43  ;;  %v19093_v12 = vld [vmem:[%s27364_s9 + $0x7a0] sm:$0xff] }
 0x598   : > { %v20927_v43 = vld [vmem:[%s27364_s9 + $0x27a] sm:$0xff] }
 0x599   : > { %v30669_v44 = vpop.f32.mrb[20].mxu1 }
 0x59a   : > { %v30671_v46 = vpop.f32.mrb[21].mxu1  ;;  %24073 = vmatmul.mubr.msk.f32.gmra.mrb[126].mxu1 %vm562_vm1, %v19079_v50  ;;  %25379 = vmatmul.mubr.msk.f32.gmra.mrb[30].mxu0 %vm562_vm1, %v20913_v4  ;;  %v19094_v50 = vld [vmem:[%s27364_s9 + $0x7b0] sm:$0xff] }
 0x59b   : > { %24075 = vmatprep.mubr.msk.f32.mxu1 %vm562_vm1, %v19080_v39  ;;  %25381 = vmatprep.mubr.msk.f32.mxu0 %vm562_vm1, %v20914_v41  ;;  %v20928_v4 = vld [vmem:[%s27364_s9 + $0x28a] sm:$0xff] }
 0x59d   : > { %v30681_v2 = vpop.f32.mrb[22].mxu1 }
 0x59e   : > { %v30683_v6 = vpop.f32.mrb[23].mxu1  ;;  %24076 = vmatmul.mubr.msk.f32.gmra.mrb[128].mxu1 %vm562_vm1, %v19081_v54  ;;  %25382 = vmatmul.mubr.msk.f32.gmra.mrb[32].mxu0 %vm562_vm1, %v20915_v42  ;;  %v19095_v54 = vld [vmem:[%s27364_s9 + $0x7b8] sm:$0xff] }
 0x59f   : > { %24078 = vmatprep.mubr.msk.f32.mxu1 %vm562_vm1, %v19082_v59  ;;  %25384 = vmatprep.mubr.msk.f32.mxu0 %vm562_vm1, %v20916_v55  ;;  %v20929_v42 = vld [vmem:[%s27364_s9 + $0x292] sm:$0xff] }
 0x5a0   : > { %v19096_v59 = vld [vmem:[%s27364_s9 + $0x7f8] sm:$0xff] }
 0x5a1   : > { %v30693_v60 = vpop.f32.mrb[24].mxu1  ;;  %v20930_v55 = vld [vmem:[%s27364_s9 + $0x2d2] sm:$0xff] }
 0x5a2   : > { %v30695_v61 = vpop.f32.mrb[25].mxu1  ;;  %24079 = vmatmul.mubr.msk.f32.gmra.mrb[130].mxu1 %vm562_vm1, %v19083_v18  ;;  %25385 = vmatmul.mubr.msk.f32.gmra.mrb[34].mxu0 %vm562_vm1, %v20917_v22 }
 0x5a3   : > { %24081 = vmatprep.mubr.msk.f32.mxu1 %vm562_vm1, %v19084_v26  ;;  %25387 = vmatprep.mubr.msk.f32.mxu0 %vm562_vm1, %v20918_v30  ;;  %v19097_v26 = vld [vmem:[%s27364_s9 + $0x800] sm:$0xff] }
 0x5a4   : > { %v20931_v30 = vld [vmem:[%s27364_s9 + $0x2da] sm:$0xff] }
 0x5a5   : > { %v30705_v7 = vpop.f32.mrb[26].mxu1 }
 0x5a6   : > { %v30707_v9 = vpop.f32.mrb[27].mxu1  ;;  %24082 = vmatmul.mubr.msk.f32.gmra.mrb[132].mxu1 %vm562_vm1, %v19085_v34  ;;  %25388 = vmatmul.mubr.msk.f32.gmra.mrb[36].mxu0 %vm562_vm1, %v20919_v63  ;;  %v19098_v34 = vld [vmem:[%s27364_s9 + $0x810] sm:$0xff] }
 0x5a7   : > { %24084 = vmatprep.mubr.msk.f32.mxu1 %vm562_vm1, %v19086_v3  ;;  %25390 = vmatprep.mubr.msk.f32.mxu0 %vm562_vm1, %v20920_v5  ;;  %v20932_v63 = vld [vmem:[%s27364_s9 + $0x2ea] sm:$0xff] }
 0x5a9   : > { %v30717_v24 = vpop.f32.mrb[28].mxu1 }
 0x5aa   : > { %v30719_v31 = vpop.f32.mrb[29].mxu1  ;;  %24085 = vmatmul.mubr.msk.f32.gmra.mrb[134].mxu1 %vm562_vm1, %v19087_v57  ;;  %25391 = vmatmul.mubr.msk.f32.gmra.mrb[38].mxu0 %vm562_vm1, %v20921_v0  ;;  %v19099_v57 = vld [vmem:[%s27364_s9 + $0x818] sm:$0xff] }
 0x5ab   : > { %24087 = vmatprep.mubr.msk.f32.mxu1 %vm562_vm1, %v19088_v32  ;;  %25393 = vmatprep.mubr.msk.f32.mxu0 %vm562_vm1, %v20922_v8  ;;  %v20933_v0 = vld [vmem:[%s27364_s9 + $0x2f2] sm:$0xff]  ;;  %v19100_v32 = vld [vmem:[%s27364_s9 + $0x828] sm:$0xff] }
 0x5ac   : > { %v20934_v8 = vld [vmem:[%s27364_s9 + $0x302] sm:$0xff] }
 0x5ad   : > { %v30729_v45 = vpop.f32.mrb[30].mxu1 }
 0x5ae   : > { %v30731_v15 = vpop.f32.mrb[31].mxu1  ;;  %24088 = vmatmul.mubr.msk.f32.gmra.mrb[136].mxu1 %vm562_vm1, %v19089_v35  ;;  %25394 = vmatmul.mubr.msk.f32.gmra.mrb[40].mxu0 %vm562_vm1, %v20923_v38 }
 0x5af   : > { %24090 = vmatprep.mubr.msk.f32.mxu1 %vm562_vm1, %v19090_v13  ;;  %25396 = vmatprep.mubr.msk.f32.mxu0 %vm562_vm1, %v20924_v40  ;;  %v19101_v13 = vld [vmem:[%s27364_s9 + $0x830] sm:$0xff] }
 0x5b0   : > { %v20935_v40 = vld [vmem:[%s27364_s9 + $0x30a] sm:$0xff] }
 0x5b1   : > { %v30741_v29 = vpop.f32.mrb[32].mxu1 }
 0x5b2   : > { %v30743_v36 = vpop.f32.mrb[33].mxu1  ;;  %24091 = vmatmul.mubr.msk.f32.gmra.mrb[138].mxu1 %vm562_vm1, %v19091_v21  ;;  %25397 = vmatmul.mubr.msk.f32.gmra.mrb[42].mxu0 %vm562_vm1, %v20925_v25  ;;  %v19102_v21 = vld [vmem:[%s27364_s9 + $0x840] sm:$0xff] }
 0x5b3   : > { %24093 = vmatprep.mubr.msk.f32.mxu1 %vm562_vm1, %v19092_v27  ;;  %25399 = vmatprep.mubr.msk.f32.mxu0 %vm562_vm1, %v20926_v48  ;;  %v20936_v25 = vld [vmem:[%s27364_s9 + $0x31a] sm:$0xff] }
 0x5b5   : > { %v30753_v39 = vpop.f32.mrb[34].mxu1 }
 0x5b6   : > { %v30755_v41 = vpop.f32.mrb[35].mxu1  ;;  %24094 = vmatmul.mubr.msk.f32.gmra.mrb[140].mxu1 %vm562_vm1, %v19093_v12  ;;  %25400 = vmatmul.mubr.msk.f32.gmra.mrb[44].mxu0 %vm562_vm1, %v20927_v43  ;;  %v19103_v12 = vld [vmem:[%s27364_s9 + $0x848] sm:$0xff] }
 0x5b7   : > { %24096 = vmatprep.mubr.msk.f32.mxu1 %vm562_vm1, %v19094_v50  ;;  %25402 = vmatprep.mubr.msk.f32.mxu0 %vm562_vm1, %v20928_v4  ;;  %v20937_v43 = vld [vmem:[%s27364_s9 + $0x322] sm:$0xff]  ;;  %v19104_v50 = vld [vmem:[%s27364_s9 + $0x858] sm:$0xff] }
 0x5b8   : > { %v20938_v4 = vld [vmem:[%s27364_s9 + $0x332] sm:$0xff] }
 0x5b9   : > { %v30765_v18 = vpop.f32.mrb[36].mxu1 }
 0x5ba   : > { %v30767_v22 = vpop.f32.mrb[37].mxu1  ;;  %24097 = vmatmul.mubr.msk.f32.gmra.mrb[142].mxu1 %vm562_vm1, %v19095_v54  ;;  %25403 = vmatmul.mubr.msk.f32.gmra.mrb[46].mxu0 %vm562_vm1, %v20929_v42 }
 0x5bb   : > { %24099 = vmatprep.mubr.msk.f32.mxu1 %vm562_vm1, %v19096_v59  ;;  %25405 = vmatprep.mubr.msk.f32.mxu0 %vm562_vm1, %v20930_v55  ;;  %v19105_v59 = vld [vmem:[%s27364_s9 + $0x860] sm:$0xff] }
 0x5bc   : > { %v20939_v55 = vld [vmem:[%s27364_s9 + $0x33a] sm:$0xff] }
 0x5bd   : > { %v30777_v3 = vpop.f32.mrb[38].mxu1 }
 0x5be   : > { %v30779_v5 = vpop.f32.mrb[39].mxu1  ;;  %24100 = vmatmul.mubr.msk.f32.gmra.mrb[144].mxu1 %vm562_vm1, %v19097_v26  ;;  %25406 = vmatmul.mubr.msk.f32.gmra.mrb[48].mxu0 %vm562_vm1, %v20931_v30  ;;  %v19106_v26 = vld [vmem:[%s27364_s9 + $0x870] sm:$0xff] }
 0x5bf   : > { %24102 = vmatprep.mubr.msk.f32.mxu1 %vm562_vm1, %v19098_v34  ;;  %25408 = vmatprep.mubr.msk.f32.mxu0 %vm562_vm1, %v20932_v63  ;;  %v20940_v30 = vld [vmem:[%s27364_s9 + $0x34a] sm:$0xff] }
 0x5c1   : > { %v30789_v35 = vpop.f32.mrb[40].mxu1 }
 0x5c2   : > { %v30791_v38 = vpop.f32.mrb[41].mxu1  ;;  %24103 = vmatmul.mubr.msk.f32.gmra.mrb[146].mxu1 %vm562_vm1, %v19099_v57  ;;  %25409 = vmatmul.mubr.msk.f32.gmra.mrb[50].mxu0 %vm562_vm1, %v20933_v0  ;;  %v19107_v57 = vld [vmem:[%s27364_s9 + $0x878] sm:$0xff] }
 0x5c3   : > { %24105 = vmatprep.mubr.msk.f32.mxu1 %vm562_vm1, %v19100_v32  ;;  %25411 = vmatprep.mubr.msk.f32.mxu0 %vm562_vm1, %v20934_v8  ;;  %v20941_v0 = vld [vmem:[%s27364_s9 + $0x352] sm:$0xff]  ;;  %v19108_v32 = vld [vmem:[%s27364_s9 + $0x888] sm:$0xff] }
 0x5c4   : > { %v20942_v8 = vld [vmem:[%s27364_s9 + $0x362] sm:$0xff] }
 0x5c5   : > { %v30801_v27 = vpop.f32.mrb[42].mxu1 }
 0x5c6   : > { %v30803_v48 = vpop.f32.mrb[43].mxu1  ;;  %24106 = vmatmul.mubr.msk.f32.gmra.mrb[148].mxu1 %vm562_vm1, %v19101_v13  ;;  %25412 = vmatmul.mubr.msk.f32.gmra.mrb[52].mxu0 %vm562_vm1, %v20935_v40 }
 0x5c7   : > { %24108 = vmatprep.mubr.msk.f32.mxu1 %vm562_vm1, %v19102_v21  ;;  %25414 = vmatprep.mubr.msk.f32.mxu0 %vm562_vm1, %v20936_v25  ;;  %v19109_v21 = vld [vmem:[%s27364_s9 + $0x890] sm:$0xff] }
 0x5c8   : > { %v20943_v25 = vld [vmem:[%s27364_s9 + $0x36a] sm:$0xff] }
 0x5c9   : > { %v30813_v54 = vpop.f32.mrb[44].mxu1 }
 0x5ca   : > { %v30815_v42 = vpop.f32.mrb[45].mxu1  ;;  %24109 = vmatmul.mubr.msk.f32.gmra.mrb[150].mxu1 %vm562_vm1, %v19103_v12  ;;  %25415 = vmatmul.mubr.msk.f32.gmra.mrb[54].mxu0 %vm562_vm1, %v20937_v43  ;;  %v19110_v12 = vld [vmem:[%s27364_s9 + $0x8a0] sm:$0xff] }
 0x5cb   : > { %24111 = vmatprep.mubr.msk.f32.mxu1 %vm562_vm1, %v19104_v50  ;;  %25417 = vmatprep.mubr.msk.f32.mxu0 %vm562_vm1, %v20938_v4  ;;  %v20944_v43 = vld [vmem:[%s27364_s9 + $0x37a] sm:$0xff] }
 0x5cd   : > { %v30825_v34 = vpop.f32.mrb[46].mxu1 }
 0x5ce   : > { %v30827_v63 = vpop.f32.mrb[47].mxu1  ;;  %24112 = vmatmul.mubr.msk.f32.gmra.mrb[152].mxu1 %vm562_vm1, %v19105_v59  ;;  %25418 = vmatmul.mubr.msk.f32.gmra.mrb[56].mxu0 %vm562_vm1, %v20939_v55  ;;  %v19111_v59 = vld [vmem:[%s27364_s9 + $0x8a8] sm:$0xff] }
 0x5cf   : > { %24114 = vmatprep.mubr.msk.f32.mxu1 %vm562_vm1, %v19106_v26  ;;  %25420 = vmatprep.mubr.msk.f32.mxu0 %vm562_vm1, %v20940_v30  ;;  %v20945_v55 = vld [vmem:[%s27364_s9 + $0x382] sm:$0xff]  ;;  %v19112_v26 = vld [vmem:[%s27364_s9 + $0x8b8] sm:$0xff] }
 0x5d0   : > { %v20946_v30 = vld [vmem:[%s27364_s9 + $0x392] sm:$0xff] }
 0x5d1   : > { %v30837_v13 = vpop.f32.mrb[48].mxu1 }
 0x5d2   : > { %v30839_v40 = vpop.f32.mrb[49].mxu1  ;;  %24115 = vmatmul.mubr.msk.f32.gmra.mrb[154].mxu1 %vm562_vm1, %v19107_v57  ;;  %25421 = vmatmul.mubr.msk.f32.gmra.mrb[58].mxu0 %vm562_vm1, %v20941_v0 }
 0x5d3   : > { %24117 = vmatprep.mubr.msk.f32.mxu1 %vm562_vm1, %v19108_v32  ;;  %25423 = vmatprep.mubr.msk.f32.mxu0 %vm562_vm1, %v20942_v8  ;;  %v19113_v32 = vld [vmem:[%s27364_s9 + $0x8c0] sm:$0xff] }
 0x5d4   : > { %v20947_v8 = vld [vmem:[%s27364_s9 + $0x39a] sm:$0xff] }
 0x5d5   : > { %v30849_v50 = vpop.f32.mrb[50].mxu1 }
 0x5d6   : > { %32343 = vst [vmem:[#allocation24_spill] sm:$0xff] %v30849_v50  ;;  %v30851_v4 = vpop.f32.mrb[51].mxu1  ;;  %24118 = vmatmul.mubr.msk.f32.gmra.mrb[156].mxu1 %vm562_vm1, %v19109_v21  ;;  %25424 = vmatmul.mubr.msk.f32.gmra.mrb[60].mxu0 %vm562_vm1, %v20943_v25  ;;  %v19114_v21 = vld [vmem:[%s27364_s9 + $0x8d0] sm:$0xff]  ;;  %v20992_v50 = vld [vmem:[%s27364_s9 + $0x61a] sm:$0xff] }
 0x5d7   : > { %32344 = vst [vmem:[#allocation25_spill] sm:$0xff] %v30851_v4  ;;  %24120 = vmatprep.mubr.msk.f32.mxu1 %vm562_vm1, %v19110_v12  ;;  %25426 = vmatprep.mubr.msk.f32.mxu0 %vm562_vm1, %v20944_v43  ;;  %v20948_v25 = vld [vmem:[%s27364_s9 + $0x3aa] sm:$0xff]  ;;  %v19448_v4 = vld [vmem:[%s27364_s9 + $0x601] sm:$0xff] }
 0x5d9   : > { %v30861_v57 = vpop.f32.mrb[52].mxu1 }
 0x5da   : > { %32345 = vst [vmem:[#allocation26_spill] sm:$0xff] %v30861_v57  ;;  %v30863_v0 = vpop.f32.mrb[53].mxu1  ;;  %24121 = vmatmul.mubr.msk.f32.gmra.mrb[158].mxu1 %vm562_vm1, %v19111_v59  ;;  %25427 = vmatmul.mubr.msk.f32.gmra.mrb[62].mxu0 %vm562_vm1, %v20945_v55  ;;  %v19115_v59 = vld [vmem:[%s27364_s9 + $0x8d8] sm:$0xff] }
 0x5db   : > { %32346 = vst [vmem:[#allocation27_spill] sm:$0xff] %v30863_v0  ;;  %24123 = vmatprep.mubr.msk.f32.mxu1 %vm562_vm1, %v19112_v26  ;;  %25429 = vmatprep.mubr.msk.f32.mxu0 %vm562_vm1, %v20946_v30  ;;  %v20949_v55 = vld [vmem:[%s27364_s9 + $0x3b2] sm:$0xff]  ;;  %v19116_v26 = vld [vmem:[%s27364_s9 + $0x8e8] sm:$0xff] }
 0x5dc   : > { %v20950_v30 = vld [vmem:[%s27364_s9 + $0x3c2] sm:$0xff] }
 0x5dd   : > { %v30873_v12 = vpop.f32.mrb[54].mxu1 }
 0x5de   : > { %32347 = vst [vmem:[#allocation5_spill] sm:$0xff] %v30873_v12  ;;  %v30875_v43 = vpop.f32.mrb[55].mxu1  ;;  %24124 = vmatmul.mubr.msk.f32.gmra.mrb[160].mxu1 %vm562_vm1, %v19113_v32  ;;  %25430 = vmatmul.mubr.msk.f32.gmra.mrb[64].mxu0 %vm562_vm1, %v20947_v8  ;;  %v19117_v32 = vld [vmem:[%s27364_s9 + $0x8f0] sm:$0xff] }
 0x5df   : > { %32348 = vst [vmem:[#allocation6_spill] sm:$0xff] %v30875_v43  ;;  %24126 = vmatprep.mubr.msk.f32.mxu1 %vm562_vm1, %v19114_v21  ;;  %25432 = vmatprep.mubr.msk.f32.mxu0 %vm562_vm1, %v20948_v25  ;;  %v20951_v8 = vld [vmem:[%s27364_s9 + $0x3ca] sm:$0xff]  ;;  %v19118_v21 = vld [vmem:[%s27364_s9 + $0x900] sm:$0xff] }
 0x5e0   : > { %v20952_v25 = vld [vmem:[%s27364_s9 + $0x3da] sm:$0xff] }
 0x5e1   : > { %v30885_v0 = vpop.f32.mrb[56].mxu1 }
 0x5e2   : > { %32349 = vst [vmem:[#allocation7_spill] sm:$0xff] %v30885_v0  ;;  %v30887_v12 = vpop.f32.mrb[57].mxu1  ;;  %24127 = vmatmul.mubr.msk.f32.gmra.mrb[162].mxu1 %vm562_vm1, %v19115_v59  ;;  %25433 = vmatmul.mubr.msk.f32.gmra.mrb[66].mxu0 %vm562_vm1, %v20949_v55  ;;  %v19119_v59 = vld [vmem:[%s27364_s9 + $0x908] sm:$0xff] }
 0x5e3   : > { %32350 = vst [vmem:[#allocation8_spill] sm:$0xff] %v30887_v12  ;;  %24129 = vmatprep.mubr.msk.f32.mxu1 %vm562_vm1, %v19116_v26  ;;  %25435 = vmatprep.mubr.msk.f32.mxu0 %vm562_vm1, %v20950_v30  ;;  %v20953_v55 = vld [vmem:[%s27364_s9 + $0x3e2] sm:$0xff] }
 0x5e4   : > { %v19120_v26 = vld [vmem:[%s27364_s9 + $0x948] sm:$0xff] }
 0x5e5   : > { %v30897_v43 = vpop.f32.mrb[58].mxu1  ;;  %v20954_v30 = vld [vmem:[%s27364_s9 + $0x422] sm:$0xff] }
 0x5e6   : > { %32351 = vst [vmem:[#allocation9_spill] sm:$0xff] %v30897_v43  ;;  %v30899_v0 = vpop.f32.mrb[59].mxu1  ;;  %24130 = vmatmul.mubr.msk.f32.gmra.mrb[164].mxu1 %vm562_vm1, %v19117_v32  ;;  %25436 = vmatmul.mubr.msk.f32.gmra.mrb[68].mxu0 %vm562_vm1, %v20951_v8  ;;  %v19121_v32 = vld [vmem:[%s27364_s9 + $0x950] sm:$0xff] }
 0x5e7   : > { %32352 = vst [vmem:[#allocation28_spill] sm:$0xff] %v30899_v0  ;;  %24132 = vmatprep.mubr.msk.f32.mxu1 %vm562_vm1, %v19118_v21  ;;  %25438 = vmatprep.mubr.msk.f32.mxu0 %vm562_vm1, %v20952_v25  ;;  %v20955_v8 = vld [vmem:[%s27364_s9 + $0x42a] sm:$0xff]  ;;  %v19122_v21 = vld [vmem:[%s27364_s9 + $0x960] sm:$0xff] }
 0x5e8   : > { %v20956_v25 = vld [vmem:[%s27364_s9 + $0x43a] sm:$0xff] }
 0x5e9   : > { %v30909_v12 = vpop.f32.mrb[60].mxu1 }
 0x5ea   : > { %32353 = vst [vmem:[#allocation29_spill] sm:$0xff] %v30909_v12  ;;  %v30911_v43 = vpop.f32.mrb[61].mxu1  ;;  %24133 = vmatmul.mubr.msk.f32.gmra.mrb[166].mxu1 %vm562_vm1, %v19119_v59  ;;  %25439 = vmatmul.mubr.msk.f32.gmra.mrb[70].mxu0 %vm562_vm1, %v20953_v55  ;;  %v19123_v59 = vld [vmem:[%s27364_s9 + $0x968] sm:$0xff] }
 0x5eb   : > { %32354 = vst [vmem:[#allocation10_spill] sm:$0xff] %v30911_v43  ;;  %24135 = vmatprep.mubr.msk.f32.mxu1 %vm562_vm1, %v19120_v26  ;;  %25441 = vmatprep.mubr.msk.f32.mxu0 %vm562_vm1, %v20954_v30  ;;  %v20957_v55 = vld [vmem:[%s27364_s9 + $0x442] sm:$0xff]  ;;  %v19124_v26 = vld [vmem:[%s27364_s9 + $0x978] sm:$0xff] }
 0x5ec   : > { %v20958_v30 = vld [vmem:[%s27364_s9 + $0x452] sm:$0xff] }
 0x5ed   : > { %v30921_v0 = vpop.f32.mrb[62].mxu1 }
 0x5ee   : > { %32355 = vst [vmem:[#allocation11_spill] sm:$0xff] %v30921_v0  ;;  %v30923_v12 = vpop.f32.mrb[63].mxu1  ;;  %24136 = vmatmul.mubr.msk.f32.gmra.mrb[168].mxu1 %vm562_vm1, %v19121_v32  ;;  %25442 = vmatmul.mubr.msk.f32.gmra.mrb[72].mxu0 %vm562_vm1, %v20955_v8  ;;  %v19125_v32 = vld [vmem:[%s27364_s9 + $0x980] sm:$0xff] }
 0x5ef   : > { %32356 = vst [vmem:[#allocation12_spill] sm:$0xff] %v30923_v12  ;;  %24138 = vmatprep.mubr.msk.f32.mxu1 %vm562_vm1, %v19122_v21  ;;  %25444 = vmatprep.mubr.msk.f32.mxu0 %vm562_vm1, %v20956_v25  ;;  %v20959_v8 = vld [vmem:[%s27364_s9 + $0x45a] sm:$0xff]  ;;  %v19126_v21 = vld [vmem:[%s27364_s9 + $0x990] sm:$0xff] }
 0x5f0   : > { %v20960_v25 = vld [vmem:[%s27364_s9 + $0x46a] sm:$0xff] }
 0x5f1   : > { %v30933_v43 = vpop.f32.mrb[64].mxu1 }
 0x5f2   : > { %32357 = vst [vmem:[#allocation13_spill] sm:$0xff] %v30933_v43  ;;  %v30935_v0 = vpop.f32.mrb[65].mxu1  ;;  %24139 = vmatmul.mubr.msk.f32.gmra.mrb[170].mxu1 %vm562_vm1, %v19123_v59  ;;  %25445 = vmatmul.mubr.msk.f32.gmra.mrb[74].mxu0 %vm562_vm1, %v20957_v55  ;;  %v19127_v59 = vld [vmem:[%s27364_s9 + $0x998] sm:$0xff] }
 0x5f3   : > { %32358 = vst [vmem:[#allocation14_spill] sm:$0xff] %v30935_v0  ;;  %24141 = vmatprep.mubr.msk.f32.mxu1 %vm562_vm1, %v19124_v26  ;;  %25447 = vmatprep.mubr.msk.f32.mxu0 %vm562_vm1, %v20958_v30  ;;  %v20961_v55 = vld [vmem:[%s27364_s9 + $0x472] sm:$0xff]  ;;  %v19128_v26 = vld [vmem:[%s27364_s9 + $0x9a8] sm:$0xff] }
 0x5f4   : > { %v20962_v30 = vld [vmem:[%s27364_s9 + $0x482] sm:$0xff] }
 0x5f5   : > { %v30945_v12 = vpop.f32.mrb[66].mxu1 }
 0x5f6   : > { %32359 = vst [vmem:[#allocation15_spill] sm:$0xff] %v30945_v12  ;;  %v30947_v43 = vpop.f32.mrb[67].mxu1  ;;  %24142 = vmatmul.mubr.msk.f32.gmra.mrb[172].mxu1 %vm562_vm1, %v19125_v32  ;;  %25448 = vmatmul.mubr.msk.f32.gmra.mrb[76].mxu0 %vm562_vm1, %v20959_v8  ;;  %v19129_v32 = vld [vmem:[%s27364_s9 + $0x9b0] sm:$0xff] }
 0x5f7   : > { %32360 = vst [vmem:[#allocation16_spill] sm:$0xff] %v30947_v43  ;;  %24144 = vmatprep.mubr.msk.f32.mxu1 %vm562_vm1, %v19126_v21  ;;  %25450 = vmatprep.mubr.msk.f32.mxu0 %vm562_vm1, %v20960_v25  ;;  %v20963_v8 = vld [vmem:[%s27364_s9 + $0x48a] sm:$0xff]  ;;  %v19130_v21 = vld [vmem:[%s27364_s9 + $0x9c0] sm:$0xff] }
 0x5f8   : > { %v20964_v25 = vld [vmem:[%s27364_s9 + $0x49a] sm:$0xff] }
 0x5f9   : > { %v30957_v0 = vpop.f32.mrb[68].mxu1 }
 0x5fa   : > { %32361 = vst [vmem:[#allocation17_spill] sm:$0xff] %v30957_v0  ;;  %v30959_v12 = vpop.f32.mrb[69].mxu1  ;;  %24145 = vmatmul.mubr.msk.f32.gmra.mrb[174].mxu1 %vm562_vm1, %v19127_v59  ;;  %25451 = vmatmul.mubr.msk.f32.gmra.mrb[78].mxu0 %vm562_vm1, %v20961_v55  ;;  %v19131_v59 = vld [vmem:[%s27364_s9 + $0x9c8] sm:$0xff] }
 0x5fb   : > { %32362 = vst [vmem:[#allocation18_spill] sm:$0xff] %v30959_v12  ;;  %24147 = vmatprep.mubr.msk.f32.mxu1 %vm562_vm1, %v19128_v26  ;;  %25453 = vmatprep.mubr.msk.f32.mxu0 %vm562_vm1, %v20962_v30  ;;  %v20965_v55 = vld [vmem:[%s27364_s9 + $0x4a2] sm:$0xff]  ;;  %v19132_v26 = vld [vmem:[%s27364_s9 + $0x9d8] sm:$0xff] }
 0x5fc   : > { %v20966_v30 = vld [vmem:[%s27364_s9 + $0x4b2] sm:$0xff] }
 0x5fd   : > { %v30969_v43 = vpop.f32.mrb[70].mxu1 }
 0x5fe   : > { %32363 = vst [vmem:[#allocation19_spill] sm:$0xff] %v30969_v43  ;;  %v30971_v0 = vpop.f32.mrb[71].mxu1  ;;  %24148 = vmatmul.mubr.msk.f32.gmra.mrb[176].mxu1 %vm562_vm1, %v19129_v32  ;;  %25454 = vmatmul.mubr.msk.f32.gmra.mrb[80].mxu0 %vm562_vm1, %v20963_v8  ;;  %v19133_v32 = vld [vmem:[%s27364_s9 + $0x9e0] sm:$0xff] }
 0x5ff   : > { %32364 = vst [vmem:[#allocation20_spill] sm:$0xff] %v30971_v0  ;;  %24150 = vmatprep.mubr.msk.f32.mxu1 %vm562_vm1, %v19130_v21  ;;  %25456 = vmatprep.mubr.msk.f32.mxu0 %vm562_vm1, %v20964_v25  ;;  %v20967_v8 = vld [vmem:[%s27364_s9 + $0x4ba] sm:$0xff]  ;;  %v19134_v21 = vld [vmem:[%s27364_s9 + $0x9f0] sm:$0xff] }
 0x600   : > { %v20968_v25 = vld [vmem:[%s27364_s9 + $0x4ca] sm:$0xff] }
 0x601   : > { %v30981_v12 = vpop.f32.mrb[72].mxu1 }
 0x602   : > { %32365 = vst [vmem:[#allocation21_spill] sm:$0xff] %v30981_v12  ;;  %v30983_v43 = vpop.f32.mrb[73].mxu1  ;;  %24151 = vmatmul.mubr.msk.f32.gmra.mrb[178].mxu1 %vm562_vm1, %v19131_v59  ;;  %25457 = vmatmul.mubr.msk.f32.gmra.mrb[82].mxu0 %vm562_vm1, %v20965_v55  ;;  %v19135_v59 = vld [vmem:[%s27364_s9 + $0x9f8] sm:$0xff] }
 0x603   : > { %32366 = vst [vmem:[#allocation22_spill] sm:$0xff] %v30983_v43  ;;  %24153 = vmatprep.mubr.msk.f32.mxu1 %vm562_vm1, %v19132_v26  ;;  %25459 = vmatprep.mubr.msk.f32.mxu0 %vm562_vm1, %v20966_v30  ;;  %v20969_v55 = vld [vmem:[%s27364_s9 + $0x4d2] sm:$0xff]  ;;  %v19136_v26 = vld [vmem:[%s27364_s9 + $0xa08] sm:$0xff] }
 0x604   : > { %v20970_v30 = vld [vmem:[%s27364_s9 + $0x4e2] sm:$0xff] }
 0x605   : > { %v30993_v0 = vpop.f32.mrb[74].mxu1 }
 0x606   : > { %32367 = vst [vmem:[#allocation23_spill] sm:$0xff] %v30993_v0  ;;  %v30995_v12 = vpop.f32.mrb[75].mxu1  ;;  %24154 = vmatmul.mubr.msk.f32.gmra.mrb[180].mxu1 %vm562_vm1, %v19133_v32  ;;  %25460 = vmatmul.mubr.msk.f32.gmra.mrb[84].mxu0 %vm562_vm1, %v20967_v8  ;;  %v19137_v32 = vld [vmem:[%s27364_s9 + $0xa10] sm:$0xff] }
 0x607   : > { %32368 = vst [vmem:[#allocation30_spill] sm:$0xff] %v30995_v12  ;;  %24156 = vmatprep.mubr.msk.f32.mxu1 %vm562_vm1, %v19134_v21  ;;  %25462 = vmatprep.mubr.msk.f32.mxu0 %vm562_vm1, %v20968_v25  ;;  %v20971_v8 = vld [vmem:[%s27364_s9 + $0x4ea] sm:$0xff]  ;;  %v19138_v21 = vld [vmem:[%s27364_s9 + $0xa20] sm:$0xff] }
 0x608   : > { %v20972_v25 = vld [vmem:[%s27364_s9 + $0x4fa] sm:$0xff] }
 0x609   : > { %v31005_v43 = vpop.f32.mrb[76].mxu1 }
 0x60a   : > { %32369 = vst [vmem:[#allocation31_spill] sm:$0xff] %v31005_v43  ;;  %v31007_v0 = vpop.f32.mrb[77].mxu1  ;;  %24157 = vmatmul.mubr.msk.f32.gmra.mrb[182].mxu1 %vm562_vm1, %v19135_v59  ;;  %25463 = vmatmul.mubr.msk.f32.gmra.mrb[86].mxu0 %vm562_vm1, %v20969_v55  ;;  %v19139_v59 = vld [vmem:[%s27364_s9 + $0xa28] sm:$0xff] }
 0x60b   : > { %32370 = vst [vmem:[#allocation32_spill] sm:$0xff] %v31007_v0  ;;  %24159 = vmatprep.mubr.msk.f32.mxu1 %vm562_vm1, %v19136_v26  ;;  %25465 = vmatprep.mubr.msk.f32.mxu0 %vm562_vm1, %v20970_v30  ;;  %v20973_v55 = vld [vmem:[%s27364_s9 + $0x502] sm:$0xff]  ;;  %v19140_v26 = vld [vmem:[%s27364_s9 + $0xa38] sm:$0xff] }
 0x60c   : > { %v20974_v30 = vld [vmem:[%s27364_s9 + $0x512] sm:$0xff] }
 0x60d   : > { %v31017_v12 = vpop.f32.mrb[78].mxu1 }
 0x60e   : > { %32371 = vst [vmem:[#allocation33_spill] sm:$0xff] %v31017_v12  ;;  %v31019_v43 = vpop.f32.mrb[79].mxu1  ;;  %24160 = vmatmul.mubr.msk.f32.gmra.mrb[184].mxu1 %vm562_vm1, %v19137_v32  ;;  %25466 = vmatmul.mubr.msk.f32.gmra.mrb[88].mxu0 %vm562_vm1, %v20971_v8  ;;  %v19141_v32 = vld [vmem:[%s27364_s9 + $0xa40] sm:$0xff] }
 0x60f   : > { %32372 = vst [vmem:[#allocation34_spill] sm:$0xff] %v31019_v43  ;;  %24162 = vmatprep.mubr.msk.f32.mxu1 %vm562_vm1, %v19138_v21  ;;  %25468 = vmatprep.mubr.msk.f32.mxu0 %vm562_vm1, %v20972_v25  ;;  %v20975_v8 = vld [vmem:[%s27364_s9 + $0x51a] sm:$0xff]  ;;  %v19142_v21 = vld [vmem:[%s27364_s9 + $0xa50] sm:$0xff] }
 0x610   : > { %v20976_v25 = vld [vmem:[%s27364_s9 + $0x52a] sm:$0xff] }
 0x611   : > { %v31029_v0 = vpop.f32.mrb[80].mxu1 }
 0x612   : > { %32373 = vst [vmem:[#allocation35_spill] sm:$0xff] %v31029_v0  ;;  %v31031_v12 = vpop.f32.mrb[81].mxu1  ;;  %24163 = vmatmul.mubr.msk.f32.gmra.mrb[186].mxu1 %vm562_vm1, %v19139_v59  ;;  %25469 = vmatmul.mubr.msk.f32.gmra.mrb[90].mxu0 %vm562_vm1, %v20973_v55  ;;  %v19143_v59 = vld [vmem:[%s27364_s9 + $0xa58] sm:$0xff] }
 0x613   : > { %32374 = vst [vmem:[#allocation36_spill] sm:$0xff] %v31031_v12  ;;  %24165 = vmatprep.mubr.msk.f32.mxu1 %vm562_vm1, %v19140_v26  ;;  %25471 = vmatprep.mubr.msk.f32.mxu0 %vm562_vm1, %v20974_v30  ;;  %v20977_v55 = vld [vmem:[%s27364_s9 + $0x532] sm:$0xff] }
 0x614   : > { %v19434_v26 = vld [vmem:[%s27364_s9 + $0x559] sm:$0xff] }
 0x615   : > { %v31041_v43 = vpop.f32.mrb[82].mxu1  ;;  %v20978_v30 = vld [vmem:[%s27364_s9 + $0x572] sm:$0xff] }
 0x616   : > { %32375 = vst [vmem:[#allocation37_spill] sm:$0xff] %v31041_v43  ;;  %v31043_v0 = vpop.f32.mrb[83].mxu1  ;;  %24166 = vmatmul.mubr.msk.f32.gmra.mrb[188].mxu1 %vm562_vm1, %v19141_v32  ;;  %25472 = vmatmul.mubr.msk.f32.gmra.mrb[92].mxu0 %vm562_vm1, %v20975_v8  ;;  %v19435_v32 = vld [vmem:[%s27364_s9 + $0x561] sm:$0xff] }
 0x617   : > { %32376 = vst [vmem:[#allocation38_spill] sm:$0xff] %v31043_v0  ;;  %24168 = vmatprep.mubr.msk.f32.mxu1 %vm562_vm1, %v19142_v21  ;;  %25474 = vmatprep.mubr.msk.f32.mxu0 %vm562_vm1, %v20976_v25  ;;  %v20979_v8 = vld [vmem:[%s27364_s9 + $0x57a] sm:$0xff]  ;;  %v19436_v21 = vld [vmem:[%s27364_s9 + $0x571] sm:$0xff] }
 0x618   : > { %v20980_v25 = vld [vmem:[%s27364_s9 + $0x58a] sm:$0xff] }
 0x619   : > { %v31053_v12 = vpop.f32.mrb[84].mxu1 }
 0x61a   : > { %32377 = vst [vmem:[#allocation39_spill] sm:$0xff] %v31053_v12  ;;  %v31055_v43 = vpop.f32.mrb[85].mxu1  ;;  %24169 = vmatmul.mubr.msk.f32.gmra.mrb[190].mxu1 %vm562_vm1, %v19143_v59  ;;  %25475 = vmatmul.mubr.msk.f32.gmra.mrb[94].mxu0 %vm562_vm1, %v20977_v55  ;;  %v19437_v59 = vld [vmem:[%s27364_s9 + $0x579] sm:$0xff] }
 0x61b   : > { %32378 = vst [vmem:[#allocation40_spill] sm:$0xff] %v31055_v43  ;;  %24317 = vmatprep.mubr.msk.f32.mxu1 %vm562_vm1, %v19434_v26  ;;  %25477 = vmatprep.mubr.msk.f32.mxu0 %vm562_vm1, %v20978_v30  ;;  %v20981_v55 = vld [vmem:[%s27364_s9 + $0x592] sm:$0xff]  ;;  %v19438_v26 = vld [vmem:[%s27364_s9 + $0x589] sm:$0xff] }
 0x61c   : > { %v20982_v30 = vld [vmem:[%s27364_s9 + $0x5a2] sm:$0xff] }
 0x61d   : > { %v31065_v0 = vpop.f32.mrb[86].mxu1 }
 0x61e   : > { %32379 = vst [vmem:[#allocation41_spill] sm:$0xff] %v31065_v0  ;;  %v31067_v12 = vpop.f32.mrb[87].mxu1  ;;  %24318 = vmatmul.mubr.msk.f32.vlgmr.msra.gmra.mrb[96].mxu1 %vm562_vm1, %v19435_v32  ;;  %25478 = vmatmul.mubr.msk.f32.gmra.mrb[96].mxu0 %vm562_vm1, %v20979_v8  ;;  %v19439_v32 = vld [vmem:[%s27364_s9 + $0x591] sm:$0xff] }
 0x61f   : > { %32380 = vst [vmem:[#allocation42_spill] sm:$0xff] %v31067_v12  ;;  %24320 = vmatprep.mubr.msk.f32.mxu1 %vm562_vm1, %v19436_v21  ;;  %25480 = vmatprep.mubr.msk.f32.mxu0 %vm562_vm1, %v20980_v25  ;;  %v20983_v8 = vld [vmem:[%s27364_s9 + $0x5aa] sm:$0xff]  ;;  %v19440_v21 = vld [vmem:[%s27364_s9 + $0x5a1] sm:$0xff] }
 0x620   : > { %v20984_v25 = vld [vmem:[%s27364_s9 + $0x5ba] sm:$0xff] }
 0x621   : > { %v31077_v43 = vpop.f32.mrb[88].mxu1 }
 0x622   : > { %32381 = vst [vmem:[#allocation43_spill] sm:$0xff] %v31077_v43  ;;  %v31079_v0 = vpop.f32.mrb[89].mxu1  ;;  %24321 = vmatmul.mubr.msk.f32.gmra.mrb[98].mxu1 %vm562_vm1, %v19437_v59  ;;  %25481 = vmatmul.mubr.msk.f32.gmra.mrb[98].mxu0 %vm562_vm1, %v20981_v55  ;;  %v19441_v59 = vld [vmem:[%s27364_s9 + $0x5a9] sm:$0xff] }
 0x623   : > { %32382 = vst [vmem:[#allocation44_spill] sm:$0xff] %v31079_v0  ;;  %24323 = vmatprep.mubr.msk.f32.mxu1 %vm562_vm1, %v19438_v26  ;;  %25483 = vmatprep.mubr.msk.f32.mxu0 %vm562_vm1, %v20982_v30  ;;  %v20985_v55 = vld [vmem:[%s27364_s9 + $0x5c2] sm:$0xff]  ;;  %v19442_v26 = vld [vmem:[%s27364_s9 + $0x5b9] sm:$0xff] }
 0x624   : > { %v20986_v30 = vld [vmem:[%s27364_s9 + $0x5d2] sm:$0xff] }
 0x625   : > { %v31089_v12 = vpop.f32.mrb[90].mxu1 }
 0x626   : > { %32383 = vst [vmem:[#allocation45_spill] sm:$0xff] %v31089_v12  ;;  %v31091_v43 = vpop.f32.mrb[91].mxu1  ;;  %24324 = vmatmul.mubr.msk.f32.gmra.mrb[100].mxu1 %vm562_vm1, %v19439_v32  ;;  %25484 = vmatmul.mubr.msk.f32.gmra.mrb[100].mxu0 %vm562_vm1, %v20983_v8  ;;  %v19443_v32 = vld [vmem:[%s27364_s9 + $0x5c1] sm:$0xff] }
 0x627   : > { %32384 = vst [vmem:[#allocation46_spill] sm:$0xff] %v31091_v43  ;;  %24326 = vmatprep.mubr.msk.f32.mxu1 %vm562_vm1, %v19440_v21  ;;  %25486 = vmatprep.mubr.msk.f32.mxu0 %vm562_vm1, %v20984_v25  ;;  %v20987_v8 = vld [vmem:[%s27364_s9 + $0x5da] sm:$0xff]  ;;  %v19444_v21 = vld [vmem:[%s27364_s9 + $0x5d1] sm:$0xff] }
 0x628   : > { %v20988_v25 = vld [vmem:[%s27364_s9 + $0x5ea] sm:$0xff] }
 0x629   : > { %v31101_v12 = vpop.f32.mrb[92].mxu1  ;;  %v20991_v43 = vld [vmem:[%s27364_s9 + $0x60a] sm:$0xff] }
 0x62a   : > { %32385 = vst [vmem:[#allocation47_spill] sm:$0xff] %v31101_v12  ;;  %v31103_v0 = vpop.f32.mrb[93].mxu1  ;;  %24327 = vmatmul.mubr.msk.f32.gmra.mrb[102].mxu1 %vm562_vm1, %v19441_v59  ;;  %25487 = vmatmul.mubr.msk.f32.gmra.mrb[102].mxu0 %vm562_vm1, %v20985_v55  ;;  %v19445_v59 = vld [vmem:[%s27364_s9 + $0x5d9] sm:$0xff] }
 0x62b   : > { %32386 = vst [vmem:[#allocation48_spill] sm:$0xff] %v31103_v0  ;;  %24329 = vmatprep.mubr.msk.f32.mxu1 %vm562_vm1, %v19442_v26  ;;  %25489 = vmatprep.mubr.msk.f32.mxu0 %vm562_vm1, %v20986_v30  ;;  %v20989_v55 = vld [vmem:[%s27364_s9 + $0x5f2] sm:$0xff]  ;;  %v19446_v26 = vld [vmem:[%s27364_s9 + $0x5e9] sm:$0xff] }
 0x62c   : > { %v20990_v30 = vld [vmem:[%s27364_s9 + $0x602] sm:$0xff] }
 0x62d   : > { %v31113_v12 = vpop.f32.mrb[94].mxu1 }
 0x62e   : > { %32387 = vst [vmem:[#allocation49_spill] sm:$0xff] %v31113_v12  ;;  %v31115_v0 = vpop.f32.mrb[95].mxu1  ;;  %24330 = vmatmul.mubr.msk.f32.gmra.mrb[104].mxu1 %vm562_vm1, %v19443_v32  ;;  %25490 = vmatmul.mubr.msk.f32.gmra.mrb[104].mxu0 %vm562_vm1, %v20987_v8  ;;  %v31131_v32 = vld [vmem:[%s32207_s2] ss:$0 sm:$0xff]  ;;  %v19447_v12 = vld [vmem:[%s27364_s9 + $0x5f1] sm:$0xff] }
 0x62f   : > { %32388 = vst [vmem:[#allocation50_spill] sm:$0xff] %v31115_v0  ;;  %24332 = vmatprep.mubr.msk.f32.mxu1 %vm562_vm1, %v19444_v21  ;;  %25492 = vmatprep.mubr.msk.f32.mxu0 %vm562_vm1, %v20988_v25 }
 0x631   : > { %v25335_v0 = vpop.f32.mrb[0].mxu0 }
 0x632   : > { %v25623_v8 = vadd.f32 %v25335_v0, %v30549_v58  ;;  %24333 = vmatmul.mubr.msk.f32.gmra.mrb[106].mxu1 %vm562_vm1, %v19445_v59  ;;  %v16553_v21 = vpop.f32.mrb[1].mxu0  ;;  %25493 = vmatmul.mubr.msk.f32.gmra.mrb[106].mxu0 %vm562_vm1, %v20989_v55 }
 0x633   : > { %v25624_v25 = vadd.f32 %v16553_v21, %v30551_v62  ;;  %24335 = vmatprep.mubr.msk.f32.mxu1 %vm562_vm1, %v19446_v26  ;;  %25495 = vmatprep.mubr.msk.f32.mxu0 %vm562_vm1, %v20990_v30  ;;  %v20993_v21 = vld [vmem:[%s27364_s9 + $0x622] sm:$0xff] }
 0x634   : > { %v17712_v57 = vadd.f32 %v25623_v8, %v31131_v32  ;;  %v19449_v8 = vld [vmem:[%s27364_s9 + $0x609] sm:$0xff] }
 0x635   : > { %v17711_v58 = vadd.f32 %v25624_v25, %v31131_v32  ;;  %v25338_v0 = vpop.f32.mrb[2].mxu0 }
 0x636   : > { %v17904_v59 = vmax.f32 %v17712_v57, 0.0  ;;  %v25625_v62 = vadd.f32 %v25338_v0, %v30561_v10  ;;  %24336 = vmatmul.mubr.msk.f32.gmra.mrb[108].mxu1 %vm562_vm1, %v19447_v12  ;;  %v16563_v55 = vpop.f32.mrb[3].mxu0  ;;  %25496 = vmatmul.mubr.msk.f32.gmra.mrb[108].mxu0 %vm562_vm1, %v20991_v43  ;;  %v19450_v57 = vld [vmem:[%s27364_s9 + $0x619] sm:$0xff] }
 0x637   : > { %v17903_v26 = vmax.f32 %v17711_v58, 0.0  ;;  %v25626_v30 = vadd.f32 %v16563_v55, %v30563_v14  ;;  %24338 = vmatprep.mubr.msk.f32.mxu1 %vm562_vm1, %v19448_v4  ;;  %25498 = vmatprep.mubr.msk.f32.mxu0 %vm562_vm1, %v20992_v50  ;;  %v20994_v12 = vld [vmem:[%s27364_s9 + $0x632] sm:$0xff] }
 0x638   : > { %18097 = vst.msk [vmem:[%s31153_s11 + $0x8] sm:$0xff] %vm18095_vm2, %v17904_v59  ;;  %v17714_v10 = vadd.f32 %v25625_v62, %v31131_v32  ;;  %v19451_v59 = vld [vmem:[%s27364_s9 + $0x621] sm:$0xff] }
 0x639   : > { %18096 = vst.msk [vmem:[%s31153_s11] sm:$0xff] %vm18095_vm2, %v17903_v26  ;;  %v17713_v14 = vadd.f32 %v25626_v30, %v31131_v32  ;;  %v25341_v50 = vpop.f32.mrb[4].mxu0  ;;  %v20995_v62 = vld [vmem:[%s27364_s9 + $0x63a] sm:$0xff]  ;;  %v20996_v26 = vld [vmem:[%s27364_s9 + $0x64a] sm:$0xff] }
 0x63a   : > { %v17906_v4 = vmax.f32 %v17714_v10, 0.0  ;;  %v25627_v43 = vadd.f32 %v25341_v50, %v30573_v51  ;;  %24339 = vmatmul.mubr.msk.f32.gmra.mrb[110].mxu1 %vm562_vm1, %v19449_v8  ;;  %v16573_v25 = vpop.f32.mrb[5].mxu0  ;;  %25499 = vmatmul.mubr.msk.f32.gmra.mrb[110].mxu0 %vm562_vm1, %v20993_v21  ;;  %v19452_v51 = vld [vmem:[%s27364_s9 + $0x631] sm:$0xff] }
 0x63b   : > { %v17905_v58 = vmax.f32 %v17713_v14, 0.0  ;;  %v25628_v0 = vadd.f32 %v16573_v25, %v30575_v33  ;;  %24341 = vmatprep.mubr.msk.f32.mxu1 %vm562_vm1, %v19450_v57  ;;  %25501 = vmatprep.mubr.msk.f32.mxu0 %vm562_vm1, %v20994_v12  ;;  %v19453_v14 = vld [vmem:[%s27364_s9 + $0x639] sm:$0xff] }
 0x63c   : > { %18099 = vst.msk [vmem:[%s31153_s11 + $0x18] sm:$0xff] %vm18095_vm2, %v17906_v4  ;;  %v17716_v55 = vadd.f32 %v25627_v43, %v31131_v32  ;;  %v20997_v50 = vld [vmem:[%s27364_s9 + $0x652] sm:$0xff]  ;;  %v20998_v43 = vld [vmem:[%s27364_s9 + $0x662] sm:$0xff] }
 0x63d   : > { %18098 = vst.msk [vmem:[%s31153_s11 + $0x10] sm:$0xff] %vm18095_vm2, %v17905_v58  ;;  %v17715_v33 = vadd.f32 %v25628_v0, %v31131_v32  ;;  %v25344_v30 = vpop.f32.mrb[6].mxu0 }
 0x63e   : > { %v17908_v8 = vmax.f32 %v17716_v55, 0.0  ;;  %v25629_v21 = vadd.f32 %v25344_v30, %v30585_v49  ;;  %24342 = vmatmul.mubr.msk.f32.gmra.mrb[112].mxu1 %vm562_vm1, %v19451_v59  ;;  %v16583_v10 = vpop.f32.mrb[7].mxu0  ;;  %25502 = vmatmul.mubr.msk.f32.gmra.mrb[112].mxu0 %vm562_vm1, %v20995_v62  ;;  %v19454_v49 = vld [vmem:[%s27364_s9 + $0x649] sm:$0xff]  ;;  %v21000_v30 = vld [vmem:[%s27364_s9 + $0x67a] sm:$0xff] }
 0x63f   : > { %v17907_v57 = vmax.f32 %v17715_v33, 0.0  ;;  %v25630_v12 = vadd.f32 %v16583_v10, %v30587_v1  ;;  %24344 = vmatprep.mubr.msk.f32.mxu1 %vm562_vm1, %v19452_v51  ;;  %25504 = vmatprep.mubr.msk.f32.mxu0 %vm562_vm1, %v20996_v26  ;;  %v19455_v51 = vld [vmem:[%s27364_s9 + $0x651] sm:$0xff] }
 0x640   : > { %18101 = vst.msk [vmem:[%s31153_s11 + $0x28] sm:$0xff] %vm18095_vm2, %v17908_v8  ;;  %v17718_v4 = vadd.f32 %v25629_v21, %v31131_v32  ;;  %v20999_v26 = vld [vmem:[%s27364_s9 + $0x66a] sm:$0xff] }
 0x641   : > { %18100 = vst.msk [vmem:[%s31153_s11 + $0x20] sm:$0xff] %vm18095_vm2, %v17907_v57  ;;  %v17717_v1 = vadd.f32 %v25630_v12, %v31131_v32  ;;  %v25347_v25 = vpop.f32.mrb[8].mxu0 }
 0x642   : > { %v17910_v58 = vmax.f32 %v17718_v4, 0.0  ;;  %v25631_v0 = vadd.f32 %v25347_v25, %v30597_v23  ;;  %24345 = vmatmul.mubr.msk.f32.gmra.mrb[114].mxu1 %vm562_vm1, %v19453_v14  ;;  %v16593_v59 = vpop.f32.mrb[9].mxu0  ;;  %25505 = vmatmul.mubr.msk.f32.gmra.mrb[114].mxu0 %vm562_vm1, %v20997_v50  ;;  %v19456_v23 = vld [vmem:[%s27364_s9 + $0x661] sm:$0xff]  ;;  %v19457_v50 = vld [vmem:[%s27364_s9 + $0x669] sm:$0xff] }
 0x643   : > { %v17909_v62 = vmax.f32 %v17717_v1, 0.0  ;;  %v25632_v55 = vadd.f32 %v16593_v59, %v30599_v52  ;;  %24347 = vmatprep.mubr.msk.f32.mxu1 %vm562_vm1, %v19454_v49  ;;  %25507 = vmatprep.mubr.msk.f32.mxu0 %vm562_vm1, %v20998_v43  ;;  %v21001_v4 = vld [vmem:[%s27364_s9 + $0x682] sm:$0xff] }
 0x644   : > { %18103 = vst.msk [vmem:[%s31153_s11 + $0x38] sm:$0xff] %vm18095_vm2, %v17910_v58  ;;  %v17720_v33 = vadd.f32 %v25631_v0, %v31131_v32  ;;  %v21002_v43 = vld [vmem:[%s27364_s9 + $0x6c2] sm:$0xff] }
 0x645   : > { %18102 = vst.msk [vmem:[%s31153_s11 + $0x30] sm:$0xff] %vm18095_vm2, %v17909_v62  ;;  %v17719_v52 = vadd.f32 %v25632_v55, %v31131_v32  ;;  %v25350_v8 = vpop.f32.mrb[10].mxu0  ;;  %v19459_v55 = vld [vmem:[%s27364_s9 + $0x6b1] sm:$0xff] }
 0x646   : > { %v17912_v21 = vmax.f32 %v17720_v33, 0.0  ;;  %v25633_v10 = vadd.f32 %v25350_v8, %v30609_v16  ;;  %24348 = vmatmul.mubr.msk.f32.gmra.mrb[116].mxu1 %vm562_vm1, %v19455_v51  ;;  %v16603_v57 = vpop.f32.mrb[11].mxu0  ;;  %25508 = vmatmul.mubr.msk.f32.gmra.mrb[116].mxu0 %vm562_vm1, %v20999_v26  ;;  %v19458_v16 = vld [vmem:[%s27364_s9 + $0x6a9] sm:$0xff]  ;;  %v21004_v33 = vld [vmem:[%s27364_s9 + $0x6da] sm:$0xff] }
 0x647   : > { %v17911_v12 = vmax.f32 %v17719_v52, 0.0  ;;  %v25634_v14 = vadd.f32 %v16603_v57, %v30611_v20  ;;  %24350 = vmatprep.mubr.msk.f32.mxu1 %vm562_vm1, %v19456_v23  ;;  %25510 = vmatprep.mubr.msk.f32.mxu0 %vm562_vm1, %v21000_v30  ;;  %v21003_v51 = vld [vmem:[%s27364_s9 + $0x6ca] sm:$0xff] }
 0x648   : > { %18105 = vst.msk [vmem:[%s31153_s11 + $0x48] sm:$0xff] %vm18095_vm2, %v17912_v21  ;;  %v17722_v49 = vadd.f32 %v25633_v10, %v31131_v32  ;;  %v19461_v57 = vld [vmem:[%s27364_s9 + $0x6c9] sm:$0xff] }
 0x649   : > { %18104 = vst.msk [vmem:[%s31153_s11 + $0x40] sm:$0xff] %vm18095_vm2, %v17911_v12  ;;  %v17721_v20 = vadd.f32 %v25634_v14, %v31131_v32  ;;  %v25353_v1 = vpop.f32.mrb[12].mxu0  ;;  %v21005_v12 = vld [vmem:[%s27364_s9 + $0x6e2] sm:$0xff] }
 0x64a   : > { %v17914_v25 = vmax.f32 %v17722_v49, 0.0  ;;  %v25635_v58 = vadd.f32 %v25353_v1, %v30621_v37  ;;  %24351 = vmatmul.mubr.msk.f32.gmra.mrb[118].mxu1 %vm562_vm1, %v19457_v50  ;;  %v16613_v0 = vpop.f32.mrb[13].mxu0  ;;  %25511 = vmatmul.mubr.msk.f32.gmra.mrb[118].mxu0 %vm562_vm1, %v21001_v4  ;;  %v19460_v37 = vld [vmem:[%s27364_s9 + $0x6c1] sm:$0xff]  ;;  %v21006_v50 = vld [vmem:[%s27364_s9 + $0x6f2] sm:$0xff] }
 0x64b   : > { %v17913_v59 = vmax.f32 %v17721_v20, 0.0  ;;  %v25636_v62 = vadd.f32 %v16613_v0, %v30623_v11  ;;  %24353 = vmatprep.mubr.msk.f32.mxu1 %vm562_vm1, %v19458_v16  ;;  %25513 = vmatprep.mubr.msk.f32.mxu0 %vm562_vm1, %v21002_v43 }
 0x64c   : > { %18107 = vst.msk [vmem:[%s31153_s11 + $0x58] sm:$0xff] %vm18095_vm2, %v17914_v25  ;;  %v17724_v26 = vadd.f32 %v25635_v58, %v31131_v32  ;;  %v19463_v25 = vld [vmem:[%s27364_s9 + $0x6e1] sm:$0xff] }
 0x64d   : > { %18106 = vst.msk [vmem:[%s31153_s11 + $0x50] sm:$0xff] %vm18095_vm2, %v17913_v59  ;;  %v17723_v11 = vadd.f32 %v25636_v62, %v31131_v32  ;;  %v25356_v23 = vpop.f32.mrb[14].mxu0  ;;  %v21007_v58 = vld [vmem:[%s27364_s9 + $0x6fa] sm:$0xff]  ;;  %v21008_v59 = vld [vmem:[%s27364_s9 + $0x70a] sm:$0xff] }
 0x64e   : > { %v17916_v30 = vmax.f32 %v17724_v26, 0.0  ;;  %v25637_v52 = vadd.f32 %v25356_v23, %v30633_v17  ;;  %24354 = vmatmul.mubr.msk.f32.gmra.mrb[120].mxu1 %vm562_vm1, %v19459_v55  ;;  %v16623_v8 = vpop.f32.mrb[15].mxu0  ;;  %25514 = vmatmul.mubr.msk.f32.gmra.mrb[120].mxu0 %vm562_vm1, %v21003_v51  ;;  %v19462_v17 = vld [vmem:[%s27364_s9 + $0x6d9] sm:$0xff] }
 0x64f   : > { %v17915_v21 = vmax.f32 %v17723_v11, 0.0  ;;  %v25638_v10 = vadd.f32 %v16623_v8, %v30635_v19  ;;  %24356 = vmatprep.mubr.msk.f32.mxu1 %vm562_vm1, %v19460_v37  ;;  %25516 = vmatprep.mubr.msk.f32.mxu0 %vm562_vm1, %v21004_v33  ;;  %v19465_v11 = vld [vmem:[%s27364_s9 + $0x6f9] sm:$0xff] }
 0x650   : > { %18109 = vst.msk [vmem:[%s31153_s11 + $0x68] sm:$0xff] %vm18095_vm2, %v17916_v30  ;;  %v17726_v14 = vadd.f32 %v25637_v52, %v31131_v32  ;;  %v21009_v23 = vld [vmem:[%s27364_s9 + $0x712] sm:$0xff]  ;;  %v21010_v52 = vld [vmem:[%s27364_s9 + $0x722] sm:$0xff] }
 0x651   : > { %18108 = vst.msk [vmem:[%s31153_s11 + $0x60] sm:$0xff] %vm18095_vm2, %v17915_v21  ;;  %v17725_v19 = vadd.f32 %v25638_v10, %v31131_v32  ;;  %v25359_v4 = vpop.f32.mrb[16].mxu0 }
 0x652   : > { %v17918_v49 = vmax.f32 %v17726_v14, 0.0  ;;  %v25639_v16 = vadd.f32 %v25359_v4, %v30645_v53  ;;  %24357 = vmatmul.mubr.msk.f32.gmra.mrb[122].mxu1 %vm562_vm1, %v19461_v57  ;;  %v16633_v43 = vpop.f32.mrb[17].mxu0  ;;  %25517 = vmatmul.mubr.msk.f32.gmra.mrb[122].mxu0 %vm562_vm1, %v21005_v12  ;;  %v19464_v53 = vld [vmem:[%s27364_s9 + $0x6f1] sm:$0xff]  ;;  %v21012_v4 = vld [vmem:[%s27364_s9 + $0x73a] sm:$0xff] }
 0x653   : > { %v17917_v20 = vmax.f32 %v17725_v19, 0.0  ;;  %v25640_v1 = vadd.f32 %v16633_v43, %v30647_v47  ;;  %24359 = vmatprep.mubr.msk.f32.mxu1 %vm562_vm1, %v19462_v17  ;;  %25519 = vmatprep.mubr.msk.f32.mxu0 %vm562_vm1, %v21006_v50  ;;  %v19467_v17 = vld [vmem:[%s27364_s9 + $0x711] sm:$0xff] }
 0x654   : > { %18111 = vst.msk [vmem:[%s31153_s11 + $0x78] sm:$0xff] %vm18095_vm2, %v17918_v49  ;;  %v17728_v0 = vadd.f32 %v25639_v16, %v31131_v32  ;;  %v21011_v50 = vld [vmem:[%s27364_s9 + $0x72a] sm:$0xff] }
 0x655   : > { %18110 = vst.msk [vmem:[%s31153_s11 + $0x70] sm:$0xff] %vm18095_vm2, %v17917_v20  ;;  %v17727_v47 = vadd.f32 %v25640_v1, %v31131_v32  ;;  %v25362_v62 = vpop.f32.mrb[18].mxu0 }
 0x656   : > { %v17920_v55 = vmax.f32 %v17728_v0, 0.0  ;;  %v25641_v51 = vadd.f32 %v25362_v62, %v30657_v28  ;;  %24360 = vmatmul.mubr.msk.f32.gmra.mrb[124].mxu1 %vm562_vm1, %v19463_v25  ;;  %v16643_v26 = vpop.f32.mrb[19].mxu0  ;;  %25520 = vmatmul.mubr.msk.f32.gmra.mrb[124].mxu0 %vm562_vm1, %v21007_v58  ;;  %v19466_v28 = vld [vmem:[%s27364_s9 + $0x709] sm:$0xff] }
 0x657   : > { %v17919_v37 = vmax.f32 %v17727_v47, 0.0  ;;  %v25642_v33 = vadd.f32 %v16643_v26, %v30659_v56  ;;  %24362 = vmatprep.mubr.msk.f32.mxu1 %vm562_vm1, %v19464_v53  ;;  %25522 = vmatprep.mubr.msk.f32.mxu0 %vm562_vm1, %v21008_v59  ;;  %v19469_v58 = vld [vmem:[%s27364_s9 + $0x729] sm:$0xff]  ;;  %v21014_v59 = vld [vmem:[%s27364_s9 + $0x752] sm:$0xff] }
 0x658   : > { %18113 = vst.msk [vmem:[%s31153_s11 + $0x88] sm:$0xff] %vm18095_vm2, %v17920_v55  ;;  %v17730_v30 = vadd.f32 %v25641_v51, %v31131_v32  ;;  %v21013_v0 = vld [vmem:[%s27364_s9 + $0x742] sm:$0xff] }
 0x659   : > { %18112 = vst.msk [vmem:[%s31153_s11 + $0x80] sm:$0xff] %vm18095_vm2, %v17919_v37  ;;  %v17729_v56 = vadd.f32 %v25642_v33, %v31131_v32  ;;  %v25365_v8 = vpop.f32.mrb[20].mxu0  ;;  %v19471_v33 = vld [vmem:[%s27364_s9 + $0x741] sm:$0xff] }
 0x65a   : > { %v17922_v21 = vmax.f32 %v17730_v30, 0.0  ;;  %v25643_v10 = vadd.f32 %v25365_v8, %v30669_v44  ;;  %24363 = vmatmul.mubr.msk.f32.gmra.mrb[126].mxu1 %vm562_vm1, %v19465_v11  ;;  %v16653_v57 = vpop.f32.mrb[21].mxu0  ;;  %25523 = vmatmul.mubr.msk.f32.gmra.mrb[126].mxu0 %vm562_vm1, %v21009_v23  ;;  %v19468_v44 = vld [vmem:[%s27364_s9 + $0x721] sm:$0xff]  ;;  %v21016_v30 = vld [vmem:[%s27364_s9 + $0x76a] sm:$0xff] }
 0x65b   : > { %v17921_v12 = vmax.f32 %v17729_v56, 0.0  ;;  %v25644_v14 = vadd.f32 %v16653_v57, %v30671_v46  ;;  %24365 = vmatprep.mubr.msk.f32.mxu1 %vm562_vm1, %v19466_v28  ;;  %25525 = vmatprep.mubr.msk.f32.mxu0 %vm562_vm1, %v21010_v52  ;;  %v21015_v11 = vld [vmem:[%s27364_s9 + $0x75a] sm:$0xff] }
 0x65c   : > { %18115 = vst.msk [vmem:[%s31153_s11 + $0x98] sm:$0xff] %vm18095_vm2, %v17922_v21  ;;  %v17732_v19 = vadd.f32 %v25643_v10, %v31131_v32  ;;  %v19473_v57 = vld [vmem:[%s27364_s9 + $0x759] sm:$0xff] }
 0x65d   : > { %18114 = vst.msk [vmem:[%s31153_s11 + $0x90] sm:$0xff] %vm18095_vm2, %v17921_v12  ;;  %v17731_v46 = vadd.f32 %v25644_v14, %v31131_v32  ;;  %v25368_v49 = vpop.f32.mrb[22].mxu0  ;;  %v21017_v12 = vld [vmem:[%s27364_s9 + $0x772] sm:$0xff] }
 0x65e   : > { %v17924_v16 = vmax.f32 %v17732_v19, 0.0  ;;  %v25645_v43 = vadd.f32 %v25368_v49, %v30681_v2  ;;  %24366 = vmatmul.mubr.msk.f32.gmra.mrb[128].mxu1 %vm562_vm1, %v19467_v17  ;;  %v16663_v20 = vpop.f32.mrb[23].mxu0  ;;  %25526 = vmatmul.mubr.msk.f32.gmra.mrb[128].mxu0 %vm562_vm1, %v21011_v50  ;;  %v19470_v2 = vld [vmem:[%s27364_s9 + $0x739] sm:$0xff]  ;;  %v21018_v17 = vld [vmem:[%s27364_s9 + $0x782] sm:$0xff] }
 0x65f   : > { %v17923_v1 = vmax.f32 %v17731_v46, 0.0  ;;  %v25646_v25 = vadd.f32 %v16663_v20, %v30683_v6  ;;  %24368 = vmatprep.mubr.msk.f32.mxu1 %vm562_vm1, %v19468_v44  ;;  %25528 = vmatprep.mubr.msk.f32.mxu0 %vm562_vm1, %v21012_v4 }
 0x660   : > { %18117 = vst.msk [vmem:[%s31153_s11 + $0xa8] sm:$0xff] %vm18095_vm2, %v17924_v16  ;;  %v17734_v53 = vadd.f32 %v25645_v43, %v31131_v32  ;;  %v19475_v16 = vld [vmem:[%s27364_s9 + $0x771] sm:$0xff] }
 0x661   : > { %18116 = vst.msk [vmem:[%s31153_s11 + $0xa0] sm:$0xff] %vm18095_vm2, %v17923_v1  ;;  %v17733_v6 = vadd.f32 %v25646_v25, %v31131_v32  ;;  %v25371_v47 = vpop.f32.mrb[24].mxu0  ;;  %v21019_v43 = vld [vmem:[%s27364_s9 + $0x78a] sm:$0xff]  ;;  %v21020_v1 = vld [vmem:[%s27364_s9 + $0x79a] sm:$0xff] }
 0x662   : > { %v17926_v62 = vmax.f32 %v17734_v53, 0.0  ;;  %v25647_v55 = vadd.f32 %v25371_v47, %v30693_v60  ;;  %24369 = vmatmul.mubr.msk.f32.gmra.mrb[130].mxu1 %vm562_vm1, %v19469_v58  ;;  %v16673_v51 = vpop.f32.mrb[25].mxu0  ;;  %25529 = vmatmul.mubr.msk.f32.gmra.mrb[130].mxu0 %vm562_vm1, %v21013_v0  ;;  %v19472_v60 = vld [vmem:[%s27364_s9 + $0x751] sm:$0xff]  ;;  %v21021_v47 = vld [vmem:[%s27364_s9 + $0x7a2] sm:$0xff] }
 0x663   : > { %v17925_v26 = vmax.f32 %v17733_v6, 0.0  ;;  %v25648_v37 = vadd.f32 %v16673_v51, %v30695_v61  ;;  %24371 = vmatprep.mubr.msk.f32.mxu1 %vm562_vm1, %v19470_v2  ;;  %25531 = vmatprep.mubr.msk.f32.mxu0 %vm562_vm1, %v21014_v59  ;;  %v19477_v6 = vld [vmem:[%s27364_s9 + $0x789] sm:$0xff] }
 0x664   : > { %18119 = vst.msk [vmem:[%s31153_s11 + $0xb8] sm:$0xff] %vm18095_vm2, %v17926_v62  ;;  %v17736_v23 = vadd.f32 %v25647_v55, %v31131_v32  ;;  %v21022_v55 = vld [vmem:[%s27364_s9 + $0x7b2] sm:$0xff] }
 0x665   : > { %18118 = vst.msk [vmem:[%s31153_s11 + $0xb0] sm:$0xff] %vm18095_vm2, %v17925_v26  ;;  %v17735_v61 = vadd.f32 %v25648_v37, %v31131_v32  ;;  %v25374_v28 = vpop.f32.mrb[26].mxu0 }
 0x666   : > { %v17928_v52 = vmax.f32 %v17736_v23, 0.0  ;;  %v25649_v56 = vadd.f32 %v25374_v28, %v30705_v7  ;;  %24372 = vmatmul.mubr.msk.f32.gmra.mrb[132].mxu1 %vm562_vm1, %v19471_v33  ;;  %v16683_v8 = vpop.f32.mrb[27].mxu0  ;;  %25532 = vmatmul.mubr.msk.f32.gmra.mrb[132].mxu0 %vm562_vm1, %v21015_v11  ;;  %v19474_v7 = vld [vmem:[%s27364_s9 + $0x769] sm:$0xff] }
 0x667   : > { %v17927_v21 = vmax.f32 %v17735_v61, 0.0  ;;  %v25650_v10 = vadd.f32 %v16683_v8, %v30707_v9  ;;  %24374 = vmatprep.mubr.msk.f32.mxu1 %vm562_vm1, %v19472_v60  ;;  %25534 = vmatprep.mubr.msk.f32.mxu0 %vm562_vm1, %v21016_v30  ;;  %v19479_v60 = vld [vmem:[%s27364_s9 + $0x7a1] sm:$0xff]  ;;  %v21024_v28 = vld [vmem:[%s27364_s9 + $0x7ca] sm:$0xff] }
 0x668   : > { %18121 = vst.msk [vmem:[%s31153_s11 + $0xc8] sm:$0xff] %vm18095_vm2, %v17928_v52  ;;  %v17738_v14 = vadd.f32 %v25649_v56, %v31131_v32  ;;  %v21023_v30 = vld [vmem:[%s27364_s9 + $0x7ba] sm:$0xff] }
 0x669   : > { %18120 = vst.msk [vmem:[%s31153_s11 + $0xc0] sm:$0xff] %vm18095_vm2, %v17927_v21  ;;  %v17737_v9 = vadd.f32 %v25650_v10, %v31131_v32  ;;  %v25377_v50 = vpop.f32.mrb[28].mxu0 }
 0x66a   : > { %v17930_v19 = vmax.f32 %v17738_v14, 0.0  ;;  %v25651_v44 = vadd.f32 %v25377_v50, %v30717_v24  ;;  %24375 = vmatmul.mubr.msk.f32.gmra.mrb[134].mxu1 %vm562_vm1, %v19473_v57  ;;  %v16693_v4 = vpop.f32.mrb[29].mxu0  ;;  %25535 = vmatmul.mubr.msk.f32.gmra.mrb[134].mxu0 %vm562_vm1, %v21017_v12  ;;  %v19476_v24 = vld [vmem:[%s27364_s9 + $0x781] sm:$0xff]  ;;  %v19481_v12 = vld [vmem:[%s27364_s9 + $0x7b9] sm:$0xff] }
 0x66b   : > { %v17929_v46 = vmax.f32 %v17737_v9, 0.0  ;;  %v25652_v49 = vadd.f32 %v16693_v4, %v30719_v31  ;;  %24377 = vmatprep.mubr.msk.f32.mxu1 %vm562_vm1, %v19474_v7  ;;  %25537 = vmatprep.mubr.msk.f32.mxu0 %vm562_vm1, %v21018_v17  ;;  %v21025_v14 = vld [vmem:[%s27364_s9 + $0x7d2] sm:$0xff] }
 0x66c   : > { %18123 = vst.msk [vmem:[%s31153_s11 + $0xd8] sm:$0xff] %vm18095_vm2, %v17930_v19  ;;  %v17740_v20 = vadd.f32 %v25651_v44, %v31131_v32  ;;  %v21026_v17 = vld [vmem:[%s27364_s9 + $0x812] sm:$0xff] }
 0x66d   : > { %18122 = vst.msk [vmem:[%s31153_s11 + $0xd0] sm:$0xff] %vm18095_vm2, %v17929_v46  ;;  %v17739_v31 = vadd.f32 %v25652_v49, %v31131_v32  ;;  %v25380_v25 = vpop.f32.mrb[30].mxu0  ;;  %v19483_v49 = vld [vmem:[%s27364_s9 + $0x801] sm:$0xff] }
 0x66e   : > { %v17932_v58 = vmax.f32 %v17740_v20, 0.0  ;;  %v25653_v0 = vadd.f32 %v25380_v25, %v30729_v45  ;;  %24378 = vmatmul.mubr.msk.f32.gmra.mrb[136].mxu1 %vm562_vm1, %v19475_v16  ;;  %v16703_v53 = vpop.f32.mrb[31].mxu0  ;;  %25538 = vmatmul.mubr.msk.f32.gmra.mrb[136].mxu0 %vm562_vm1, %v21019_v43  ;;  %v19478_v45 = vld [vmem:[%s27364_s9 + $0x799] sm:$0xff]  ;;  %v21028_v20 = vld [vmem:[%s27364_s9 + $0x82a] sm:$0xff] }
 0x66f   : > { %v17931_v2 = vmax.f32 %v17739_v31, 0.0  ;;  %v25654_v59 = vadd.f32 %v16703_v53, %v30731_v15  ;;  %24380 = vmatprep.mubr.msk.f32.mxu1 %vm562_vm1, %v19476_v24  ;;  %25540 = vmatprep.mubr.msk.f32.mxu0 %vm562_vm1, %v21020_v1  ;;  %v21027_v16 = vld [vmem:[%s27364_s9 + $0x81a] sm:$0xff] }
 0x670   : > { %18125 = vst.msk [vmem:[%s31153_s11 + $0xe8] sm:$0xff] %vm18095_vm2, %v17932_v58  ;;  %v17742_v62 = vadd.f32 %v25653_v0, %v31131_v32  ;;  %v19485_v53 = vld [vmem:[%s27364_s9 + $0x819] sm:$0xff] }
 0x671   : > { %18124 = vst.msk [vmem:[%s31153_s11 + $0xe0] sm:$0xff] %vm18095_vm2, %v17931_v2  ;;  %v17741_v15 = vadd.f32 %v25654_v59, %v31131_v32  ;;  %v25383_v51 = vpop.f32.mrb[32].mxu0  ;;  %v21029_v2 = vld [vmem:[%s27364_s9 + $0x832] sm:$0xff] }
 0x672   : > { %v17934_v26 = vmax.f32 %v17742_v62, 0.0  ;;  %v25655_v37 = vadd.f32 %v25383_v51, %v30741_v29  ;;  %24381 = vmatmul.mubr.msk.f32.gmra.mrb[138].mxu1 %vm562_vm1, %v19477_v6  ;;  %v16713_v33 = vpop.f32.mrb[33].mxu0  ;;  %25541 = vmatmul.mubr.msk.f32.gmra.mrb[138].mxu0 %vm562_vm1, %v21021_v47  ;;  %v19480_v29 = vld [vmem:[%s27364_s9 + $0x7b1] sm:$0xff]  ;;  %v21030_v6 = vld [vmem:[%s27364_s9 + $0x842] sm:$0xff] }
 0x673   : > { %v17933_v11 = vmax.f32 %v17741_v15, 0.0  ;;  %v25656_v23 = vadd.f32 %v16713_v33, %v30743_v36  ;;  %24383 = vmatprep.mubr.msk.f32.mxu1 %vm562_vm1, %v19478_v45  ;;  %25543 = vmatprep.mubr.msk.f32.mxu0 %vm562_vm1, %v21022_v55 }
 0x674   : > { %18127 = vst.msk [vmem:[%s31153_s11 + $0xf8] sm:$0xff] %vm18095_vm2, %v17934_v26  ;;  %v17744_v61 = vadd.f32 %v25655_v37, %v31131_v32  ;;  %v19487_v26 = vld [vmem:[%s27364_s9 + $0x831] sm:$0xff] }
 0x675   : > { %18126 = vst.msk [vmem:[%s31153_s11 + $0xf0] sm:$0xff] %vm18095_vm2, %v17933_v11  ;;  %v17743_v36 = vadd.f32 %v25656_v23, %v31131_v32  ;;  %v25386_v52 = vpop.f32.mrb[34].mxu0  ;;  %v21031_v37 = vld [vmem:[%s27364_s9 + $0x84a] sm:$0xff]  ;;  %v21032_v11 = vld [vmem:[%s27364_s9 + $0x85a] sm:$0xff] }
 0x676   : > { %v17936_v56 = vmax.f32 %v17744_v61, 0.0  ;;  %v25657_v8 = vadd.f32 %v25386_v52, %v30753_v39  ;;  %24384 = vmatmul.mubr.msk.f32.gmra.mrb[140].mxu1 %vm562_vm1, %v19479_v60  ;;  %v16723_v21 = vpop.f32.mrb[35].mxu0  ;;  %25544 = vmatmul.mubr.msk.f32.gmra.mrb[140].mxu0 %vm562_vm1, %v21023_v30  ;;  %v19482_v39 = vld [vmem:[%s27364_s9 + $0x7f9] sm:$0xff]  ;;  %v21033_v52 = vld [vmem:[%s27364_s9 + $0x862] sm:$0xff] }
 0x677   : > { %v17935_v10 = vmax.f32 %v17743_v36, 0.0  ;;  %v25658_v57 = vadd.f32 %v16723_v21, %v30755_v41  ;;  %24386 = vmatprep.mubr.msk.f32.mxu1 %vm562_vm1, %v19480_v29  ;;  %25546 = vmatprep.mubr.msk.f32.mxu0 %vm562_vm1, %v21024_v28  ;;  %v19489_v36 = vld [vmem:[%s27364_s9 + $0x849] sm:$0xff] }
 0x678   : > { %18129 = vst.msk [vmem:[%s31153_s11 + $0x108] sm:$0xff] %vm18095_vm2, %v17936_v56  ;;  %v17746_v7 = vadd.f32 %v25657_v8, %v31131_v32  ;;  %v21034_v8 = vld [vmem:[%s27364_s9 + $0x872] sm:$0xff] }
 0x679   : > { %18128 = vst.msk [vmem:[%s31153_s11 + $0x100] sm:$0xff] %vm18095_vm2, %v17935_v10  ;;  %v17745_v41 = vadd.f32 %v25658_v57, %v31131_v32  ;;  %v25389_v9 = vpop.f32.mrb[36].mxu0 }
 0x67a   : > { %v17938_v50 = vmax.f32 %v17746_v7, 0.0  ;;  %v25659_v19 = vadd.f32 %v25389_v9, %v30765_v18  ;;  %24387 = vmatmul.mubr.msk.f32.gmra.mrb[142].mxu1 %vm562_vm1, %v19481_v12  ;;  %v16733_v44 = vpop.f32.mrb[37].mxu0  ;;  %25547 = vmatmul.mubr.msk.f32.gmra.mrb[142].mxu0 %vm562_vm1, %v21025_v14  ;;  %v19484_v18 = vld [vmem:[%s27364_s9 + $0x811] sm:$0xff] }
 0x67b   : > { %v17937_v4 = vmax.f32 %v17745_v41, 0.0  ;;  %v25660_v46 = vadd.f32 %v16733_v44, %v30767_v22  ;;  %24389 = vmatprep.mubr.msk.f32.mxu1 %vm562_vm1, %v19482_v39  ;;  %25549 = vmatprep.mubr.msk.f32.mxu0 %vm562_vm1, %v21026_v17  ;;  %v19491_v39 = vld [vmem:[%s27364_s9 + $0x861] sm:$0xff]  ;;  %v21036_v9 = vld [vmem:[%s27364_s9 + $0x88a] sm:$0xff] }
 0x67c   : > { %18131 = vst.msk [vmem:[%s31153_s11 + $0x118] sm:$0xff] %vm18095_vm2, %v17938_v50  ;;  %v17748_v43 = vadd.f32 %v25659_v19, %v31131_v32  ;;  %v21035_v17 = vld [vmem:[%s27364_s9 + $0x87a] sm:$0xff] }
 0x67d   : > { %18130 = vst.msk [vmem:[%s31153_s11 + $0x110] sm:$0xff] %vm18095_vm2, %v17937_v4  ;;  %v17747_v22 = vadd.f32 %v25660_v46, %v31131_v32  ;;  %v25392_v24 = vpop.f32.mrb[38].mxu0 }
 0x67e   : > { %v17940_v1 = vmax.f32 %v17748_v43, 0.0  ;;  %v25661_v31 = vadd.f32 %v25392_v24, %v30777_v3  ;;  %24390 = vmatmul.mubr.msk.f32.gmra.mrb[144].mxu1 %vm562_vm1, %v19483_v49  ;;  %v16743_v25 = vpop.f32.mrb[39].mxu0  ;;  %25550 = vmatmul.mubr.msk.f32.gmra.mrb[144].mxu0 %vm562_vm1, %v21027_v16  ;;  %v19486_v3 = vld [vmem:[%s27364_s9 + $0x829] sm:$0xff]  ;;  %v19493_v16 = vld [vmem:[%s27364_s9 + $0x879] sm:$0xff] }
 0x67f   : > { %v17939_v58 = vmax.f32 %v17747_v22, 0.0  ;;  %v25662_v0 = vadd.f32 %v16743_v25, %v30779_v5  ;;  %24392 = vmatprep.mubr.msk.f32.mxu1 %vm562_vm1, %v19484_v18  ;;  %25552 = vmatprep.mubr.msk.f32.mxu0 %vm562_vm1, %v21028_v20  ;;  %v21037_v43 = vld [vmem:[%s27364_s9 + $0x892] sm:$0xff]  ;;  %v21038_v20 = vld [vmem:[%s27364_s9 + $0x8a2] sm:$0xff] }
 0x680   : > { %18133 = vst.msk [vmem:[%s31153_s11 + $0x128] sm:$0xff] %vm18095_vm2, %v17940_v1  ;;  %v17750_v59 = vadd.f32 %v25661_v31, %v31131_v32 }
 0x681   : > { %18132 = vst.msk [vmem:[%s31153_s11 + $0x120] sm:$0xff] %vm18095_vm2, %v17939_v58  ;;  %v17749_v5 = vadd.f32 %v25662_v0, %v31131_v32  ;;  %v25395_v47 = vpop.f32.mrb[40].mxu0  ;;  %v19495_v0 = vld [vmem:[%s27364_s9 + $0x891] sm:$0xff] }
 0x682   : > { %v17942_v62 = vmax.f32 %v17750_v59, 0.0  ;;  %v25663_v45 = vadd.f32 %v25395_v47, %v30789_v35  ;;  %24393 = vmatmul.mubr.msk.f32.gmra.mrb[146].mxu1 %vm562_vm1, %v19485_v53  ;;  %v16753_v55 = vpop.f32.mrb[41].mxu0  ;;  %25553 = vmatmul.mubr.msk.f32.gmra.mrb[146].mxu0 %vm562_vm1, %v21029_v2  ;;  %v19488_v35 = vld [vmem:[%s27364_s9 + $0x841] sm:$0xff]  ;;  %v21039_v53 = vld [vmem:[%s27364_s9 + $0x8aa] sm:$0xff] }
 0x683   : > { %v17941_v15 = vmax.f32 %v17749_v5, 0.0  ;;  %v25664_v51 = vadd.f32 %v16753_v55, %v30791_v38  ;;  %24395 = vmatprep.mubr.msk.f32.mxu1 %vm562_vm1, %v19486_v3  ;;  %25555 = vmatprep.mubr.msk.f32.mxu0 %vm562_vm1, %v21030_v6  ;;  %v21040_v59 = vld [vmem:[%s27364_s9 + $0x8ba] sm:$0xff] }
 0x684   : > { %18135 = vst.msk [vmem:[%s31153_s11 + $0x138] sm:$0xff] %vm18095_vm2, %v17942_v62  ;;  %v17752_v33 = vadd.f32 %v25663_v45, %v31131_v32  ;;  %v32389_v5 = vld [vmem:[#allocation24_spill] sm:$0xff]  ;;  %v32390_v55 = vld [vmem:[#allocation25_spill] sm:$0xff] }
 0x685   : > { %18134 = vst.msk [vmem:[%s31153_s11 + $0x130] sm:$0xff] %vm18095_vm2, %v17941_v15  ;;  %v17751_v38 = vadd.f32 %v25664_v51, %v31131_v32  ;;  %v25398_v23 = vpop.f32.mrb[42].mxu0  ;;  %v19497_v51 = vld [vmem:[%s27364_s9 + $0x8a9] sm:$0xff] }
 0x686   : > { %v17944_v60 = vmax.f32 %v17752_v33, 0.0  ;;  %v25665_v30 = vadd.f32 %v25398_v23, %v30801_v27  ;;  %24396 = vmatmul.mubr.msk.f32.gmra.mrb[148].mxu1 %vm562_vm1, %v19487_v26  ;;  %v16763_v61 = vpop.f32.mrb[43].mxu0  ;;  %25556 = vmatmul.mubr.msk.f32.gmra.mrb[148].mxu0 %vm562_vm1, %v21031_v37  ;;  %v19490_v27 = vld [vmem:[%s27364_s9 + $0x859] sm:$0xff]  ;;  %v21041_v26 = vld [vmem:[%s27364_s9 + $0x8c2] sm:$0xff] }
 0x687   : > { %v17943_v29 = vmax.f32 %v17751_v38, 0.0  ;;  %v25666_v28 = vadd.f32 %v16763_v61, %v30803_v48  ;;  %24398 = vmatprep.mubr.msk.f32.mxu1 %vm562_vm1, %v19488_v35  ;;  %25558 = vmatprep.mubr.msk.f32.mxu0 %vm562_vm1, %v21032_v11  ;;  %v19498_v33 = vld [vmem:[%s27364_s9 + $0x8b9] sm:$0xff] }
 0x688   : > { %18137 = vst.msk [vmem:[%s31153_s11 + $0x148] sm:$0xff] %vm18095_vm2, %v17944_v60  ;;  %v17754_v56 = vadd.f32 %v25665_v30, %v31131_v32  ;;  %v21042_v35 = vld [vmem:[%s27364_s9 + $0x8d2] sm:$0xff]  ;;  %v32391_v60 = vld [vmem:[#allocation26_spill] sm:$0xff] }
 0x689   : > { %18136 = vst.msk [vmem:[%s31153_s11 + $0x140] sm:$0xff] %vm18095_vm2, %v17943_v29  ;;  %v17753_v48 = vadd.f32 %v25666_v28, %v31131_v32  ;;  %v25401_v21 = vpop.f32.mrb[44].mxu0  ;;  %v32392_v28 = vld [vmem:[#allocation27_spill] sm:$0xff] }
 0x68a   : > { %v17946_v10 = vmax.f32 %v17754_v56, 0.0  ;;  %v25667_v57 = vadd.f32 %v25401_v21, %v30813_v54  ;;  %24399 = vmatmul.mubr.msk.f32.gmra.mrb[150].mxu1 %vm562_vm1, %v19489_v36  ;;  %v16773_v12 = vpop.f32.mrb[45].mxu0  ;;  %25559 = vmatmul.mubr.msk.f32.gmra.mrb[150].mxu0 %vm562_vm1, %v21033_v52  ;;  %v19492_v54 = vld [vmem:[%s27364_s9 + $0x871] sm:$0xff]  ;;  %v19499_v52 = vld [vmem:[%s27364_s9 + $0x8c1] sm:$0xff] }
 0x68b   : > { %v17945_v14 = vmax.f32 %v17753_v48, 0.0  ;;  %v25668_v7 = vadd.f32 %v16773_v12, %v30815_v42  ;;  %24401 = vmatprep.mubr.msk.f32.mxu1 %vm562_vm1, %v19490_v27  ;;  %25561 = vmatprep.mubr.msk.f32.mxu0 %vm562_vm1, %v21034_v8  ;;  %v21043_v56 = vld [vmem:[%s27364_s9 + $0x8da] sm:$0xff]  ;;  %v19500_v8 = vld [vmem:[%s27364_s9 + $0x8d1] sm:$0xff] }
 0x68c   : > { %18139 = vst.msk [vmem:[%s31153_s11 + $0x158] sm:$0xff] %vm18095_vm2, %v17946_v10  ;;  %v17756_v41 = vadd.f32 %v25667_v57, %v31131_v32  ;;  %v21044_v48 = vld [vmem:[%s27364_s9 + $0x8ea] sm:$0xff]  ;;  %v32393_v12 = vld [vmem:[#allocation5_spill] sm:$0xff] }
 0x68d   : > { %18138 = vst.msk [vmem:[%s31153_s11 + $0x150] sm:$0xff] %vm18095_vm2, %v17945_v14  ;;  %v17755_v42 = vadd.f32 %v25668_v7, %v31131_v32  ;;  %v25404_v50 = vpop.f32.mrb[46].mxu0 }
 0x68e   : > { %v17948_v19 = vmax.f32 %v17756_v41, 0.0  ;;  %v25669_v44 = vadd.f32 %v25404_v50, %v30825_v34  ;;  %24402 = vmatmul.mubr.msk.f32.gmra.mrb[152].mxu1 %vm562_vm1, %v19491_v39  ;;  %v16783_v4 = vpop.f32.mrb[47].mxu0  ;;  %25562 = vmatmul.mubr.msk.f32.gmra.mrb[152].mxu0 %vm562_vm1, %v21035_v17  ;;  %v19494_v34 = vld [vmem:[%s27364_s9 + $0x889] sm:$0xff] }
 0x68f   : > { %v17947_v46 = vmax.f32 %v17755_v42, 0.0  ;;  %v25670_v49 = vadd.f32 %v16783_v4, %v30827_v63  ;;  %24404 = vmatprep.mubr.msk.f32.mxu1 %vm562_vm1, %v19492_v54  ;;  %25564 = vmatprep.mubr.msk.f32.mxu0 %vm562_vm1, %v21036_v9  ;;  %v32394_v17 = vld [vmem:[#allocation6_spill] sm:$0xff]  ;;  %v19501_v54 = vld [vmem:[%s27364_s9 + $0x8d9] sm:$0xff] }
 0x690   : > { %18141 = vst.msk [vmem:[%s31153_s11 + $0x168] sm:$0xff] %vm18095_vm2, %v17948_v19  ;;  %v17758_v18 = vadd.f32 %v25669_v44, %v31131_v32  ;;  %v21045_v9 = vld [vmem:[%s27364_s9 + $0x8f2] sm:$0xff]  ;;  %v19502_v50 = vld [vmem:[%s27364_s9 + $0x8e9] sm:$0xff] }
 0x691   : > { %18140 = vst.msk [vmem:[%s31153_s11 + $0x160] sm:$0xff] %vm18095_vm2, %v17947_v46  ;;  %v17757_v63 = vadd.f32 %v25670_v49, %v31131_v32  ;;  %v25407_v22 = vpop.f32.mrb[48].mxu0  ;;  %v21046_v19 = vld [vmem:[%s27364_s9 + $0x902] sm:$0xff]  ;;  %v32395_v49 = vld [vmem:[#allocation7_spill] sm:$0xff] }
 0x692   : > { %v17950_v24 = vmax.f32 %v17758_v18, 0.0  ;;  %v25671_v1 = vadd.f32 %v25407_v22, %v30837_v13  ;;  %24405 = vmatmul.mubr.msk.f32.gmra.mrb[154].mxu1 %vm562_vm1, %v19493_v16  ;;  %v16793_v31 = vpop.f32.mrb[49].mxu0  ;;  %25565 = vmatmul.mubr.msk.f32.gmra.mrb[154].mxu0 %vm562_vm1, %v21037_v43  ;;  %v19496_v13 = vld [vmem:[%s27364_s9 + $0x8a1] sm:$0xff]  ;;  %v31592_v22 = vld [vmem:[%s32207_s2] ss:$0 sm:$0xff] }
 0x693   : > { %v17949_v25 = vmax.f32 %v17757_v63, 0.0  ;;  %v25672_v58 = vadd.f32 %v16793_v31, %v30839_v40  ;;  %24407 = vmatprep.mubr.msk.f32.mxu1 %vm562_vm1, %v19494_v34  ;;  %25567 = vmatprep.mubr.msk.f32.mxu0 %vm562_vm1, %v21038_v20  ;;  %v32396_v34 = vld [vmem:[#allocation8_spill] sm:$0xff]  ;;  %v21047_v63 = vld [vmem:[%s27364_s9 + $0x90a] sm:$0xff] }
 0x694   : > { %18143 = vst.msk [vmem:[%s31153_s11 + $0x178] sm:$0xff] %vm18095_vm2, %v17950_v24  ;;  %v17760_v2 = vadd.f32 %v25671_v1, %v31131_v32  ;;  %v19504_v1 = vld [vmem:[%s27364_s9 + $0x901] sm:$0xff] }
 0x695   : > { %18142 = vst.msk [vmem:[%s31153_s11 + $0x170] sm:$0xff] %vm18095_vm2, %v17949_v25  ;;  %v17759_v40 = vadd.f32 %v25672_v58, %v31131_v32  ;;  %v25410_v3 = vpop.f32.mrb[50].mxu0  ;;  %v21048_v31 = vld [vmem:[%s27364_s9 + $0x91a] sm:$0xff] }
 0x696   : > { %v17952_v6 = vmax.f32 %v17760_v2, 0.0  ;;  %v25673_v47 = vadd.f32 %v25410_v3, %v32389_v5  ;;  %24408 = vmatmul.mubr.msk.f32.gmra.mrb[156].mxu1 %vm562_vm1, %v19495_v0  ;;  %v16803_v62 = vpop.f32.mrb[51].mxu0  ;;  %25568 = vmatmul.mubr.msk.f32.gmra.mrb[156].mxu0 %vm562_vm1, %v21039_v53  ;;  %v32397_v53 = vld [vmem:[#allocation9_spill] sm:$0xff] }
 0x697   : > { %v17951_v45 = vmax.f32 %v17759_v40, 0.0  ;;  %v25674_v15 = vadd.f32 %v16803_v62, %v32390_v55  ;;  %24410 = vmatprep.mubr.msk.f32.mxu1 %vm562_vm1, %v19496_v13  ;;  %25570 = vmatprep.mubr.msk.f32.mxu0 %vm562_vm1, %v21040_v59  ;;  %v32398_v40 = vld [vmem:[#allocation28_spill] sm:$0xff]  ;;  %v21049_v5 = vld [vmem:[%s27364_s9 + $0x922] sm:$0xff] }
 0x698   : > { %18145 = vst.msk [vmem:[%s31153_s11 + $0x188] sm:$0xff] %vm18095_vm2, %v17952_v6  ;;  %v17762_v37 = vadd.f32 %v25673_v47, %v31131_v32  ;;  %v19505_v6 = vld [vmem:[%s27364_s9 + $0x909] sm:$0xff] }
 0x699   : > { %18144 = vst.msk [vmem:[%s31153_s11 + $0x180] sm:$0xff] %vm18095_vm2, %v17951_v45  ;;  %v17761_v11 = vadd.f32 %v25674_v15, %v31131_v32  ;;  %v25413_v38 = vpop.f32.mrb[52].mxu0  ;;  %v19506_v62 = vld [vmem:[%s27364_s9 + $0x949] sm:$0xff] }
 0x69a   : > { %v17954_v23 = vmax.f32 %v17762_v37, 0.0  ;;  %v25675_v30 = vadd.f32 %v25413_v38, %v32391_v60  ;;  %24411 = vmatmul.mubr.msk.f32.gmra.mrb[158].mxu1 %vm562_vm1, %v19497_v51  ;;  %v16813_v61 = vpop.f32.mrb[53].mxu0  ;;  %25571 = vmatmul.mubr.msk.f32.gmra.mrb[158].mxu0 %vm562_vm1, %v21041_v26  ;;  %v21050_v45 = vld [vmem:[%s27364_s9 + $0x962] sm:$0xff]  ;;  %v21051_v60 = vld [vmem:[%s27364_s9 + $0x96a] sm:$0xff] }
 0x69b   : > { %v17953_v29 = vmax.f32 %v17761_v11, 0.0  ;;  %v25676_v36 = vadd.f32 %v16813_v61, %v32392_v28  ;;  %24413 = vmatprep.mubr.msk.f32.mxu1 %vm562_vm1, %v19498_v33  ;;  %25573 = vmatprep.mubr.msk.f32.mxu0 %vm562_vm1, %v21042_v35  ;;  %v32399_v26 = vld [vmem:[#allocation29_spill] sm:$0xff]  ;;  %v32400_v11 = vld [vmem:[#allocation10_spill] sm:$0xff] }
 0x69c   : > { %18147 = vst.msk [vmem:[%s31153_s11 + $0x198] sm:$0xff] %vm18095_vm2, %v17954_v23  ;;  %v17764_v27 = vadd.f32 %v25675_v30, %v31131_v32  ;;  %v19507_v23 = vld [vmem:[%s27364_s9 + $0x951] sm:$0xff]  ;;  %v19508_v61 = vld [vmem:[%s27364_s9 + $0x961] sm:$0xff] }
 0x69d   : > { %18146 = vst.msk [vmem:[%s31153_s11 + $0x190] sm:$0xff] %vm18095_vm2, %v17953_v29  ;;  %v17763_v21 = vadd.f32 %v25676_v36, %v31131_v32  ;;  %v25416_v10 = vpop.f32.mrb[54].mxu0  ;;  %v21052_v29 = vld [vmem:[%s27364_s9 + $0x97a] sm:$0xff] }
 0x69e   : > { %v17956_v57 = vmax.f32 %v17764_v27, 0.0  ;;  %v25677_v14 = vadd.f32 %v25416_v10, %v32393_v12  ;;  %24414 = vmatmul.mubr.msk.f32.gmra.mrb[160].mxu1 %vm562_vm1, %v19499_v52  ;;  %v16823_v7 = vpop.f32.mrb[55].mxu0  ;;  %25574 = vmatmul.mubr.msk.f32.gmra.mrb[160].mxu0 %vm562_vm1, %v21043_v56  ;;  %v32401_v56 = vld [vmem:[#allocation11_spill] sm:$0xff]  ;;  %v21053_v12 = vld [vmem:[%s27364_s9 + $0x982] sm:$0xff] }
 0x69f   : > { %v17955_v39 = vmax.f32 %v17763_v21, 0.0  ;;  %v25678_v41 = vadd.f32 %v16823_v7, %v32394_v17  ;;  %24416 = vmatprep.mubr.msk.f32.mxu1 %vm562_vm1, %v19500_v8  ;;  %25576 = vmatprep.mubr.msk.f32.mxu0 %vm562_vm1, %v21044_v48  ;;  %v32402_v21 = vld [vmem:[#allocation12_spill] sm:$0xff] }
 0x6a0   : > { %18149 = vst.msk [vmem:[%s31153_s11 + $0x1a8] sm:$0xff] %vm18095_vm2, %v17956_v57  ;;  %v17766_v42 = vadd.f32 %v25677_v14, %v31131_v32  ;;  %v19509_v57 = vld [vmem:[%s27364_s9 + $0x969] sm:$0xff]  ;;  %v19510_v7 = vld [vmem:[%s27364_s9 + $0x979] sm:$0xff] }
 0x6a1   : > { %18148 = vst.msk [vmem:[%s31153_s11 + $0x1a0] sm:$0xff] %vm18095_vm2, %v17955_v39  ;;  %v17765_v44 = vadd.f32 %v25678_v41, %v31131_v32  ;;  %v25419_v4 = vpop.f32.mrb[56].mxu0  ;;  %v19503_v32 = vld [vmem:[%s27364_s9 + $0x8f1] sm:$0xff] }
 0x6a2   : > { %v17958_v46 = vmax.f32 %v17766_v42, 0.0  ;;  %v25679_v16 = vadd.f32 %v25419_v4, %v32395_v49  ;;  %24417 = vmatmul.mubr.msk.f32.gmra.mrb[162].mxu1 %vm562_vm1, %v19501_v54  ;;  %v16833_v43 = vpop.f32.mrb[57].mxu0  ;;  %25577 = vmatmul.mubr.msk.f32.gmra.mrb[162].mxu0 %vm562_vm1, %v21045_v9  ;;  %v21054_v39 = vld [vmem:[%s27364_s9 + $0x992] sm:$0xff]  ;;  %v32403_v9 = vld [vmem:[#allocation13_spill] sm:$0xff] }
 0x6a3   : > { %v17957_v18 = vmax.f32 %v17765_v44, 0.0  ;;  %v25680_v20 = vadd.f32 %v16833_v43, %v32396_v34  ;;  %24419 = vmatprep.mubr.msk.f32.mxu1 %vm562_vm1, %v19502_v50  ;;  %25579 = vmatprep.mubr.msk.f32.mxu0 %vm562_vm1, %v21046_v19  ;;  %v32404_v44 = vld [vmem:[#allocation14_spill] sm:$0xff]  ;;  %v21055_v49 = vld [vmem:[%s27364_s9 + $0x99a] sm:$0xff]  ;;  %v19512_v43 = vld [vmem:[%s27364_s9 + $0x991] sm:$0xff] }
 0x6a4   : > { %18151 = vst.msk [vmem:[%s31153_s11 + $0x1b8] sm:$0xff] %vm18095_vm2, %v17958_v46  ;;  %v17768_v24 = vadd.f32 %v31592_v22, %v25679_v16  ;;  %v19511_v46 = vld [vmem:[%s27364_s9 + $0x981] sm:$0xff] }
 0x6a5   : > { %18150 = vst.msk [vmem:[%s31153_s11 + $0x1b0] sm:$0xff] %vm18095_vm2, %v17957_v18  ;;  %v17767_v25 = vadd.f32 %v31592_v22, %v25680_v20  ;;  %v25422_v58 = vpop.f32.mrb[58].mxu0  ;;  %v21056_v18 = vld [vmem:[%s27364_s9 + $0x9aa] sm:$0xff] }
 0x6a6   : > { %v17960_v0 = vmax.f32 %v17768_v24, 0.0  ;;  %v25681_v2 = vadd.f32 %v25422_v58, %v32397_v53  ;;  %24420 = vmatmul.mubr.msk.f32.gmra.mrb[164].mxu1 %vm562_vm1, %v19503_v32  ;;  %v16843_v13 = vpop.f32.mrb[59].mxu0  ;;  %25580 = vmatmul.mubr.msk.f32.gmra.mrb[164].mxu0 %vm562_vm1, %v21047_v63  ;;  %v32405_v63 = vld [vmem:[#allocation15_spill] sm:$0xff] }
 0x6a7   : > { %v17959_v59 = vmax.f32 %v17767_v25, 0.0  ;;  %v25682_v3 = vadd.f32 %v16843_v13, %v32398_v40  ;;  %24422 = vmatprep.mubr.msk.f32.mxu1 %vm562_vm1, %v19504_v1  ;;  %25582 = vmatprep.mubr.msk.f32.mxu0 %vm562_vm1, %v21048_v31  ;;  %v32406_v25 = vld [vmem:[#allocation16_spill] sm:$0xff]  ;;  %v19514_v13 = vld [vmem:[%s27364_s9 + $0x9a9] sm:$0xff] }
 0x6a8   : > { %18153 = vst.msk [vmem:[%s31153_s11 + $0x1c8] sm:$0xff] %vm18095_vm2, %v17960_v0  ;;  %v17770_v47 = vadd.f32 %v31592_v22, %v25681_v2  ;;  %v19513_v0 = vld [vmem:[%s27364_s9 + $0x999] sm:$0xff] }
 0x6a9   : > { %18152 = vst.msk [vmem:[%s31153_s11 + $0x1c0] sm:$0xff] %vm18095_vm2, %v17959_v59  ;;  %v17769_v55 = vadd.f32 %v31592_v22, %v25682_v3  ;;  %v25425_v15 = vpop.f32.mrb[60].mxu0  ;;  %v21057_v53 = vld [vmem:[%s27364_s9 + $0x9b2] sm:$0xff]  ;;  %v21058_v59 = vld [vmem:[%s27364_s9 + $0x9c2] sm:$0xff] }
 0x6aa   : > { %v17962_v51 = vmax.f32 %v17770_v47, 0.0  ;;  %v25683_v37 = vadd.f32 %v25425_v15, %v32399_v26  ;;  %24423 = vmatmul.mubr.msk.f32.gmra.mrb[166].mxu1 %vm562_vm1, %v19505_v6  ;;  %v16853_v33 = vpop.f32.mrb[61].mxu0  ;;  %25583 = vmatmul.mubr.msk.f32.gmra.mrb[166].mxu0 %vm562_vm1, %v21049_v5  ;;  %v32407_v5 = vld [vmem:[#allocation17_spill] sm:$0xff]  ;;  %v21059_v26 = vld [vmem:[%s27364_s9 + $0x9ca] sm:$0xff] }
 0x6ab   : > { %v17961_v35 = vmax.f32 %v17769_v55, 0.0  ;;  %v25684_v38 = vadd.f32 %v16853_v33, %v32400_v11  ;;  %24425 = vmatprep.mubr.msk.f32.mxu1 %vm562_vm1, %v19506_v62  ;;  %25585 = vmatprep.mubr.msk.f32.mxu0 %vm562_vm1, %v21050_v45  ;;  %v32408_v55 = vld [vmem:[#allocation18_spill] sm:$0xff] }
 0x6ac   : > { %18155 = vst.msk [vmem:[%s31153_s11 + $0x1d8] sm:$0xff] %vm18095_vm2, %v17962_v51  ;;  %v17772_v30 = vadd.f32 %v31592_v22, %v25683_v37  ;;  %v19515_v51 = vld [vmem:[%s27364_s9 + $0x9b1] sm:$0xff]  ;;  %v19516_v33 = vld [vmem:[%s27364_s9 + $0x9c1] sm:$0xff] }
 0x6ad   : > { %18154 = vst.msk [vmem:[%s31153_s11 + $0x1d0] sm:$0xff] %vm18095_vm2, %v17961_v35  ;;  %v17771_v28 = vadd.f32 %v31592_v22, %v25684_v38  ;;  %v25428_v36 = vpop.f32.mrb[62].mxu0  ;;  %v21060_v35 = vld [vmem:[%s27364_s9 + $0x9da] sm:$0xff] }
 0x6ae   : > { %v17964_v52 = vmax.f32 %v17772_v30, 0.0  ;;  %v25685_v27 = vadd.f32 %v25428_v36, %v32401_v56  ;;  %24426 = vmatmul.mubr.msk.f32.gmra.mrb[168].mxu1 %vm562_vm1, %v19507_v23  ;;  %v16863_v8 = vpop.f32.mrb[63].mxu0  ;;  %25586 = vmatmul.mubr.msk.f32.gmra.mrb[168].mxu0 %vm562_vm1, %v21051_v60  ;;  %v32409_v60 = vld [vmem:[#allocation19_spill] sm:$0xff]  ;;  %v21061_v56 = vld [vmem:[%s27364_s9 + $0x9e2] sm:$0xff] }
 0x6af   : > { %v17963_v48 = vmax.f32 %v17771_v28, 0.0  ;;  %v25686_v10 = vadd.f32 %v16863_v8, %v32402_v21  ;;  %24428 = vmatprep.mubr.msk.f32.mxu1 %vm562_vm1, %v19508_v61  ;;  %25588 = vmatprep.mubr.msk.f32.mxu0 %vm562_vm1, %v21052_v29  ;;  %v32410_v28 = vld [vmem:[#allocation20_spill] sm:$0xff] }
 0x6b0   : > { %18157 = vst.msk [vmem:[%s31153_s11 + $0x1e8] sm:$0xff] %vm18095_vm2, %v17964_v52  ;;  %v17774_v14 = vadd.f32 %v31592_v22, %v25685_v27  ;;  %v19517_v52 = vld [vmem:[%s27364_s9 + $0x9c9] sm:$0xff]  ;;  %v19518_v8 = vld [vmem:[%s27364_s9 + $0x9d9] sm:$0xff] }
 0x6b1   : > { %18156 = vst.msk [vmem:[%s31153_s11 + $0x1e0] sm:$0xff] %vm18095_vm2, %v17963_v48  ;;  %v17773_v17 = vadd.f32 %v31592_v22, %v25686_v10  ;;  %v25431_v41 = vpop.f32.mrb[64].mxu0  ;;  %v21062_v48 = vld [vmem:[%s27364_s9 + $0x9f2] sm:$0xff] }
 0x6b2   : > { %v17966_v54 = vmax.f32 %v17774_v14, 0.0  ;;  %v25687_v42 = vadd.f32 %v25431_v41, %v32403_v9  ;;  %24429 = vmatmul.mubr.msk.f32.gmra.mrb[170].mxu1 %vm562_vm1, %v19509_v57  ;;  %v16873_v50 = vpop.f32.mrb[65].mxu0  ;;  %25589 = vmatmul.mubr.msk.f32.gmra.mrb[170].mxu0 %vm562_vm1, %v21053_v12  ;;  %v32411_v12 = vld [vmem:[#allocation21_spill] sm:$0xff] }
 0x6b3   : > { %v17965_v19 = vmax.f32 %v17773_v17, 0.0  ;;  %v25688_v4 = vadd.f32 %v16873_v50, %v32404_v44  ;;  %24431 = vmatprep.mubr.msk.f32.mxu1 %vm562_vm1, %v19510_v7  ;;  %25591 = vmatprep.mubr.msk.f32.mxu0 %vm562_vm1, %v21054_v39  ;;  %v32412_v17 = vld [vmem:[#allocation22_spill] sm:$0xff]  ;;  %v21063_v9 = vld [vmem:[%s27364_s9 + $0x9fa] sm:$0xff]  ;;  %v19520_v50 = vld [vmem:[%s27364_s9 + $0x9f1] sm:$0xff] }
 0x6b4   : > { %18159 = vst.msk [vmem:[%s31153_s11 + $0x1f8] sm:$0xff] %vm18095_vm2, %v17966_v54  ;;  %v17776_v16 = vadd.f32 %v31592_v22, %v25687_v42  ;;  %v19519_v54 = vld [vmem:[%s27364_s9 + $0x9e1] sm:$0xff] }
 0x6b5   : > { %18158 = vst.msk [vmem:[%s31153_s11 + $0x1f0] sm:$0xff] %vm18095_vm2, %v17965_v19  ;;  %v17775_v34 = vadd.f32 %v31592_v22, %v25688_v4  ;;  %v25434_v20 = vpop.f32.mrb[66].mxu0  ;;  %v21064_v19 = vld [vmem:[%s27364_s9 + $0xa0a] sm:$0xff] }
 0x6b6   : > { %v17968_v32 = vmax.f32 %v17776_v16, 0.0  ;;  %v25689_v24 = vadd.f32 %v25434_v20, %v32405_v63  ;;  %24432 = vmatmul.mubr.msk.f32.gmra.mrb[172].mxu1 %vm562_vm1, %v19511_v46  ;;  %v16883_v1 = vpop.f32.mrb[67].mxu0  ;;  %25592 = vmatmul.mubr.msk.f32.gmra.mrb[172].mxu0 %vm562_vm1, %v21055_v49  ;;  %v32413_v49 = vld [vmem:[#allocation23_spill] sm:$0xff] }
 0x6b7   : > { %v17967_v31 = vmax.f32 %v17775_v34, 0.0  ;;  %v25690_v58 = vadd.f32 %v16883_v1, %v32406_v25  ;;  %24434 = vmatprep.mubr.msk.f32.mxu1 %vm562_vm1, %v19512_v43  ;;  %25594 = vmatprep.mubr.msk.f32.mxu0 %vm562_vm1, %v21056_v18  ;;  %v32414_v34 = vld [vmem:[#allocation30_spill] sm:$0xff]  ;;  %v21065_v63 = vld [vmem:[%s27364_s9 + $0xa12] sm:$0xff] }
 0x6b8   : > { %18161 = vst.msk [vmem:[%s31153_s11 + $0x208] sm:$0xff] %vm18095_vm2, %v17968_v32  ;;  %v17778_v2 = vadd.f32 %v31592_v22, %v25689_v24  ;;  %v19521_v32 = vld [vmem:[%s27364_s9 + $0x9f9] sm:$0xff]  ;;  %v19522_v1 = vld [vmem:[%s27364_s9 + $0xa09] sm:$0xff] }
 0x6b9   : > { %18160 = vst.msk [vmem:[%s31153_s11 + $0x200] sm:$0xff] %vm18095_vm2, %v17967_v31  ;;  %v17777_v40 = vadd.f32 %v31592_v22, %v25690_v58  ;;  %v25437_v3 = vpop.f32.mrb[68].mxu0  ;;  %v21066_v31 = vld [vmem:[%s27364_s9 + $0xa22] sm:$0xff] }
 0x6ba   : > { %v17970_v6 = vmax.f32 %v17778_v2, 0.0  ;;  %v25691_v47 = vadd.f32 %v25437_v3, %v32407_v5  ;;  %24435 = vmatmul.mubr.msk.f32.gmra.mrb[174].mxu1 %vm562_vm1, %v19513_v0  ;;  %v16893_v62 = vpop.f32.mrb[69].mxu0  ;;  %25595 = vmatmul.mubr.msk.f32.gmra.mrb[174].mxu0 %vm562_vm1, %v21057_v53  ;;  %v32415_v53 = vld [vmem:[#allocation31_spill] sm:$0xff] }
 0x6bb   : > { %v17969_v45 = vmax.f32 %v17777_v40, 0.0  ;;  %v25692_v15 = vadd.f32 %v16893_v62, %v32408_v55  ;;  %24437 = vmatprep.mubr.msk.f32.mxu1 %vm562_vm1, %v19514_v13  ;;  %25597 = vmatprep.mubr.msk.f32.mxu0 %vm562_vm1, %v21058_v59  ;;  %v32416_v40 = vld [vmem:[#allocation32_spill] sm:$0xff]  ;;  %v21067_v5 = vld [vmem:[%s27364_s9 + $0xa2a] sm:$0xff]  ;;  %v19524_v62 = vld [vmem:[%s27364_s9 + $0xa21] sm:$0xff] }
 0x6bc   : > { %18163 = vst.msk [vmem:[%s31153_s11 + $0x218] sm:$0xff] %vm18095_vm2, %v17970_v6  ;;  %v17780_v37 = vadd.f32 %v31592_v22, %v25691_v47  ;;  %v19523_v6 = vld [vmem:[%s27364_s9 + $0xa11] sm:$0xff] }
 0x6bd   : > { %18162 = vst.msk [vmem:[%s31153_s11 + $0x210] sm:$0xff] %vm18095_vm2, %v17969_v45  ;;  %v17779_v11 = vadd.f32 %v31592_v22, %v25692_v15  ;;  %v25440_v38 = vpop.f32.mrb[70].mxu0  ;;  %v21068_v45 = vld [vmem:[%s27364_s9 + $0xa3a] sm:$0xff] }
 0x6be   : > { %v17972_v23 = vmax.f32 %v17780_v37, 0.0  ;;  %v25693_v30 = vadd.f32 %v25440_v38, %v32409_v60  ;;  %24438 = vmatmul.mubr.msk.f32.gmra.mrb[176].mxu1 %vm562_vm1, %v19515_v51  ;;  %v16903_v61 = vpop.f32.mrb[71].mxu0  ;;  %25598 = vmatmul.mubr.msk.f32.gmra.mrb[176].mxu0 %vm562_vm1, %v21059_v26  ;;  %v32417_v26 = vld [vmem:[#allocation33_spill] sm:$0xff] }
 0x6bf   : > { %v17971_v29 = vmax.f32 %v17779_v11, 0.0  ;;  %v25694_v36 = vadd.f32 %v16903_v61, %v32410_v28  ;;  %24440 = vmatprep.mubr.msk.f32.mxu1 %vm562_vm1, %v19516_v33  ;;  %25600 = vmatprep.mubr.msk.f32.mxu0 %vm562_vm1, %v21060_v35  ;;  %v32418_v11 = vld [vmem:[#allocation34_spill] sm:$0xff]  ;;  %v19526_v61 = vld [vmem:[%s27364_s9 + $0xa39] sm:$0xff] }
 0x6c0   : > { %18165 = vst.msk [vmem:[%s31153_s11 + $0x228] sm:$0xff] %vm18095_vm2, %v17972_v23  ;;  %v17782_v27 = vadd.f32 %v31592_v22, %v25693_v30  ;;  %v19525_v23 = vld [vmem:[%s27364_s9 + $0xa29] sm:$0xff] }
 0x6c1   : > { %18164 = vst.msk [vmem:[%s31153_s11 + $0x220] sm:$0xff] %vm18095_vm2, %v17971_v29  ;;  %v17781_v21 = vadd.f32 %v31592_v22, %v25694_v36  ;;  %v25443_v10 = vpop.f32.mrb[72].mxu0  ;;  %v21069_v60 = vld [vmem:[%s27364_s9 + $0xa42] sm:$0xff]  ;;  %v21070_v29 = vld [vmem:[%s27364_s9 + $0xa52] sm:$0xff] }
 0x6c2   : > { %v17974_v57 = vmax.f32 %v17782_v27, 0.0  ;;  %v25695_v14 = vadd.f32 %v25443_v10, %v32411_v12  ;;  %24441 = vmatmul.mubr.msk.f32.gmra.mrb[178].mxu1 %vm562_vm1, %v19517_v52  ;;  %v16913_v7 = vpop.f32.mrb[73].mxu0  ;;  %25601 = vmatmul.mubr.msk.f32.gmra.mrb[178].mxu0 %vm562_vm1, %v21061_v56  ;;  %v32419_v56 = vld [vmem:[#allocation35_spill] sm:$0xff]  ;;  %v21071_v12 = vld [vmem:[%s27364_s9 + $0xa5a] sm:$0xff] }
 0x6c3   : > { %v17973_v39 = vmax.f32 %v17781_v21, 0.0  ;;  %v25696_v41 = vadd.f32 %v16913_v7, %v32412_v17  ;;  %24443 = vmatprep.mubr.msk.f32.mxu1 %vm562_vm1, %v19518_v8  ;;  %25603 = vmatprep.mubr.msk.f32.mxu0 %vm562_vm1, %v21062_v48  ;;  %v32420_v21 = vld [vmem:[#allocation36_spill] sm:$0xff] }
 0x6c4   : > { %18167 = vst.msk [vmem:[%s31153_s11 + $0x238] sm:$0xff] %vm18095_vm2, %v17974_v57  ;;  %v17784_v42 = vadd.f32 %v31592_v22, %v25695_v14  ;;  %v19527_v57 = vld [vmem:[%s27364_s9 + $0xa41] sm:$0xff]  ;;  %v19528_v7 = vld [vmem:[%s27364_s9 + $0xa51] sm:$0xff] }
 0x6c5   : > { %18166 = vst.msk [vmem:[%s31153_s11 + $0x230] sm:$0xff] %vm18095_vm2, %v17973_v39  ;;  %v17783_v44 = vadd.f32 %v31592_v22, %v25696_v41  ;;  %v25446_v4 = vpop.f32.mrb[74].mxu0  ;;  %v21072_v39 = vld [vmem:[%s27364_s9 + $0xa6a] sm:$0xff] }
 0x6c6   : > { %v17976_v46 = vmax.f32 %v17784_v42, 0.0  ;;  %v25697_v16 = vadd.f32 %v25446_v4, %v32413_v49  ;;  %24444 = vmatmul.mubr.msk.f32.gmra.mrb[180].mxu1 %vm562_vm1, %v19519_v54  ;;  %v16923_v43 = vpop.f32.mrb[75].mxu0  ;;  %25604 = vmatmul.mubr.msk.f32.gmra.mrb[180].mxu0 %vm562_vm1, %v21063_v9  ;;  %v32421_v9 = vld [vmem:[#allocation37_spill] sm:$0xff]  ;;  %v21073_v49 = vld [vmem:[%s27364_s9 + $0xa72] sm:$0xff] }
 0x6c7   : > { %v17975_v18 = vmax.f32 %v17783_v44, 0.0  ;;  %v25698_v20 = vadd.f32 %v16923_v43, %v32414_v34  ;;  %24446 = vmatprep.mubr.msk.f32.mxu1 %vm562_vm1, %v19520_v50  ;;  %25606 = vmatprep.mubr.msk.f32.mxu0 %vm562_vm1, %v21064_v19  ;;  %v32422_v44 = vld [vmem:[#allocation38_spill] sm:$0xff] }
 0x6c8   : > { %18169 = vst.msk [vmem:[%s31153_s11 + $0x248] sm:$0xff] %vm18095_vm2, %v17976_v46  ;;  %v17786_v24 = vadd.f32 %v31592_v22, %v25697_v16  ;;  %v19529_v46 = vld [vmem:[%s27364_s9 + $0xa59] sm:$0xff] }
 0x6c9   : > { %18168 = vst.msk [vmem:[%s31153_s11 + $0x240] sm:$0xff] %vm18095_vm2, %v17975_v18  ;;  %v17785_v25 = vadd.f32 %v31592_v22, %v25698_v20  ;;  %v25449_v58 = vpop.f32.mrb[76].mxu0  ;;  %v32423_v20 = vld [vmem:[#allocation39_spill] sm:$0xff] }
 0x6ca   : > { %v17978_v0 = vmax.f32 %v17786_v24, 0.0  ;;  %v25699_v2 = vadd.f32 %v25449_v58, %v32415_v53  ;;  %24447 = vmatmul.mubr.msk.f32.gmra.mrb[182].mxu1 %vm562_vm1, %v19521_v32  ;;  %v16933_v13 = vpop.f32.mrb[77].mxu0  ;;  %25607 = vmatmul.mubr.msk.f32.gmra.mrb[182].mxu0 %vm562_vm1, %v21065_v63 }
 0x6cb   : > { %v17977_v59 = vmax.f32 %v17785_v25, 0.0  ;;  %v25700_v3 = vadd.f32 %v16933_v13, %v32416_v40  ;;  %24449 = vmatprep.mubr.msk.f32.mxu1 %vm562_vm1, %v19522_v1  ;;  %25609 = vmatprep.mubr.msk.f32.mxu0 %vm562_vm1, %v21066_v31  ;;  %v32424_v1 = vld [vmem:[#allocation40_spill] sm:$0xff] }
 0x6cc   : > { %18171 = vst.msk [vmem:[%s31153_s11 + $0x258] sm:$0xff] %vm18095_vm2, %v17978_v0  ;;  %v17788_v47 = vadd.f32 %v31592_v22, %v25699_v2  ;;  %v32425_v2 = vld [vmem:[#allocation41_spill] sm:$0xff] }
 0x6cd   : > { %18170 = vst.msk [vmem:[%s31153_s11 + $0x250] sm:$0xff] %vm18095_vm2, %v17977_v59  ;;  %v17787_v55 = vadd.f32 %v31592_v22, %v25700_v3  ;;  %v25452_v15 = vpop.f32.mrb[78].mxu0  ;;  %v32426_v3 = vld [vmem:[#allocation42_spill] sm:$0xff] }
 0x6ce   : > { %v17980_v51 = vmax.f32 %v17788_v47, 0.0  ;;  %v25701_v37 = vadd.f32 %v25452_v15, %v32417_v26  ;;  %24450 = vmatmul.mubr.msk.f32.gmra.mrb[184].mxu1 %vm562_vm1, %v19523_v6  ;;  %v16943_v33 = vpop.f32.mrb[79].mxu0  ;;  %25610 = vmatmul.mubr.msk.f32.gmra.mrb[184].mxu0 %vm562_vm1, %v21067_v5 }
 0x6cf   : > { %v17979_v35 = vmax.f32 %v17787_v55, 0.0  ;;  %v25702_v38 = vadd.f32 %v16943_v33, %v32418_v11  ;;  %24452 = vmatprep.mubr.msk.f32.mxu1 %vm562_vm1, %v19524_v62  ;;  %25612 = vmatprep.mubr.msk.f32.mxu0 %vm562_vm1, %v21068_v45  ;;  %v32427_v55 = vld [vmem:[#allocation43_spill] sm:$0xff] }
 0x6d0   : > { %18173 = vst.msk [vmem:[%s31153_s11 + $0x268] sm:$0xff] %vm18095_vm2, %v17980_v51  ;;  %v17790_v30 = vadd.f32 %v31592_v22, %v25701_v37  ;;  %v32428_v37 = vld [vmem:[#allocation44_spill] sm:$0xff] }
 0x6d1   : > { %18172 = vst.msk [vmem:[%s31153_s11 + $0x260] sm:$0xff] %vm18095_vm2, %v17979_v35  ;;  %v17789_v28 = vadd.f32 %v31592_v22, %v25702_v38  ;;  %v25455_v36 = vpop.f32.mrb[80].mxu0 }
 0x6d2   : > { %v17982_v52 = vmax.f32 %v17790_v30, 0.0  ;;  %v25703_v27 = vadd.f32 %v25455_v36, %v32419_v56  ;;  %24453 = vmatmul.mubr.msk.f32.gmra.mrb[186].mxu1 %vm562_vm1, %v19525_v23  ;;  %v16953_v8 = vpop.f32.mrb[81].mxu0  ;;  %25613 = vmatmul.mubr.msk.f32.gmra.mrb[186].mxu0 %vm562_vm1, %v21069_v60  ;;  %v32429_v60 = vld [vmem:[#allocation45_spill] sm:$0xff] }
 0x6d3   : > { %v17981_v48 = vmax.f32 %v17789_v28, 0.0  ;;  %v25704_v10 = vadd.f32 %v16953_v8, %v32420_v21  ;;  %24455 = vmatprep.mubr.msk.f32.mxu1 %vm562_vm1, %v19526_v61  ;;  %25615 = vmatprep.mubr.msk.f32.mxu0 %vm562_vm1, %v21070_v29  ;;  %v32430_v28 = vld [vmem:[#allocation46_spill] sm:$0xff] }
 0x6d4   : > { %18175 = vst.msk [vmem:[%s31153_s11 + $0x278] sm:$0xff] %vm18095_vm2, %v17982_v52  ;;  %v17792_v14 = vadd.f32 %v31592_v22, %v25703_v27 }
 0x6d5   : > { %18174 = vst.msk [vmem:[%s31153_s11 + $0x270] sm:$0xff] %vm18095_vm2, %v17981_v48  ;;  %v17791_v17 = vadd.f32 %v31592_v22, %v25704_v10  ;;  %v25458_v41 = vpop.f32.mrb[82].mxu0  ;;  %v32431_v48 = vld [vmem:[#allocation47_spill] sm:$0xff] }
 0x6d6   : > { %v17984_v54 = vmax.f32 %v17792_v14, 0.0  ;;  %v25705_v42 = vadd.f32 %v25458_v41, %v32421_v9  ;;  %24456 = vmatmul.mubr.msk.f32.gmra.mrb[188].mxu1 %vm562_vm1, %v19527_v57  ;;  %v16963_v50 = vpop.f32.mrb[83].mxu0  ;;  %25616 = vmatmul.mubr.msk.f32.gmra.mrb[188].mxu0 %vm562_vm1, %v21071_v12  ;;  %v32432_v12 = vld [vmem:[#allocation48_spill] sm:$0xff] }
 0x6d7   : > { %v17983_v19 = vmax.f32 %v17791_v17, 0.0  ;;  %v25706_v4 = vadd.f32 %v16963_v50, %v32422_v44  ;;  %24458 = vmatprep.mubr.msk.f32.mxu1 %vm562_vm1, %v19528_v7  ;;  %25618 = vmatprep.mubr.msk.f32.mxu0 %vm562_vm1, %v21072_v39 }
 0x6d8   : > { %18177 = vst.msk [vmem:[%s31153_s11 + $0x288] sm:$0xff] %vm18095_vm2, %v17984_v54  ;;  %v17794_v16 = vadd.f32 %v31592_v22, %v25705_v42  ;;  %v32433_v54 = vld [vmem:[#allocation49_spill] sm:$0xff] }
 0x6d9   : > { %18176 = vst.msk [vmem:[%s31153_s11 + $0x280] sm:$0xff] %vm18095_vm2, %v17983_v19  ;;  %v17793_v43 = vadd.f32 %v31592_v22, %v25706_v4  ;;  %v25461_v18 = vpop.f32.mrb[84].mxu0  ;;  %v32434_v19 = vld [vmem:[#allocation50_spill] sm:$0xff] }
 0x6da   : > { %v17986_v34 = vmax.f32 %v17794_v16, 0.0  ;;  %v25707_v32 = vadd.f32 %v25461_v18, %v32423_v20  ;;  %24459 = vmatmul.mubr.msk.f32.gmra.mrb[190].mxu1 %vm562_vm1, %v19529_v46  ;;  %v16973_v63 = vpop.f32.mrb[85].mxu0  ;;  %25619 = vmatmul.mubr.msk.f32.gmra.mrb[190].mxu0 %vm562_vm1, %v21073_v49 }
 0x6db   : > { %v17985_v24 = vmax.f32 %v17793_v43, 0.0  ;;  %v25708_v31 = vadd.f32 %v16973_v63, %v32424_v1 }
 0x6dc   : > { %18179 = vst.msk [vmem:[%s31153_s11 + $0x298] sm:$0xff] %vm18095_vm2, %v17986_v34  ;;  %v17796_v25 = vadd.f32 %v31592_v22, %v25707_v32 }
 0x6dd   : > { %18178 = vst.msk [vmem:[%s31153_s11 + $0x290] sm:$0xff] %vm18095_vm2, %v17985_v24  ;;  %v17795_v58 = vadd.f32 %v31592_v22, %v25708_v31  ;;  %v25464_v0 = vpop.f32.mrb[86].mxu0 }
 0x6de   : > { %v17988_v53 = vmax.f32 %v17796_v25, 0.0  ;;  %v25709_v13 = vadd.f32 %v25464_v0, %v32425_v2  ;;  %v16983_v59 = vpop.f32.mrb[87].mxu0 }
 0x6df   : > { %v17987_v40 = vmax.f32 %v17795_v58, 0.0  ;;  %v25710_v6 = vadd.f32 %v16983_v59, %v32426_v3 }
 0x6e0   : > { %18181 = vst.msk [vmem:[%s31153_s11 + $0x2a8] sm:$0xff] %vm18095_vm2, %v17988_v53  ;;  %v17798_v5 = vadd.f32 %v31592_v22, %v25709_v13 }
 0x6e1   : > { %18180 = vst.msk [vmem:[%s31153_s11 + $0x2a0] sm:$0xff] %vm18095_vm2, %v17987_v40  ;;  %v17797_v47 = vadd.f32 %v31592_v22, %v25710_v6  ;;  %v25467_v62 = vpop.f32.mrb[88].mxu0 }
 0x6e2   : > { %v17990_v45 = vmax.f32 %v17798_v5, 0.0  ;;  %v25711_v15 = vadd.f32 %v25467_v62, %v32427_v55  ;;  %v16993_v51 = vpop.f32.mrb[89].mxu0 }
 0x6e3   : > { %v17989_v26 = vmax.f32 %v17797_v47, 0.0  ;;  %v25712_v33 = vadd.f32 %v16993_v51, %v32428_v37 }
 0x6e4   : > { %18183 = vst.msk [vmem:[%s31153_s11 + $0x2b8] sm:$0xff] %vm18095_vm2, %v17990_v45  ;;  %v17800_v35 = vadd.f32 %v31592_v22, %v25711_v15 }
 0x6e5   : > { %18182 = vst.msk [vmem:[%s31153_s11 + $0x2b0] sm:$0xff] %vm18095_vm2, %v17989_v26  ;;  %v17799_v11 = vadd.f32 %v31592_v22, %v25712_v33  ;;  %v25470_v38 = vpop.f32.mrb[90].mxu0 }
 0x6e6   : > { %v17992_v23 = vmax.f32 %v17800_v35, 0.0  ;;  %v25713_v30 = vadd.f32 %v25470_v38, %v32429_v60  ;;  %v17003_v61 = vpop.f32.mrb[91].mxu0 }
 0x6e7   : > { %v17991_v29 = vmax.f32 %v17799_v11, 0.0  ;;  %v25714_v36 = vadd.f32 %v17003_v61, %v32430_v28 }
 0x6e8   : > { %18185 = vst.msk [vmem:[%s31153_s11 + $0x2c8] sm:$0xff] %vm18095_vm2, %v17992_v23  ;;  %v17802_v52 = vadd.f32 %v31592_v22, %v25713_v30 }
 0x6e9   : > { %18184 = vst.msk [vmem:[%s31153_s11 + $0x2c0] sm:$0xff] %vm18095_vm2, %v17991_v29  ;;  %v17801_v56 = vadd.f32 %v31592_v22, %v25714_v36  ;;  %v25473_v27 = vpop.f32.mrb[92].mxu0 }
 0x6ea   : > { %v17994_v8 = vmax.f32 %v17802_v52, 0.0  ;;  %v25715_v21 = vadd.f32 %v25473_v27, %v32431_v48  ;;  %v17013_v10 = vpop.f32.mrb[93].mxu0 }
 0x6eb   : > { %v17993_v57 = vmax.f32 %v17801_v56, 0.0  ;;  %v25716_v14 = vadd.f32 %v17013_v10, %v32432_v12 }
 0x6ec   : > { %18187 = vst.msk [vmem:[%s31153_s11 + $0x2d8] sm:$0xff] %vm18095_vm2, %v17994_v8  ;;  %v17804_v7 = vadd.f32 %v31592_v22, %v25715_v21 }
 0x6ed   : > { %18186 = vst.msk [vmem:[%s31153_s11 + $0x2d0] sm:$0xff] %vm18095_vm2, %v17993_v57  ;;  %v17803_v39 = vadd.f32 %v31592_v22, %v25716_v14  ;;  %v25476_v17 = vpop.f32.mrb[94].mxu0 }
 0x6ee   : > { %v17996_v41 = vmax.f32 %v17804_v7, 0.0  ;;  %v25717_v9 = vadd.f32 %v25476_v17, %v32433_v54  ;;  %v17023_v42 = vpop.f32.mrb[95].mxu0 }
 0x6ef   : > { %v17995_v50 = vmax.f32 %v17803_v39, 0.0  ;;  %v25718_v44 = vadd.f32 %v17023_v42, %v32434_v19 }
 0x6f0   : > { %18189 = vst.msk [vmem:[%s31153_s11 + $0x2e8] sm:$0xff] %vm18095_vm2, %v17996_v41  ;;  %v17806_v4 = vadd.f32 %v31592_v22, %v25717_v9 }
 0x6f1   : > { %18188 = vst.msk [vmem:[%s31153_s11 + $0x2e0] sm:$0xff] %vm18095_vm2, %v17995_v50  ;;  %v17805_v46 = vadd.f32 %v31592_v22, %v25718_v44  ;;  %v24319_v49 = vpop.f32.mrb[96].mxu1  ;;  %v25479_v16 = vpop.f32.mrb[96].mxu0 }
 0x6f2   : > { %v17998_v43 = vmax.f32 %v17806_v4, 0.0  ;;  %v25719_v18 = vadd.f32 %v25479_v16, %v24319_v49  ;;  %v9072_v34 = vpop.f32.mrb[97].mxu1  ;;  %v17033_v20 = vpop.f32.mrb[97].mxu0 }
 0x6f3   : > { %v17997_v32 = vmax.f32 %v17805_v46, 0.0  ;;  %v25720_v63 = vadd.f32 %v17033_v20, %v9072_v34 }
 0x6f4   : > { %18191 = vst.msk [vmem:[%s31153_s11 + $0x2f8] sm:$0xff] %vm18095_vm2, %v17998_v43  ;;  %v17808_v24 = vadd.f32 %v31592_v22, %v25719_v18 }
 0x6f5   : > { %18190 = vst.msk [vmem:[%s31153_s11 + $0x2f0] sm:$0xff] %vm18095_vm2, %v17997_v32  ;;  %v17807_v1 = vadd.f32 %v31592_v22, %v25720_v63  ;;  %v24322_v31 = vpop.f32.mrb[98].mxu1  ;;  %v25482_v25 = vpop.f32.mrb[98].mxu0 }
 0x6f6   : > { %v18000_v58 = vmax.f32 %v17808_v24, 0.0  ;;  %v25721_v0 = vadd.f32 %v25482_v25, %v24322_v31  ;;  %v9082_v53 = vpop.f32.mrb[99].mxu1  ;;  %v17043_v2 = vpop.f32.mrb[99].mxu0 }
 0x6f7   : > { %v17999_v13 = vmax.f32 %v17807_v1, 0.0  ;;  %v25722_v59 = vadd.f32 %v17043_v2, %v9082_v53 }
 0x6f8   : > { %18193 = vst.msk [vmem:[%s31153_s11 + $0x308] sm:$0xff] %vm18095_vm2, %v18000_v58  ;;  %v17810_v40 = vadd.f32 %v31592_v22, %v25721_v0 }
 0x6f9   : > { %18192 = vst.msk [vmem:[%s31153_s11 + $0x300] sm:$0xff] %vm18095_vm2, %v17999_v13  ;;  %v17809_v3 = vadd.f32 %v31592_v22, %v25722_v59  ;;  %v24325_v6 = vpop.f32.mrb[100].mxu1  ;;  %v25485_v5 = vpop.f32.mrb[100].mxu0 }
 0x6fa   : > { %v18002_v47 = vmax.f32 %v17810_v40, 0.0  ;;  %v25723_v62 = vadd.f32 %v25485_v5, %v24325_v6  ;;  %v9092_v45 = vpop.f32.mrb[101].mxu1  ;;  %v17053_v55 = vpop.f32.mrb[101].mxu0 }
 0x6fb   : > { %v18001_v15 = vmax.f32 %v17809_v3, 0.0  ;;  %v25724_v51 = vadd.f32 %v17053_v55, %v9092_v45 }
 0x6fc   : > { %18195 = vst.msk [vmem:[%s31153_s11 + $0x318] sm:$0xff] %vm18095_vm2, %v18002_v47  ;;  %v17812_v26 = vadd.f32 %v31592_v22, %v25723_v62 }
 0x6fd   : > { %18194 = vst.msk [vmem:[%s31153_s11 + $0x310] sm:$0xff] %vm18095_vm2, %v18001_v15  ;;  %v17811_v37 = vadd.f32 %v31592_v22, %v25724_v51  ;;  %v24328_v33 = vpop.f32.mrb[102].mxu1  ;;  %v25488_v35 = vpop.f32.mrb[102].mxu0 }
 0x6fe   : > { %v18004_v11 = vmax.f32 %v17812_v26, 0.0  ;;  %v25725_v38 = vadd.f32 %v25488_v35, %v24328_v33  ;;  %v9102_v23 = vpop.f32.mrb[103].mxu1  ;;  %v17063_v60 = vpop.f32.mrb[103].mxu0 }
 0x6ff   : > { %v18003_v30 = vmax.f32 %v17811_v37, 0.0  ;;  %v25726_v61 = vadd.f32 %v17063_v60, %v9102_v23 }
 0x700   : > { %18197 = vst.msk [vmem:[%s31153_s11 + $0x328] sm:$0xff] %vm18095_vm2, %v18004_v11  ;;  %v17814_v29 = vadd.f32 %v31592_v22, %v25725_v38 }
 0x701   : > { %18196 = vst.msk [vmem:[%s31153_s11 + $0x320] sm:$0xff] %vm18095_vm2, %v18003_v30  ;;  %v17813_v28 = vadd.f32 %v31592_v22, %v25726_v61  ;;  %v24331_v36 = vpop.f32.mrb[104].mxu1  ;;  %v25491_v52 = vpop.f32.mrb[104].mxu0 }
 0x702   : > { %v18006_v56 = vmax.f32 %v17814_v29, 0.0  ;;  %v25727_v27 = vadd.f32 %v25491_v52, %v24331_v36  ;;  %v9112_v8 = vpop.f32.mrb[105].mxu1  ;;  %v17073_v48 = vpop.f32.mrb[105].mxu0 }
 0x703   : > { %v18005_v21 = vmax.f32 %v17813_v28, 0.0  ;;  %v25728_v10 = vadd.f32 %v17073_v48, %v9112_v8 }
 0x704   : > { %18199 = vst.msk [vmem:[%s31153_s11 + $0x338] sm:$0xff] %vm18095_vm2, %v18006_v56  ;;  %v17816_v57 = vadd.f32 %v31592_v22, %v25727_v27 }
 0x705   : > { %18198 = vst.msk [vmem:[%s31153_s11 + $0x330] sm:$0xff] %vm18095_vm2, %v18005_v21  ;;  %v17815_v12 = vadd.f32 %v31592_v22, %v25728_v10  ;;  %v24334_v14 = vpop.f32.mrb[106].mxu1  ;;  %v25494_v7 = vpop.f32.mrb[106].mxu0 }
 0x706   : > { %v18008_v39 = vmax.f32 %v17816_v57, 0.0  ;;  %v25729_v17 = vadd.f32 %v25494_v7, %v24334_v14  ;;  %v9122_v41 = vpop.f32.mrb[107].mxu1  ;;  %v17083_v54 = vpop.f32.mrb[107].mxu0 }
 0x707   : > { %v18007_v9 = vmax.f32 %v17815_v12, 0.0  ;;  %v25730_v42 = vadd.f32 %v17083_v54, %v9122_v41 }
 0x708   : > { %18201 = vst.msk [vmem:[%s31153_s11 + $0x348] sm:$0xff] %vm18095_vm2, %v18008_v39  ;;  %v17818_v50 = vadd.f32 %v31592_v22, %v25729_v17 }
 0x709   : > { %18200 = vst.msk [vmem:[%s31153_s11 + $0x340] sm:$0xff] %vm18095_vm2, %v18007_v9  ;;  %v17817_v19 = vadd.f32 %v31592_v22, %v25730_v42  ;;  %v24337_v44 = vpop.f32.mrb[108].mxu1  ;;  %v25497_v4 = vpop.f32.mrb[108].mxu0 }
 0x70a   : > { %v18010_v46 = vmax.f32 %v17818_v50, 0.0  ;;  %v25731_v49 = vadd.f32 %v25497_v4, %v24337_v44  ;;  %v9132_v16 = vpop.f32.mrb[109].mxu1  ;;  %v17093_v43 = vpop.f32.mrb[109].mxu0 }
 0x70b   : > { %v18009_v18 = vmax.f32 %v17817_v19, 0.0  ;;  %v25732_v34 = vadd.f32 %v17093_v43, %v9132_v16 }
 0x70c   : > { %18203 = vst.msk [vmem:[%s31153_s11 + $0x358] sm:$0xff] %vm18095_vm2, %v18010_v46  ;;  %v17820_v20 = vadd.f32 %v31592_v22, %v25731_v49 }
 0x70d   : > { %18202 = vst.msk [vmem:[%s31153_s11 + $0x350] sm:$0xff] %vm18095_vm2, %v18009_v18  ;;  %v17819_v32 = vadd.f32 %v31592_v22, %v25732_v34  ;;  %v24340_v63 = vpop.f32.mrb[110].mxu1  ;;  %v25500_v24 = vpop.f32.mrb[110].mxu0 }
 0x70e   : > { %v18012_v1 = vmax.f32 %v17820_v20, 0.0  ;;  %v25733_v31 = vadd.f32 %v25500_v24, %v24340_v63  ;;  %v9142_v25 = vpop.f32.mrb[111].mxu1  ;;  %v17103_v58 = vpop.f32.mrb[111].mxu0 }
 0x70f   : > { %v18011_v0 = vmax.f32 %v17819_v32, 0.0  ;;  %v25734_v53 = vadd.f32 %v17103_v58, %v9142_v25 }
 0x710   : > { %18205 = vst.msk [vmem:[%s31153_s11 + $0x368] sm:$0xff] %vm18095_vm2, %v18012_v1  ;;  %v17822_v2 = vadd.f32 %v31592_v22, %v25733_v31 }
 0x711   : > { %18204 = vst.msk [vmem:[%s31153_s11 + $0x360] sm:$0xff] %vm18095_vm2, %v18011_v0  ;;  %v17821_v13 = vadd.f32 %v31592_v22, %v25734_v53  ;;  %v24343_v59 = vpop.f32.mrb[112].mxu1  ;;  %v25503_v40 = vpop.f32.mrb[112].mxu0 }
 0x712   : > { %v18014_v3 = vmax.f32 %v17822_v2, 0.0  ;;  %v25735_v6 = vadd.f32 %v25503_v40, %v24343_v59  ;;  %v9152_v5 = vpop.f32.mrb[113].mxu1  ;;  %v17113_v47 = vpop.f32.mrb[113].mxu0 }
 0x713   : > { %v18013_v62 = vmax.f32 %v17821_v13, 0.0  ;;  %v25736_v45 = vadd.f32 %v17113_v47, %v9152_v5 }
 0x714   : > { %18207 = vst.msk [vmem:[%s31153_s11 + $0x378] sm:$0xff] %vm18095_vm2, %v18014_v3  ;;  %v17824_v55 = vadd.f32 %v31592_v22, %v25735_v6 }
 0x715   : > { %18206 = vst.msk [vmem:[%s31153_s11 + $0x370] sm:$0xff] %vm18095_vm2, %v18013_v62  ;;  %v17823_v15 = vadd.f32 %v31592_v22, %v25736_v45  ;;  %v24346_v51 = vpop.f32.mrb[114].mxu1  ;;  %v25506_v26 = vpop.f32.mrb[114].mxu0 }
 0x716   : > { %v18016_v37 = vmax.f32 %v17824_v55, 0.0  ;;  %v25737_v33 = vadd.f32 %v25506_v26, %v24346_v51  ;;  %v9162_v35 = vpop.f32.mrb[115].mxu1  ;;  %v17123_v11 = vpop.f32.mrb[115].mxu0 }
 0x717   : > { %v18015_v38 = vmax.f32 %v17823_v15, 0.0  ;;  %v25738_v23 = vadd.f32 %v17123_v11, %v9162_v35 }
 0x718   : > { %18209 = vst.msk [vmem:[%s31153_s11 + $0x388] sm:$0xff] %vm18095_vm2, %v18016_v37  ;;  %v17826_v60 = vadd.f32 %v31592_v22, %v25737_v33 }
 0x719   : > { %18208 = vst.msk [vmem:[%s31153_s11 + $0x380] sm:$0xff] %vm18095_vm2, %v18015_v38  ;;  %v17825_v30 = vadd.f32 %v31592_v22, %v25738_v23  ;;  %v24349_v61 = vpop.f32.mrb[116].mxu1  ;;  %v25509_v29 = vpop.f32.mrb[116].mxu0 }
 0x71a   : > { %v18018_v28 = vmax.f32 %v17826_v60, 0.0  ;;  %v25739_v36 = vadd.f32 %v25509_v29, %v24349_v61  ;;  %v9172_v52 = vpop.f32.mrb[117].mxu1  ;;  %v17133_v56 = vpop.f32.mrb[117].mxu0 }
 0x71b   : > { %v18017_v27 = vmax.f32 %v17825_v30, 0.0  ;;  %v25740_v8 = vadd.f32 %v17133_v56, %v9172_v52 }
 0x71c   : > { %18211 = vst.msk [vmem:[%s31153_s11 + $0x398] sm:$0xff] %vm18095_vm2, %v18018_v28  ;;  %v17828_v48 = vadd.f32 %v31592_v22, %v25739_v36 }
 0x71d   : > { %18210 = vst.msk [vmem:[%s31153_s11 + $0x390] sm:$0xff] %vm18095_vm2, %v18017_v27  ;;  %v17827_v21 = vadd.f32 %v31592_v22, %v25740_v8  ;;  %v24352_v10 = vpop.f32.mrb[118].mxu1  ;;  %v25512_v57 = vpop.f32.mrb[118].mxu0 }
 0x71e   : > { %v18020_v12 = vmax.f32 %v17828_v48, 0.0  ;;  %v25741_v14 = vadd.f32 %v25512_v57, %v24352_v10  ;;  %v9182_v7 = vpop.f32.mrb[119].mxu1  ;;  %v17143_v39 = vpop.f32.mrb[119].mxu0 }
 0x71f   : > { %v18019_v17 = vmax.f32 %v17827_v21, 0.0  ;;  %v25742_v41 = vadd.f32 %v17143_v39, %v9182_v7  ;;  %v31963_v39 = vld [vmem:[%s32207_s2] ss:$0 sm:$0xff] }
 0x720   : > { %18213 = vst.msk [vmem:[%s31153_s11 + $0x3a8] sm:$0xff] %vm18095_vm2, %v18020_v12  ;;  %v17830_v54 = vadd.f32 %v31592_v22, %v25741_v14 }
 0x721   : > { %18212 = vst.msk [vmem:[%s31153_s11 + $0x3a0] sm:$0xff] %vm18095_vm2, %v18019_v17  ;;  %v17829_v9 = vadd.f32 %v31592_v22, %v25742_v41  ;;  %v24355_v42 = vpop.f32.mrb[120].mxu1  ;;  %v25515_v50 = vpop.f32.mrb[120].mxu0 }
 0x722   : > { %v18022_v19 = vmax.f32 %v17830_v54, 0.0  ;;  %v25743_v44 = vadd.f32 %v25515_v50, %v24355_v42  ;;  %v9192_v4 = vpop.f32.mrb[121].mxu1  ;;  %v17153_v46 = vpop.f32.mrb[121].mxu0 }
 0x723   : > { %v18021_v49 = vmax.f32 %v17829_v9, 0.0  ;;  %v25744_v16 = vadd.f32 %v17153_v46, %v9192_v4 }
 0x724   : > { %18215 = vst.msk [vmem:[%s31153_s11 + $0x3b8] sm:$0xff] %vm18095_vm2, %v18022_v19  ;;  %v17832_v43 = vadd.f32 %v31592_v22, %v25743_v44 }
 0x725   : > { %18214 = vst.msk [vmem:[%s31153_s11 + $0x3b0] sm:$0xff] %vm18095_vm2, %v18021_v49  ;;  %v17831_v18 = vadd.f32 %v31592_v22, %v25744_v16  ;;  %v24358_v34 = vpop.f32.mrb[122].mxu1  ;;  %v25518_v20 = vpop.f32.mrb[122].mxu0 }
 0x726   : > { %v18024_v32 = vmax.f32 %v17832_v43, 0.0  ;;  %v25745_v63 = vadd.f32 %v25518_v20, %v24358_v34  ;;  %v9202_v24 = vpop.f32.mrb[123].mxu1  ;;  %v17163_v1 = vpop.f32.mrb[123].mxu0 }
 0x727   : > { %v18023_v31 = vmax.f32 %v17831_v18, 0.0  ;;  %v25746_v25 = vadd.f32 %v17163_v1, %v9202_v24 }
 0x728   : > { %18217 = vst.msk [vmem:[%s31153_s11 + $0x3c8] sm:$0xff] %vm18095_vm2, %v18024_v32  ;;  %v17834_v58 = vadd.f32 %v31592_v22, %v25745_v63 }
 0x729   : > { %18216 = vst.msk [vmem:[%s31153_s11 + $0x3c0] sm:$0xff] %vm18095_vm2, %v18023_v31  ;;  %v17833_v0 = vadd.f32 %v31592_v22, %v25746_v25  ;;  %v24361_v53 = vpop.f32.mrb[124].mxu1  ;;  %v25521_v2 = vpop.f32.mrb[124].mxu0 }
 0x72a   : > { %v18026_v13 = vmax.f32 %v17834_v58, 0.0  ;;  %v25747_v59 = vadd.f32 %v25521_v2, %v24361_v53  ;;  %v9212_v40 = vpop.f32.mrb[125].mxu1  ;;  %v17173_v3 = vpop.f32.mrb[125].mxu0 }
 0x72b   : > { %v18025_v6 = vmax.f32 %v17833_v0, 0.0  ;;  %v25748_v5 = vadd.f32 %v17173_v3, %v9212_v40 }
 0x72c   : > { %18219 = vst.msk [vmem:[%s31153_s11 + $0x3d8] sm:$0xff] %vm18095_vm2, %v18026_v13  ;;  %v17836_v47 = vadd.f32 %v31592_v22, %v25747_v59 }
 0x72d   : > { %18218 = vst.msk [vmem:[%s31153_s11 + $0x3d0] sm:$0xff] %vm18095_vm2, %v18025_v6  ;;  %v17835_v62 = vadd.f32 %v31592_v22, %v25748_v5  ;;  %v24364_v45 = vpop.f32.mrb[126].mxu1  ;;  %v25524_v55 = vpop.f32.mrb[126].mxu0 }
 0x72e   : > { %v18028_v15 = vmax.f32 %v17836_v47, 0.0  ;;  %v25749_v51 = vadd.f32 %v25524_v55, %v24364_v45  ;;  %v9222_v26 = vpop.f32.mrb[127].mxu1  ;;  %v17183_v37 = vpop.f32.mrb[127].mxu0 }
 0x72f   : > { %v18027_v33 = vmax.f32 %v17835_v62, 0.0  ;;  %v25750_v35 = vadd.f32 %v17183_v37, %v9222_v26 }
 0x730   : > { %18221 = vst.msk [vmem:[%s31153_s11 + $0x3e8] sm:$0xff] %vm18095_vm2, %v18028_v15  ;;  %v17838_v11 = vadd.f32 %v31592_v22, %v25749_v51 }
 0x731   : > { %18220 = vst.msk [vmem:[%s31153_s11 + $0x3e0] sm:$0xff] %vm18095_vm2, %v18027_v33  ;;  %v17837_v38 = vadd.f32 %v31592_v22, %v25750_v35  ;;  %v24367_v23 = vpop.f32.mrb[128].mxu1  ;;  %v25527_v60 = vpop.f32.mrb[128].mxu0 }
 0x732   : > { %v18030_v30 = vmax.f32 %v17838_v11, 0.0  ;;  %v25751_v61 = vadd.f32 %v25527_v60, %v24367_v23  ;;  %v9232_v29 = vpop.f32.mrb[129].mxu1  ;;  %v17193_v28 = vpop.f32.mrb[129].mxu0 }
 0x733   : > { %v18029_v36 = vmax.f32 %v17837_v38, 0.0  ;;  %v25752_v52 = vadd.f32 %v17193_v28, %v9232_v29 }
 0x734   : > { %18223 = vst.msk [vmem:[%s31153_s11 + $0x3f8] sm:$0xff] %vm18095_vm2, %v18030_v30  ;;  %v17840_v56 = vadd.f32 %v31592_v22, %v25751_v61 }
 0x735   : > { %18222 = vst.msk [vmem:[%s31153_s11 + $0x3f0] sm:$0xff] %vm18095_vm2, %v18029_v36  ;;  %v17839_v27 = vadd.f32 %v31592_v22, %v25752_v52  ;;  %v24370_v8 = vpop.f32.mrb[130].mxu1  ;;  %v25530_v48 = vpop.f32.mrb[130].mxu0 }
 0x736   : > { %v18032_v21 = vmax.f32 %v17840_v56, 0.0  ;;  %v25753_v10 = vadd.f32 %v25530_v48, %v24370_v8  ;;  %v9242_v57 = vpop.f32.mrb[131].mxu1  ;;  %v17203_v12 = vpop.f32.mrb[131].mxu0 }
 0x737   : > { %v18031_v14 = vmax.f32 %v17839_v27, 0.0  ;;  %v25754_v7 = vadd.f32 %v17203_v12, %v9242_v57 }
 0x738   : > { %18225 = vst.msk [vmem:[%s31153_s11 + $0x408] sm:$0xff] %vm18095_vm2, %v18032_v21  ;;  %v17842_v17 = vadd.f32 %v31963_v39, %v25753_v10 }
 0x739   : > { %18224 = vst.msk [vmem:[%s31153_s11 + $0x400] sm:$0xff] %vm18095_vm2, %v18031_v14  ;;  %v17841_v22 = vadd.f32 %v31963_v39, %v25754_v7  ;;  %v24373_v41 = vpop.f32.mrb[132].mxu1  ;;  %v25533_v54 = vpop.f32.mrb[132].mxu0 }
 0x73a   : > { %v18034_v9 = vmax.f32 %v17842_v17, 0.0  ;;  %v25755_v42 = vadd.f32 %v25533_v54, %v24373_v41  ;;  %v9252_v50 = vpop.f32.mrb[133].mxu1  ;;  %v17213_v19 = vpop.f32.mrb[133].mxu0 }
 0x73b   : > { %v18033_v44 = vmax.f32 %v17841_v22, 0.0  ;;  %v25756_v4 = vadd.f32 %v17213_v19, %v9252_v50 }
 0x73c   : > { %18227 = vst.msk [vmem:[%s31153_s11 + $0x418] sm:$0xff] %vm18095_vm2, %v18034_v9  ;;  %v17844_v46 = vadd.f32 %v31963_v39, %v25755_v42 }
 0x73d   : > { %18226 = vst.msk [vmem:[%s31153_s11 + $0x410] sm:$0xff] %vm18095_vm2, %v18033_v44  ;;  %v17843_v49 = vadd.f32 %v31963_v39, %v25756_v4  ;;  %v24376_v16 = vpop.f32.mrb[134].mxu1  ;;  %v25536_v43 = vpop.f32.mrb[134].mxu0 }
 0x73e   : > { %v18036_v18 = vmax.f32 %v17844_v46, 0.0  ;;  %v25757_v34 = vadd.f32 %v25536_v43, %v24376_v16  ;;  %v9262_v20 = vpop.f32.mrb[135].mxu1  ;;  %v17223_v32 = vpop.f32.mrb[135].mxu0 }
 0x73f   : > { %v18035_v63 = vmax.f32 %v17843_v49, 0.0  ;;  %v25758_v24 = vadd.f32 %v17223_v32, %v9262_v20 }
 0x740   : > { %18229 = vst.msk [vmem:[%s31153_s11 + $0x428] sm:$0xff] %vm18095_vm2, %v18036_v18  ;;  %v17846_v1 = vadd.f32 %v31963_v39, %v25757_v34 }
 0x741   : > { %18228 = vst.msk [vmem:[%s31153_s11 + $0x420] sm:$0xff] %vm18095_vm2, %v18035_v63  ;;  %v17845_v31 = vadd.f32 %v31963_v39, %v25758_v24  ;;  %v24379_v25 = vpop.f32.mrb[136].mxu1  ;;  %v25539_v58 = vpop.f32.mrb[136].mxu0 }
 0x742   : > { %v18038_v0 = vmax.f32 %v17846_v1, 0.0  ;;  %v25759_v53 = vadd.f32 %v25539_v58, %v24379_v25  ;;  %v9272_v2 = vpop.f32.mrb[137].mxu1  ;;  %v17233_v13 = vpop.f32.mrb[137].mxu0 }
 0x743   : > { %v18037_v59 = vmax.f32 %v17845_v31, 0.0  ;;  %v25760_v40 = vadd.f32 %v17233_v13, %v9272_v2 }
 0x744   : > { %18231 = vst.msk [vmem:[%s31153_s11 + $0x438] sm:$0xff] %vm18095_vm2, %v18038_v0  ;;  %v17848_v3 = vadd.f32 %v31963_v39, %v25759_v53 }
 0x745   : > { %18230 = vst.msk [vmem:[%s31153_s11 + $0x430] sm:$0xff] %vm18095_vm2, %v18037_v59  ;;  %v17847_v6 = vadd.f32 %v31963_v39, %v25760_v40  ;;  %v24382_v5 = vpop.f32.mrb[138].mxu1  ;;  %v25542_v47 = vpop.f32.mrb[138].mxu0 }
 0x746   : > { %v18040_v62 = vmax.f32 %v17848_v3, 0.0  ;;  %v25761_v45 = vadd.f32 %v25542_v47, %v24382_v5  ;;  %v9282_v55 = vpop.f32.mrb[139].mxu1  ;;  %v17243_v15 = vpop.f32.mrb[139].mxu0 }
 0x747   : > { %v18039_v51 = vmax.f32 %v17847_v6, 0.0  ;;  %v25762_v26 = vadd.f32 %v17243_v15, %v9282_v55 }
 0x748   : > { %18233 = vst.msk [vmem:[%s31153_s11 + $0x448] sm:$0xff] %vm18095_vm2, %v18040_v62  ;;  %v17850_v37 = vadd.f32 %v31963_v39, %v25761_v45 }
 0x749   : > { %18232 = vst.msk [vmem:[%s31153_s11 + $0x440] sm:$0xff] %vm18095_vm2, %v18039_v51  ;;  %v17849_v33 = vadd.f32 %v31963_v39, %v25762_v26  ;;  %v24385_v35 = vpop.f32.mrb[140].mxu1  ;;  %v25545_v11 = vpop.f32.mrb[140].mxu0 }
 0x74a   : > { %v18042_v38 = vmax.f32 %v17850_v37, 0.0  ;;  %v25763_v23 = vadd.f32 %v25545_v11, %v24385_v35  ;;  %v9292_v60 = vpop.f32.mrb[141].mxu1  ;;  %v17253_v30 = vpop.f32.mrb[141].mxu0 }
 0x74b   : > { %v18041_v61 = vmax.f32 %v17849_v33, 0.0  ;;  %v25764_v29 = vadd.f32 %v17253_v30, %v9292_v60 }
 0x74c   : > { %18235 = vst.msk [vmem:[%s31153_s11 + $0x458] sm:$0xff] %vm18095_vm2, %v18042_v38  ;;  %v17852_v28 = vadd.f32 %v31963_v39, %v25763_v23 }
 0x74d   : > { %18234 = vst.msk [vmem:[%s31153_s11 + $0x450] sm:$0xff] %vm18095_vm2, %v18041_v61  ;;  %v17851_v36 = vadd.f32 %v31963_v39, %v25764_v29  ;;  %v24388_v52 = vpop.f32.mrb[142].mxu1  ;;  %v25548_v56 = vpop.f32.mrb[142].mxu0 }
 0x74e   : > { %v18044_v27 = vmax.f32 %v17852_v28, 0.0  ;;  %v25765_v8 = vadd.f32 %v25548_v56, %v24388_v52  ;;  %v9302_v48 = vpop.f32.mrb[143].mxu1  ;;  %v17263_v21 = vpop.f32.mrb[143].mxu0 }
 0x74f   : > { %v18043_v10 = vmax.f32 %v17851_v36, 0.0  ;;  %v25766_v57 = vadd.f32 %v17263_v21, %v9302_v48 }
 0x750   : > { %18237 = vst.msk [vmem:[%s31153_s11 + $0x468] sm:$0xff] %vm18095_vm2, %v18044_v27  ;;  %v17854_v12 = vadd.f32 %v31963_v39, %v25765_v8 }
 0x751   : > { %18236 = vst.msk [vmem:[%s31153_s11 + $0x460] sm:$0xff] %vm18095_vm2, %v18043_v10  ;;  %v17853_v14 = vadd.f32 %v31963_v39, %v25766_v57  ;;  %v24391_v7 = vpop.f32.mrb[144].mxu1  ;;  %v25551_v17 = vpop.f32.mrb[144].mxu0 }
 0x752   : > { %v18046_v22 = vmax.f32 %v17854_v12, 0.0  ;;  %v25767_v41 = vadd.f32 %v25551_v17, %v24391_v7  ;;  %v9312_v54 = vpop.f32.mrb[145].mxu1  ;;  %v17273_v9 = vpop.f32.mrb[145].mxu0 }
 0x753   : > { %v18045_v42 = vmax.f32 %v17853_v14, 0.0  ;;  %v25768_v50 = vadd.f32 %v17273_v9, %v9312_v54 }
 0x754   : > { %18239 = vst.msk [vmem:[%s31153_s11 + $0x478] sm:$0xff] %vm18095_vm2, %v18046_v22  ;;  %v17856_v19 = vadd.f32 %v31963_v39, %v25767_v41 }
 0x755   : > { %18238 = vst.msk [vmem:[%s31153_s11 + $0x470] sm:$0xff] %vm18095_vm2, %v18045_v42  ;;  %v17855_v44 = vadd.f32 %v31963_v39, %v25768_v50  ;;  %v24394_v4 = vpop.f32.mrb[146].mxu1  ;;  %v25554_v46 = vpop.f32.mrb[146].mxu0 }
 0x756   : > { %v18048_v49 = vmax.f32 %v17856_v19, 0.0  ;;  %v25769_v16 = vadd.f32 %v25554_v46, %v24394_v4  ;;  %v9322_v43 = vpop.f32.mrb[147].mxu1  ;;  %v17283_v18 = vpop.f32.mrb[147].mxu0 }
 0x757   : > { %v18047_v34 = vmax.f32 %v17855_v44, 0.0  ;;  %v25770_v20 = vadd.f32 %v17283_v18, %v9322_v43 }
 0x758   : > { %18241 = vst.msk [vmem:[%s31153_s11 + $0x488] sm:$0xff] %vm18095_vm2, %v18048_v49  ;;  %v17858_v32 = vadd.f32 %v31963_v39, %v25769_v16 }
 0x759   : > { %18240 = vst.msk [vmem:[%s31153_s11 + $0x480] sm:$0xff] %vm18095_vm2, %v18047_v34  ;;  %v17857_v63 = vadd.f32 %v31963_v39, %v25770_v20  ;;  %v24397_v24 = vpop.f32.mrb[148].mxu1  ;;  %v25557_v1 = vpop.f32.mrb[148].mxu0 }
 0x75a   : > { %v18050_v31 = vmax.f32 %v17858_v32, 0.0  ;;  %v25771_v25 = vadd.f32 %v25557_v1, %v24397_v24  ;;  %v9332_v58 = vpop.f32.mrb[149].mxu1  ;;  %v17293_v0 = vpop.f32.mrb[149].mxu0 }
 0x75b   : > { %v18049_v53 = vmax.f32 %v17857_v63, 0.0  ;;  %v25772_v2 = vadd.f32 %v17293_v0, %v9332_v58 }
 0x75c   : > { %18243 = vst.msk [vmem:[%s31153_s11 + $0x498] sm:$0xff] %vm18095_vm2, %v18050_v31  ;;  %v17860_v13 = vadd.f32 %v31963_v39, %v25771_v25 }
 0x75d   : > { %18242 = vst.msk [vmem:[%s31153_s11 + $0x490] sm:$0xff] %vm18095_vm2, %v18049_v53  ;;  %v17859_v59 = vadd.f32 %v31963_v39, %v25772_v2  ;;  %v24400_v40 = vpop.f32.mrb[150].mxu1  ;;  %v25560_v3 = vpop.f32.mrb[150].mxu0 }
 0x75e   : > { %v18052_v6 = vmax.f32 %v17860_v13, 0.0  ;;  %v25773_v5 = vadd.f32 %v25560_v3, %v24400_v40  ;;  %v9342_v47 = vpop.f32.mrb[151].mxu1  ;;  %v17303_v62 = vpop.f32.mrb[151].mxu0 }
 0x75f   : > { %v18051_v45 = vmax.f32 %v17859_v59, 0.0  ;;  %v25774_v55 = vadd.f32 %v17303_v62, %v9342_v47 }
 0x760   : > { %18245 = vst.msk [vmem:[%s31153_s11 + $0x4a8] sm:$0xff] %vm18095_vm2, %v18052_v6  ;;  %v17862_v15 = vadd.f32 %v31963_v39, %v25773_v5 }
 0x761   : > { %18244 = vst.msk [vmem:[%s31153_s11 + $0x4a0] sm:$0xff] %vm18095_vm2, %v18051_v45  ;;  %v17861_v51 = vadd.f32 %v31963_v39, %v25774_v55  ;;  %v24403_v26 = vpop.f32.mrb[152].mxu1  ;;  %v25563_v37 = vpop.f32.mrb[152].mxu0 }
 0x762   : > { %v18054_v33 = vmax.f32 %v17862_v15, 0.0  ;;  %v25775_v35 = vadd.f32 %v25563_v37, %v24403_v26  ;;  %v9352_v11 = vpop.f32.mrb[153].mxu1  ;;  %v17313_v38 = vpop.f32.mrb[153].mxu0 }
 0x763   : > { %v18053_v23 = vmax.f32 %v17861_v51, 0.0  ;;  %v25776_v60 = vadd.f32 %v17313_v38, %v9352_v11 }
 0x764   : > { %18247 = vst.msk [vmem:[%s31153_s11 + $0x4b8] sm:$0xff] %vm18095_vm2, %v18054_v33  ;;  %v17864_v30 = vadd.f32 %v31963_v39, %v25775_v35 }
 0x765   : > { %18246 = vst.msk [vmem:[%s31153_s11 + $0x4b0] sm:$0xff] %vm18095_vm2, %v18053_v23  ;;  %v17863_v61 = vadd.f32 %v31963_v39, %v25776_v60  ;;  %v24406_v29 = vpop.f32.mrb[154].mxu1  ;;  %v25566_v28 = vpop.f32.mrb[154].mxu0 }
 0x766   : > { %v18056_v36 = vmax.f32 %v17864_v30, 0.0  ;;  %v25777_v52 = vadd.f32 %v25566_v28, %v24406_v29  ;;  %v9362_v56 = vpop.f32.mrb[155].mxu1  ;;  %v17323_v27 = vpop.f32.mrb[155].mxu0 }
 0x767   : > { %v18055_v8 = vmax.f32 %v17863_v61, 0.0  ;;  %v25778_v48 = vadd.f32 %v17323_v27, %v9362_v56 }
 0x768   : > { %18249 = vst.msk [vmem:[%s31153_s11 + $0x4c8] sm:$0xff] %vm18095_vm2, %v18056_v36  ;;  %v17866_v21 = vadd.f32 %v31963_v39, %v25777_v52 }
 0x769   : > { %18248 = vst.msk [vmem:[%s31153_s11 + $0x4c0] sm:$0xff] %vm18095_vm2, %v18055_v8  ;;  %v17865_v10 = vadd.f32 %v31963_v39, %v25778_v48  ;;  %v24409_v57 = vpop.f32.mrb[156].mxu1  ;;  %v25569_v12 = vpop.f32.mrb[156].mxu0 }
 0x76a   : > { %v18058_v14 = vmax.f32 %v17866_v21, 0.0  ;;  %v25779_v7 = vadd.f32 %v25569_v12, %v24409_v57  ;;  %v9372_v17 = vpop.f32.mrb[157].mxu1  ;;  %v17333_v22 = vpop.f32.mrb[157].mxu0 }
 0x76b   : > { %v18057_v41 = vmax.f32 %v17865_v10, 0.0  ;;  %v25780_v54 = vadd.f32 %v17333_v22, %v9372_v17 }
 0x76c   : > { %18251 = vst.msk [vmem:[%s31153_s11 + $0x4d8] sm:$0xff] %vm18095_vm2, %v18058_v14  ;;  %v17868_v9 = vadd.f32 %v31963_v39, %v25779_v7 }
 0x76d   : > { %18250 = vst.msk [vmem:[%s31153_s11 + $0x4d0] sm:$0xff] %vm18095_vm2, %v18057_v41  ;;  %v17867_v42 = vadd.f32 %v31963_v39, %v25780_v54  ;;  %v24412_v50 = vpop.f32.mrb[158].mxu1  ;;  %v25572_v19 = vpop.f32.mrb[158].mxu0 }
 0x76e   : > { %v18060_v44 = vmax.f32 %v17868_v9, 0.0  ;;  %v25781_v4 = vadd.f32 %v25572_v19, %v24412_v50  ;;  %v9382_v46 = vpop.f32.mrb[159].mxu1  ;;  %v17343_v49 = vpop.f32.mrb[159].mxu0 }
 0x76f   : > { %v18059_v16 = vmax.f32 %v17867_v42, 0.0  ;;  %v25782_v43 = vadd.f32 %v17343_v49, %v9382_v46 }
 0x770   : > { %18253 = vst.msk [vmem:[%s31153_s11 + $0x4e8] sm:$0xff] %vm18095_vm2, %v18060_v44  ;;  %v17870_v18 = vadd.f32 %v31963_v39, %v25781_v4 }
 0x771   : > { %18252 = vst.msk [vmem:[%s31153_s11 + $0x4e0] sm:$0xff] %vm18095_vm2, %v18059_v16  ;;  %v17869_v34 = vadd.f32 %v31963_v39, %v25782_v43  ;;  %v24415_v20 = vpop.f32.mrb[160].mxu1  ;;  %v25575_v32 = vpop.f32.mrb[160].mxu0 }
 0x772   : > { %v18062_v63 = vmax.f32 %v17870_v18, 0.0  ;;  %v25783_v24 = vadd.f32 %v25575_v32, %v24415_v20  ;;  %v9392_v1 = vpop.f32.mrb[161].mxu1  ;;  %v17353_v31 = vpop.f32.mrb[161].mxu0 }
 0x773   : > { %v18061_v25 = vmax.f32 %v17869_v34, 0.0  ;;  %v25784_v58 = vadd.f32 %v17353_v31, %v9392_v1 }
 0x774   : > { %18255 = vst.msk [vmem:[%s31153_s11 + $0x4f8] sm:$0xff] %vm18095_vm2, %v18062_v63  ;;  %v17872_v0 = vadd.f32 %v31963_v39, %v25783_v24 }
 0x775   : > { %18254 = vst.msk [vmem:[%s31153_s11 + $0x4f0] sm:$0xff] %vm18095_vm2, %v18061_v25  ;;  %v17871_v53 = vadd.f32 %v31963_v39, %v25784_v58  ;;  %v24418_v2 = vpop.f32.mrb[162].mxu1  ;;  %v25578_v13 = vpop.f32.mrb[162].mxu0 }
 0x776   : > { %v18064_v59 = vmax.f32 %v17872_v0, 0.0  ;;  %v25785_v40 = vadd.f32 %v25578_v13, %v24418_v2  ;;  %v9402_v3 = vpop.f32.mrb[163].mxu1  ;;  %v17363_v6 = vpop.f32.mrb[163].mxu0 }
 0x777   : > { %v18063_v5 = vmax.f32 %v17871_v53, 0.0  ;;  %v25786_v47 = vadd.f32 %v17363_v6, %v9402_v3 }
 0x778   : > { %18257 = vst.msk [vmem:[%s31153_s11 + $0x508] sm:$0xff] %vm18095_vm2, %v18064_v59  ;;  %v17874_v62 = vadd.f32 %v31963_v39, %v25785_v40 }
 0x779   : > { %18256 = vst.msk [vmem:[%s31153_s11 + $0x500] sm:$0xff] %vm18095_vm2, %v18063_v5  ;;  %v17873_v45 = vadd.f32 %v31963_v39, %v25786_v47  ;;  %v24421_v55 = vpop.f32.mrb[164].mxu1  ;;  %v25581_v15 = vpop.f32.mrb[164].mxu0 }
 0x77a   : > { %v18066_v51 = vmax.f32 %v17874_v62, 0.0  ;;  %v25787_v26 = vadd.f32 %v25581_v15, %v24421_v55  ;;  %v9412_v37 = vpop.f32.mrb[165].mxu1  ;;  %v17373_v33 = vpop.f32.mrb[165].mxu0 }
 0x77b   : > { %v18065_v35 = vmax.f32 %v17873_v45, 0.0  ;;  %v25788_v11 = vadd.f32 %v17373_v33, %v9412_v37 }
 0x77c   : > { %18259 = vst.msk [vmem:[%s31153_s11 + $0x518] sm:$0xff] %vm18095_vm2, %v18066_v51  ;;  %v17876_v38 = vadd.f32 %v31963_v39, %v25787_v26 }
 0x77d   : > { %18258 = vst.msk [vmem:[%s31153_s11 + $0x510] sm:$0xff] %vm18095_vm2, %v18065_v35  ;;  %v17875_v23 = vadd.f32 %v31963_v39, %v25788_v11  ;;  %v24424_v60 = vpop.f32.mrb[166].mxu1  ;;  %v25584_v30 = vpop.f32.mrb[166].mxu0 }
 0x77e   : > { %v18068_v61 = vmax.f32 %v17876_v38, 0.0  ;;  %v25789_v29 = vadd.f32 %v25584_v30, %v24424_v60  ;;  %v9422_v28 = vpop.f32.mrb[167].mxu1  ;;  %v17383_v36 = vpop.f32.mrb[167].mxu0 }
 0x77f   : > { %v18067_v52 = vmax.f32 %v17875_v23, 0.0  ;;  %v25790_v56 = vadd.f32 %v17383_v36, %v9422_v28 }
 0x780   : > { %18261 = vst.msk [vmem:[%s31153_s11 + $0x528] sm:$0xff] %vm18095_vm2, %v18068_v61  ;;  %v17878_v27 = vadd.f32 %v31963_v39, %v25789_v29 }
 0x781   : > { %18260 = vst.msk [vmem:[%s31153_s11 + $0x520] sm:$0xff] %vm18095_vm2, %v18067_v52  ;;  %v17877_v8 = vadd.f32 %v31963_v39, %v25790_v56  ;;  %v24427_v48 = vpop.f32.mrb[168].mxu1  ;;  %v25587_v21 = vpop.f32.mrb[168].mxu0 }
 0x782   : > { %v18070_v10 = vmax.f32 %v17878_v27, 0.0  ;;  %v25791_v57 = vadd.f32 %v25587_v21, %v24427_v48  ;;  %v9432_v12 = vpop.f32.mrb[169].mxu1  ;;  %v17393_v14 = vpop.f32.mrb[169].mxu0 }
 0x783   : > { %v18069_v7 = vmax.f32 %v17877_v8, 0.0  ;;  %v25792_v17 = vadd.f32 %v17393_v14, %v9432_v12 }
 0x784   : > { %18263 = vst.msk [vmem:[%s31153_s11 + $0x538] sm:$0xff] %vm18095_vm2, %v18070_v10  ;;  %v17880_v22 = vadd.f32 %v31963_v39, %v25791_v57 }
 0x785   : > { %18262 = vst.msk [vmem:[%s31153_s11 + $0x530] sm:$0xff] %vm18095_vm2, %v18069_v7  ;;  %v17879_v41 = vadd.f32 %v31963_v39, %v25792_v17  ;;  %v24430_v54 = vpop.f32.mrb[170].mxu1  ;;  %v25590_v9 = vpop.f32.mrb[170].mxu0 }
 0x786   : > { %v18072_v42 = vmax.f32 %v17880_v22, 0.0  ;;  %v25793_v50 = vadd.f32 %v25590_v9, %v24430_v54  ;;  %v9442_v19 = vpop.f32.mrb[171].mxu1  ;;  %v17403_v44 = vpop.f32.mrb[171].mxu0 }
 0x787   : > { %v18071_v4 = vmax.f32 %v17879_v41, 0.0  ;;  %v25794_v46 = vadd.f32 %v17403_v44, %v9442_v19 }
 0x788   : > { %18265 = vst.msk [vmem:[%s31153_s11 + $0x548] sm:$0xff] %vm18095_vm2, %v18072_v42  ;;  %v17882_v49 = vadd.f32 %v31963_v39, %v25793_v50 }
 0x789   : > { %18264 = vst.msk [vmem:[%s31153_s11 + $0x540] sm:$0xff] %vm18095_vm2, %v18071_v4  ;;  %v17881_v16 = vadd.f32 %v31963_v39, %v25794_v46  ;;  %v24433_v43 = vpop.f32.mrb[172].mxu1  ;;  %v25593_v18 = vpop.f32.mrb[172].mxu0 }
 0x78a   : > { %v18074_v34 = vmax.f32 %v17882_v49, 0.0  ;;  %v25795_v20 = vadd.f32 %v25593_v18, %v24433_v43  ;;  %v9452_v32 = vpop.f32.mrb[173].mxu1  ;;  %v17413_v63 = vpop.f32.mrb[173].mxu0 }
 0x78b   : > { %v18073_v24 = vmax.f32 %v17881_v16, 0.0  ;;  %v25796_v1 = vadd.f32 %v17413_v63, %v9452_v32 }
 0x78c   : > { %18267 = vst.msk [vmem:[%s31153_s11 + $0x558] sm:$0xff] %vm18095_vm2, %v18074_v34  ;;  %v17884_v31 = vadd.f32 %v31963_v39, %v25795_v20 }
 0x78d   : > { %18266 = vst.msk [vmem:[%s31153_s11 + $0x550] sm:$0xff] %vm18095_vm2, %v18073_v24  ;;  %v17883_v25 = vadd.f32 %v31963_v39, %v25796_v1  ;;  %v24436_v58 = vpop.f32.mrb[174].mxu1  ;;  %v25596_v0 = vpop.f32.mrb[174].mxu0 }
 0x78e   : > { %v18076_v53 = vmax.f32 %v17884_v31, 0.0  ;;  %v25797_v2 = vadd.f32 %v25596_v0, %v24436_v58  ;;  %v9462_v13 = vpop.f32.mrb[175].mxu1  ;;  %v17423_v59 = vpop.f32.mrb[175].mxu0 }
 0x78f   : > { %v18075_v40 = vmax.f32 %v17883_v25, 0.0  ;;  %v25798_v3 = vadd.f32 %v17423_v59, %v9462_v13 }
 0x790   : > { %18269 = vst.msk [vmem:[%s31153_s11 + $0x568] sm:$0xff] %vm18095_vm2, %v18076_v53  ;;  %v17886_v6 = vadd.f32 %v31963_v39, %v25797_v2 }
 0x791   : > { %18268 = vst.msk [vmem:[%s31153_s11 + $0x560] sm:$0xff] %vm18095_vm2, %v18075_v40  ;;  %v17885_v5 = vadd.f32 %v31963_v39, %v25798_v3  ;;  %v24439_v47 = vpop.f32.mrb[176].mxu1  ;;  %v25599_v62 = vpop.f32.mrb[176].mxu0 }
 0x792   : > { %v18078_v45 = vmax.f32 %v17886_v6, 0.0  ;;  %v25799_v55 = vadd.f32 %v25599_v62, %v24439_v47  ;;  %v9472_v15 = vpop.f32.mrb[177].mxu1  ;;  %v17433_v51 = vpop.f32.mrb[177].mxu0 }
 0x793   : > { %v18077_v26 = vmax.f32 %v17885_v5, 0.0  ;;  %v25800_v37 = vadd.f32 %v17433_v51, %v9472_v15 }
 0x794   : > { %18271 = vst.msk [vmem:[%s31153_s11 + $0x578] sm:$0xff] %vm18095_vm2, %v18078_v45  ;;  %v17888_v33 = vadd.f32 %v31963_v39, %v25799_v55 }
 0x795   : > { %18270 = vst.msk [vmem:[%s31153_s11 + $0x570] sm:$0xff] %vm18095_vm2, %v18077_v26  ;;  %v17887_v35 = vadd.f32 %v31963_v39, %v25800_v37  ;;  %v24442_v11 = vpop.f32.mrb[178].mxu1  ;;  %v25602_v38 = vpop.f32.mrb[178].mxu0 }
 0x796   : > { %v18080_v23 = vmax.f32 %v17888_v33, 0.0  ;;  %v25801_v60 = vadd.f32 %v25602_v38, %v24442_v11  ;;  %v9482_v30 = vpop.f32.mrb[179].mxu1  ;;  %v17443_v61 = vpop.f32.mrb[179].mxu0 }
 0x797   : > { %v18079_v29 = vmax.f32 %v17887_v35, 0.0  ;;  %v25802_v28 = vadd.f32 %v17443_v61, %v9482_v30 }
 0x798   : > { %18273 = vst.msk [vmem:[%s31153_s11 + $0x588] sm:$0xff] %vm18095_vm2, %v18080_v23  ;;  %v17890_v36 = vadd.f32 %v31963_v39, %v25801_v60 }
 0x799   : > { %18272 = vst.msk [vmem:[%s31153_s11 + $0x580] sm:$0xff] %vm18095_vm2, %v18079_v29  ;;  %v17889_v52 = vadd.f32 %v31963_v39, %v25802_v28  ;;  %v24445_v56 = vpop.f32.mrb[180].mxu1  ;;  %v25605_v27 = vpop.f32.mrb[180].mxu0 }
 0x79a   : > { %v18082_v8 = vmax.f32 %v17890_v36, 0.0  ;;  %v25803_v48 = vadd.f32 %v25605_v27, %v24445_v56  ;;  %v9492_v21 = vpop.f32.mrb[181].mxu1  ;;  %v17453_v10 = vpop.f32.mrb[181].mxu0 }
 0x79b   : > { %v18081_v57 = vmax.f32 %v17889_v52, 0.0  ;;  %v25804_v12 = vadd.f32 %v17453_v10, %v9492_v21 }
 0x79c   : > { %18275 = vst.msk [vmem:[%s31153_s11 + $0x598] sm:$0xff] %vm18095_vm2, %v18082_v8  ;;  %v17892_v14 = vadd.f32 %v31963_v39, %v25803_v48 }
 0x79d   : > { %18274 = vst.msk [vmem:[%s31153_s11 + $0x590] sm:$0xff] %vm18095_vm2, %v18081_v57  ;;  %v17891_v7 = vadd.f32 %v31963_v39, %v25804_v12  ;;  %v24448_v17 = vpop.f32.mrb[182].mxu1  ;;  %v25608_v22 = vpop.f32.mrb[182].mxu0 }
 0x79e   : > { %v18084_v41 = vmax.f32 %v17892_v14, 0.0  ;;  %v25805_v54 = vadd.f32 %v25608_v22, %v24448_v17  ;;  %v9502_v9 = vpop.f32.mrb[183].mxu1  ;;  %v17463_v42 = vpop.f32.mrb[183].mxu0 }
 0x79f   : > { %v18083_v50 = vmax.f32 %v17891_v7, 0.0  ;;  %v25806_v19 = vadd.f32 %v17463_v42, %v9502_v9 }
 0x7a0   : > { %18277 = vst.msk [vmem:[%s31153_s11 + $0x5a8] sm:$0xff] %vm18095_vm2, %v18084_v41  ;;  %v17894_v44 = vadd.f32 %v31963_v39, %v25805_v54 }
 0x7a1   : > { %18276 = vst.msk [vmem:[%s31153_s11 + $0x5a0] sm:$0xff] %vm18095_vm2, %v18083_v50  ;;  %v17893_v4 = vadd.f32 %v31963_v39, %v25806_v19  ;;  %v24451_v46 = vpop.f32.mrb[184].mxu1  ;;  %v25611_v49 = vpop.f32.mrb[184].mxu0 }
 0x7a2   : > { %v18086_v16 = vmax.f32 %v17894_v44, 0.0  ;;  %v25807_v43 = vadd.f32 %v25611_v49, %v24451_v46  ;;  %v9512_v18 = vpop.f32.mrb[185].mxu1  ;;  %v17473_v34 = vpop.f32.mrb[185].mxu0 }
 0x7a3   : > { %v18085_v20 = vmax.f32 %v17893_v4, 0.0  ;;  %v25808_v32 = vadd.f32 %v17473_v34, %v9512_v18 }
 0x7a4   : > { %18279 = vst.msk [vmem:[%s31153_s11 + $0x5b8] sm:$0xff] %vm18095_vm2, %v18086_v16  ;;  %v17896_v63 = vadd.f32 %v31963_v39, %v25807_v43 }
 0x7a5   : > { %18278 = vst.msk [vmem:[%s31153_s11 + $0x5b0] sm:$0xff] %vm18095_vm2, %v18085_v20  ;;  %v17895_v24 = vadd.f32 %v31963_v39, %v25808_v32  ;;  %v24454_v1 = vpop.f32.mrb[186].mxu1  ;;  %v25614_v31 = vpop.f32.mrb[186].mxu0 }
 0x7a6   : > { %v18088_v25 = vmax.f32 %v17896_v63, 0.0  ;;  %v25809_v58 = vadd.f32 %v25614_v31, %v24454_v1  ;;  %v9522_v0 = vpop.f32.mrb[187].mxu1  ;;  %v17483_v53 = vpop.f32.mrb[187].mxu0 }
 0x7a7   : > { %v18087_v2 = vmax.f32 %v17895_v24, 0.0  ;;  %v25810_v13 = vadd.f32 %v17483_v53, %v9522_v0 }
 0x7a8   : > { %18281 = vst.msk [vmem:[%s31153_s11 + $0x5c8] sm:$0xff] %vm18095_vm2, %v18088_v25  ;;  %v17898_v59 = vadd.f32 %v31963_v39, %v25809_v58 }
 0x7a9   : > { %18280 = vst.msk [vmem:[%s31153_s11 + $0x5c0] sm:$0xff] %vm18095_vm2, %v18087_v2  ;;  %v17897_v40 = vadd.f32 %v31963_v39, %v25810_v13  ;;  %v24457_v3 = vpop.f32.mrb[188].mxu1  ;;  %v25617_v6 = vpop.f32.mrb[188].mxu0 }
 0x7aa   : > { %v18090_v5 = vmax.f32 %v17898_v59, 0.0  ;;  %v25811_v47 = vadd.f32 %v25617_v6, %v24457_v3  ;;  %v9532_v62 = vpop.f32.mrb[189].mxu1  ;;  %v17493_v45 = vpop.f32.mrb[189].mxu0 }
 0x7ab   : > { %v18089_v55 = vmax.f32 %v17897_v40, 0.0  ;;  %v25812_v15 = vadd.f32 %v17493_v45, %v9532_v62 }
 0x7ac   : > { %18283 = vst.msk [vmem:[%s31153_s11 + $0x5d8] sm:$0xff] %vm18095_vm2, %v18090_v5  ;;  %v17900_v51 = vadd.f32 %v31963_v39, %v25811_v47 }
 0x7ad   : > { %18282 = vst.msk [vmem:[%s31153_s11 + $0x5d0] sm:$0xff] %vm18095_vm2, %v18089_v55  ;;  %v17899_v26 = vadd.f32 %v31963_v39, %v25812_v15  ;;  %v24460_v37 = vpop.f32.mrb[190].mxu1  ;;  %v25620_v33 = vpop.f32.mrb[190].mxu0 }
 0x7ae   : > { %v18092_v35 = vmax.f32 %v17900_v51, 0.0  ;;  %v25813_v11 = vadd.f32 %v25620_v33, %v24460_v37  ;;  %v9542_v38 = vpop.f32.mrb[191].mxu1  ;;  %v17503_v23 = vpop.f32.mrb[191].mxu0 }
 0x7af   : > { %v18091_v60 = vmax.f32 %v17899_v26, 0.0  ;;  %v25814_v30 = vadd.f32 %v17503_v23, %v9542_v38 }
 0x7b0   : > { %18285 = vst.msk [vmem:[%s31153_s11 + $0x5e8] sm:$0xff] %vm18095_vm2, %v18092_v35  ;;  %v17902_v61 = vadd.f32 %v31963_v39, %v25813_v11 }
 0x7b1   : > { %18284 = vst.msk [vmem:[%s31153_s11 + $0x5e0] sm:$0xff] %vm18095_vm2, %v18091_v60  ;;  %v17901_v29 = vadd.f32 %v31963_v39, %v25814_v30 }
 0x7b2   : > { %v18094_v28 = vmax.f32 %v17902_v61, 0.0 }
 0x7b3   : > { %v18093_v36 = vmax.f32 %v17901_v29, 0.0 }
 0x7b4   : > { %18287 = vst.msk [vmem:[%s31153_s11 + $0x5f8] sm:$0xff] %vm18095_vm2, %v18094_v28 }
 0x7b5   : > { %18286 = vst.msk [vmem:[%s31153_s11 + $0x5f0] sm:$0xff] %vm18095_vm2, %v18093_v36 }
 0x7b6   : > { %27220 = shalt.err (!%p27217_p3)
}
 0x7b7   : > { %s27221_s6 = scalar_lea.hbm %s32154_s28, 24576  ;;  %s27225_s10 = scalar_lea.hbm %s32208_s3, 49152 }
 0x7b8   : > { %p27222_p4 = scmp.ne.s32.totalorder %s32154_s28, %s27221_s6  ;;  %p27226_p9 = scmp.lt.u32.totalorder %s32154_s28, %s32208_s3 }
 0x7b9   : > { %p27227_p10 = scmp.lt.u32.totalorder %s27225_s10, %s27221_s6  ;;  %p27229_p12 = scmp.lt.u32.totalorder %s27221_s6, %s32154_s28 }
 0x7ba   : > { %p27223_p7 = pnand %p27222_p4, %p27332_p5 }
 0x7bb   : > { %p27228_p11 = por %p27227_p10, %p27226_p9 }
 0x7bc   : > { %p27224_p8 = pneg %p27223_p7 }
 0x7bd   : > { %p27230_p13 = por %p27229_p12, %p27228_p11 }
 0x7bf   : > { %p27231_p0 = pnand %p27230_p13, %p27224_p8 }
 0x7c1   : > { %27234 = shalt.err (!%p27231_p0)
}
 0x7c2   : > { %s27272_s19 = smov 128   ;;  %s27273_s9 = smov 8  }
 0x7c3   : > { %27162 = dma.vmem_to_hbm [thread:$0]  (%p27332_p5), %s32156_s25, 24576, %s32154_s28, %s32164_s16, %s27272_s19, %s27272_s19, %s27273_s9  }
 0x7c4 PF: > { %p27168_p1 = scmp.ge.s32.totalorder %s27269_s15, 2  ;;  %s18318_s20 = sand.u32 1, %s27257_s12  }
 0x7c5   : > { %s18319_s24 = scalar_lea.sflag [#allocation3], %s18318_s20 }
 0x7c6   : > { %p27165_p2 = pnand %p27168_p1, %p27336_p6 }
 0x7c8   : > { %27252 = dma.done.wait (!%p27165_p2), %s18319_s24, 24576  }
 0x7c9   : > { %27254 = vsyncadd (!%p27165_p2), %s18319_s24, 4294942720  ;;  %p13_p3 = scmp.ge.s32.totalorder %s27319_s18, 4   ;;  %s32435_s12 = smov %s27261_s13 }
 0x7ca   : > { %s32436_s13 = smov %s27265_s14  ;;  %s32437_s14 = smov %s27330_s21 }
 0x7cb   : > { %s32438_s15 = smov %s27319_s18  ;;  %15 = sbr.rel (!%p13_p3) target bundleno = 3 (0x3), region = 77 }
 0x7d2   :  { %18324 = vsyncpa [#allocation3], 1 }
 0x7d3   :  { %18326 = vsyncpa [#allocation3 + $0x1], 1 }

</bundles_post_ra>
